<compile_context>
chip_gen: v5e
topology: v5e:2x2
jax: 0.10.0
libtpu: 0.0.40
codegen_flags: <defaults>
</compile_context>

<pallas_src>
import functools

import jax
import jax.numpy as jnp
from jax.experimental import pallas as pl
from jax.experimental.pallas import tpu as pltpu

LANE = 128

_PARALLEL = pltpu.CompilerParams(dimension_semantics=("parallel",))
_ARBITRARY = pltpu.CompilerParams(dimension_semantics=("arbitrary",))


def _round_up(x, m):
    return (x + m - 1) // m * m


# ----------------------------------------------------------------------------
# Pallas kernels
# ----------------------------------------------------------------------------

def _conv1x1_kernel(x_ref, w_ref, o_ref):
    # x: (1, HW, Cin_p) bf16, w: (Cin_p, Cout_p) bf16 (resident), out bf16.
    o_ref[0] = jnp.dot(
        x_ref[0], w_ref[...], preferred_element_type=jnp.float32
    ).astype(o_ref.dtype)


def _conv3x3_kernel(x_ref, w_ref, o_ref, *, wp, h_out, w_out):
    # 3x3 stride-1 conv as 9 shifted 2-D matmuls over the flattened padded image.
    # x: (1, rows, Cin_p) bf16 where rows = (hp+1)*wp (one guard row at the bottom),
    # w: (9, Cin_p, Cout_p) bf16, out: (1, h_out*w_out, Cout_p) bf16.
    x = x_ref[0]
    m = h_out * wp                      # accumulate on the padded-width grid
    acc = None
    for kh in range(3):
        for kw in range(3):
            off = kh * wp + kw          # static shifted slab, stays in VMEM
            part = jnp.dot(x[off:off + m, :], w_ref[kh * 3 + kw],
                           preferred_element_type=jnp.float32)
            acc = part if acc is None else acc + part
    acc = acc.astype(o_ref.dtype)
    # Drop the (wp - w_out) garbage columns per output row while storing.
    for oh in range(h_out):
        o_ref[0, oh * w_out:(oh + 1) * w_out, :] = acc[oh * wp:oh * wp + w_out, :]


def _bn_stats_kernel(x_ref, stats_ref, *, inv_count, eps):
    # Pass 1: accumulate per-channel sum / sum-of-squares across the batch grid
    # (grid axis 'arbitrary'); finalize mean and rsqrt(var+eps) on the last step.
    b = pl.program_id(0)

    @pl.when(b == 0)
    def _():
        stats_ref[...] = jnp.zeros_like(stats_ref)

    x = x_ref[0].astype(jnp.float32)                         # (HW, Cp)
    stats_ref[0:1, :] += jnp.sum(x, axis=0, keepdims=True)
    stats_ref[1:2, :] += jnp.sum(x * x, axis=0, keepdims=True)

    @pl.when(b == pl.num_programs(0) - 1)
    def _():
        mean = stats_ref[0:1, :] * inv_count
        var = stats_ref[1:2, :] * inv_count - mean * mean
        stats_ref[0:1, :] = mean
        stats_ref[1:2, :] = jax.lax.rsqrt(var + eps)


def _bn_norm_kernel(x_ref, stats_ref, *rest, relu, has_residual):
    # Pass 2: normalize (+ optional residual, + optional ReLU); f32 VPU math, bf16 out.
    if has_residual:
        res_ref, o_ref = rest
    else:
        (o_ref,) = rest
    x = x_ref[0].astype(jnp.float32)                         # (HW, Cp)
    y = (x - stats_ref[0:1, :]) * stats_ref[1:2, :]
    if has_residual:
        y = y + res_ref[0].astype(jnp.float32)
    if relu:
        y = jnp.maximum(y, 0.0)
    o_ref[0] = y.astype(o_ref.dtype)


def _head_kernel(x_ref, w_ref, b_ref, o_ref, *, inv_hw):
    # Fused AdaptiveAvgPool2d(1) + Linear for one batch element.
    x = x_ref[0].astype(jnp.float32)                         # (HW, Cp)
    pooled = jnp.sum(x, axis=0, keepdims=True) * inv_hw      # (1, Cp) f32
    logits = jnp.dot(pooled.astype(jnp.bfloat16), w_ref[...],
                     preferred_element_type=jnp.float32) + b_ref[...]
    o_ref[0] = logits


# ----------------------------------------------------------------------------
# Kernel wrappers
# ----------------------------------------------------------------------------

def conv1x1(x_flat, w):
    n, hw, cp = x_flat.shape
    cout_p = w.shape[-1]
    return pl.pallas_call(
        _conv1x1_kernel,
        out_shape=jax.ShapeDtypeStruct((n, hw, cout_p), jnp.bfloat16),
        grid=(n,),
        in_specs=[pl.BlockSpec((1, hw, cp), lambda b: (b, 0, 0)),
                  pl.BlockSpec((cp, cout_p), lambda b: (0, 0))],
        out_specs=pl.BlockSpec((1, hw, cout_p), lambda b: (b, 0, 0)),
        compiler_params=_PARALLEL,
    )(x_flat, w)


def conv3x3(x_flat, w9, h, w, padding):
    n, _, cp = x_flat.shape
    cout_p = w9.shape[-1]
    x4 = x_flat.reshape(n, h, w, cp)
    # Spatial zero-pad; one extra guard row at the bottom keeps the in-kernel
    # shifted slabs in range (its zeros only feed discarded accumulator rows).
    x4 = jnp.pad(x4, ((0, 0), (padding, padding + 1), (padding, padding), (0, 0)))
    hp, wp = h + 2 * padding, w + 2 * padding
    h_out, w_out = hp - 2, wp - 2
    rows = (hp + 1) * wp
    xf = x4.reshape(n, rows, cp)
    out = pl.pallas_call(
        functools.partial(_conv3x3_kernel, wp=wp, h_out=h_out, w_out=w_out),
        out_shape=jax.ShapeDtypeStruct((n, h_out * w_out, cout_p), jnp.bfloat16),
        grid=(n,),
        in_specs=[pl.BlockSpec((1, rows, cp), lambda b: (b, 0, 0)),
                  pl.BlockSpec((9, cp, cout_p), lambda b: (0, 0, 0))],
        out_specs=pl.BlockSpec((1, h_out * w_out, cout_p), lambda b: (b, 0, 0)),
        compiler_params=_PARALLEL,
    )(xf, w9)
    return out, h_out, w_out


def bn_act(x_flat, residual=None, relu=True, eps=1e-5):
    """Training-mode BatchNorm (gamma=1, beta=0, biased batch stats) + residual + ReLU."""
    n, hw, cp = x_flat.shape
    stats = pl.pallas_call(
        functools.partial(_bn_stats_kernel, inv_count=1.0 / (n * hw), eps=eps),
        out_shape=jax.ShapeDtypeStruct((2, cp), jnp.float32),
        grid=(n,),
        in_specs=[pl.BlockSpec((1, hw, cp), lambda b: (b, 0, 0))],
        out_specs=pl.BlockSpec((2, cp), lambda b: (0, 0)),
        compiler_params=_ARBITRARY,
    )(x_flat)

    has_res = residual is not None
    in_specs = [pl.BlockSpec((1, hw, cp), lambda b: (b, 0, 0)),
                pl.BlockSpec((2, cp), lambda b: (0, 0))]
    args = [x_flat, stats]
    if has_res:
        in_specs.append(pl.BlockSpec((1, hw, cp), lambda b: (b, 0, 0)))
        args.append(residual)
    return pl.pallas_call(
        functools.partial(_bn_norm_kernel, relu=relu, has_residual=has_res),
        out_shape=jax.ShapeDtypeStruct((n, hw, cp), jnp.bfloat16),
        grid=(n,),
        in_specs=in_specs,
        out_specs=pl.BlockSpec((1, hw, cp), lambda b: (b, 0, 0)),
        compiler_params=_PARALLEL,
    )(*args)


def head(x_flat, fc_w, fc_b):
    n, hw, cp = x_flat.shape
    ncp = fc_w.shape[-1]
    out = pl.pallas_call(
        functools.partial(_head_kernel, inv_hw=1.0 / hw),
        out_shape=jax.ShapeDtypeStruct((n, 1, ncp), jnp.float32),
        grid=(n,),
        in_specs=[pl.BlockSpec((1, hw, cp), lambda b: (b, 0, 0)),
                  pl.BlockSpec((cp, ncp), lambda b: (0, 0)),
                  pl.BlockSpec((1, ncp), lambda b: (0, 0))],
        out_specs=pl.BlockSpec((1, 1, ncp), lambda b: (b, 0, 0)),
        compiler_params=_PARALLEL,
    )(x_flat, fc_w, fc_b)
    return out.reshape(n, ncp)


# ----------------------------------------------------------------------------
# Model: parameters + forward
# ----------------------------------------------------------------------------

def _kaiming(key, shape, fan_in):
    # kaiming_normal_(mode='fan_in', nonlinearity='relu'): std = sqrt(2 / fan_in)
    return (2.0 / fan_in) ** 0.5 * jax.random.normal(key, shape, jnp.float32)


def init_model(key, cfg):
    keys = iter(jax.random.split(key, 64))

    def conv_w(k, ci, co):
        # Conv weight generated as (k*k, ci, co), then channel-padded once to
        # lane-dense bf16 (k*k, cip, cop); 1x1 convs squeeze the tap axis.
        w = _kaiming(next(keys), (k * k, ci, co), ci * k * k)
        cip, cop = _round_up(ci, LANE), _round_up(co, LANE)
        wp = jnp.zeros((k * k, cip, cop), jnp.bfloat16)
        wp = wp.at[:, :ci, :co].set(w.astype(jnp.bfloat16))
        return wp if k > 1 else wp[0]

    params = {'conv1': conv_w(3, 3, cfg['input_conv_filters'])}
    arch, param_groups = [], []
    c_in = cfg['input_conv_filters']
    for c_out, c_b, n_blocks, stride in zip(cfg['group_filters'],
                                            cfg['group_bottlenecks'],
                                            cfg['group_n_blocks'],
                                            cfg['group_strides']):
        blocks_arch, blocks_params = [], []
        for b in range(n_blocks):
            s = stride if b == 0 else 1
            ci = c_in if b == 0 else c_out
            downsample = (ci != c_out) or (s != 1)
            blk = {'conv1': conv_w(1, ci, c_b),
                   'conv2': conv_w(3, c_b, c_b),
                   'conv3': conv_w(1, c_b, c_out)}
            if downsample:  # shortcut option 'B': 1x1 conv (stride s) + BN
                blk['conv_sc'] = conv_w(1, ci, c_out)
            blocks_params.append(blk)
            blocks_arch.append({'stride': s, 'downsample': downsample})
        param_groups.append(blocks_params)
        arch.append(blocks_arch)
        c_in = c_out
    params['groups'] = param_groups

    c_last = cfg['group_filters'][-1]
    cp_last = _round_up(c_last, LANE)
    clsp = _round_up(cfg['n_classes'], LANE)
    fc = _kaiming(next(keys), (c_last, cfg['n_classes']), c_last)
    params['fc_w'] = jnp.zeros((cp_last, clsp), jnp.bfloat16).at[
        :c_last, :cfg['n_classes']].set(fc.astype(jnp.bfloat16))
    params['fc_b'] = jnp.zeros((1, clsp), jnp.float32)
    return arch, params


def bottleneck_block(x_flat, p, h, w, stride, downsample):
    n, _, cp = x_flat.shape
    if stride > 1:
        # 1x1 conv with stride s just reads every s-th pixel: subsample in glue
        # (cheap XLA slice), reuse for both conv1 and the shortcut conv.
        x4 = x_flat.reshape(n, h, w, cp)[:, ::stride, ::stride, :]
        h_in, w_in = x4.shape[1], x4.shape[2]
        xin = x4.reshape(n, h_in * w_in, cp)
    else:
        xin, h_in, w_in = x_flat, h, w

    out = conv1x1(xin, p['conv1'])
    out = bn_act(out, relu=True)
    out, _, _ = conv3x3(out, p['conv2'], h_in, w_in, padding=1)
    out = bn_act(out, relu=True)
    out = conv1x1(out, p['conv3'])
    if downsample:
        sc = bn_act(conv1x1(xin, p['conv_sc']), relu=False)
    else:
        sc = x_flat
    out = bn_act(out, residual=sc, relu=True)
    return out, h_in, w_in


def forward(params, x_nchw, arch, n_classes):
    n, c, h, w = x_nchw.shape
    cp = _round_up(c, LANE)
    # NCHW -> NHWC, pad channels to 128 once, cast to bf16, flatten spatial dims.
    x = jnp.transpose(x_nchw, (0, 2, 3, 1))
    x = jnp.pad(x, ((0, 0), (0, 0), (0, 0), (0, cp - c)))
    x = x.astype(jnp.bfloat16).reshape(n, h * w, cp)

    x, h, w = conv3x3(x, params['conv1'], h, w, padding=0)  # nn.Conv2d(3, f, 3, 1): pad=0
    x = bn_act(x, relu=True)
    for gi, group in enumerate(arch):
        for bi, blk in enumerate(group):
            x, h, w = bottleneck_block(x, params['groups'][gi][bi], h, w,
                                       blk['stride'], blk['downsample'])
    logits = head(x, params['fc_w'], params['fc_b'])
    return logits[:, :n_classes]


# TODO(synk): BatchNorm running-mean/var buffer updates (a training-time side effect) are
# not modeled; they do not affect the training-mode forward output.

if __name__ == "__main__":
    cfg = {
        'n_classes': 10,
        'input_conv_filters': 8,
        'group_filters': [16, 32, 64],
        'group_bottlenecks': [4, 8, 16],
        'group_n_blocks': [2, 1, 1],
        'group_strides': [1, 2, 2],
    }
    key = jax.random.PRNGKey(0)
    k_params, k_x = jax.random.split(key)
    arch, params = init_model(k_params, cfg)

    x = jax.random.normal(k_x, (2, 3, 16, 16), jnp.float32)  # NCHW, like PyTorch

    fwd = jax.jit(lambda p, xx: forward(p, xx, arch, cfg['n_classes']))
    logits = fwd(params, x)
    jax.block_until_ready(logits)
    assert logits.shape == (2, cfg['n_classes'])
    assert bool(jnp.all(jnp.isfinite(logits)))
    print("KERNEL_OK")
</pallas_src>

<mosaic_0001>
module attributes {stable_mosaic.version = 11 : i64} {
  func.func @_conv3x3_kernel(%arg0: i32, %arg1: memref<1x272x128xbf16, #tpu.memory_space<vmem>>, %arg2: memref<9x128x128xbf16, #tpu.memory_space<vmem>>, %arg3: memref<1x196x128xbf16, #tpu.memory_space<vmem>>) attributes {dimension_semantics = [#tpu.dimension_semantics<parallel>], iteration_bounds = array<i64: 2>, scalar_prefetch = 0 : i64, scratch_operands = 0 : i64, tpu.core_type = #tpu.core_type<tc>, window_params = [{transform_indices = @transform_0, window_bounds = array<i64: 1, 272, 128>}, {pipeline_mode = #tpu.pipeline_mode<synchronous>, transform_indices = @transform_1, window_bounds = array<i64: 9, 128, 128>}, {transform_indices = @transform_2, window_bounds = array<i64: 1, 196, 128>}]} {
    %c0 = arith.constant 0 : index
    %c0_0 = arith.constant 0 : index
    %c0_1 = arith.constant 0 : index
    %0 = vector.load %arg1[%c0, %c0_0, %c0_1] : memref<1x272x128xbf16, #tpu.memory_space<vmem>>, vector<1x272x128xbf16>
    %1 = vector.shape_cast %0 : vector<1x272x128xbf16> to vector<272x128xbf16>
    %2 = vector.extract_strided_slice %1 {offsets = [0, 0], sizes = [224, 128], strides = [1, 1]} : vector<272x128xbf16> to vector<224x128xbf16>
    %c0_2 = arith.constant 0 : index
    %c0_3 = arith.constant 0 : index
    %c0_4 = arith.constant 0 : index
    %3 = vector.load %arg2[%c0_2, %c0_3, %c0_4] : memref<9x128x128xbf16, #tpu.memory_space<vmem>>, vector<1x128x128xbf16>
    %4 = vector.shape_cast %3 : vector<1x128x128xbf16> to vector<128x128xbf16>
    %cst = arith.constant dense<0.000000e+00> : vector<224x128xf32>
    %5 = tpu.matmul %2, %4, %cst {dimension_numbers = #tpu.dot_dimension_numbers<[1], [0], [0], [1], [0, 0, 1, 1], [], []>} : vector<224x128xbf16>, vector<128x128xbf16>, vector<224x128xf32> -> vector<224x128xf32>
    %6 = vector.extract_strided_slice %1 {offsets = [1, 0], sizes = [224, 128], strides = [1, 1]} : vector<272x128xbf16> to vector<224x128xbf16>
    %c1 = arith.constant 1 : index
    %c0_5 = arith.constant 0 : index
    %c0_6 = arith.constant 0 : index
    %7 = vector.load %arg2[%c1, %c0_5, %c0_6] : memref<9x128x128xbf16, #tpu.memory_space<vmem>>, vector<1x128x128xbf16>
    %8 = vector.shape_cast %7 : vector<1x128x128xbf16> to vector<128x128xbf16>
    %cst_7 = arith.constant dense<0.000000e+00> : vector<224x128xf32>
    %9 = tpu.matmul %6, %8, %cst_7 {dimension_numbers = #tpu.dot_dimension_numbers<[1], [0], [0], [1], [0, 0, 1, 1], [], []>} : vector<224x128xbf16>, vector<128x128xbf16>, vector<224x128xf32> -> vector<224x128xf32>
    %10 = arith.addf %5, %9 : vector<224x128xf32>
    %11 = vector.extract_strided_slice %1 {offsets = [2, 0], sizes = [224, 128], strides = [1, 1]} : vector<272x128xbf16> to vector<224x128xbf16>
    %c2 = arith.constant 2 : index
    %c0_8 = arith.constant 0 : index
    %c0_9 = arith.constant 0 : index
    %12 = vector.load %arg2[%c2, %c0_8, %c0_9] : memref<9x128x128xbf16, #tpu.memory_space<vmem>>, vector<1x128x128xbf16>
    %13 = vector.shape_cast %12 : vector<1x128x128xbf16> to vector<128x128xbf16>
    %cst_10 = arith.constant dense<0.000000e+00> : vector<224x128xf32>
    %14 = tpu.matmul %11, %13, %cst_10 {dimension_numbers = #tpu.dot_dimension_numbers<[1], [0], [0], [1], [0, 0, 1, 1], [], []>} : vector<224x128xbf16>, vector<128x128xbf16>, vector<224x128xf32> -> vector<224x128xf32>
    %15 = arith.addf %10, %14 : vector<224x128xf32>
    %16 = vector.extract_strided_slice %1 {offsets = [16, 0], sizes = [224, 128], strides = [1, 1]} : vector<272x128xbf16> to vector<224x128xbf16>
    %c3 = arith.constant 3 : index
    %c0_11 = arith.constant 0 : index
    %c0_12 = arith.constant 0 : index
    %17 = vector.load %arg2[%c3, %c0_11, %c0_12] : memref<9x128x128xbf16, #tpu.memory_space<vmem>>, vector<1x128x128xbf16>
    %18 = vector.shape_cast %17 : vector<1x128x128xbf16> to vector<128x128xbf16>
    %cst_13 = arith.constant dense<0.000000e+00> : vector<224x128xf32>
    %19 = tpu.matmul %16, %18, %cst_13 {dimension_numbers = #tpu.dot_dimension_numbers<[1], [0], [0], [1], [0, 0, 1, 1], [], []>} : vector<224x128xbf16>, vector<128x128xbf16>, vector<224x128xf32> -> vector<224x128xf32>
    %20 = arith.addf %15, %19 : vector<224x128xf32>
    %21 = vector.extract_strided_slice %1 {offsets = [17, 0], sizes = [224, 128], strides = [1, 1]} : vector<272x128xbf16> to vector<224x128xbf16>
    %c4 = arith.constant 4 : index
    %c0_14 = arith.constant 0 : index
    %c0_15 = arith.constant 0 : index
    %22 = vector.load %arg2[%c4, %c0_14, %c0_15] : memref<9x128x128xbf16, #tpu.memory_space<vmem>>, vector<1x128x128xbf16>
    %23 = vector.shape_cast %22 : vector<1x128x128xbf16> to vector<128x128xbf16>
    %cst_16 = arith.constant dense<0.000000e+00> : vector<224x128xf32>
    %24 = tpu.matmul %21, %23, %cst_16 {dimension_numbers = #tpu.dot_dimension_numbers<[1], [0], [0], [1], [0, 0, 1, 1], [], []>} : vector<224x128xbf16>, vector<128x128xbf16>, vector<224x128xf32> -> vector<224x128xf32>
    %25 = arith.addf %20, %24 : vector<224x128xf32>
    %26 = vector.extract_strided_slice %1 {offsets = [18, 0], sizes = [224, 128], strides = [1, 1]} : vector<272x128xbf16> to vector<224x128xbf16>
    %c5 = arith.constant 5 : index
    %c0_17 = arith.constant 0 : index
    %c0_18 = arith.constant 0 : index
    %27 = vector.load %arg2[%c5, %c0_17, %c0_18] : memref<9x128x128xbf16, #tpu.memory_space<vmem>>, vector<1x128x128xbf16>
    %28 = vector.shape_cast %27 : vector<1x128x128xbf16> to vector<128x128xbf16>
    %cst_19 = arith.constant dense<0.000000e+00> : vector<224x128xf32>
    %29 = tpu.matmul %26, %28, %cst_19 {dimension_numbers = #tpu.dot_dimension_numbers<[1], [0], [0], [1], [0, 0, 1, 1], [], []>} : vector<224x128xbf16>, vector<128x128xbf16>, vector<224x128xf32> -> vector<224x128xf32>
    %30 = arith.addf %25, %29 : vector<224x128xf32>
    %31 = vector.extract_strided_slice %1 {offsets = [32, 0], sizes = [224, 128], strides = [1, 1]} : vector<272x128xbf16> to vector<224x128xbf16>
    %c6 = arith.constant 6 : index
    %c0_20 = arith.constant 0 : index
    %c0_21 = arith.constant 0 : index
    %32 = vector.load %arg2[%c6, %c0_20, %c0_21] : memref<9x128x128xbf16, #tpu.memory_space<vmem>>, vector<1x128x128xbf16>
    %33 = vector.shape_cast %32 : vector<1x128x128xbf16> to vector<128x128xbf16>
    %cst_22 = arith.constant dense<0.000000e+00> : vector<224x128xf32>
    %34 = tpu.matmul %31, %33, %cst_22 {dimension_numbers = #tpu.dot_dimension_numbers<[1], [0], [0], [1], [0, 0, 1, 1], [], []>} : vector<224x128xbf16>, vector<128x128xbf16>, vector<224x128xf32> -> vector<224x128xf32>
    %35 = arith.addf %30, %34 : vector<224x128xf32>
    %36 = vector.extract_strided_slice %1 {offsets = [33, 0], sizes = [224, 128], strides = [1, 1]} : vector<272x128xbf16> to vector<224x128xbf16>
    %c7 = arith.constant 7 : index
    %c0_23 = arith.constant 0 : index
    %c0_24 = arith.constant 0 : index
    %37 = vector.load %arg2[%c7, %c0_23, %c0_24] : memref<9x128x128xbf16, #tpu.memory_space<vmem>>, vector<1x128x128xbf16>
    %38 = vector.shape_cast %37 : vector<1x128x128xbf16> to vector<128x128xbf16>
    %cst_25 = arith.constant dense<0.000000e+00> : vector<224x128xf32>
    %39 = tpu.matmul %36, %38, %cst_25 {dimension_numbers = #tpu.dot_dimension_numbers<[1], [0], [0], [1], [0, 0, 1, 1], [], []>} : vector<224x128xbf16>, vector<128x128xbf16>, vector<224x128xf32> -> vector<224x128xf32>
    %40 = arith.addf %35, %39 : vector<224x128xf32>
    %41 = vector.extract_strided_slice %1 {offsets = [34, 0], sizes = [224, 128], strides = [1, 1]} : vector<272x128xbf16> to vector<224x128xbf16>
    %c8 = arith.constant 8 : index
    %c0_26 = arith.constant 0 : index
    %c0_27 = arith.constant 0 : index
    %42 = vector.load %arg2[%c8, %c0_26, %c0_27] : memref<9x128x128xbf16, #tpu.memory_space<vmem>>, vector<1x128x128xbf16>
    %43 = vector.shape_cast %42 : vector<1x128x128xbf16> to vector<128x128xbf16>
    %cst_28 = arith.constant dense<0.000000e+00> : vector<224x128xf32>
    %44 = tpu.matmul %41, %43, %cst_28 {dimension_numbers = #tpu.dot_dimension_numbers<[1], [0], [0], [1], [0, 0, 1, 1], [], []>} : vector<224x128xbf16>, vector<128x128xbf16>, vector<224x128xf32> -> vector<224x128xf32>
    %45 = arith.addf %40, %44 : vector<224x128xf32>
    %46 = arith.truncf %45 : vector<224x128xf32> to vector<224x128xbf16>
    %47 = vector.extract_strided_slice %46 {offsets = [0, 0], sizes = [14, 128], strides = [1, 1]} : vector<224x128xbf16> to vector<14x128xbf16>
    %c0_29 = arith.constant 0 : index
    %c0_30 = arith.constant 0 : index
    %c0_31 = arith.constant 0 : index
    %48 = vector.load %arg3[%c0_29, %c0_30, %c0_31] : memref<1x196x128xbf16, #tpu.memory_space<vmem>>, vector<1x14x128xbf16>
    %49 = vector.shape_cast %48 : vector<1x14x128xbf16> to vector<14x128xbf16>
    %50 = vector.shape_cast %47 : vector<14x128xbf16> to vector<1x14x128xbf16>
    tpu.vector_store %arg3[%c0_29, %c0_30, %c0_31], %50 {strides = array<i32>} : memref<1x196x128xbf16, #tpu.memory_space<vmem>>, vector<1x14x128xbf16>,
    %51 = vector.extract_strided_slice %46 {offsets = [16, 0], sizes = [14, 128], strides = [1, 1]} : vector<224x128xbf16> to vector<14x128xbf16>
    %c0_32 = arith.constant 0 : index
    %c14 = arith.constant 14 : index
    %c0_33 = arith.constant 0 : index
    %52 = vector.load %arg3[%c0_32, %c14, %c0_33] : memref<1x196x128xbf16, #tpu.memory_space<vmem>>, vector<1x14x128xbf16>
    %53 = vector.shape_cast %52 : vector<1x14x128xbf16> to vector<14x128xbf16>
    %54 = vector.shape_cast %51 : vector<14x128xbf16> to vector<1x14x128xbf16>
    tpu.vector_store %arg3[%c0_32, %c14, %c0_33], %54 {strides = array<i32>} : memref<1x196x128xbf16, #tpu.memory_space<vmem>>, vector<1x14x128xbf16>,
    %55 = vector.extract_strided_slice %46 {offsets = [32, 0], sizes = [14, 128], strides = [1, 1]} : vector<224x128xbf16> to vector<14x128xbf16>
    %c0_34 = arith.constant 0 : index
    %c28 = arith.constant 28 : index
    %c0_35 = arith.constant 0 : index
    %56 = vector.load %arg3[%c0_34, %c28, %c0_35] : memref<1x196x128xbf16, #tpu.memory_space<vmem>>, vector<1x14x128xbf16>
    %57 = vector.shape_cast %56 : vector<1x14x128xbf16> to vector<14x128xbf16>
    %58 = vector.shape_cast %55 : vector<14x128xbf16> to vector<1x14x128xbf16>
    tpu.vector_store %arg3[%c0_34, %c28, %c0_35], %58 {strides = array<i32>} : memref<1x196x128xbf16, #tpu.memory_space<vmem>>, vector<1x14x128xbf16>,
    %59 = vector.extract_strided_slice %46 {offsets = [48, 0], sizes = [14, 128], strides = [1, 1]} : vector<224x128xbf16> to vector<14x128xbf16>
    %c0_36 = arith.constant 0 : index
    %c42 = arith.constant 42 : index
    %c0_37 = arith.constant 0 : index
    %60 = vector.load %arg3[%c0_36, %c42, %c0_37] : memref<1x196x128xbf16, #tpu.memory_space<vmem>>, vector<1x14x128xbf16>
    %61 = vector.shape_cast %60 : vector<1x14x128xbf16> to vector<14x128xbf16>
    %62 = vector.shape_cast %59 : vector<14x128xbf16> to vector<1x14x128xbf16>
    tpu.vector_store %arg3[%c0_36, %c42, %c0_37], %62 {strides = array<i32>} : memref<1x196x128xbf16, #tpu.memory_space<vmem>>, vector<1x14x128xbf16>,
    %63 = vector.extract_strided_slice %46 {offsets = [64, 0], sizes = [14, 128], strides = [1, 1]} : vector<224x128xbf16> to vector<14x128xbf16>
    %c0_38 = arith.constant 0 : index
    %c56 = arith.constant 56 : index
    %c0_39 = arith.constant 0 : index
    %64 = vector.load %arg3[%c0_38, %c56, %c0_39] : memref<1x196x128xbf16, #tpu.memory_space<vmem>>, vector<1x14x128xbf16>
    %65 = vector.shape_cast %64 : vector<1x14x128xbf16> to vector<14x128xbf16>
    %66 = vector.shape_cast %63 : vector<14x128xbf16> to vector<1x14x128xbf16>
    tpu.vector_store %arg3[%c0_38, %c56, %c0_39], %66 {strides = array<i32>} : memref<1x196x128xbf16, #tpu.memory_space<vmem>>, vector<1x14x128xbf16>,
    %67 = vector.extract_strided_slice %46 {offsets = [80, 0], sizes = [14, 128], strides = [1, 1]} : vector<224x128xbf16> to vector<14x128xbf16>
    %c0_40 = arith.constant 0 : index
    %c70 = arith.constant 70 : index
    %c0_41 = arith.constant 0 : index
    %68 = vector.load %arg3[%c0_40, %c70, %c0_41] : memref<1x196x128xbf16, #tpu.memory_space<vmem>>, vector<1x14x128xbf16>
    %69 = vector.shape_cast %68 : vector<1x14x128xbf16> to vector<14x128xbf16>
    %70 = vector.shape_cast %67 : vector<14x128xbf16> to vector<1x14x128xbf16>
    tpu.vector_store %arg3[%c0_40, %c70, %c0_41], %70 {strides = array<i32>} : memref<1x196x128xbf16, #tpu.memory_space<vmem>>, vector<1x14x128xbf16>,
    %71 = vector.extract_strided_slice %46 {offsets = [96, 0], sizes = [14, 128], strides = [1, 1]} : vector<224x128xbf16> to vector<14x128xbf16>
    %c0_42 = arith.constant 0 : index
    %c84 = arith.constant 84 : index
    %c0_43 = arith.constant 0 : index
    %72 = vector.load %arg3[%c0_42, %c84, %c0_43] : memref<1x196x128xbf16, #tpu.memory_space<vmem>>, vector<1x14x128xbf16>
    %73 = vector.shape_cast %72 : vector<1x14x128xbf16> to vector<14x128xbf16>
    %74 = vector.shape_cast %71 : vector<14x128xbf16> to vector<1x14x128xbf16>
    tpu.vector_store %arg3[%c0_42, %c84, %c0_43], %74 {strides = array<i32>} : memref<1x196x128xbf16, #tpu.memory_space<vmem>>, vector<1x14x128xbf16>,
    %75 = vector.extract_strided_slice %46 {offsets = [112, 0], sizes = [14, 128], strides = [1, 1]} : vector<224x128xbf16> to vector<14x128xbf16>
    %c0_44 = arith.constant 0 : index
    %c98 = arith.constant 98 : index
    %c0_45 = arith.constant 0 : index
    %76 = vector.load %arg3[%c0_44, %c98, %c0_45] : memref<1x196x128xbf16, #tpu.memory_space<vmem>>, vector<1x14x128xbf16>
    %77 = vector.shape_cast %76 : vector<1x14x128xbf16> to vector<14x128xbf16>
    %78 = vector.shape_cast %75 : vector<14x128xbf16> to vector<1x14x128xbf16>
    tpu.vector_store %arg3[%c0_44, %c98, %c0_45], %78 {strides = array<i32>} : memref<1x196x128xbf16, #tpu.memory_space<vmem>>, vector<1x14x128xbf16>,
    %79 = vector.extract_strided_slice %46 {offsets = [128, 0], sizes = [14, 128], strides = [1, 1]} : vector<224x128xbf16> to vector<14x128xbf16>
    %c0_46 = arith.constant 0 : index
    %c112 = arith.constant 112 : index
    %c0_47 = arith.constant 0 : index
    %80 = vector.load %arg3[%c0_46, %c112, %c0_47] : memref<1x196x128xbf16, #tpu.memory_space<vmem>>, vector<1x14x128xbf16>
    %81 = vector.shape_cast %80 : vector<1x14x128xbf16> to vector<14x128xbf16>
    %82 = vector.shape_cast %79 : vector<14x128xbf16> to vector<1x14x128xbf16>
    tpu.vector_store %arg3[%c0_46, %c112, %c0_47], %82 {strides = array<i32>} : memref<1x196x128xbf16, #tpu.memory_space<vmem>>, vector<1x14x128xbf16>,
    %83 = vector.extract_strided_slice %46 {offsets = [144, 0], sizes = [14, 128], strides = [1, 1]} : vector<224x128xbf16> to vector<14x128xbf16>
    %c0_48 = arith.constant 0 : index
    %c126 = arith.constant 126 : index
    %c0_49 = arith.constant 0 : index
    %84 = vector.load %arg3[%c0_48, %c126, %c0_49] : memref<1x196x128xbf16, #tpu.memory_space<vmem>>, vector<1x14x128xbf16>
    %85 = vector.shape_cast %84 : vector<1x14x128xbf16> to vector<14x128xbf16>
    %86 = vector.shape_cast %83 : vector<14x128xbf16> to vector<1x14x128xbf16>
    tpu.vector_store %arg3[%c0_48, %c126, %c0_49], %86 {strides = array<i32>} : memref<1x196x128xbf16, #tpu.memory_space<vmem>>, vector<1x14x128xbf16>,
    %87 = vector.extract_strided_slice %46 {offsets = [160, 0], sizes = [14, 128], strides = [1, 1]} : vector<224x128xbf16> to vector<14x128xbf16>
    %c0_50 = arith.constant 0 : index
    %c140 = arith.constant 140 : index
    %c0_51 = arith.constant 0 : index
    %88 = vector.load %arg3[%c0_50, %c140, %c0_51] : memref<1x196x128xbf16, #tpu.memory_space<vmem>>, vector<1x14x128xbf16>
    %89 = vector.shape_cast %88 : vector<1x14x128xbf16> to vector<14x128xbf16>
    %90 = vector.shape_cast %87 : vector<14x128xbf16> to vector<1x14x128xbf16>
    tpu.vector_store %arg3[%c0_50, %c140, %c0_51], %90 {strides = array<i32>} : memref<1x196x128xbf16, #tpu.memory_space<vmem>>, vector<1x14x128xbf16>,
    %91 = vector.extract_strided_slice %46 {offsets = [176, 0], sizes = [14, 128], strides = [1, 1]} : vector<224x128xbf16> to vector<14x128xbf16>
    %c0_52 = arith.constant 0 : index
    %c154 = arith.constant 154 : index
    %c0_53 = arith.constant 0 : index
    %92 = vector.load %arg3[%c0_52, %c154, %c0_53] : memref<1x196x128xbf16, #tpu.memory_space<vmem>>, vector<1x14x128xbf16>
    %93 = vector.shape_cast %92 : vector<1x14x128xbf16> to vector<14x128xbf16>
    %94 = vector.shape_cast %91 : vector<14x128xbf16> to vector<1x14x128xbf16>
    tpu.vector_store %arg3[%c0_52, %c154, %c0_53], %94 {strides = array<i32>} : memref<1x196x128xbf16, #tpu.memory_space<vmem>>, vector<1x14x128xbf16>,
    %95 = vector.extract_strided_slice %46 {offsets = [192, 0], sizes = [14, 128], strides = [1, 1]} : vector<224x128xbf16> to vector<14x128xbf16>
    %c0_54 = arith.constant 0 : index
    %c168 = arith.constant 168 : index
    %c0_55 = arith.constant 0 : index
    %96 = vector.load %arg3[%c0_54, %c168, %c0_55] : memref<1x196x128xbf16, #tpu.memory_space<vmem>>, vector<1x14x128xbf16>
    %97 = vector.shape_cast %96 : vector<1x14x128xbf16> to vector<14x128xbf16>
    %98 = vector.shape_cast %95 : vector<14x128xbf16> to vector<1x14x128xbf16>
    tpu.vector_store %arg3[%c0_54, %c168, %c0_55], %98 {strides = array<i32>} : memref<1x196x128xbf16, #tpu.memory_space<vmem>>, vector<1x14x128xbf16>,
    %99 = vector.extract_strided_slice %46 {offsets = [208, 0], sizes = [14, 128], strides = [1, 1]} : vector<224x128xbf16> to vector<14x128xbf16>
    %c0_56 = arith.constant 0 : index
    %c182 = arith.constant 182 : index
    %c0_57 = arith.constant 0 : index
    %100 = vector.load %arg3[%c0_56, %c182, %c0_57] : memref<1x196x128xbf16, #tpu.memory_space<vmem>>, vector<1x14x128xbf16>
    %101 = vector.shape_cast %100 : vector<1x14x128xbf16> to vector<14x128xbf16>
    %102 = vector.shape_cast %99 : vector<14x128xbf16> to vector<1x14x128xbf16>
    tpu.vector_store %arg3[%c0_56, %c182, %c0_57], %102 {strides = array<i32>} : memref<1x196x128xbf16, #tpu.memory_space<vmem>>, vector<1x14x128xbf16>,
    return
  }
  func.func @transform_0(%arg0: i32) -> (i32, i32, i32) {
    %c0_i32 = arith.constant 0 : i32
    %c0_i32_0 = arith.constant 0 : i32
    %c0_i32_1 = arith.constant 0 : i32
    return %arg0, %c0_i32, %c0_i32_0 : i32, i32, i32
  }
  func.func @transform_1(%arg0: i32) -> (i32, i32, i32) {
    %c0_i32 = arith.constant 0 : i32
    %c0_i32_0 = arith.constant 0 : i32
    %c0_i32_1 = arith.constant 0 : i32
    %c0_i32_2 = arith.constant 0 : i32
    return %c0_i32, %c0_i32_0, %c0_i32_1 : i32, i32, i32
  }
  func.func @transform_2(%arg0: i32) -> (i32, i32, i32) {
    %c0_i32 = arith.constant 0 : i32
    %c0_i32_0 = arith.constant 0 : i32
    %c0_i32_1 = arith.constant 0 : i32
    return %arg0, %c0_i32, %c0_i32_0 : i32, i32, i32
  }
}

module attributes {stable_mosaic.version = 11 : i64} {
  func.func @_bn_stats_kernel(%arg0: i32, %arg1: memref<1x196x128xbf16, #tpu.memory_space<vmem>>, %arg2: memref<2x128xf32, #tpu.memory_space<vmem>>) attributes {dimension_semantics = [#tpu.dimension_semantics<arbitrary>], iteration_bounds = array<i64: 2>, scalar_prefetch = 0 : i64, scratch_operands = 0 : i64, tpu.core_type = #tpu.core_type<tc>, window_params = [{transform_indices = @transform_0, window_bounds = array<i64: 1, 196, 128>}, {pipeline_mode = #tpu.pipeline_mode<synchronous>, transform_indices = @transform_1, window_bounds = array<i64: 2, 128>}]} {
    %c0_i32 = arith.constant 0 : i32
    %0 = arith.cmpi eq, %arg0, %c0_i32 : i32
    %1 = arith.extui %0 : i1 to i32
    %c0_i32_0 = arith.constant 0 : i32
    %2 = arith.cmpi ne, %1, %c0_i32_0 : i32
    scf.if %2 {
      %cst_12 = arith.constant 0.000000e+00 : f32
      %20 = vector.broadcast %cst_12 : f32 to vector<2x128xf32>
      %c0_13 = arith.constant 0 : index
      %c0_14 = arith.constant 0 : index
      %21 = vector.load %arg2[%c0_13, %c0_14] : memref<2x128xf32, #tpu.memory_space<vmem>>, vector<2x128xf32>
      tpu.vector_store %arg2[%c0_13, %c0_14], %20 {strides = array<i32>} : memref<2x128xf32, #tpu.memory_space<vmem>>, vector<2x128xf32>,
    } else {
    }
    %c0 = arith.constant 0 : index
    %c0_1 = arith.constant 0 : index
    %c0_2 = arith.constant 0 : index
    %3 = vector.load %arg1[%c0, %c0_1, %c0_2] : memref<1x196x128xbf16, #tpu.memory_space<vmem>>, vector<1x196x128xbf16>
    %4 = vector.shape_cast %3 : vector<1x196x128xbf16> to vector<196x128xbf16>
    %5 = arith.extf %4 : vector<196x128xbf16> to vector<196x128xf32>
    %c0_3 = arith.constant 0 : index
    %c0_4 = arith.constant 0 : index
    %6 = vector.load %arg2[%c0_3, %c0_4] : memref<2x128xf32, #tpu.memory_space<vmem>>, vector<1x128xf32>
    %cst = arith.constant dense<0.000000e+00> : vector<128xf32>
    %7 = vector.multi_reduction <add>, %5, %cst [0] : vector<196x128xf32> to vector<128xf32>
    %8 = vector.shape_cast %7 : vector<128xf32> to vector<1x128xf32>
    %9 = arith.addf %6, %8 : vector<1x128xf32>
    %c0_5 = arith.constant 0 : index
    %c0_6 = arith.constant 0 : index
    %10 = vector.load %arg2[%c0_5, %c0_6] : memref<2x128xf32, #tpu.memory_space<vmem>>, vector<1x128xf32>
    tpu.vector_store %arg2[%c0_5, %c0_6], %9 {strides = array<i32>} : memref<2x128xf32, #tpu.memory_space<vmem>>, vector<1x128xf32>,
    %c1 = arith.constant 1 : index
    %c0_7 = arith.constant 0 : index
    %11 = vector.load %arg2[%c1, %c0_7] : memref<2x128xf32, #tpu.memory_space<vmem>>, vector<1x128xf32>
    %12 = arith.mulf %5, %5 : vector<196x128xf32>
    %cst_8 = arith.constant dense<0.000000e+00> : vector<128xf32>
    %13 = vector.multi_reduction <add>, %12, %cst_8 [0] : vector<196x128xf32> to vector<128xf32>
    %14 = vector.shape_cast %13 : vector<128xf32> to vector<1x128xf32>
    %15 = arith.addf %11, %14 : vector<1x128xf32>
    %c1_9 = arith.constant 1 : index
    %c0_10 = arith.constant 0 : index
    %16 = vector.load %arg2[%c1_9, %c0_10] : memref<2x128xf32, #tpu.memory_space<vmem>>, vector<1x128xf32>
    tpu.vector_store %arg2[%c1_9, %c0_10], %15 {strides = array<i32>} : memref<2x128xf32, #tpu.memory_space<vmem>>, vector<1x128xf32>,
    %c1_i32 = arith.constant 1 : i32
    %17 = arith.cmpi eq, %arg0, %c1_i32 : i32
    %18 = arith.extui %17 : i1 to i32
    %c0_i32_11 = arith.constant 0 : i32
    %19 = arith.cmpi ne, %18, %c0_i32_11 : i32
    scf.if %19 {
      %c0_12 = arith.constant 0 : index
      %c0_13 = arith.constant 0 : index
      %20 = vector.load %arg2[%c0_12, %c0_13] : memref<2x128xf32, #tpu.memory_space<vmem>>, vector<1x128xf32>
      %cst_14 = arith.constant 0.00255102036 : f32
      %21 = vector.broadcast %cst_14 : f32 to vector<1x128xf32>
      %22 = arith.mulf %20, %21 : vector<1x128xf32>
      %c1_15 = arith.constant 1 : index
      %c0_16 = arith.constant 0 : index
      %23 = vector.load %arg2[%c1_15, %c0_16] : memref<2x128xf32, #tpu.memory_space<vmem>>, vector<1x128xf32>
      %cst_17 = arith.constant 0.00255102036 : f32
      %24 = vector.broadcast %cst_17 : f32 to vector<1x128xf32>
      %25 = arith.mulf %23, %24 : vector<1x128xf32>
      %26 = arith.mulf %22, %22 : vector<1x128xf32>
      %27 = arith.subf %25, %26 : vector<1x128xf32>
      %c0_18 = arith.constant 0 : index
      %c0_19 = arith.constant 0 : index
      %28 = vector.load %arg2[%c0_18, %c0_19] : memref<2x128xf32, #tpu.memory_space<vmem>>, vector<1x128xf32>
      tpu.vector_store %arg2[%c0_18, %c0_19], %22 {strides = array<i32>} : memref<2x128xf32, #tpu.memory_space<vmem>>, vector<1x128xf32>,
      %cst_20 = arith.constant 9.99999974E-6 : f32
      %29 = vector.broadcast %cst_20 : f32 to vector<1x128xf32>
      %30 = arith.addf %27, %29 : vector<1x128xf32>
      %31 = math.rsqrt %30 : vector<1x128xf32>
      %c1_21 = arith.constant 1 : index
      %c0_22 = arith.constant 0 : index
      %32 = vector.load %arg2[%c1_21, %c0_22] : memref<2x128xf32, #tpu.memory_space<vmem>>, vector<1x128xf32>
      tpu.vector_store %arg2[%c1_21, %c0_22], %31 {strides = array<i32>} : memref<2x128xf32, #tpu.memory_space<vmem>>, vector<1x128xf32>,
    } else {
    }
    return
  }
  func.func @transform_0(%arg0: i32) -> (i32, i32, i32) {
    %c0_i32 = arith.constant 0 : i32
    %c0_i32_0 = arith.constant 0 : i32
    %c0_i32_1 = arith.constant 0 : i32
    return %arg0, %c0_i32, %c0_i32_0 : i32, i32, i32
  }
  func.func @transform_1(%arg0: i32) -> (i32, i32) {
    %c0_i32 = arith.constant 0 : i32
    %c0_i32_0 = arith.constant 0 : i32
    %c0_i32_1 = arith.constant 0 : i32
    return %c0_i32, %c0_i32_0 : i32, i32
  }
}

module attributes {stable_mosaic.version = 11 : i64} {
  func.func @_bn_norm_kernel(%arg0: i32, %arg1: memref<1x196x128xbf16, #tpu.memory_space<vmem>>, %arg2: memref<2x128xf32, #tpu.memory_space<vmem>>, %arg3: memref<1x196x128xbf16, #tpu.memory_space<vmem>>) attributes {dimension_semantics = [#tpu.dimension_semantics<parallel>], iteration_bounds = array<i64: 2>, scalar_prefetch = 0 : i64, scratch_operands = 0 : i64, tpu.core_type = #tpu.core_type<tc>, window_params = [{transform_indices = @transform_0, window_bounds = array<i64: 1, 196, 128>}, {pipeline_mode = #tpu.pipeline_mode<synchronous>, transform_indices = @transform_1, window_bounds = array<i64: 2, 128>}, {transform_indices = @transform_2, window_bounds = array<i64: 1, 196, 128>}]} {
    %c0 = arith.constant 0 : index
    %c0_0 = arith.constant 0 : index
    %c0_1 = arith.constant 0 : index
    %0 = vector.load %arg1[%c0, %c0_0, %c0_1] : memref<1x196x128xbf16, #tpu.memory_space<vmem>>, vector<1x196x128xbf16>
    %1 = vector.shape_cast %0 : vector<1x196x128xbf16> to vector<196x128xbf16>
    %2 = arith.extf %1 : vector<196x128xbf16> to vector<196x128xf32>
    %c0_2 = arith.constant 0 : index
    %c0_3 = arith.constant 0 : index
    %3 = vector.load %arg2[%c0_2, %c0_3] : memref<2x128xf32, #tpu.memory_space<vmem>>, vector<1x128xf32>
    %4 = vector.broadcast %3 : vector<1x128xf32> to vector<196x128xf32>
    %5 = arith.subf %2, %4 : vector<196x128xf32>
    %c1 = arith.constant 1 : index
    %c0_4 = arith.constant 0 : index
    %6 = vector.load %arg2[%c1, %c0_4] : memref<2x128xf32, #tpu.memory_space<vmem>>, vector<1x128xf32>
    %7 = vector.broadcast %6 : vector<1x128xf32> to vector<196x128xf32>
    %8 = arith.mulf %5, %7 : vector<196x128xf32>
    %cst = arith.constant 0.000000e+00 : f32
    %9 = vector.broadcast %cst : f32 to vector<196x128xf32>
    %10 = arith.maximumf %8, %9 : vector<196x128xf32>
    %11 = arith.truncf %10 : vector<196x128xf32> to vector<196x128xbf16>
    %c0_5 = arith.constant 0 : index
    %c0_6 = arith.constant 0 : index
    %c0_7 = arith.constant 0 : index
    %12 = vector.load %arg3[%c0_5, %c0_6, %c0_7] : memref<1x196x128xbf16, #tpu.memory_space<vmem>>, vector<1x196x128xbf16>
    %13 = vector.shape_cast %12 : vector<1x196x128xbf16> to vector<196x128xbf16>
    %14 = vector.shape_cast %11 : vector<196x128xbf16> to vector<1x196x128xbf16>
    tpu.vector_store %arg3[%c0_5, %c0_6, %c0_7], %14 {strides = array<i32>} : memref<1x196x128xbf16, #tpu.memory_space<vmem>>, vector<1x196x128xbf16>,
    return
  }
  func.func @transform_0(%arg0: i32) -> (i32, i32, i32) {
    %c0_i32 = arith.constant 0 : i32
    %c0_i32_0 = arith.constant 0 : i32
    %c0_i32_1 = arith.constant 0 : i32
    return %arg0, %c0_i32, %c0_i32_0 : i32, i32, i32
  }
  func.func @transform_1(%arg0: i32) -> (i32, i32) {
    %c0_i32 = arith.constant 0 : i32
    %c0_i32_0 = arith.constant 0 : i32
    %c0_i32_1 = arith.constant 0 : i32
    return %c0_i32, %c0_i32_0 : i32, i32
  }
  func.func @transform_2(%arg0: i32) -> (i32, i32, i32) {
    %c0_i32 = arith.constant 0 : i32
    %c0_i32_0 = arith.constant 0 : i32
    %c0_i32_1 = arith.constant 0 : i32
    return %arg0, %c0_i32, %c0_i32_0 : i32, i32, i32
  }
}

module attributes {stable_mosaic.version = 11 : i64} {
  func.func @_conv1x1_kernel(%arg0: i32, %arg1: memref<1x196x128xbf16, #tpu.memory_space<vmem>>, %arg2: memref<128x128xbf16, #tpu.memory_space<vmem>>, %arg3: memref<1x196x128xbf16, #tpu.memory_space<vmem>>) attributes {dimension_semantics = [#tpu.dimension_semantics<parallel>], iteration_bounds = array<i64: 2>, scalar_prefetch = 0 : i64, scratch_operands = 0 : i64, tpu.core_type = #tpu.core_type<tc>, window_params = [{transform_indices = @transform_0, window_bounds = array<i64: 1, 196, 128>}, {pipeline_mode = #tpu.pipeline_mode<synchronous>, transform_indices = @transform_1, window_bounds = array<i64: 128, 128>}, {transform_indices = @transform_2, window_bounds = array<i64: 1, 196, 128>}]} {
    %c0 = arith.constant 0 : index
    %c0_0 = arith.constant 0 : index
    %c0_1 = arith.constant 0 : index
    %0 = vector.load %arg1[%c0, %c0_0, %c0_1] : memref<1x196x128xbf16, #tpu.memory_space<vmem>>, vector<1x196x128xbf16>
    %1 = vector.shape_cast %0 : vector<1x196x128xbf16> to vector<196x128xbf16>
    %c0_2 = arith.constant 0 : index
    %c0_3 = arith.constant 0 : index
    %2 = vector.load %arg2[%c0_2, %c0_3] : memref<128x128xbf16, #tpu.memory_space<vmem>>, vector<128x128xbf16>
    %cst = arith.constant dense<0.000000e+00> : vector<196x128xf32>
    %3 = tpu.matmul %1, %2, %cst {dimension_numbers = #tpu.dot_dimension_numbers<[1], [0], [0], [1], [0, 0, 1, 1], [], []>} : vector<196x128xbf16>, vector<128x128xbf16>, vector<196x128xf32> -> vector<196x128xf32>
    %4 = arith.truncf %3 : vector<196x128xf32> to vector<196x128xbf16>
    %c0_4 = arith.constant 0 : index
    %c0_5 = arith.constant 0 : index
    %c0_6 = arith.constant 0 : index
    %5 = vector.load %arg3[%c0_4, %c0_5, %c0_6] : memref<1x196x128xbf16, #tpu.memory_space<vmem>>, vector<1x196x128xbf16>
    %6 = vector.shape_cast %5 : vector<1x196x128xbf16> to vector<196x128xbf16>
    %7 = vector.shape_cast %4 : vector<196x128xbf16> to vector<1x196x128xbf16>
    tpu.vector_store %arg3[%c0_4, %c0_5, %c0_6], %7 {strides = array<i32>} : memref<1x196x128xbf16, #tpu.memory_space<vmem>>, vector<1x196x128xbf16>,
    return
  }
  func.func @transform_0(%arg0: i32) -> (i32, i32, i32) {
    %c0_i32 = arith.constant 0 : i32
    %c0_i32_0 = arith.constant 0 : i32
    %c0_i32_1 = arith.constant 0 : i32
    return %arg0, %c0_i32, %c0_i32_0 : i32, i32, i32
  }
  func.func @transform_1(%arg0: i32) -> (i32, i32) {
    %c0_i32 = arith.constant 0 : i32
    %c0_i32_0 = arith.constant 0 : i32
    %c0_i32_1 = arith.constant 0 : i32
    return %c0_i32, %c0_i32_0 : i32, i32
  }
  func.func @transform_2(%arg0: i32) -> (i32, i32, i32) {
    %c0_i32 = arith.constant 0 : i32
    %c0_i32_0 = arith.constant 0 : i32
    %c0_i32_1 = arith.constant 0 : i32
    return %arg0, %c0_i32, %c0_i32_0 : i32, i32, i32
  }
}

module attributes {stable_mosaic.version = 11 : i64} {
  func.func @_bn_norm_kernel(%arg0: i32, %arg1: memref<1x196x128xbf16, #tpu.memory_space<vmem>>, %arg2: memref<2x128xf32, #tpu.memory_space<vmem>>, %arg3: memref<1x196x128xbf16, #tpu.memory_space<vmem>>) attributes {dimension_semantics = [#tpu.dimension_semantics<parallel>], iteration_bounds = array<i64: 2>, scalar_prefetch = 0 : i64, scratch_operands = 0 : i64, tpu.core_type = #tpu.core_type<tc>, window_params = [{transform_indices = @transform_0, window_bounds = array<i64: 1, 196, 128>}, {pipeline_mode = #tpu.pipeline_mode<synchronous>, transform_indices = @transform_1, window_bounds = array<i64: 2, 128>}, {transform_indices = @transform_2, window_bounds = array<i64: 1, 196, 128>}]} {
    %c0 = arith.constant 0 : index
    %c0_0 = arith.constant 0 : index
    %c0_1 = arith.constant 0 : index
    %0 = vector.load %arg1[%c0, %c0_0, %c0_1] : memref<1x196x128xbf16, #tpu.memory_space<vmem>>, vector<1x196x128xbf16>
    %1 = vector.shape_cast %0 : vector<1x196x128xbf16> to vector<196x128xbf16>
    %2 = arith.extf %1 : vector<196x128xbf16> to vector<196x128xf32>
    %c0_2 = arith.constant 0 : index
    %c0_3 = arith.constant 0 : index
    %3 = vector.load %arg2[%c0_2, %c0_3] : memref<2x128xf32, #tpu.memory_space<vmem>>, vector<1x128xf32>
    %4 = vector.broadcast %3 : vector<1x128xf32> to vector<196x128xf32>
    %5 = arith.subf %2, %4 : vector<196x128xf32>
    %c1 = arith.constant 1 : index
    %c0_4 = arith.constant 0 : index
    %6 = vector.load %arg2[%c1, %c0_4] : memref<2x128xf32, #tpu.memory_space<vmem>>, vector<1x128xf32>
    %7 = vector.broadcast %6 : vector<1x128xf32> to vector<196x128xf32>
    %8 = arith.mulf %5, %7 : vector<196x128xf32>
    %9 = arith.truncf %8 : vector<196x128xf32> to vector<196x128xbf16>
    %c0_5 = arith.constant 0 : index
    %c0_6 = arith.constant 0 : index
    %c0_7 = arith.constant 0 : index
    %10 = vector.load %arg3[%c0_5, %c0_6, %c0_7] : memref<1x196x128xbf16, #tpu.memory_space<vmem>>, vector<1x196x128xbf16>
    %11 = vector.shape_cast %10 : vector<1x196x128xbf16> to vector<196x128xbf16>
    %12 = vector.shape_cast %9 : vector<196x128xbf16> to vector<1x196x128xbf16>
    tpu.vector_store %arg3[%c0_5, %c0_6, %c0_7], %12 {strides = array<i32>} : memref<1x196x128xbf16, #tpu.memory_space<vmem>>, vector<1x196x128xbf16>,
    return
  }
  func.func @transform_0(%arg0: i32) -> (i32, i32, i32) {
    %c0_i32 = arith.constant 0 : i32
    %c0_i32_0 = arith.constant 0 : i32
    %c0_i32_1 = arith.constant 0 : i32
    return %arg0, %c0_i32, %c0_i32_0 : i32, i32, i32
  }
  func.func @transform_1(%arg0: i32) -> (i32, i32) {
    %c0_i32 = arith.constant 0 : i32
    %c0_i32_0 = arith.constant 0 : i32
    %c0_i32_1 = arith.constant 0 : i32
    return %c0_i32, %c0_i32_0 : i32, i32
  }
  func.func @transform_2(%arg0: i32) -> (i32, i32, i32) {
    %c0_i32 = arith.constant 0 : i32
    %c0_i32_0 = arith.constant 0 : i32
    %c0_i32_1 = arith.constant 0 : i32
    return %arg0, %c0_i32, %c0_i32_0 : i32, i32, i32
  }
}

module attributes {stable_mosaic.version = 11 : i64} {
  func.func @_bn_norm_kernel(%arg0: i32, %arg1: memref<1x196x128xbf16, #tpu.memory_space<vmem>>, %arg2: memref<2x128xf32, #tpu.memory_space<vmem>>, %arg3: memref<1x196x128xbf16, #tpu.memory_space<vmem>>, %arg4: memref<1x196x128xbf16, #tpu.memory_space<vmem>>) attributes {dimension_semantics = [#tpu.dimension_semantics<parallel>], iteration_bounds = array<i64: 2>, scalar_prefetch = 0 : i64, scratch_operands = 0 : i64, tpu.core_type = #tpu.core_type<tc>, window_params = [{transform_indices = @transform_0, window_bounds = array<i64: 1, 196, 128>}, {pipeline_mode = #tpu.pipeline_mode<synchronous>, transform_indices = @transform_1, window_bounds = array<i64: 2, 128>}, {transform_indices = @transform_2, window_bounds = array<i64: 1, 196, 128>}, {transform_indices = @transform_3, window_bounds = array<i64: 1, 196, 128>}]} {
    %c0 = arith.constant 0 : index
    %c0_0 = arith.constant 0 : index
    %c0_1 = arith.constant 0 : index
    %0 = vector.load %arg1[%c0, %c0_0, %c0_1] : memref<1x196x128xbf16, #tpu.memory_space<vmem>>, vector<1x196x128xbf16>
    %1 = vector.shape_cast %0 : vector<1x196x128xbf16> to vector<196x128xbf16>
    %2 = arith.extf %1 : vector<196x128xbf16> to vector<196x128xf32>
    %c0_2 = arith.constant 0 : index
    %c0_3 = arith.constant 0 : index
    %3 = vector.load %arg2[%c0_2, %c0_3] : memref<2x128xf32, #tpu.memory_space<vmem>>, vector<1x128xf32>
    %4 = vector.broadcast %3 : vector<1x128xf32> to vector<196x128xf32>
    %5 = arith.subf %2, %4 : vector<196x128xf32>
    %c1 = arith.constant 1 : index
    %c0_4 = arith.constant 0 : index
    %6 = vector.load %arg2[%c1, %c0_4] : memref<2x128xf32, #tpu.memory_space<vmem>>, vector<1x128xf32>
    %7 = vector.broadcast %6 : vector<1x128xf32> to vector<196x128xf32>
    %8 = arith.mulf %5, %7 : vector<196x128xf32>
    %c0_5 = arith.constant 0 : index
    %c0_6 = arith.constant 0 : index
    %c0_7 = arith.constant 0 : index
    %9 = vector.load %arg3[%c0_5, %c0_6, %c0_7] : memref<1x196x128xbf16, #tpu.memory_space<vmem>>, vector<1x196x128xbf16>
    %10 = vector.shape_cast %9 : vector<1x196x128xbf16> to vector<196x128xbf16>
    %11 = arith.extf %10 : vector<196x128xbf16> to vector<196x128xf32>
    %12 = arith.addf %8, %11 : vector<196x128xf32>
    %cst = arith.constant 0.000000e+00 : f32
    %13 = vector.broadcast %cst : f32 to vector<196x128xf32>
    %14 = arith.maximumf %12, %13 : vector<196x128xf32>
    %15 = arith.truncf %14 : vector<196x128xf32> to vector<196x128xbf16>
    %c0_8 = arith.constant 0 : index
    %c0_9 = arith.constant 0 : index
    %c0_10 = arith.constant 0 : index
    %16 = vector.load %arg4[%c0_8, %c0_9, %c0_10] : memref<1x196x128xbf16, #tpu.memory_space<vmem>>, vector<1x196x128xbf16>
    %17 = vector.shape_cast %16 : vector<1x196x128xbf16> to vector<196x128xbf16>
    %18 = vector.shape_cast %15 : vector<196x128xbf16> to vector<1x196x128xbf16>
    tpu.vector_store %arg4[%c0_8, %c0_9, %c0_10], %18 {strides = array<i32>} : memref<1x196x128xbf16, #tpu.memory_space<vmem>>, vector<1x196x128xbf16>,
    return
  }
  func.func @transform_0(%arg0: i32) -> (i32, i32, i32) {
    %c0_i32 = arith.constant 0 : i32
    %c0_i32_0 = arith.constant 0 : i32
    %c0_i32_1 = arith.constant 0 : i32
    return %arg0, %c0_i32, %c0_i32_0 : i32, i32, i32
  }
  func.func @transform_1(%arg0: i32) -> (i32, i32) {
    %c0_i32 = arith.constant 0 : i32
    %c0_i32_0 = arith.constant 0 : i32
    %c0_i32_1 = arith.constant 0 : i32
    return %c0_i32, %c0_i32_0 : i32, i32
  }
  func.func @transform_2(%arg0: i32) -> (i32, i32, i32) {
    %c0_i32 = arith.constant 0 : i32
    %c0_i32_0 = arith.constant 0 : i32
    %c0_i32_1 = arith.constant 0 : i32
    return %arg0, %c0_i32, %c0_i32_0 : i32, i32, i32
  }
  func.func @transform_3(%arg0: i32) -> (i32, i32, i32) {
    %c0_i32 = arith.constant 0 : i32
    %c0_i32_0 = arith.constant 0 : i32
    %c0_i32_1 = arith.constant 0 : i32
    return %arg0, %c0_i32, %c0_i32_0 : i32, i32, i32
  }
}

module attributes {stable_mosaic.version = 11 : i64} {
  func.func @_conv1x1_kernel(%arg0: i32, %arg1: memref<1x49x128xbf16, #tpu.memory_space<vmem>>, %arg2: memref<128x128xbf16, #tpu.memory_space<vmem>>, %arg3: memref<1x49x128xbf16, #tpu.memory_space<vmem>>) attributes {dimension_semantics = [#tpu.dimension_semantics<parallel>], iteration_bounds = array<i64: 2>, scalar_prefetch = 0 : i64, scratch_operands = 0 : i64, tpu.core_type = #tpu.core_type<tc>, window_params = [{transform_indices = @transform_0, window_bounds = array<i64: 1, 49, 128>}, {pipeline_mode = #tpu.pipeline_mode<synchronous>, transform_indices = @transform_1, window_bounds = array<i64: 128, 128>}, {transform_indices = @transform_2, window_bounds = array<i64: 1, 49, 128>}]} {
    %c0 = arith.constant 0 : index
    %c0_0 = arith.constant 0 : index
    %c0_1 = arith.constant 0 : index
    %0 = vector.load %arg1[%c0, %c0_0, %c0_1] : memref<1x49x128xbf16, #tpu.memory_space<vmem>>, vector<1x49x128xbf16>
    %1 = vector.shape_cast %0 : vector<1x49x128xbf16> to vector<49x128xbf16>
    %c0_2 = arith.constant 0 : index
    %c0_3 = arith.constant 0 : index
    %2 = vector.load %arg2[%c0_2, %c0_3] : memref<128x128xbf16, #tpu.memory_space<vmem>>, vector<128x128xbf16>
    %cst = arith.constant dense<0.000000e+00> : vector<49x128xf32>
    %3 = tpu.matmul %1, %2, %cst {dimension_numbers = #tpu.dot_dimension_numbers<[1], [0], [0], [1], [0, 0, 1, 1], [], []>} : vector<49x128xbf16>, vector<128x128xbf16>, vector<49x128xf32> -> vector<49x128xf32>
    %4 = arith.truncf %3 : vector<49x128xf32> to vector<49x128xbf16>
    %c0_4 = arith.constant 0 : index
    %c0_5 = arith.constant 0 : index
    %c0_6 = arith.constant 0 : index
    %5 = vector.load %arg3[%c0_4, %c0_5, %c0_6] : memref<1x49x128xbf16, #tpu.memory_space<vmem>>, vector<1x49x128xbf16>
    %6 = vector.shape_cast %5 : vector<1x49x128xbf16> to vector<49x128xbf16>
    %7 = vector.shape_cast %4 : vector<49x128xbf16> to vector<1x49x128xbf16>
    tpu.vector_store %arg3[%c0_4, %c0_5, %c0_6], %7 {strides = array<i32>} : memref<1x49x128xbf16, #tpu.memory_space<vmem>>, vector<1x49x128xbf16>,
    return
  }
  func.func @transform_0(%arg0: i32) -> (i32, i32, i32) {
    %c0_i32 = arith.constant 0 : i32
    %c0_i32_0 = arith.constant 0 : i32
    %c0_i32_1 = arith.constant 0 : i32
    return %arg0, %c0_i32, %c0_i32_0 : i32, i32, i32
  }
  func.func @transform_1(%arg0: i32) -> (i32, i32) {
    %c0_i32 = arith.constant 0 : i32
    %c0_i32_0 = arith.constant 0 : i32
    %c0_i32_1 = arith.constant 0 : i32
    return %c0_i32, %c0_i32_0 : i32, i32
  }
  func.func @transform_2(%arg0: i32) -> (i32, i32, i32) {
    %c0_i32 = arith.constant 0 : i32
    %c0_i32_0 = arith.constant 0 : i32
    %c0_i32_1 = arith.constant 0 : i32
    return %arg0, %c0_i32, %c0_i32_0 : i32, i32, i32
  }
}

module attributes {stable_mosaic.version = 11 : i64} {
  func.func @_bn_norm_kernel(%arg0: i32, %arg1: memref<1x49x128xbf16, #tpu.memory_space<vmem>>, %arg2: memref<2x128xf32, #tpu.memory_space<vmem>>, %arg3: memref<1x49x128xbf16, #tpu.memory_space<vmem>>) attributes {dimension_semantics = [#tpu.dimension_semantics<parallel>], iteration_bounds = array<i64: 2>, scalar_prefetch = 0 : i64, scratch_operands = 0 : i64, tpu.core_type = #tpu.core_type<tc>, window_params = [{transform_indices = @transform_0, window_bounds = array<i64: 1, 49, 128>}, {pipeline_mode = #tpu.pipeline_mode<synchronous>, transform_indices = @transform_1, window_bounds = array<i64: 2, 128>}, {transform_indices = @transform_2, window_bounds = array<i64: 1, 49, 128>}]} {
    %c0 = arith.constant 0 : index
    %c0_0 = arith.constant 0 : index
    %c0_1 = arith.constant 0 : index
    %0 = vector.load %arg1[%c0, %c0_0, %c0_1] : memref<1x49x128xbf16, #tpu.memory_space<vmem>>, vector<1x49x128xbf16>
    %1 = vector.shape_cast %0 : vector<1x49x128xbf16> to vector<49x128xbf16>
    %2 = arith.extf %1 : vector<49x128xbf16> to vector<49x128xf32>
    %c0_2 = arith.constant 0 : index
    %c0_3 = arith.constant 0 : index
    %3 = vector.load %arg2[%c0_2, %c0_3] : memref<2x128xf32, #tpu.memory_space<vmem>>, vector<1x128xf32>
    %4 = vector.broadcast %3 : vector<1x128xf32> to vector<49x128xf32>
    %5 = arith.subf %2, %4 : vector<49x128xf32>
    %c1 = arith.constant 1 : index
    %c0_4 = arith.constant 0 : index
    %6 = vector.load %arg2[%c1, %c0_4] : memref<2x128xf32, #tpu.memory_space<vmem>>, vector<1x128xf32>
    %7 = vector.broadcast %6 : vector<1x128xf32> to vector<49x128xf32>
    %8 = arith.mulf %5, %7 : vector<49x128xf32>
    %cst = arith.constant 0.000000e+00 : f32
    %9 = vector.broadcast %cst : f32 to vector<49x128xf32>
    %10 = arith.maximumf %8, %9 : vector<49x128xf32>
    %11 = arith.truncf %10 : vector<49x128xf32> to vector<49x128xbf16>
    %c0_5 = arith.constant 0 : index
    %c0_6 = arith.constant 0 : index
    %c0_7 = arith.constant 0 : index
    %12 = vector.load %arg3[%c0_5, %c0_6, %c0_7] : memref<1x49x128xbf16, #tpu.memory_space<vmem>>, vector<1x49x128xbf16>
    %13 = vector.shape_cast %12 : vector<1x49x128xbf16> to vector<49x128xbf16>
    %14 = vector.shape_cast %11 : vector<49x128xbf16> to vector<1x49x128xbf16>
    tpu.vector_store %arg3[%c0_5, %c0_6, %c0_7], %14 {strides = array<i32>} : memref<1x49x128xbf16, #tpu.memory_space<vmem>>, vector<1x49x128xbf16>,
    return
  }
  func.func @transform_0(%arg0: i32) -> (i32, i32, i32) {
    %c0_i32 = arith.constant 0 : i32
    %c0_i32_0 = arith.constant 0 : i32
    %c0_i32_1 = arith.constant 0 : i32
    return %arg0, %c0_i32, %c0_i32_0 : i32, i32, i32
  }
  func.func @transform_1(%arg0: i32) -> (i32, i32) {
    %c0_i32 = arith.constant 0 : i32
    %c0_i32_0 = arith.constant 0 : i32
    %c0_i32_1 = arith.constant 0 : i32
    return %c0_i32, %c0_i32_0 : i32, i32
  }
  func.func @transform_2(%arg0: i32) -> (i32, i32, i32) {
    %c0_i32 = arith.constant 0 : i32
    %c0_i32_0 = arith.constant 0 : i32
    %c0_i32_1 = arith.constant 0 : i32
    return %arg0, %c0_i32, %c0_i32_0 : i32, i32, i32
  }
}

module attributes {stable_mosaic.version = 11 : i64} {
  func.func @_bn_stats_kernel(%arg0: i32, %arg1: memref<1x49x128xbf16, #tpu.memory_space<vmem>>, %arg2: memref<2x128xf32, #tpu.memory_space<vmem>>) attributes {dimension_semantics = [#tpu.dimension_semantics<arbitrary>], iteration_bounds = array<i64: 2>, scalar_prefetch = 0 : i64, scratch_operands = 0 : i64, tpu.core_type = #tpu.core_type<tc>, window_params = [{transform_indices = @transform_0, window_bounds = array<i64: 1, 49, 128>}, {pipeline_mode = #tpu.pipeline_mode<synchronous>, transform_indices = @transform_1, window_bounds = array<i64: 2, 128>}]} {
    %c0_i32 = arith.constant 0 : i32
    %0 = arith.cmpi eq, %arg0, %c0_i32 : i32
    %1 = arith.extui %0 : i1 to i32
    %c0_i32_0 = arith.constant 0 : i32
    %2 = arith.cmpi ne, %1, %c0_i32_0 : i32
    scf.if %2 {
      %cst_12 = arith.constant 0.000000e+00 : f32
      %20 = vector.broadcast %cst_12 : f32 to vector<2x128xf32>
      %c0_13 = arith.constant 0 : index
      %c0_14 = arith.constant 0 : index
      %21 = vector.load %arg2[%c0_13, %c0_14] : memref<2x128xf32, #tpu.memory_space<vmem>>, vector<2x128xf32>
      tpu.vector_store %arg2[%c0_13, %c0_14], %20 {strides = array<i32>} : memref<2x128xf32, #tpu.memory_space<vmem>>, vector<2x128xf32>,
    } else {
    }
    %c0 = arith.constant 0 : index
    %c0_1 = arith.constant 0 : index
    %c0_2 = arith.constant 0 : index
    %3 = vector.load %arg1[%c0, %c0_1, %c0_2] : memref<1x49x128xbf16, #tpu.memory_space<vmem>>, vector<1x49x128xbf16>
    %4 = vector.shape_cast %3 : vector<1x49x128xbf16> to vector<49x128xbf16>
    %5 = arith.extf %4 : vector<49x128xbf16> to vector<49x128xf32>
    %c0_3 = arith.constant 0 : index
    %c0_4 = arith.constant 0 : index
    %6 = vector.load %arg2[%c0_3, %c0_4] : memref<2x128xf32, #tpu.memory_space<vmem>>, vector<1x128xf32>
    %cst = arith.constant dense<0.000000e+00> : vector<128xf32>
    %7 = vector.multi_reduction <add>, %5, %cst [0] : vector<49x128xf32> to vector<128xf32>
    %8 = vector.shape_cast %7 : vector<128xf32> to vector<1x128xf32>
    %9 = arith.addf %6, %8 : vector<1x128xf32>
    %c0_5 = arith.constant 0 : index
    %c0_6 = arith.constant 0 : index
    %10 = vector.load %arg2[%c0_5, %c0_6] : memref<2x128xf32, #tpu.memory_space<vmem>>, vector<1x128xf32>
    tpu.vector_store %arg2[%c0_5, %c0_6], %9 {strides = array<i32>} : memref<2x128xf32, #tpu.memory_space<vmem>>, vector<1x128xf32>,
    %c1 = arith.constant 1 : index
    %c0_7 = arith.constant 0 : index
    %11 = vector.load %arg2[%c1, %c0_7] : memref<2x128xf32, #tpu.memory_space<vmem>>, vector<1x128xf32>
    %12 = arith.mulf %5, %5 : vector<49x128xf32>
    %cst_8 = arith.constant dense<0.000000e+00> : vector<128xf32>
    %13 = vector.multi_reduction <add>, %12, %cst_8 [0] : vector<49x128xf32> to vector<128xf32>
    %14 = vector.shape_cast %13 : vector<128xf32> to vector<1x128xf32>
    %15 = arith.addf %11, %14 : vector<1x128xf32>
    %c1_9 = arith.constant 1 : index
    %c0_10 = arith.constant 0 : index
    %16 = vector.load %arg2[%c1_9, %c0_10] : memref<2x128xf32, #tpu.memory_space<vmem>>, vector<1x128xf32>
    tpu.vector_store %arg2[%c1_9, %c0_10], %15 {strides = array<i32>} : memref<2x128xf32, #tpu.memory_space<vmem>>, vector<1x128xf32>,
    %c1_i32 = arith.constant 1 : i32
    %17 = arith.cmpi eq, %arg0, %c1_i32 : i32
    %18 = arith.extui %17 : i1 to i32
    %c0_i32_11 = arith.constant 0 : i32
    %19 = arith.cmpi ne, %18, %c0_i32_11 : i32
    scf.if %19 {
      %c0_12 = arith.constant 0 : index
      %c0_13 = arith.constant 0 : index
      %20 = vector.load %arg2[%c0_12, %c0_13] : memref<2x128xf32, #tpu.memory_space<vmem>>, vector<1x128xf32>
      %cst_14 = arith.constant 0.0102040814 : f32
      %21 = vector.broadcast %cst_14 : f32 to vector<1x128xf32>
      %22 = arith.mulf %20, %21 : vector<1x128xf32>
      %c1_15 = arith.constant 1 : index
      %c0_16 = arith.constant 0 : index
      %23 = vector.load %arg2[%c1_15, %c0_16] : memref<2x128xf32, #tpu.memory_space<vmem>>, vector<1x128xf32>
      %cst_17 = arith.constant 0.0102040814 : f32
      %24 = vector.broadcast %cst_17 : f32 to vector<1x128xf32>
      %25 = arith.mulf %23, %24 : vector<1x128xf32>
      %26 = arith.mulf %22, %22 : vector<1x128xf32>
      %27 = arith.subf %25, %26 : vector<1x128xf32>
      %c0_18 = arith.constant 0 : index
      %c0_19 = arith.constant 0 : index
      %28 = vector.load %arg2[%c0_18, %c0_19] : memref<2x128xf32, #tpu.memory_space<vmem>>, vector<1x128xf32>
      tpu.vector_store %arg2[%c0_18, %c0_19], %22 {strides = array<i32>} : memref<2x128xf32, #tpu.memory_space<vmem>>, vector<1x128xf32>,
      %cst_20 = arith.constant 9.99999974E-6 : f32
      %29 = vector.broadcast %cst_20 : f32 to vector<1x128xf32>
      %30 = arith.addf %27, %29 : vector<1x128xf32>
      %31 = math.rsqrt %30 : vector<1x128xf32>
      %c1_21 = arith.constant 1 : index
      %c0_22 = arith.constant 0 : index
      %32 = vector.load %arg2[%c1_21, %c0_22] : memref<2x128xf32, #tpu.memory_space<vmem>>, vector<1x128xf32>
      tpu.vector_store %arg2[%c1_21, %c0_22], %31 {strides = array<i32>} : memref<2x128xf32, #tpu.memory_space<vmem>>, vector<1x128xf32>,
    } else {
    }
    return
  }
  func.func @transform_0(%arg0: i32) -> (i32, i32, i32) {
    %c0_i32 = arith.constant 0 : i32
    %c0_i32_0 = arith.constant 0 : i32
    %c0_i32_1 = arith.constant 0 : i32
    return %arg0, %c0_i32, %c0_i32_0 : i32, i32, i32
  }
  func.func @transform_1(%arg0: i32) -> (i32, i32) {
    %c0_i32 = arith.constant 0 : i32
    %c0_i32_0 = arith.constant 0 : i32
    %c0_i32_1 = arith.constant 0 : i32
    return %c0_i32, %c0_i32_0 : i32, i32
  }
}

module attributes {stable_mosaic.version = 11 : i64} {
  func.func @_bn_norm_kernel(%arg0: i32, %arg1: memref<1x49x128xbf16, #tpu.memory_space<vmem>>, %arg2: memref<2x128xf32, #tpu.memory_space<vmem>>, %arg3: memref<1x49x128xbf16, #tpu.memory_space<vmem>>) attributes {dimension_semantics = [#tpu.dimension_semantics<parallel>], iteration_bounds = array<i64: 2>, scalar_prefetch = 0 : i64, scratch_operands = 0 : i64, tpu.core_type = #tpu.core_type<tc>, window_params = [{transform_indices = @transform_0, window_bounds = array<i64: 1, 49, 128>}, {pipeline_mode = #tpu.pipeline_mode<synchronous>, transform_indices = @transform_1, window_bounds = array<i64: 2, 128>}, {transform_indices = @transform_2, window_bounds = array<i64: 1, 49, 128>}]} {
    %c0 = arith.constant 0 : index
    %c0_0 = arith.constant 0 : index
    %c0_1 = arith.constant 0 : index
    %0 = vector.load %arg1[%c0, %c0_0, %c0_1] : memref<1x49x128xbf16, #tpu.memory_space<vmem>>, vector<1x49x128xbf16>
    %1 = vector.shape_cast %0 : vector<1x49x128xbf16> to vector<49x128xbf16>
    %2 = arith.extf %1 : vector<49x128xbf16> to vector<49x128xf32>
    %c0_2 = arith.constant 0 : index
    %c0_3 = arith.constant 0 : index
    %3 = vector.load %arg2[%c0_2, %c0_3] : memref<2x128xf32, #tpu.memory_space<vmem>>, vector<1x128xf32>
    %4 = vector.broadcast %3 : vector<1x128xf32> to vector<49x128xf32>
    %5 = arith.subf %2, %4 : vector<49x128xf32>
    %c1 = arith.constant 1 : index
    %c0_4 = arith.constant 0 : index
    %6 = vector.load %arg2[%c1, %c0_4] : memref<2x128xf32, #tpu.memory_space<vmem>>, vector<1x128xf32>
    %7 = vector.broadcast %6 : vector<1x128xf32> to vector<49x128xf32>
    %8 = arith.mulf %5, %7 : vector<49x128xf32>
    %9 = arith.truncf %8 : vector<49x128xf32> to vector<49x128xbf16>
    %c0_5 = arith.constant 0 : index
    %c0_6 = arith.constant 0 : index
    %c0_7 = arith.constant 0 : index
    %10 = vector.load %arg3[%c0_5, %c0_6, %c0_7] : memref<1x49x128xbf16, #tpu.memory_space<vmem>>, vector<1x49x128xbf16>
    %11 = vector.shape_cast %10 : vector<1x49x128xbf16> to vector<49x128xbf16>
    %12 = vector.shape_cast %9 : vector<49x128xbf16> to vector<1x49x128xbf16>
    tpu.vector_store %arg3[%c0_5, %c0_6, %c0_7], %12 {strides = array<i32>} : memref<1x49x128xbf16, #tpu.memory_space<vmem>>, vector<1x49x128xbf16>,
    return
  }
  func.func @transform_0(%arg0: i32) -> (i32, i32, i32) {
    %c0_i32 = arith.constant 0 : i32
    %c0_i32_0 = arith.constant 0 : i32
    %c0_i32_1 = arith.constant 0 : i32
    return %arg0, %c0_i32, %c0_i32_0 : i32, i32, i32
  }
  func.func @transform_1(%arg0: i32) -> (i32, i32) {
    %c0_i32 = arith.constant 0 : i32
    %c0_i32_0 = arith.constant 0 : i32
    %c0_i32_1 = arith.constant 0 : i32
    return %c0_i32, %c0_i32_0 : i32, i32
  }
  func.func @transform_2(%arg0: i32) -> (i32, i32, i32) {
    %c0_i32 = arith.constant 0 : i32
    %c0_i32_0 = arith.constant 0 : i32
    %c0_i32_1 = arith.constant 0 : i32
    return %arg0, %c0_i32, %c0_i32_0 : i32, i32, i32
  }
}

module attributes {stable_mosaic.version = 11 : i64} {
  func.func @_conv3x3_kernel(%arg0: i32, %arg1: memref<1x90x128xbf16, #tpu.memory_space<vmem>>, %arg2: memref<9x128x128xbf16, #tpu.memory_space<vmem>>, %arg3: memref<1x49x128xbf16, #tpu.memory_space<vmem>>) attributes {dimension_semantics = [#tpu.dimension_semantics<parallel>], iteration_bounds = array<i64: 2>, scalar_prefetch = 0 : i64, scratch_operands = 0 : i64, tpu.core_type = #tpu.core_type<tc>, window_params = [{transform_indices = @transform_0, window_bounds = array<i64: 1, 90, 128>}, {pipeline_mode = #tpu.pipeline_mode<synchronous>, transform_indices = @transform_1, window_bounds = array<i64: 9, 128, 128>}, {transform_indices = @transform_2, window_bounds = array<i64: 1, 49, 128>}]} {
    %c0 = arith.constant 0 : index
    %c0_0 = arith.constant 0 : index
    %c0_1 = arith.constant 0 : index
    %0 = vector.load %arg1[%c0, %c0_0, %c0_1] : memref<1x90x128xbf16, #tpu.memory_space<vmem>>, vector<1x90x128xbf16>
    %1 = vector.shape_cast %0 : vector<1x90x128xbf16> to vector<90x128xbf16>
    %2 = vector.extract_strided_slice %1 {offsets = [0, 0], sizes = [63, 128], strides = [1, 1]} : vector<90x128xbf16> to vector<63x128xbf16>
    %c0_2 = arith.constant 0 : index
    %c0_3 = arith.constant 0 : index
    %c0_4 = arith.constant 0 : index
    %3 = vector.load %arg2[%c0_2, %c0_3, %c0_4] : memref<9x128x128xbf16, #tpu.memory_space<vmem>>, vector<1x128x128xbf16>
    %4 = vector.shape_cast %3 : vector<1x128x128xbf16> to vector<128x128xbf16>
    %cst = arith.constant dense<0.000000e+00> : vector<63x128xf32>
    %5 = tpu.matmul %2, %4, %cst {dimension_numbers = #tpu.dot_dimension_numbers<[1], [0], [0], [1], [0, 0, 1, 1], [], []>} : vector<63x128xbf16>, vector<128x128xbf16>, vector<63x128xf32> -> vector<63x128xf32>
    %6 = vector.extract_strided_slice %1 {offsets = [1, 0], sizes = [63, 128], strides = [1, 1]} : vector<90x128xbf16> to vector<63x128xbf16>
    %c1 = arith.constant 1 : index
    %c0_5 = arith.constant 0 : index
    %c0_6 = arith.constant 0 : index
    %7 = vector.load %arg2[%c1, %c0_5, %c0_6] : memref<9x128x128xbf16, #tpu.memory_space<vmem>>, vector<1x128x128xbf16>
    %8 = vector.shape_cast %7 : vector<1x128x128xbf16> to vector<128x128xbf16>
    %cst_7 = arith.constant dense<0.000000e+00> : vector<63x128xf32>
    %9 = tpu.matmul %6, %8, %cst_7 {dimension_numbers = #tpu.dot_dimension_numbers<[1], [0], [0], [1], [0, 0, 1, 1], [], []>} : vector<63x128xbf16>, vector<128x128xbf16>, vector<63x128xf32> -> vector<63x128xf32>
    %10 = arith.addf %5, %9 : vector<63x128xf32>
    %11 = vector.extract_strided_slice %1 {offsets = [2, 0], sizes = [63, 128], strides = [1, 1]} : vector<90x128xbf16> to vector<63x128xbf16>
    %c2 = arith.constant 2 : index
    %c0_8 = arith.constant 0 : index
    %c0_9 = arith.constant 0 : index
    %12 = vector.load %arg2[%c2, %c0_8, %c0_9] : memref<9x128x128xbf16, #tpu.memory_space<vmem>>, vector<1x128x128xbf16>
    %13 = vector.shape_cast %12 : vector<1x128x128xbf16> to vector<128x128xbf16>
    %cst_10 = arith.constant dense<0.000000e+00> : vector<63x128xf32>
    %14 = tpu.matmul %11, %13, %cst_10 {dimension_numbers = #tpu.dot_dimension_numbers<[1], [0], [0], [1], [0, 0, 1, 1], [], []>} : vector<63x128xbf16>, vector<128x128xbf16>, vector<63x128xf32> -> vector<63x128xf32>
    %15 = arith.addf %10, %14 : vector<63x128xf32>
    %16 = vector.extract_strided_slice %1 {offsets = [9, 0], sizes = [63, 128], strides = [1, 1]} : vector<90x128xbf16> to vector<63x128xbf16>
    %c3 = arith.constant 3 : index
    %c0_11 = arith.constant 0 : index
    %c0_12 = arith.constant 0 : index
    %17 = vector.load %arg2[%c3, %c0_11, %c0_12] : memref<9x128x128xbf16, #tpu.memory_space<vmem>>, vector<1x128x128xbf16>
    %18 = vector.shape_cast %17 : vector<1x128x128xbf16> to vector<128x128xbf16>
    %cst_13 = arith.constant dense<0.000000e+00> : vector<63x128xf32>
    %19 = tpu.matmul %16, %18, %cst_13 {dimension_numbers = #tpu.dot_dimension_numbers<[1], [0], [0], [1], [0, 0, 1, 1], [], []>} : vector<63x128xbf16>, vector<128x128xbf16>, vector<63x128xf32> -> vector<63x128xf32>
    %20 = arith.addf %15, %19 : vector<63x128xf32>
    %21 = vector.extract_strided_slice %1 {offsets = [10, 0], sizes = [63, 128], strides = [1, 1]} : vector<90x128xbf16> to vector<63x128xbf16>
    %c4 = arith.constant 4 : index
    %c0_14 = arith.constant 0 : index
    %c0_15 = arith.constant 0 : index
    %22 = vector.load %arg2[%c4, %c0_14, %c0_15] : memref<9x128x128xbf16, #tpu.memory_space<vmem>>, vector<1x128x128xbf16>
    %23 = vector.shape_cast %22 : vector<1x128x128xbf16> to vector<128x128xbf16>
    %cst_16 = arith.constant dense<0.000000e+00> : vector<63x128xf32>
    %24 = tpu.matmul %21, %23, %cst_16 {dimension_numbers = #tpu.dot_dimension_numbers<[1], [0], [0], [1], [0, 0, 1, 1], [], []>} : vector<63x128xbf16>, vector<128x128xbf16>, vector<63x128xf32> -> vector<63x128xf32>
    %25 = arith.addf %20, %24 : vector<63x128xf32>
    %26 = vector.extract_strided_slice %1 {offsets = [11, 0], sizes = [63, 128], strides = [1, 1]} : vector<90x128xbf16> to vector<63x128xbf16>
    %c5 = arith.constant 5 : index
    %c0_17 = arith.constant 0 : index
    %c0_18 = arith.constant 0 : index
    %27 = vector.load %arg2[%c5, %c0_17, %c0_18] : memref<9x128x128xbf16, #tpu.memory_space<vmem>>, vector<1x128x128xbf16>
    %28 = vector.shape_cast %27 : vector<1x128x128xbf16> to vector<128x128xbf16>
    %cst_19 = arith.constant dense<0.000000e+00> : vector<63x128xf32>
    %29 = tpu.matmul %26, %28, %cst_19 {dimension_numbers = #tpu.dot_dimension_numbers<[1], [0], [0], [1], [0, 0, 1, 1], [], []>} : vector<63x128xbf16>, vector<128x128xbf16>, vector<63x128xf32> -> vector<63x128xf32>
    %30 = arith.addf %25, %29 : vector<63x128xf32>
    %31 = vector.extract_strided_slice %1 {offsets = [18, 0], sizes = [63, 128], strides = [1, 1]} : vector<90x128xbf16> to vector<63x128xbf16>
    %c6 = arith.constant 6 : index
    %c0_20 = arith.constant 0 : index
    %c0_21 = arith.constant 0 : index
    %32 = vector.load %arg2[%c6, %c0_20, %c0_21] : memref<9x128x128xbf16, #tpu.memory_space<vmem>>, vector<1x128x128xbf16>
    %33 = vector.shape_cast %32 : vector<1x128x128xbf16> to vector<128x128xbf16>
    %cst_22 = arith.constant dense<0.000000e+00> : vector<63x128xf32>
    %34 = tpu.matmul %31, %33, %cst_22 {dimension_numbers = #tpu.dot_dimension_numbers<[1], [0], [0], [1], [0, 0, 1, 1], [], []>} : vector<63x128xbf16>, vector<128x128xbf16>, vector<63x128xf32> -> vector<63x128xf32>
    %35 = arith.addf %30, %34 : vector<63x128xf32>
    %36 = vector.extract_strided_slice %1 {offsets = [19, 0], sizes = [63, 128], strides = [1, 1]} : vector<90x128xbf16> to vector<63x128xbf16>
    %c7 = arith.constant 7 : index
    %c0_23 = arith.constant 0 : index
    %c0_24 = arith.constant 0 : index
    %37 = vector.load %arg2[%c7, %c0_23, %c0_24] : memref<9x128x128xbf16, #tpu.memory_space<vmem>>, vector<1x128x128xbf16>
    %38 = vector.shape_cast %37 : vector<1x128x128xbf16> to vector<128x128xbf16>
    %cst_25 = arith.constant dense<0.000000e+00> : vector<63x128xf32>
    %39 = tpu.matmul %36, %38, %cst_25 {dimension_numbers = #tpu.dot_dimension_numbers<[1], [0], [0], [1], [0, 0, 1, 1], [], []>} : vector<63x128xbf16>, vector<128x128xbf16>, vector<63x128xf32> -> vector<63x128xf32>
    %40 = arith.addf %35, %39 : vector<63x128xf32>
    %41 = vector.extract_strided_slice %1 {offsets = [20, 0], sizes = [63, 128], strides = [1, 1]} : vector<90x128xbf16> to vector<63x128xbf16>
    %c8 = arith.constant 8 : index
    %c0_26 = arith.constant 0 : index
    %c0_27 = arith.constant 0 : index
    %42 = vector.load %arg2[%c8, %c0_26, %c0_27] : memref<9x128x128xbf16, #tpu.memory_space<vmem>>, vector<1x128x128xbf16>
    %43 = vector.shape_cast %42 : vector<1x128x128xbf16> to vector<128x128xbf16>
    %cst_28 = arith.constant dense<0.000000e+00> : vector<63x128xf32>
    %44 = tpu.matmul %41, %43, %cst_28 {dimension_numbers = #tpu.dot_dimension_numbers<[1], [0], [0], [1], [0, 0, 1, 1], [], []>} : vector<63x128xbf16>, vector<128x128xbf16>, vector<63x128xf32> -> vector<63x128xf32>
    %45 = arith.addf %40, %44 : vector<63x128xf32>
    %46 = arith.truncf %45 : vector<63x128xf32> to vector<63x128xbf16>
    %47 = vector.extract_strided_slice %46 {offsets = [0, 0], sizes = [7, 128], strides = [1, 1]} : vector<63x128xbf16> to vector<7x128xbf16>
    %c0_29 = arith.constant 0 : index
    %c0_30 = arith.constant 0 : index
    %c0_31 = arith.constant 0 : index
    %48 = vector.load %arg3[%c0_29, %c0_30, %c0_31] : memref<1x49x128xbf16, #tpu.memory_space<vmem>>, vector<1x7x128xbf16>
    %49 = vector.shape_cast %48 : vector<1x7x128xbf16> to vector<7x128xbf16>
    %50 = vector.shape_cast %47 : vector<7x128xbf16> to vector<1x7x128xbf16>
    tpu.vector_store %arg3[%c0_29, %c0_30, %c0_31], %50 {strides = array<i32>} : memref<1x49x128xbf16, #tpu.memory_space<vmem>>, vector<1x7x128xbf16>,
    %51 = vector.extract_strided_slice %46 {offsets = [9, 0], sizes = [7, 128], strides = [1, 1]} : vector<63x128xbf16> to vector<7x128xbf16>
    %c0_32 = arith.constant 0 : index
    %c7_33 = arith.constant 7 : index
    %c0_34 = arith.constant 0 : index
    %52 = vector.load %arg3[%c0_32, %c7_33, %c0_34] : memref<1x49x128xbf16, #tpu.memory_space<vmem>>, vector<1x7x128xbf16>
    %53 = vector.shape_cast %52 : vector<1x7x128xbf16> to vector<7x128xbf16>
    %54 = vector.shape_cast %51 : vector<7x128xbf16> to vector<1x7x128xbf16>
    tpu.vector_store %arg3[%c0_32, %c7_33, %c0_34], %54 {strides = array<i32>} : memref<1x49x128xbf16, #tpu.memory_space<vmem>>, vector<1x7x128xbf16>,
    %55 = vector.extract_strided_slice %46 {offsets = [18, 0], sizes = [7, 128], strides = [1, 1]} : vector<63x128xbf16> to vector<7x128xbf16>
    %c0_35 = arith.constant 0 : index
    %c14 = arith.constant 14 : index
    %c0_36 = arith.constant 0 : index
    %56 = vector.load %arg3[%c0_35, %c14, %c0_36] : memref<1x49x128xbf16, #tpu.memory_space<vmem>>, vector<1x7x128xbf16>
    %57 = vector.shape_cast %56 : vector<1x7x128xbf16> to vector<7x128xbf16>
    %58 = vector.shape_cast %55 : vector<7x128xbf16> to vector<1x7x128xbf16>
    tpu.vector_store %arg3[%c0_35, %c14, %c0_36], %58 {strides = array<i32>} : memref<1x49x128xbf16, #tpu.memory_space<vmem>>, vector<1x7x128xbf16>,
    %59 = vector.extract_strided_slice %46 {offsets = [27, 0], sizes = [7, 128], strides = [1, 1]} : vector<63x128xbf16> to vector<7x128xbf16>
    %c0_37 = arith.constant 0 : index
    %c21 = arith.constant 21 : index
    %c0_38 = arith.constant 0 : index
    %60 = vector.load %arg3[%c0_37, %c21, %c0_38] : memref<1x49x128xbf16, #tpu.memory_space<vmem>>, vector<1x7x128xbf16>
    %61 = vector.shape_cast %60 : vector<1x7x128xbf16> to vector<7x128xbf16>
    %62 = vector.shape_cast %59 : vector<7x128xbf16> to vector<1x7x128xbf16>
    tpu.vector_store %arg3[%c0_37, %c21, %c0_38], %62 {strides = array<i32>} : memref<1x49x128xbf16, #tpu.memory_space<vmem>>, vector<1x7x128xbf16>,
    %63 = vector.extract_strided_slice %46 {offsets = [36, 0], sizes = [7, 128], strides = [1, 1]} : vector<63x128xbf16> to vector<7x128xbf16>
    %c0_39 = arith.constant 0 : index
    %c28 = arith.constant 28 : index
    %c0_40 = arith.constant 0 : index
    %64 = vector.load %arg3[%c0_39, %c28, %c0_40] : memref<1x49x128xbf16, #tpu.memory_space<vmem>>, vector<1x7x128xbf16>
    %65 = vector.shape_cast %64 : vector<1x7x128xbf16> to vector<7x128xbf16>
    %66 = vector.shape_cast %63 : vector<7x128xbf16> to vector<1x7x128xbf16>
    tpu.vector_store %arg3[%c0_39, %c28, %c0_40], %66 {strides = array<i32>} : memref<1x49x128xbf16, #tpu.memory_space<vmem>>, vector<1x7x128xbf16>,
    %67 = vector.extract_strided_slice %46 {offsets = [45, 0], sizes = [7, 128], strides = [1, 1]} : vector<63x128xbf16> to vector<7x128xbf16>
    %c0_41 = arith.constant 0 : index
    %c35 = arith.constant 35 : index
    %c0_42 = arith.constant 0 : index
    %68 = vector.load %arg3[%c0_41, %c35, %c0_42] : memref<1x49x128xbf16, #tpu.memory_space<vmem>>, vector<1x7x128xbf16>
    %69 = vector.shape_cast %68 : vector<1x7x128xbf16> to vector<7x128xbf16>
    %70 = vector.shape_cast %67 : vector<7x128xbf16> to vector<1x7x128xbf16>
    tpu.vector_store %arg3[%c0_41, %c35, %c0_42], %70 {strides = array<i32>} : memref<1x49x128xbf16, #tpu.memory_space<vmem>>, vector<1x7x128xbf16>,
    %71 = vector.extract_strided_slice %46 {offsets = [54, 0], sizes = [7, 128], strides = [1, 1]} : vector<63x128xbf16> to vector<7x128xbf16>
    %c0_43 = arith.constant 0 : index
    %c42 = arith.constant 42 : index
    %c0_44 = arith.constant 0 : index
    %72 = vector.load %arg3[%c0_43, %c42, %c0_44] : memref<1x49x128xbf16, #tpu.memory_space<vmem>>, vector<1x7x128xbf16>
    %73 = vector.shape_cast %72 : vector<1x7x128xbf16> to vector<7x128xbf16>
    %74 = vector.shape_cast %71 : vector<7x128xbf16> to vector<1x7x128xbf16>
    tpu.vector_store %arg3[%c0_43, %c42, %c0_44], %74 {strides = array<i32>} : memref<1x49x128xbf16, #tpu.memory_space<vmem>>, vector<1x7x128xbf16>,
    return
  }
  func.func @transform_0(%arg0: i32) -> (i32, i32, i32) {
    %c0_i32 = arith.constant 0 : i32
    %c0_i32_0 = arith.constant 0 : i32
    %c0_i32_1 = arith.constant 0 : i32
    return %arg0, %c0_i32, %c0_i32_0 : i32, i32, i32
  }
  func.func @transform_1(%arg0: i32) -> (i32, i32, i32) {
    %c0_i32 = arith.constant 0 : i32
    %c0_i32_0 = arith.constant 0 : i32
    %c0_i32_1 = arith.constant 0 : i32
    %c0_i32_2 = arith.constant 0 : i32
    return %c0_i32, %c0_i32_0, %c0_i32_1 : i32, i32, i32
  }
  func.func @transform_2(%arg0: i32) -> (i32, i32, i32) {
    %c0_i32 = arith.constant 0 : i32
    %c0_i32_0 = arith.constant 0 : i32
    %c0_i32_1 = arith.constant 0 : i32
    return %arg0, %c0_i32, %c0_i32_0 : i32, i32, i32
  }
}

module attributes {stable_mosaic.version = 11 : i64} {
  func.func @_bn_norm_kernel(%arg0: i32, %arg1: memref<1x49x128xbf16, #tpu.memory_space<vmem>>, %arg2: memref<2x128xf32, #tpu.memory_space<vmem>>, %arg3: memref<1x49x128xbf16, #tpu.memory_space<vmem>>, %arg4: memref<1x49x128xbf16, #tpu.memory_space<vmem>>) attributes {dimension_semantics = [#tpu.dimension_semantics<parallel>], iteration_bounds = array<i64: 2>, scalar_prefetch = 0 : i64, scratch_operands = 0 : i64, tpu.core_type = #tpu.core_type<tc>, window_params = [{transform_indices = @transform_0, window_bounds = array<i64: 1, 49, 128>}, {pipeline_mode = #tpu.pipeline_mode<synchronous>, transform_indices = @transform_1, window_bounds = array<i64: 2, 128>}, {transform_indices = @transform_2, window_bounds = array<i64: 1, 49, 128>}, {transform_indices = @transform_3, window_bounds = array<i64: 1, 49, 128>}]} {
    %c0 = arith.constant 0 : index
    %c0_0 = arith.constant 0 : index
    %c0_1 = arith.constant 0 : index
    %0 = vector.load %arg1[%c0, %c0_0, %c0_1] : memref<1x49x128xbf16, #tpu.memory_space<vmem>>, vector<1x49x128xbf16>
    %1 = vector.shape_cast %0 : vector<1x49x128xbf16> to vector<49x128xbf16>
    %2 = arith.extf %1 : vector<49x128xbf16> to vector<49x128xf32>
    %c0_2 = arith.constant 0 : index
    %c0_3 = arith.constant 0 : index
    %3 = vector.load %arg2[%c0_2, %c0_3] : memref<2x128xf32, #tpu.memory_space<vmem>>, vector<1x128xf32>
    %4 = vector.broadcast %3 : vector<1x128xf32> to vector<49x128xf32>
    %5 = arith.subf %2, %4 : vector<49x128xf32>
    %c1 = arith.constant 1 : index
    %c0_4 = arith.constant 0 : index
    %6 = vector.load %arg2[%c1, %c0_4] : memref<2x128xf32, #tpu.memory_space<vmem>>, vector<1x128xf32>
    %7 = vector.broadcast %6 : vector<1x128xf32> to vector<49x128xf32>
    %8 = arith.mulf %5, %7 : vector<49x128xf32>
    %c0_5 = arith.constant 0 : index
    %c0_6 = arith.constant 0 : index
    %c0_7 = arith.constant 0 : index
    %9 = vector.load %arg3[%c0_5, %c0_6, %c0_7] : memref<1x49x128xbf16, #tpu.memory_space<vmem>>, vector<1x49x128xbf16>
    %10 = vector.shape_cast %9 : vector<1x49x128xbf16> to vector<49x128xbf16>
    %11 = arith.extf %10 : vector<49x128xbf16> to vector<49x128xf32>
    %12 = arith.addf %8, %11 : vector<49x128xf32>
    %cst = arith.constant 0.000000e+00 : f32
    %13 = vector.broadcast %cst : f32 to vector<49x128xf32>
    %14 = arith.maximumf %12, %13 : vector<49x128xf32>
    %15 = arith.truncf %14 : vector<49x128xf32> to vector<49x128xbf16>
    %c0_8 = arith.constant 0 : index
    %c0_9 = arith.constant 0 : index
    %c0_10 = arith.constant 0 : index
    %16 = vector.load %arg4[%c0_8, %c0_9, %c0_10] : memref<1x49x128xbf16, #tpu.memory_space<vmem>>, vector<1x49x128xbf16>
    %17 = vector.shape_cast %16 : vector<1x49x128xbf16> to vector<49x128xbf16>
    %18 = vector.shape_cast %15 : vector<49x128xbf16> to vector<1x49x128xbf16>
    tpu.vector_store %arg4[%c0_8, %c0_9, %c0_10], %18 {strides = array<i32>} : memref<1x49x128xbf16, #tpu.memory_space<vmem>>, vector<1x49x128xbf16>,
    return
  }
  func.func @transform_0(%arg0: i32) -> (i32, i32, i32) {
    %c0_i32 = arith.constant 0 : i32
    %c0_i32_0 = arith.constant 0 : i32
    %c0_i32_1 = arith.constant 0 : i32
    return %arg0, %c0_i32, %c0_i32_0 : i32, i32, i32
  }
  func.func @transform_1(%arg0: i32) -> (i32, i32) {
    %c0_i32 = arith.constant 0 : i32
    %c0_i32_0 = arith.constant 0 : i32
    %c0_i32_1 = arith.constant 0 : i32
    return %c0_i32, %c0_i32_0 : i32, i32
  }
  func.func @transform_2(%arg0: i32) -> (i32, i32, i32) {
    %c0_i32 = arith.constant 0 : i32
    %c0_i32_0 = arith.constant 0 : i32
    %c0_i32_1 = arith.constant 0 : i32
    return %arg0, %c0_i32, %c0_i32_0 : i32, i32, i32
  }
  func.func @transform_3(%arg0: i32) -> (i32, i32, i32) {
    %c0_i32 = arith.constant 0 : i32
    %c0_i32_0 = arith.constant 0 : i32
    %c0_i32_1 = arith.constant 0 : i32
    return %arg0, %c0_i32, %c0_i32_0 : i32, i32, i32
  }
}

module attributes {stable_mosaic.version = 11 : i64} {
  func.func @_bn_stats_kernel(%arg0: i32, %arg1: memref<1x16x128xbf16, #tpu.memory_space<vmem>>, %arg2: memref<2x128xf32, #tpu.memory_space<vmem>>) attributes {dimension_semantics = [#tpu.dimension_semantics<arbitrary>], iteration_bounds = array<i64: 2>, scalar_prefetch = 0 : i64, scratch_operands = 0 : i64, tpu.core_type = #tpu.core_type<tc>, window_params = [{transform_indices = @transform_0, window_bounds = array<i64: 1, 16, 128>}, {pipeline_mode = #tpu.pipeline_mode<synchronous>, transform_indices = @transform_1, window_bounds = array<i64: 2, 128>}]} {
    %c0_i32 = arith.constant 0 : i32
    %0 = arith.cmpi eq, %arg0, %c0_i32 : i32
    %1 = arith.extui %0 : i1 to i32
    %c0_i32_0 = arith.constant 0 : i32
    %2 = arith.cmpi ne, %1, %c0_i32_0 : i32
    scf.if %2 {
      %cst_12 = arith.constant 0.000000e+00 : f32
      %20 = vector.broadcast %cst_12 : f32 to vector<2x128xf32>
      %c0_13 = arith.constant 0 : index
      %c0_14 = arith.constant 0 : index
      %21 = vector.load %arg2[%c0_13, %c0_14] : memref<2x128xf32, #tpu.memory_space<vmem>>, vector<2x128xf32>
      tpu.vector_store %arg2[%c0_13, %c0_14], %20 {strides = array<i32>} : memref<2x128xf32, #tpu.memory_space<vmem>>, vector<2x128xf32>,
    } else {
    }
    %c0 = arith.constant 0 : index
    %c0_1 = arith.constant 0 : index
    %c0_2 = arith.constant 0 : index
    %3 = vector.load %arg1[%c0, %c0_1, %c0_2] : memref<1x16x128xbf16, #tpu.memory_space<vmem>>, vector<1x16x128xbf16>
    %4 = vector.shape_cast %3 : vector<1x16x128xbf16> to vector<16x128xbf16>
    %5 = arith.extf %4 : vector<16x128xbf16> to vector<16x128xf32>
    %c0_3 = arith.constant 0 : index
    %c0_4 = arith.constant 0 : index
    %6 = vector.load %arg2[%c0_3, %c0_4] : memref<2x128xf32, #tpu.memory_space<vmem>>, vector<1x128xf32>
    %cst = arith.constant dense<0.000000e+00> : vector<128xf32>
    %7 = vector.multi_reduction <add>, %5, %cst [0] : vector<16x128xf32> to vector<128xf32>
    %8 = vector.shape_cast %7 : vector<128xf32> to vector<1x128xf32>
    %9 = arith.addf %6, %8 : vector<1x128xf32>
    %c0_5 = arith.constant 0 : index
    %c0_6 = arith.constant 0 : index
    %10 = vector.load %arg2[%c0_5, %c0_6] : memref<2x128xf32, #tpu.memory_space<vmem>>, vector<1x128xf32>
    tpu.vector_store %arg2[%c0_5, %c0_6], %9 {strides = array<i32>} : memref<2x128xf32, #tpu.memory_space<vmem>>, vector<1x128xf32>,
    %c1 = arith.constant 1 : index
    %c0_7 = arith.constant 0 : index
    %11 = vector.load %arg2[%c1, %c0_7] : memref<2x128xf32, #tpu.memory_space<vmem>>, vector<1x128xf32>
    %12 = arith.mulf %5, %5 : vector<16x128xf32>
    %cst_8 = arith.constant dense<0.000000e+00> : vector<128xf32>
    %13 = vector.multi_reduction <add>, %12, %cst_8 [0] : vector<16x128xf32> to vector<128xf32>
    %14 = vector.shape_cast %13 : vector<128xf32> to vector<1x128xf32>
    %15 = arith.addf %11, %14 : vector<1x128xf32>
    %c1_9 = arith.constant 1 : index
    %c0_10 = arith.constant 0 : index
    %16 = vector.load %arg2[%c1_9, %c0_10] : memref<2x128xf32, #tpu.memory_space<vmem>>, vector<1x128xf32>
    tpu.vector_store %arg2[%c1_9, %c0_10], %15 {strides = array<i32>} : memref<2x128xf32, #tpu.memory_space<vmem>>, vector<1x128xf32>,
    %c1_i32 = arith.constant 1 : i32
    %17 = arith.cmpi eq, %arg0, %c1_i32 : i32
    %18 = arith.extui %17 : i1 to i32
    %c0_i32_11 = arith.constant 0 : i32
    %19 = arith.cmpi ne, %18, %c0_i32_11 : i32
    scf.if %19 {
      %c0_12 = arith.constant 0 : index
      %c0_13 = arith.constant 0 : index
      %20 = vector.load %arg2[%c0_12, %c0_13] : memref<2x128xf32, #tpu.memory_space<vmem>>, vector<1x128xf32>
      %cst_14 = arith.constant 3.125000e-02 : f32
      %21 = vector.broadcast %cst_14 : f32 to vector<1x128xf32>
      %22 = arith.mulf %20, %21 : vector<1x128xf32>
      %c1_15 = arith.constant 1 : index
      %c0_16 = arith.constant 0 : index
      %23 = vector.load %arg2[%c1_15, %c0_16] : memref<2x128xf32, #tpu.memory_space<vmem>>, vector<1x128xf32>
      %cst_17 = arith.constant 3.125000e-02 : f32
      %24 = vector.broadcast %cst_17 : f32 to vector<1x128xf32>
      %25 = arith.mulf %23, %24 : vector<1x128xf32>
      %26 = arith.mulf %22, %22 : vector<1x128xf32>
      %27 = arith.subf %25, %26 : vector<1x128xf32>
      %c0_18 = arith.constant 0 : index
      %c0_19 = arith.constant 0 : index
      %28 = vector.load %arg2[%c0_18, %c0_19] : memref<2x128xf32, #tpu.memory_space<vmem>>, vector<1x128xf32>
      tpu.vector_store %arg2[%c0_18, %c0_19], %22 {strides = array<i32>} : memref<2x128xf32, #tpu.memory_space<vmem>>, vector<1x128xf32>,
      %cst_20 = arith.constant 9.99999974E-6 : f32
      %29 = vector.broadcast %cst_20 : f32 to vector<1x128xf32>
      %30 = arith.addf %27, %29 : vector<1x128xf32>
      %31 = math.rsqrt %30 : vector<1x128xf32>
      %c1_21 = arith.constant 1 : index
      %c0_22 = arith.constant 0 : index
      %32 = vector.load %arg2[%c1_21, %c0_22] : memref<2x128xf32, #tpu.memory_space<vmem>>, vector<1x128xf32>
      tpu.vector_store %arg2[%c1_21, %c0_22], %31 {strides = array<i32>} : memref<2x128xf32, #tpu.memory_space<vmem>>, vector<1x128xf32>,
    } else {
    }
    return
  }
  func.func @transform_0(%arg0: i32) -> (i32, i32, i32) {
    %c0_i32 = arith.constant 0 : i32
    %c0_i32_0 = arith.constant 0 : i32
    %c0_i32_1 = arith.constant 0 : i32
    return %arg0, %c0_i32, %c0_i32_0 : i32, i32, i32
  }
  func.func @transform_1(%arg0: i32) -> (i32, i32) {
    %c0_i32 = arith.constant 0 : i32
    %c0_i32_0 = arith.constant 0 : i32
    %c0_i32_1 = arith.constant 0 : i32
    return %c0_i32, %c0_i32_0 : i32, i32
  }
}

module attributes {stable_mosaic.version = 11 : i64} {
  func.func @_conv1x1_kernel(%arg0: i32, %arg1: memref<1x16x128xbf16, #tpu.memory_space<vmem>>, %arg2: memref<128x128xbf16, #tpu.memory_space<vmem>>, %arg3: memref<1x16x128xbf16, #tpu.memory_space<vmem>>) attributes {dimension_semantics = [#tpu.dimension_semantics<parallel>], iteration_bounds = array<i64: 2>, scalar_prefetch = 0 : i64, scratch_operands = 0 : i64, tpu.core_type = #tpu.core_type<tc>, window_params = [{transform_indices = @transform_0, window_bounds = array<i64: 1, 16, 128>}, {pipeline_mode = #tpu.pipeline_mode<synchronous>, transform_indices = @transform_1, window_bounds = array<i64: 128, 128>}, {transform_indices = @transform_2, window_bounds = array<i64: 1, 16, 128>}]} {
    %c0 = arith.constant 0 : index
    %c0_0 = arith.constant 0 : index
    %c0_1 = arith.constant 0 : index
    %0 = vector.load %arg1[%c0, %c0_0, %c0_1] : memref<1x16x128xbf16, #tpu.memory_space<vmem>>, vector<1x16x128xbf16>
    %1 = vector.shape_cast %0 : vector<1x16x128xbf16> to vector<16x128xbf16>
    %c0_2 = arith.constant 0 : index
    %c0_3 = arith.constant 0 : index
    %2 = vector.load %arg2[%c0_2, %c0_3] : memref<128x128xbf16, #tpu.memory_space<vmem>>, vector<128x128xbf16>
    %cst = arith.constant dense<0.000000e+00> : vector<16x128xf32>
    %3 = tpu.matmul %1, %2, %cst {dimension_numbers = #tpu.dot_dimension_numbers<[1], [0], [0], [1], [0, 0, 1, 1], [], []>} : vector<16x128xbf16>, vector<128x128xbf16>, vector<16x128xf32> -> vector<16x128xf32>
    %4 = arith.truncf %3 : vector<16x128xf32> to vector<16x128xbf16>
    %c0_4 = arith.constant 0 : index
    %c0_5 = arith.constant 0 : index
    %c0_6 = arith.constant 0 : index
    %5 = vector.load %arg3[%c0_4, %c0_5, %c0_6] : memref<1x16x128xbf16, #tpu.memory_space<vmem>>, vector<1x16x128xbf16>
    %6 = vector.shape_cast %5 : vector<1x16x128xbf16> to vector<16x128xbf16>
    %7 = vector.shape_cast %4 : vector<16x128xbf16> to vector<1x16x128xbf16>
    tpu.vector_store %arg3[%c0_4, %c0_5, %c0_6], %7 {strides = array<i32>} : memref<1x16x128xbf16, #tpu.memory_space<vmem>>, vector<1x16x128xbf16>,
    return
  }
  func.func @transform_0(%arg0: i32) -> (i32, i32, i32) {
    %c0_i32 = arith.constant 0 : i32
    %c0_i32_0 = arith.constant 0 : i32
    %c0_i32_1 = arith.constant 0 : i32
    return %arg0, %c0_i32, %c0_i32_0 : i32, i32, i32
  }
  func.func @transform_1(%arg0: i32) -> (i32, i32) {
    %c0_i32 = arith.constant 0 : i32
    %c0_i32_0 = arith.constant 0 : i32
    %c0_i32_1 = arith.constant 0 : i32
    return %c0_i32, %c0_i32_0 : i32, i32
  }
  func.func @transform_2(%arg0: i32) -> (i32, i32, i32) {
    %c0_i32 = arith.constant 0 : i32
    %c0_i32_0 = arith.constant 0 : i32
    %c0_i32_1 = arith.constant 0 : i32
    return %arg0, %c0_i32, %c0_i32_0 : i32, i32, i32
  }
}

module attributes {stable_mosaic.version = 11 : i64} {
  func.func @_bn_norm_kernel(%arg0: i32, %arg1: memref<1x16x128xbf16, #tpu.memory_space<vmem>>, %arg2: memref<2x128xf32, #tpu.memory_space<vmem>>, %arg3: memref<1x16x128xbf16, #tpu.memory_space<vmem>>) attributes {dimension_semantics = [#tpu.dimension_semantics<parallel>], iteration_bounds = array<i64: 2>, scalar_prefetch = 0 : i64, scratch_operands = 0 : i64, tpu.core_type = #tpu.core_type<tc>, window_params = [{transform_indices = @transform_0, window_bounds = array<i64: 1, 16, 128>}, {pipeline_mode = #tpu.pipeline_mode<synchronous>, transform_indices = @transform_1, window_bounds = array<i64: 2, 128>}, {transform_indices = @transform_2, window_bounds = array<i64: 1, 16, 128>}]} {
    %c0 = arith.constant 0 : index
    %c0_0 = arith.constant 0 : index
    %c0_1 = arith.constant 0 : index
    %0 = vector.load %arg1[%c0, %c0_0, %c0_1] : memref<1x16x128xbf16, #tpu.memory_space<vmem>>, vector<1x16x128xbf16>
    %1 = vector.shape_cast %0 : vector<1x16x128xbf16> to vector<16x128xbf16>
    %2 = arith.extf %1 : vector<16x128xbf16> to vector<16x128xf32>
    %c0_2 = arith.constant 0 : index
    %c0_3 = arith.constant 0 : index
    %3 = vector.load %arg2[%c0_2, %c0_3] : memref<2x128xf32, #tpu.memory_space<vmem>>, vector<1x128xf32>
    %4 = vector.broadcast %3 : vector<1x128xf32> to vector<16x128xf32>
    %5 = arith.subf %2, %4 : vector<16x128xf32>
    %c1 = arith.constant 1 : index
    %c0_4 = arith.constant 0 : index
    %6 = vector.load %arg2[%c1, %c0_4] : memref<2x128xf32, #tpu.memory_space<vmem>>, vector<1x128xf32>
    %7 = vector.broadcast %6 : vector<1x128xf32> to vector<16x128xf32>
    %8 = arith.mulf %5, %7 : vector<16x128xf32>
    %cst = arith.constant 0.000000e+00 : f32
    %9 = vector.broadcast %cst : f32 to vector<16x128xf32>
    %10 = arith.maximumf %8, %9 : vector<16x128xf32>
    %11 = arith.truncf %10 : vector<16x128xf32> to vector<16x128xbf16>
    %c0_5 = arith.constant 0 : index
    %c0_6 = arith.constant 0 : index
    %c0_7 = arith.constant 0 : index
    %12 = vector.load %arg3[%c0_5, %c0_6, %c0_7] : memref<1x16x128xbf16, #tpu.memory_space<vmem>>, vector<1x16x128xbf16>
    %13 = vector.shape_cast %12 : vector<1x16x128xbf16> to vector<16x128xbf16>
    %14 = vector.shape_cast %11 : vector<16x128xbf16> to vector<1x16x128xbf16>
    tpu.vector_store %arg3[%c0_5, %c0_6, %c0_7], %14 {strides = array<i32>} : memref<1x16x128xbf16, #tpu.memory_space<vmem>>, vector<1x16x128xbf16>,
    return
  }
  func.func @transform_0(%arg0: i32) -> (i32, i32, i32) {
    %c0_i32 = arith.constant 0 : i32
    %c0_i32_0 = arith.constant 0 : i32
    %c0_i32_1 = arith.constant 0 : i32
    return %arg0, %c0_i32, %c0_i32_0 : i32, i32, i32
  }
  func.func @transform_1(%arg0: i32) -> (i32, i32) {
    %c0_i32 = arith.constant 0 : i32
    %c0_i32_0 = arith.constant 0 : i32
    %c0_i32_1 = arith.constant 0 : i32
    return %c0_i32, %c0_i32_0 : i32, i32
  }
  func.func @transform_2(%arg0: i32) -> (i32, i32, i32) {
    %c0_i32 = arith.constant 0 : i32
    %c0_i32_0 = arith.constant 0 : i32
    %c0_i32_1 = arith.constant 0 : i32
    return %arg0, %c0_i32, %c0_i32_0 : i32, i32, i32
  }
}

module attributes {stable_mosaic.version = 11 : i64} {
  func.func @_bn_norm_kernel(%arg0: i32, %arg1: memref<1x16x128xbf16, #tpu.memory_space<vmem>>, %arg2: memref<2x128xf32, #tpu.memory_space<vmem>>, %arg3: memref<1x16x128xbf16, #tpu.memory_space<vmem>>) attributes {dimension_semantics = [#tpu.dimension_semantics<parallel>], iteration_bounds = array<i64: 2>, scalar_prefetch = 0 : i64, scratch_operands = 0 : i64, tpu.core_type = #tpu.core_type<tc>, window_params = [{transform_indices = @transform_0, window_bounds = array<i64: 1, 16, 128>}, {pipeline_mode = #tpu.pipeline_mode<synchronous>, transform_indices = @transform_1, window_bounds = array<i64: 2, 128>}, {transform_indices = @transform_2, window_bounds = array<i64: 1, 16, 128>}]} {
    %c0 = arith.constant 0 : index
    %c0_0 = arith.constant 0 : index
    %c0_1 = arith.constant 0 : index
    %0 = vector.load %arg1[%c0, %c0_0, %c0_1] : memref<1x16x128xbf16, #tpu.memory_space<vmem>>, vector<1x16x128xbf16>
    %1 = vector.shape_cast %0 : vector<1x16x128xbf16> to vector<16x128xbf16>
    %2 = arith.extf %1 : vector<16x128xbf16> to vector<16x128xf32>
    %c0_2 = arith.constant 0 : index
    %c0_3 = arith.constant 0 : index
    %3 = vector.load %arg2[%c0_2, %c0_3] : memref<2x128xf32, #tpu.memory_space<vmem>>, vector<1x128xf32>
    %4 = vector.broadcast %3 : vector<1x128xf32> to vector<16x128xf32>
    %5 = arith.subf %2, %4 : vector<16x128xf32>
    %c1 = arith.constant 1 : index
    %c0_4 = arith.constant 0 : index
    %6 = vector.load %arg2[%c1, %c0_4] : memref<2x128xf32, #tpu.memory_space<vmem>>, vector<1x128xf32>
    %7 = vector.broadcast %6 : vector<1x128xf32> to vector<16x128xf32>
    %8 = arith.mulf %5, %7 : vector<16x128xf32>
    %9 = arith.truncf %8 : vector<16x128xf32> to vector<16x128xbf16>
    %c0_5 = arith.constant 0 : index
    %c0_6 = arith.constant 0 : index
    %c0_7 = arith.constant 0 : index
    %10 = vector.load %arg3[%c0_5, %c0_6, %c0_7] : memref<1x16x128xbf16, #tpu.memory_space<vmem>>, vector<1x16x128xbf16>
    %11 = vector.shape_cast %10 : vector<1x16x128xbf16> to vector<16x128xbf16>
    %12 = vector.shape_cast %9 : vector<16x128xbf16> to vector<1x16x128xbf16>
    tpu.vector_store %arg3[%c0_5, %c0_6, %c0_7], %12 {strides = array<i32>} : memref<1x16x128xbf16, #tpu.memory_space<vmem>>, vector<1x16x128xbf16>,
    return
  }
  func.func @transform_0(%arg0: i32) -> (i32, i32, i32) {
    %c0_i32 = arith.constant 0 : i32
    %c0_i32_0 = arith.constant 0 : i32
    %c0_i32_1 = arith.constant 0 : i32
    return %arg0, %c0_i32, %c0_i32_0 : i32, i32, i32
  }
  func.func @transform_1(%arg0: i32) -> (i32, i32) {
    %c0_i32 = arith.constant 0 : i32
    %c0_i32_0 = arith.constant 0 : i32
    %c0_i32_1 = arith.constant 0 : i32
    return %c0_i32, %c0_i32_0 : i32, i32
  }
  func.func @transform_2(%arg0: i32) -> (i32, i32, i32) {
    %c0_i32 = arith.constant 0 : i32
    %c0_i32_0 = arith.constant 0 : i32
    %c0_i32_1 = arith.constant 0 : i32
    return %arg0, %c0_i32, %c0_i32_0 : i32, i32, i32
  }
}

module attributes {stable_mosaic.version = 11 : i64} {
  func.func @_conv3x3_kernel(%arg0: i32, %arg1: memref<1x42x128xbf16, #tpu.memory_space<vmem>>, %arg2: memref<9x128x128xbf16, #tpu.memory_space<vmem>>, %arg3: memref<1x16x128xbf16, #tpu.memory_space<vmem>>) attributes {dimension_semantics = [#tpu.dimension_semantics<parallel>], iteration_bounds = array<i64: 2>, scalar_prefetch = 0 : i64, scratch_operands = 0 : i64, tpu.core_type = #tpu.core_type<tc>, window_params = [{transform_indices = @transform_0, window_bounds = array<i64: 1, 42, 128>}, {pipeline_mode = #tpu.pipeline_mode<synchronous>, transform_indices = @transform_1, window_bounds = array<i64: 9, 128, 128>}, {transform_indices = @transform_2, window_bounds = array<i64: 1, 16, 128>}]} {
    %c0 = arith.constant 0 : index
    %c0_0 = arith.constant 0 : index
    %c0_1 = arith.constant 0 : index
    %0 = vector.load %arg1[%c0, %c0_0, %c0_1] : memref<1x42x128xbf16, #tpu.memory_space<vmem>>, vector<1x42x128xbf16>
    %1 = vector.shape_cast %0 : vector<1x42x128xbf16> to vector<42x128xbf16>
    %2 = vector.extract_strided_slice %1 {offsets = [0, 0], sizes = [24, 128], strides = [1, 1]} : vector<42x128xbf16> to vector<24x128xbf16>
    %c0_2 = arith.constant 0 : index
    %c0_3 = arith.constant 0 : index
    %c0_4 = arith.constant 0 : index
    %3 = vector.load %arg2[%c0_2, %c0_3, %c0_4] : memref<9x128x128xbf16, #tpu.memory_space<vmem>>, vector<1x128x128xbf16>
    %4 = vector.shape_cast %3 : vector<1x128x128xbf16> to vector<128x128xbf16>
    %cst = arith.constant dense<0.000000e+00> : vector<24x128xf32>
    %5 = tpu.matmul %2, %4, %cst {dimension_numbers = #tpu.dot_dimension_numbers<[1], [0], [0], [1], [0, 0, 1, 1], [], []>} : vector<24x128xbf16>, vector<128x128xbf16>, vector<24x128xf32> -> vector<24x128xf32>
    %6 = vector.extract_strided_slice %1 {offsets = [1, 0], sizes = [24, 128], strides = [1, 1]} : vector<42x128xbf16> to vector<24x128xbf16>
    %c1 = arith.constant 1 : index
    %c0_5 = arith.constant 0 : index
    %c0_6 = arith.constant 0 : index
    %7 = vector.load %arg2[%c1, %c0_5, %c0_6] : memref<9x128x128xbf16, #tpu.memory_space<vmem>>, vector<1x128x128xbf16>
    %8 = vector.shape_cast %7 : vector<1x128x128xbf16> to vector<128x128xbf16>
    %cst_7 = arith.constant dense<0.000000e+00> : vector<24x128xf32>
    %9 = tpu.matmul %6, %8, %cst_7 {dimension_numbers = #tpu.dot_dimension_numbers<[1], [0], [0], [1], [0, 0, 1, 1], [], []>} : vector<24x128xbf16>, vector<128x128xbf16>, vector<24x128xf32> -> vector<24x128xf32>
    %10 = arith.addf %5, %9 : vector<24x128xf32>
    %11 = vector.extract_strided_slice %1 {offsets = [2, 0], sizes = [24, 128], strides = [1, 1]} : vector<42x128xbf16> to vector<24x128xbf16>
    %c2 = arith.constant 2 : index
    %c0_8 = arith.constant 0 : index
    %c0_9 = arith.constant 0 : index
    %12 = vector.load %arg2[%c2, %c0_8, %c0_9] : memref<9x128x128xbf16, #tpu.memory_space<vmem>>, vector<1x128x128xbf16>
    %13 = vector.shape_cast %12 : vector<1x128x128xbf16> to vector<128x128xbf16>
    %cst_10 = arith.constant dense<0.000000e+00> : vector<24x128xf32>
    %14 = tpu.matmul %11, %13, %cst_10 {dimension_numbers = #tpu.dot_dimension_numbers<[1], [0], [0], [1], [0, 0, 1, 1], [], []>} : vector<24x128xbf16>, vector<128x128xbf16>, vector<24x128xf32> -> vector<24x128xf32>
    %15 = arith.addf %10, %14 : vector<24x128xf32>
    %16 = vector.extract_strided_slice %1 {offsets = [6, 0], sizes = [24, 128], strides = [1, 1]} : vector<42x128xbf16> to vector<24x128xbf16>
    %c3 = arith.constant 3 : index
    %c0_11 = arith.constant 0 : index
    %c0_12 = arith.constant 0 : index
    %17 = vector.load %arg2[%c3, %c0_11, %c0_12] : memref<9x128x128xbf16, #tpu.memory_space<vmem>>, vector<1x128x128xbf16>
    %18 = vector.shape_cast %17 : vector<1x128x128xbf16> to vector<128x128xbf16>
    %cst_13 = arith.constant dense<0.000000e+00> : vector<24x128xf32>
    %19 = tpu.matmul %16, %18, %cst_13 {dimension_numbers = #tpu.dot_dimension_numbers<[1], [0], [0], [1], [0, 0, 1, 1], [], []>} : vector<24x128xbf16>, vector<128x128xbf16>, vector<24x128xf32> -> vector<24x128xf32>
    %20 = arith.addf %15, %19 : vector<24x128xf32>
    %21 = vector.extract_strided_slice %1 {offsets = [7, 0], sizes = [24, 128], strides = [1, 1]} : vector<42x128xbf16> to vector<24x128xbf16>
    %c4 = arith.constant 4 : index
    %c0_14 = arith.constant 0 : index
    %c0_15 = arith.constant 0 : index
    %22 = vector.load %arg2[%c4, %c0_14, %c0_15] : memref<9x128x128xbf16, #tpu.memory_space<vmem>>, vector<1x128x128xbf16>
    %23 = vector.shape_cast %22 : vector<1x128x128xbf16> to vector<128x128xbf16>
    %cst_16 = arith.constant dense<0.000000e+00> : vector<24x128xf32>
    %24 = tpu.matmul %21, %23, %cst_16 {dimension_numbers = #tpu.dot_dimension_numbers<[1], [0], [0], [1], [0, 0, 1, 1], [], []>} : vector<24x128xbf16>, vector<128x128xbf16>, vector<24x128xf32> -> vector<24x128xf32>
    %25 = arith.addf %20, %24 : vector<24x128xf32>
    %26 = vector.extract_strided_slice %1 {offsets = [8, 0], sizes = [24, 128], strides = [1, 1]} : vector<42x128xbf16> to vector<24x128xbf16>
    %c5 = arith.constant 5 : index
    %c0_17 = arith.constant 0 : index
    %c0_18 = arith.constant 0 : index
    %27 = vector.load %arg2[%c5, %c0_17, %c0_18] : memref<9x128x128xbf16, #tpu.memory_space<vmem>>, vector<1x128x128xbf16>
    %28 = vector.shape_cast %27 : vector<1x128x128xbf16> to vector<128x128xbf16>
    %cst_19 = arith.constant dense<0.000000e+00> : vector<24x128xf32>
    %29 = tpu.matmul %26, %28, %cst_19 {dimension_numbers = #tpu.dot_dimension_numbers<[1], [0], [0], [1], [0, 0, 1, 1], [], []>} : vector<24x128xbf16>, vector<128x128xbf16>, vector<24x128xf32> -> vector<24x128xf32>
    %30 = arith.addf %25, %29 : vector<24x128xf32>
    %31 = vector.extract_strided_slice %1 {offsets = [12, 0], sizes = [24, 128], strides = [1, 1]} : vector<42x128xbf16> to vector<24x128xbf16>
    %c6 = arith.constant 6 : index
    %c0_20 = arith.constant 0 : index
    %c0_21 = arith.constant 0 : index
    %32 = vector.load %arg2[%c6, %c0_20, %c0_21] : memref<9x128x128xbf16, #tpu.memory_space<vmem>>, vector<1x128x128xbf16>
    %33 = vector.shape_cast %32 : vector<1x128x128xbf16> to vector<128x128xbf16>
    %cst_22 = arith.constant dense<0.000000e+00> : vector<24x128xf32>
    %34 = tpu.matmul %31, %33, %cst_22 {dimension_numbers = #tpu.dot_dimension_numbers<[1], [0], [0], [1], [0, 0, 1, 1], [], []>} : vector<24x128xbf16>, vector<128x128xbf16>, vector<24x128xf32> -> vector<24x128xf32>
    %35 = arith.addf %30, %34 : vector<24x128xf32>
    %36 = vector.extract_strided_slice %1 {offsets = [13, 0], sizes = [24, 128], strides = [1, 1]} : vector<42x128xbf16> to vector<24x128xbf16>
    %c7 = arith.constant 7 : index
    %c0_23 = arith.constant 0 : index
    %c0_24 = arith.constant 0 : index
    %37 = vector.load %arg2[%c7, %c0_23, %c0_24] : memref<9x128x128xbf16, #tpu.memory_space<vmem>>, vector<1x128x128xbf16>
    %38 = vector.shape_cast %37 : vector<1x128x128xbf16> to vector<128x128xbf16>
    %cst_25 = arith.constant dense<0.000000e+00> : vector<24x128xf32>
    %39 = tpu.matmul %36, %38, %cst_25 {dimension_numbers = #tpu.dot_dimension_numbers<[1], [0], [0], [1], [0, 0, 1, 1], [], []>} : vector<24x128xbf16>, vector<128x128xbf16>, vector<24x128xf32> -> vector<24x128xf32>
    %40 = arith.addf %35, %39 : vector<24x128xf32>
    %41 = vector.extract_strided_slice %1 {offsets = [14, 0], sizes = [24, 128], strides = [1, 1]} : vector<42x128xbf16> to vector<24x128xbf16>
    %c8 = arith.constant 8 : index
    %c0_26 = arith.constant 0 : index
    %c0_27 = arith.constant 0 : index
    %42 = vector.load %arg2[%c8, %c0_26, %c0_27] : memref<9x128x128xbf16, #tpu.memory_space<vmem>>, vector<1x128x128xbf16>
    %43 = vector.shape_cast %42 : vector<1x128x128xbf16> to vector<128x128xbf16>
    %cst_28 = arith.constant dense<0.000000e+00> : vector<24x128xf32>
    %44 = tpu.matmul %41, %43, %cst_28 {dimension_numbers = #tpu.dot_dimension_numbers<[1], [0], [0], [1], [0, 0, 1, 1], [], []>} : vector<24x128xbf16>, vector<128x128xbf16>, vector<24x128xf32> -> vector<24x128xf32>
    %45 = arith.addf %40, %44 : vector<24x128xf32>
    %46 = arith.truncf %45 : vector<24x128xf32> to vector<24x128xbf16>
    %47 = vector.extract_strided_slice %46 {offsets = [0, 0], sizes = [4, 128], strides = [1, 1]} : vector<24x128xbf16> to vector<4x128xbf16>
    %c0_29 = arith.constant 0 : index
    %c0_30 = arith.constant 0 : index
    %c0_31 = arith.constant 0 : index
    %48 = vector.load %arg3[%c0_29, %c0_30, %c0_31] : memref<1x16x128xbf16, #tpu.memory_space<vmem>>, vector<1x4x128xbf16>
    %49 = vector.shape_cast %48 : vector<1x4x128xbf16> to vector<4x128xbf16>
    %50 = vector.shape_cast %47 : vector<4x128xbf16> to vector<1x4x128xbf16>
    tpu.vector_store %arg3[%c0_29, %c0_30, %c0_31], %50 {strides = array<i32>} : memref<1x16x128xbf16, #tpu.memory_space<vmem>>, vector<1x4x128xbf16>,
    %51 = vector.extract_strided_slice %46 {offsets = [6, 0], sizes = [4, 128], strides = [1, 1]} : vector<24x128xbf16> to vector<4x128xbf16>
    %c0_32 = arith.constant 0 : index
    %c4_33 = arith.constant 4 : index
    %c0_34 = arith.constant 0 : index
    %52 = vector.load %arg3[%c0_32, %c4_33, %c0_34] : memref<1x16x128xbf16, #tpu.memory_space<vmem>>, vector<1x4x128xbf16>
    %53 = vector.shape_cast %52 : vector<1x4x128xbf16> to vector<4x128xbf16>
    %54 = vector.shape_cast %51 : vector<4x128xbf16> to vector<1x4x128xbf16>
    tpu.vector_store %arg3[%c0_32, %c4_33, %c0_34], %54 {strides = array<i32>} : memref<1x16x128xbf16, #tpu.memory_space<vmem>>, vector<1x4x128xbf16>,
    %55 = vector.extract_strided_slice %46 {offsets = [12, 0], sizes = [4, 128], strides = [1, 1]} : vector<24x128xbf16> to vector<4x128xbf16>
    %c0_35 = arith.constant 0 : index
    %c8_36 = arith.constant 8 : index
    %c0_37 = arith.constant 0 : index
    %56 = vector.load %arg3[%c0_35, %c8_36, %c0_37] : memref<1x16x128xbf16, #tpu.memory_space<vmem>>, vector<1x4x128xbf16>
    %57 = vector.shape_cast %56 : vector<1x4x128xbf16> to vector<4x128xbf16>
    %58 = vector.shape_cast %55 : vector<4x128xbf16> to vector<1x4x128xbf16>
    tpu.vector_store %arg3[%c0_35, %c8_36, %c0_37], %58 {strides = array<i32>} : memref<1x16x128xbf16, #tpu.memory_space<vmem>>, vector<1x4x128xbf16>,
    %59 = vector.extract_strided_slice %46 {offsets = [18, 0], sizes = [4, 128], strides = [1, 1]} : vector<24x128xbf16> to vector<4x128xbf16>
    %c0_38 = arith.constant 0 : index
    %c12 = arith.constant 12 : index
    %c0_39 = arith.constant 0 : index
    %60 = vector.load %arg3[%c0_38, %c12, %c0_39] : memref<1x16x128xbf16, #tpu.memory_space<vmem>>, vector<1x4x128xbf16>
    %61 = vector.shape_cast %60 : vector<1x4x128xbf16> to vector<4x128xbf16>
    %62 = vector.shape_cast %59 : vector<4x128xbf16> to vector<1x4x128xbf16>
    tpu.vector_store %arg3[%c0_38, %c12, %c0_39], %62 {strides = array<i32>} : memref<1x16x128xbf16, #tpu.memory_space<vmem>>, vector<1x4x128xbf16>,
    return
  }
  func.func @transform_0(%arg0: i32) -> (i32, i32, i32) {
    %c0_i32 = arith.constant 0 : i32
    %c0_i32_0 = arith.constant 0 : i32
    %c0_i32_1 = arith.constant 0 : i32
    return %arg0, %c0_i32, %c0_i32_0 : i32, i32, i32
  }
  func.func @transform_1(%arg0: i32) -> (i32, i32, i32) {
    %c0_i32 = arith.constant 0 : i32
    %c0_i32_0 = arith.constant 0 : i32
    %c0_i32_1 = arith.constant 0 : i32
    %c0_i32_2 = arith.constant 0 : i32
    return %c0_i32, %c0_i32_0, %c0_i32_1 : i32, i32, i32
  }
  func.func @transform_2(%arg0: i32) -> (i32, i32, i32) {
    %c0_i32 = arith.constant 0 : i32
    %c0_i32_0 = arith.constant 0 : i32
    %c0_i32_1 = arith.constant 0 : i32
    return %arg0, %c0_i32, %c0_i32_0 : i32, i32, i32
  }
}

module attributes {stable_mosaic.version = 11 : i64} {
  func.func @_bn_norm_kernel(%arg0: i32, %arg1: memref<1x16x128xbf16, #tpu.memory_space<vmem>>, %arg2: memref<2x128xf32, #tpu.memory_space<vmem>>, %arg3: memref<1x16x128xbf16, #tpu.memory_space<vmem>>, %arg4: memref<1x16x128xbf16, #tpu.memory_space<vmem>>) attributes {dimension_semantics = [#tpu.dimension_semantics<parallel>], iteration_bounds = array<i64: 2>, scalar_prefetch = 0 : i64, scratch_operands = 0 : i64, tpu.core_type = #tpu.core_type<tc>, window_params = [{transform_indices = @transform_0, window_bounds = array<i64: 1, 16, 128>}, {pipeline_mode = #tpu.pipeline_mode<synchronous>, transform_indices = @transform_1, window_bounds = array<i64: 2, 128>}, {transform_indices = @transform_2, window_bounds = array<i64: 1, 16, 128>}, {transform_indices = @transform_3, window_bounds = array<i64: 1, 16, 128>}]} {
    %c0 = arith.constant 0 : index
    %c0_0 = arith.constant 0 : index
    %c0_1 = arith.constant 0 : index
    %0 = vector.load %arg1[%c0, %c0_0, %c0_1] : memref<1x16x128xbf16, #tpu.memory_space<vmem>>, vector<1x16x128xbf16>
    %1 = vector.shape_cast %0 : vector<1x16x128xbf16> to vector<16x128xbf16>
    %2 = arith.extf %1 : vector<16x128xbf16> to vector<16x128xf32>
    %c0_2 = arith.constant 0 : index
    %c0_3 = arith.constant 0 : index
    %3 = vector.load %arg2[%c0_2, %c0_3] : memref<2x128xf32, #tpu.memory_space<vmem>>, vector<1x128xf32>
    %4 = vector.broadcast %3 : vector<1x128xf32> to vector<16x128xf32>
    %5 = arith.subf %2, %4 : vector<16x128xf32>
    %c1 = arith.constant 1 : index
    %c0_4 = arith.constant 0 : index
    %6 = vector.load %arg2[%c1, %c0_4] : memref<2x128xf32, #tpu.memory_space<vmem>>, vector<1x128xf32>
    %7 = vector.broadcast %6 : vector<1x128xf32> to vector<16x128xf32>
    %8 = arith.mulf %5, %7 : vector<16x128xf32>
    %c0_5 = arith.constant 0 : index
    %c0_6 = arith.constant 0 : index
    %c0_7 = arith.constant 0 : index
    %9 = vector.load %arg3[%c0_5, %c0_6, %c0_7] : memref<1x16x128xbf16, #tpu.memory_space<vmem>>, vector<1x16x128xbf16>
    %10 = vector.shape_cast %9 : vector<1x16x128xbf16> to vector<16x128xbf16>
    %11 = arith.extf %10 : vector<16x128xbf16> to vector<16x128xf32>
    %12 = arith.addf %8, %11 : vector<16x128xf32>
    %cst = arith.constant 0.000000e+00 : f32
    %13 = vector.broadcast %cst : f32 to vector<16x128xf32>
    %14 = arith.maximumf %12, %13 : vector<16x128xf32>
    %15 = arith.truncf %14 : vector<16x128xf32> to vector<16x128xbf16>
    %c0_8 = arith.constant 0 : index
    %c0_9 = arith.constant 0 : index
    %c0_10 = arith.constant 0 : index
    %16 = vector.load %arg4[%c0_8, %c0_9, %c0_10] : memref<1x16x128xbf16, #tpu.memory_space<vmem>>, vector<1x16x128xbf16>
    %17 = vector.shape_cast %16 : vector<1x16x128xbf16> to vector<16x128xbf16>
    %18 = vector.shape_cast %15 : vector<16x128xbf16> to vector<1x16x128xbf16>
    tpu.vector_store %arg4[%c0_8, %c0_9, %c0_10], %18 {strides = array<i32>} : memref<1x16x128xbf16, #tpu.memory_space<vmem>>, vector<1x16x128xbf16>,
    return
  }
  func.func @transform_0(%arg0: i32) -> (i32, i32, i32) {
    %c0_i32 = arith.constant 0 : i32
    %c0_i32_0 = arith.constant 0 : i32
    %c0_i32_1 = arith.constant 0 : i32
    return %arg0, %c0_i32, %c0_i32_0 : i32, i32, i32
  }
  func.func @transform_1(%arg0: i32) -> (i32, i32) {
    %c0_i32 = arith.constant 0 : i32
    %c0_i32_0 = arith.constant 0 : i32
    %c0_i32_1 = arith.constant 0 : i32
    return %c0_i32, %c0_i32_0 : i32, i32
  }
  func.func @transform_2(%arg0: i32) -> (i32, i32, i32) {
    %c0_i32 = arith.constant 0 : i32
    %c0_i32_0 = arith.constant 0 : i32
    %c0_i32_1 = arith.constant 0 : i32
    return %arg0, %c0_i32, %c0_i32_0 : i32, i32, i32
  }
  func.func @transform_3(%arg0: i32) -> (i32, i32, i32) {
    %c0_i32 = arith.constant 0 : i32
    %c0_i32_0 = arith.constant 0 : i32
    %c0_i32_1 = arith.constant 0 : i32
    return %arg0, %c0_i32, %c0_i32_0 : i32, i32, i32
  }
}

module attributes {stable_mosaic.version = 11 : i64} {
  func.func @_head_kernel(%arg0: i32, %arg1: memref<1x16x128xbf16, #tpu.memory_space<vmem>>, %arg2: memref<128x128xbf16, #tpu.memory_space<vmem>>, %arg3: memref<1x128xf32, #tpu.memory_space<vmem>>, %arg4: memref<1x1x128xf32, #tpu.memory_space<vmem>>) attributes {dimension_semantics = [#tpu.dimension_semantics<parallel>], iteration_bounds = array<i64: 2>, scalar_prefetch = 0 : i64, scratch_operands = 0 : i64, tpu.core_type = #tpu.core_type<tc>, window_params = [{transform_indices = @transform_0, window_bounds = array<i64: 1, 16, 128>}, {pipeline_mode = #tpu.pipeline_mode<synchronous>, transform_indices = @transform_1, window_bounds = array<i64: 128, 128>}, {pipeline_mode = #tpu.pipeline_mode<synchronous>, transform_indices = @transform_2, window_bounds = array<i64: 1, 128>}, {transform_indices = @transform_3, window_bounds = array<i64: 1, 1, 128>}]} {
    %c0 = arith.constant 0 : index
    %c0_0 = arith.constant 0 : index
    %c0_1 = arith.constant 0 : index
    %0 = vector.load %arg1[%c0, %c0_0, %c0_1] : memref<1x16x128xbf16, #tpu.memory_space<vmem>>, vector<1x16x128xbf16>
    %1 = vector.shape_cast %0 : vector<1x16x128xbf16> to vector<16x128xbf16>
    %2 = arith.extf %1 : vector<16x128xbf16> to vector<16x128xf32>
    %cst = arith.constant dense<0.000000e+00> : vector<128xf32>
    %3 = vector.multi_reduction <add>, %2, %cst [0] : vector<16x128xf32> to vector<128xf32>
    %4 = vector.shape_cast %3 : vector<128xf32> to vector<1x128xf32>
    %cst_2 = arith.constant 6.250000e-02 : f32
    %5 = vector.broadcast %cst_2 : f32 to vector<1x128xf32>
    %6 = arith.mulf %4, %5 : vector<1x128xf32>
    %7 = arith.truncf %6 : vector<1x128xf32> to vector<1x128xbf16>
    %c0_3 = arith.constant 0 : index
    %c0_4 = arith.constant 0 : index
    %8 = vector.load %arg2[%c0_3, %c0_4] : memref<128x128xbf16, #tpu.memory_space<vmem>>, vector<128x128xbf16>
    %cst_5 = arith.constant dense<0.000000e+00> : vector<1x128xf32>
    %9 = tpu.matmul %7, %8, %cst_5 {dimension_numbers = #tpu.dot_dimension_numbers<[1], [0], [0], [1], [0, 0, 1, 1], [], []>} : vector<1x128xbf16>, vector<128x128xbf16>, vector<1x128xf32> -> vector<1x128xf32>
    %c0_6 = arith.constant 0 : index
    %c0_7 = arith.constant 0 : index
    %10 = vector.load %arg3[%c0_6, %c0_7] : memref<1x128xf32, #tpu.memory_space<vmem>>, vector<1x128xf32>
    %11 = arith.addf %9, %10 : vector<1x128xf32>
    %c0_8 = arith.constant 0 : index
    %c0_9 = arith.constant 0 : index
    %c0_10 = arith.constant 0 : index
    %12 = vector.load %arg4[%c0_8, %c0_9, %c0_10] : memref<1x1x128xf32, #tpu.memory_space<vmem>>, vector<1x1x128xf32>
    %13 = vector.shape_cast %12 : vector<1x1x128xf32> to vector<1x128xf32>
    %14 = vector.shape_cast %11 : vector<1x128xf32> to vector<1x1x128xf32>
    tpu.vector_store %arg4[%c0_8, %c0_9, %c0_10], %14 {strides = array<i32>} : memref<1x1x128xf32, #tpu.memory_space<vmem>>, vector<1x1x128xf32>,
    return
  }
  func.func @transform_0(%arg0: i32) -> (i32, i32, i32) {
    %c0_i32 = arith.constant 0 : i32
    %c0_i32_0 = arith.constant 0 : i32
    %c0_i32_1 = arith.constant 0 : i32
    return %arg0, %c0_i32, %c0_i32_0 : i32, i32, i32
  }
  func.func @transform_1(%arg0: i32) -> (i32, i32) {
    %c0_i32 = arith.constant 0 : i32
    %c0_i32_0 = arith.constant 0 : i32
    %c0_i32_1 = arith.constant 0 : i32
    return %c0_i32, %c0_i32_0 : i32, i32
  }
  func.func @transform_2(%arg0: i32) -> (i32, i32) {
    %c0_i32 = arith.constant 0 : i32
    %c0_i32_0 = arith.constant 0 : i32
    %c0_i32_1 = arith.constant 0 : i32
    return %c0_i32, %c0_i32_0 : i32, i32
  }
  func.func @transform_3(%arg0: i32) -> (i32, i32, i32) {
    %c0_i32 = arith.constant 0 : i32
    %c0_i32_0 = arith.constant 0 : i32
    %c0_i32_1 = arith.constant 0 : i32
    return %arg0, %c0_i32, %c0_i32_0 : i32, i32, i32
  }
}

</mosaic_0001>

<bundles_post_ra>
// kernel: _lambda_.50
= control target key start
LH: loop header
LB: loop body
LE: loop exit
PB: predicated region body
PF: predicated region fallthrough
CT: control target
= control target key end

     0   :  { %s401_s6 = smov 0   ;;  %s465_s0 = inlined_call_operand.vmem [shape: bf16[2,196,128], index: 0, kind: input, shape index: {}]   ;;  %s466_s1 = inlined_call_operand.vmem [shape: f32[2,128], index: 1, kind: output, shape index: {}]  }
   0x1 LB: > { %s407_s7 = sadd.s32 4294967295, %s388_s6   ;;  %p305_p0 = scmp.ge.s32.totalorder %s388_s6, 1  ;;  %s388_s6 = sphi %s401_s6, %s11_s6  }
   0x2   : > { %p82_p1 = scmp.lt.s32.totalorder %s388_s6, 3 }
   0x4   : > { %p83_p2 = pnand %p305_p0, %p82_p1 }
   0x5   : > { %p97_p3 = scmp.lt.s32.totalorder (!%p83_p2), %s407_s7, 1  ;;  %p307_p4 = scmp.ne.s32.totalorder (!%p83_p2), %s407_s7, 0 }
   0x6   : > { %86 = sbr.rel (%p83_p2) target bundleno = 119 (0x77), region = 24 }
   0xb   : > { %s98_s8 = scalar_select %p97_p3, %s407_s7, 1 }
   0xc   : > { %105 = sbr.rel (%p307_p4) target bundleno = 19 (0x13), region = 28 }
   0xd   : > { %s370_s9 = smul.u32 100, %s98_s8 }
   0xf   : > { %s416_s12 = scalar_lea.vmem %s465_s0, %s370_s9 }
  0x11   : > { %v390_v0 = vmov 0.0  }
  0x12   : > { %106 = vst [vmem:[%s466_s1] sm:$0x3] %v390_v0 }
  0x13 PF: > { %v312_v1 = vld [vmem:[%s416_s12] sm:$0xff]   ;;  %v359_v2 = vld [vmem:[%s416_s12 + $0x8] sm:$0xff]   ;;  %v360_v7 = vld [vmem:[%s416_s12 + $0x10] sm:$0xff]   ;;  %vm181_vm0 = vcmask 1043456   ;;  %p308_p5 = scmp.ne.s32.totalorder %s407_s7, 1 }
  0x14   : > { %v313_v3 = vunpack.c.l.bf16 %v312_v1  ;;  %v314_v4 = vunpack.c.h.bf16 %v312_v1  ;;  %v317_v5 = vunpack.c.l.bf16 %v359_v2  ;;  %v318_v8 = vunpack.c.h.bf16 %v359_v2  ;;  %v361_v15 = vld [vmem:[%s416_s12 + $0x18] sm:$0xff]   ;;  %v362_v24 = vld [vmem:[%s416_s12 + $0x20] sm:$0xff]   ;;  %v363_v33 = vld [vmem:[%s416_s12 + $0x28] sm:$0xff]  }
  0x15   : > { %v321_v12 = vunpack.c.l.bf16 %v360_v7  ;;  %v322_v16 = vunpack.c.h.bf16 %v360_v7  ;;  %v325_v20 = vunpack.c.l.bf16 %v361_v15  ;;  %v326_v25 = vunpack.c.h.bf16 %v361_v15  ;;  %v364_v42 = vld [vmem:[%s416_s12 + $0x30] sm:$0xff]   ;;  %v365_v51 = vld [vmem:[%s416_s12 + $0x38] sm:$0xff]   ;;  %v366_v60 = vld [vmem:[%s416_s12 + $0x40] sm:$0xff]  }
  0x16   : > { %v158_v6 = vadd.f32 %v314_v4, %v313_v3  ;;  %v193_v10 = vmul.f32 %v313_v3, %v313_v3  ;;  %v194_v11 = vmul.f32 %v314_v4, %v314_v4  ;;  %v195_v14 = vmul.f32 %v317_v5, %v317_v5 }
  0x17   : > { %v196_v18 = vmul.f32 %v318_v8, %v318_v8  ;;  %v197_v22 = vmul.f32 %v321_v12, %v321_v12  ;;  %v198_v27 = vmul.f32 %v322_v16, %v322_v16  ;;  %v329_v29 = vunpack.c.l.bf16 %v362_v24 }
  0x18   : > { %v159_v9 = vadd.f32 %v317_v5, %v158_v6  ;;  %v218_v19 = vadd.f32 %v194_v11, %v193_v10  ;;  %v199_v31 = vmul.f32 %v325_v20, %v325_v20  ;;  %v330_v34 = vunpack.c.h.bf16 %v362_v24  ;;  %v367_v5 = vld [vmem:[%s416_s12 + $0x48] sm:$0xff]  }
  0x19   : > { %v200_v36 = vmul.f32 %v326_v25, %v326_v25  ;;  %v333_v38 = vunpack.c.l.bf16 %v363_v33  ;;  %v201_v40 = vmul.f32 %v329_v29, %v329_v29  ;;  %v334_v43 = vunpack.c.h.bf16 %v363_v33 }
  0x1a   : > { %v160_v13 = vadd.f32 %v318_v8, %v159_v9  ;;  %v219_v23 = vadd.f32 %v218_v19, %v195_v14  ;;  %v202_v45 = vmul.f32 %v330_v34, %v330_v34  ;;  %v337_v47 = vunpack.c.l.bf16 %v364_v42  ;;  %v368_v14 = vld [vmem:[%s416_s12 + $0x50] sm:$0xff]  }
  0x1b   : > { %v203_v49 = vmul.f32 %v333_v38, %v333_v38  ;;  %v338_v52 = vunpack.c.h.bf16 %v364_v42  ;;  %v204_v54 = vmul.f32 %v334_v43, %v334_v43  ;;  %v341_v56 = vunpack.c.l.bf16 %v365_v51 }
  0x1c   : > { %v161_v17 = vadd.f32 %v321_v12, %v160_v13  ;;  %v220_v28 = vadd.f32 %v219_v23, %v196_v18  ;;  %v205_v58 = vmul.f32 %v337_v47, %v337_v47  ;;  %v342_v61 = vunpack.c.h.bf16 %v365_v51 }
  0x1d   : > { %v206_v63 = vmul.f32 %v338_v52, %v338_v52  ;;  %v345_v1 = vunpack.c.l.bf16 %v366_v60  ;;  %v207_v3 = vmul.f32 %v341_v56, %v341_v56  ;;  %v346_v6 = vunpack.c.h.bf16 %v366_v60 }
  0x1e   : > { %v162_v21 = vadd.f32 %v322_v16, %v161_v17  ;;  %v221_v32 = vadd.f32 %v220_v28, %v197_v22  ;;  %v208_v8 = vmul.f32 %v342_v61, %v342_v61  ;;  %v349_v10 = vunpack.c.l.bf16 %v367_v5 }
  0x1f   : > { %v209_v12 = vmul.f32 %v345_v1, %v345_v1  ;;  %v350_v15 = vunpack.c.h.bf16 %v367_v5  ;;  %v210_v17 = vmul.f32 %v346_v6, %v346_v6  ;;  %v353_v19 = vunpack.c.l.bf16 %v368_v14 }
  0x20   : > { %v163_v26 = vadd.f32 %v325_v20, %v162_v21  ;;  %v222_v37 = vadd.f32 %v221_v32, %v198_v27  ;;  %v369_v20 = vld [vmem:[%s416_s12 + $0x58] sm:$0xff]   ;;  %v211_v22 = vmul.f32 %v349_v10, %v349_v10  ;;  %v354_v24 = vunpack.c.h.bf16 %v368_v14 }
  0x21   : > { %v212_v27 = vmul.f32 %v350_v15, %v350_v15 }
  0x22   : > { %v164_v30 = vadd.f32 %v326_v25, %v163_v26  ;;  %v223_v41 = vadd.f32 %v222_v37, %v199_v31  ;;  %v131_v25 = vld [vmem:[%s416_s12 + $0x60] sm:$0x3]  ;;  %v213_v31 = vmul.f32 %v353_v19, %v353_v19 }
  0x23   : > { %v156_v33 = vunpack.c.l.bf16 %v131_v25 }
  0x24   : > { %v165_v35 = vadd.f32 %v329_v29, %v164_v30  ;;  %v224_v46 = vadd.f32 %v223_v41, %v200_v36  ;;  %v357_v29 = vunpack.c.l.bf16 %v369_v20  ;;  %v214_v36 = vmul.f32 %v354_v24, %v354_v24 }
  0x25   : > { %v217_v42 = vmul.f32 %v156_v33, %v156_v33 }
  0x26   : > { %v166_v39 = vadd.f32 %v330_v34, %v165_v35  ;;  %v225_v50 = vadd.f32 %v224_v46, %v201_v40  ;;  %v358_v34 = vunpack.c.h.bf16 %v369_v20  ;;  %v215_v40 = vmul.f32 %v357_v29, %v357_v29 }
  0x28   : > { %v167_v44 = vadd.f32 %v333_v38, %v166_v39  ;;  %v226_v55 = vadd.f32 %v225_v50, %v202_v45  ;;  %v182_v38 = vsel %vm181_vm0, %v156_v33, 0.0 }
  0x2a   : > { %v168_v48 = vadd.f32 %v334_v43, %v167_v44  ;;  %v227_v59 = vadd.f32 %v226_v55, %v203_v49  ;;  %v216_v44 = vmul.f32 %v358_v34, %v358_v34 }
  0x2c   : > { %v169_v53 = vadd.f32 %v337_v47, %v168_v48  ;;  %v228_v0 = vadd.f32 %v227_v59, %v204_v54  ;;  %v241_v48 = vsel %vm181_vm0, %v217_v42, 0.0 }
  0x2e   : > { %v170_v57 = vadd.f32 %v338_v52, %v169_v53  ;;  %v229_v4 = vadd.f32 %v228_v0, %v205_v58 }
  0x30   : > { %v171_v62 = vadd.f32 %v341_v56, %v170_v57  ;;  %v230_v9 = vadd.f32 %v229_v4, %v206_v63  ;;  %v157_v57 = vld [vmem:[%s466_s1] sm:$0x1]  ;;  %v192_v63 = vld [vmem:[%s466_s1 + $0x1] sm:$0x1] }
  0x32   : > { %v172_v2 = vadd.f32 %v342_v61, %v171_v62  ;;  %v231_v13 = vadd.f32 %v230_v9, %v207_v3 }
  0x34   : > { %v173_v7 = vadd.f32 %v345_v1, %v172_v2  ;;  %v232_v18 = vadd.f32 %v231_v13, %v208_v8 }
  0x36   : > { %v174_v11 = vadd.f32 %v346_v6, %v173_v7  ;;  %v233_v23 = vadd.f32 %v232_v18, %v209_v12 }
  0x38   : > { %v175_v16 = vadd.f32 %v349_v10, %v174_v11  ;;  %v234_v28 = vadd.f32 %v233_v23, %v210_v17 }
  0x3a   : > { %v176_v21 = vadd.f32 %v350_v15, %v175_v16  ;;  %v235_v32 = vadd.f32 %v234_v28, %v211_v22 }
  0x3c   : > { %v177_v26 = vadd.f32 %v353_v19, %v176_v21  ;;  %v236_v37 = vadd.f32 %v235_v32, %v212_v27 }
  0x3e   : > { %v178_v30 = vadd.f32 %v354_v24, %v177_v26  ;;  %v237_v41 = vadd.f32 %v236_v37, %v213_v31 }
  0x40   : > { %v179_v35 = vadd.f32 %v357_v29, %v178_v30  ;;  %v238_v45 = vadd.f32 %v237_v41, %v214_v36 }
  0x42   : > { %v180_v39 = vadd.f32 %v358_v34, %v179_v35  ;;  %v239_v47 = vadd.f32 %v238_v45, %v215_v40 }
  0x44   : > { %v183_v43 = vadd.f32 %v182_v38, %v180_v39  ;;  %v240_v50 = vadd.f32 %v239_v47, %v216_v44 }
  0x46   : > { %v184_v46 = vrot.slane %v183_v43, 4  ;;  %v242_v52 = vadd.f32 %v241_v48, %v240_v50 }
  0x48   : > { %v185_v49 = vadd.f32 %v184_v46, %v183_v43  ;;  %v243_v54 = vrot.slane %v242_v52, 4 }
  0x4a   : > { %v186_v51 = vrot.slane %v185_v49, 2  ;;  %v244_v56 = vadd.f32 %v243_v54, %v242_v52 }
  0x4c   : > { %v187_v53 = vadd.f32 %v186_v51, %v185_v49  ;;  %v245_v59 = vrot.slane %v244_v56, 2 }
  0x4e   : > { %v188_v55 = vrot.slane %v187_v53, 1  ;;  %v246_v61 = vadd.f32 %v245_v59, %v244_v56 }
  0x50   : > { %v189_v58 = vadd.f32 %v188_v55, %v187_v53  ;;  %v247_v62 = vrot.slane %v246_v61, 1 }
  0x52   : > { %v190_v60 = vadd.f32 %v189_v58, %v157_v57  ;;  %v248_v0 = vadd.f32 %v247_v62, %v246_v61  ;;  %254 = sbr.rel (%p308_p5) target bundleno = 119 (0x77), region = 32 }
  0x54   : > { %191 = vst [vmem:[%s466_s1] sm:$0x1] %v190_v60  ;;  %v249_v1 = vadd.f32 %v248_v0, %v192_v63 }
  0x56   : > { %250 = vst [vmem:[%s466_s1 + $0x1] sm:$0x1] %v249_v1 }
  0x5b   : > { %v255_v2 = vld [vmem:[%s466_s1] sm:$0x1] }
  0x5c   : > { %v256_v4 = vmul.f32 0.0025510204, %v255_v2 }
  0x5d   : > { %v257_v3 = vld [vmem:[%s466_s1 + $0x1] sm:$0x1] }
  0x5e   : > { %v258_v5 = vmul.f32 0.0025510204, %v257_v3  ;;  %v259_v6 = vmul.f32 %v256_v4, %v256_v4  ;;  %261 = vst [vmem:[%s466_s1] sm:$0x1] %v256_v4 }
  0x60   : > { %v260_v7 = vsub.f32 %v258_v5, %v259_v6 }
  0x62   : > { %v262_v8 = vadd.f32 1e-05, %v260_v7 }
  0x64   : > { %380 = vrsqrt.f32 %v262_v8  ;;  %vm269_vm1 = vweird.f32 %v262_v8 }
  0x6a   : > { %v381_v9 = vpop.eup %380 }
  0x6b   : > { %v264_v10 = vmul.f32 %v381_v9, %v262_v8  ;;  %vm270_vm2 = vweird.f32 %v381_v9 }
  0x6c   : > { %vm271_vm3 = vmor %vm269_vm1, %vm270_vm2 }
  0x6d   : > { %v265_v11 = vmul.f32 %v381_v9, %v264_v10 }
  0x6f   : > { %v266_v12 = vmul.f32 0.5, %v265_v11 }
  0x71   : > { %v267_v13 = vsub.f32 1.5, %v266_v12 }
  0x73   : > { %v268_v14 = vmul.f32 %v381_v9, %v267_v13 }
  0x75   : > { %v272_v15 = vsel %vm271_vm3, %v381_v9, %v268_v14 }
  0x76   : > { %273 = vst [vmem:[%s466_s1 + $0x1] sm:$0x1] %v272_v15 }
  0x77 PF: > { %s11_s6 = sadd.s32 1, %s388_s6  }
  0x78   : > { %p8_p6 = scmp.ge.s32.totalorder %s11_s6, 4  }
  0x7a   :  { %10 = sbr.rel (!%p8_p6) target bundleno = 1 (0x1), region = 58 }

// kernel: _lambda_.51
= control target key start
LH: loop header
LB: loop body
LE: loop exit
PB: predicated region body
PF: predicated region fallthrough
CT: control target
= control target key end

     0   :  { %s551_s9 = smov 0   ;;  %s665_s0 = inlined_call_operand.vmem [shape: bf16[2,196,128], index: 0, kind: input, shape index: {}]   ;;  %s666_s1 = inlined_call_operand.vmem [shape: f32[2,128], index: 1, kind: input, shape index: {}]   ;;  %s667_s2 = inlined_call_operand.vmem [shape: bf16[2,196,128], index: 2, kind: output, shape index: {}]  }
   0x1 LB: > { %s378_s10 = sadd.s32 4294967295, %s534_s9   ;;  %p382_p0 = scmp.ge.s32.totalorder %s534_s9, 1  ;;  %s534_s9 = sphi %s551_s9, %s12_s9  }
   0x2   : > { %p112_p1 = scmp.lt.s32.totalorder %s534_s9, 3 }
   0x4   : > { %p113_p2 = pnand %p382_p0, %p112_p1 }
   0x5   : > { %p134_p3 = scmp.lt.s32.totalorder (!%p113_p2), %s378_s10, 1 }
   0x6   : > { %116 = sbr.rel (%p113_p2) target bundleno = 51 (0x33), region = 28 }
   0xb   : > { %s669_s10 = smov (!%p134_p3, %s378_s10), 1  ;;  %v572_v0 = vld [vmem:[%s666_s1] ss:$0 sm:$0xff]  ;;  %v580_v6 = vld [vmem:[%s666_s1 + $0x1] ss:$0 sm:$0xff] }
   0xc   : > { %s517_s11 = smul.u32 100, %s669_s10 }
   0xe   : > { %s567_s14 = scalar_lea.vmem %s665_s0, %s517_s11  ;;  %s606_s21 = scalar_lea.vmem %s667_s2, %s517_s11 }
   0xf   : > { %v388_v1 = vld [vmem:[%s567_s14] sm:$0xff]   ;;  %v495_v2 = vld [vmem:[%s567_s14 + $0x8] sm:$0xff]   ;;  %v496_v3 = vld [vmem:[%s567_s14 + $0x10] sm:$0xff]  }
  0x10   : > { %v389_v4 = vunpack.c.l.bf16 %v388_v1  ;;  %v390_v5 = vunpack.c.h.bf16 %v388_v1  ;;  %v393_v7 = vunpack.c.l.bf16 %v495_v2  ;;  %v394_v8 = vunpack.c.h.bf16 %v495_v2  ;;  %v497_v9 = vld [vmem:[%s567_s14 + $0x18] sm:$0xff]   ;;  %v498_v30 = vld [vmem:[%s567_s14 + $0x20] sm:$0xff]   ;;  %v499_v35 = vld [vmem:[%s567_s14 + $0x28] sm:$0xff]  }
  0x11   : > { %v397_v10 = vunpack.c.l.bf16 %v496_v3  ;;  %v398_v11 = vunpack.c.h.bf16 %v496_v3  ;;  %v401_v12 = vunpack.c.l.bf16 %v497_v9  ;;  %v402_v13 = vunpack.c.h.bf16 %v497_v9  ;;  %v500_v40 = vld [vmem:[%s567_s14 + $0x30] sm:$0xff]   ;;  %v501_v45 = vld [vmem:[%s567_s14 + $0x38] sm:$0xff]   ;;  %v502_v3 = vld [vmem:[%s567_s14 + $0x40] sm:$0xff]  }
  0x12   : > { %v196_v14 = vsub.f32 %v389_v4, %v572_v0  ;;  %v197_v15 = vsub.f32 %v390_v5, %v572_v0  ;;  %v198_v16 = vsub.f32 %v393_v7, %v572_v0  ;;  %v199_v17 = vsub.f32 %v394_v8, %v572_v0 }
  0x13   : > { %v200_v18 = vsub.f32 %v397_v10, %v572_v0  ;;  %v201_v19 = vsub.f32 %v398_v11, %v572_v0  ;;  %v202_v20 = vsub.f32 %v401_v12, %v572_v0  ;;  %v203_v21 = vsub.f32 %v402_v13, %v572_v0  ;;  %v503_v13 = vld [vmem:[%s567_s14 + $0x48] sm:$0xff]  }
  0x14   : > { %v223_v22 = vmul.f32 %v580_v6, %v196_v14  ;;  %v224_v23 = vmul.f32 %v580_v6, %v197_v15  ;;  %v225_v24 = vmul.f32 %v580_v6, %v198_v16  ;;  %v226_v25 = vmul.f32 %v580_v6, %v199_v17 }
  0x15   : > { %v227_v26 = vmul.f32 %v580_v6, %v200_v18  ;;  %v228_v27 = vmul.f32 %v580_v6, %v201_v19  ;;  %v229_v28 = vmul.f32 %v580_v6, %v202_v20  ;;  %v230_v29 = vmul.f32 %v580_v6, %v203_v21  ;;  %v504_v18 = vld [vmem:[%s567_s14 + $0x50] sm:$0xff]  }
  0x16   : > { %v248_v31 = vmax.f32 %v223_v22, 0.0  ;;  %v249_v32 = vmax.f32 %v224_v23, 0.0  ;;  %v250_v33 = vmax.f32 %v225_v24, 0.0  ;;  %v251_v34 = vmax.f32 %v226_v25, 0.0  ;;  %v505_v23 = vld [vmem:[%s567_s14 + $0x58] sm:$0xff]  }
  0x17   : > { %v252_v36 = vmax.f32 %v227_v26, 0.0  ;;  %v253_v37 = vmax.f32 %v228_v27, 0.0  ;;  %v254_v38 = vmax.f32 %v229_v28, 0.0  ;;  %v255_v39 = vmax.f32 %v230_v29, 0.0 }
  0x18   : > { %v438_v41 = vpack.c.bf16 %v249_v32, %v248_v31  ;;  %v443_v42 = vpack.c.bf16 %v251_v34, %v250_v33  ;;  %v405_v43 = vunpack.c.l.bf16 %v498_v30  ;;  %v406_v44 = vunpack.c.h.bf16 %v498_v30 }
  0x19   : > { %v448_v46 = vpack.c.bf16 %v253_v37, %v252_v36  ;;  %v453_v47 = vpack.c.bf16 %v255_v39, %v254_v38  ;;  %v409_v48 = vunpack.c.l.bf16 %v499_v35  ;;  %v410_v49 = vunpack.c.h.bf16 %v499_v35 }
  0x1a   : > { %439 = vst [vmem:[%s606_s21] sm:$0xff] %v438_v41   ;;  %v204_v50 = vsub.f32 %v405_v43, %v572_v0  ;;  %v205_v51 = vsub.f32 %v406_v44, %v572_v0  ;;  %v413_v52 = vunpack.c.l.bf16 %v500_v40  ;;  %v414_v53 = vunpack.c.h.bf16 %v500_v40  ;;  %v168_v40 = vld [vmem:[%s567_s14 + $0x60] sm:$0x3] }
  0x1b   : > { %506 = vst [vmem:[%s606_s21 + $0x8] sm:$0xff] %v443_v42   ;;  %v206_v54 = vsub.f32 %v409_v48, %v572_v0  ;;  %v207_v55 = vsub.f32 %v410_v49, %v572_v0  ;;  %v417_v56 = vunpack.c.l.bf16 %v501_v45  ;;  %v418_v57 = vunpack.c.h.bf16 %v501_v45 }
  0x1c   : > { %507 = vst [vmem:[%s606_s21 + $0x10] sm:$0xff] %v448_v46   ;;  %v231_v58 = vmul.f32 %v580_v6, %v204_v50  ;;  %v232_v59 = vmul.f32 %v580_v6, %v205_v51  ;;  %v208_v60 = vsub.f32 %v413_v52, %v572_v0  ;;  %v209_v61 = vsub.f32 %v414_v53, %v572_v0 }
  0x1d   : > { %508 = vst [vmem:[%s606_s21 + $0x18] sm:$0xff] %v453_v47   ;;  %v233_v62 = vmul.f32 %v580_v6, %v206_v54  ;;  %v234_v63 = vmul.f32 %v580_v6, %v207_v55  ;;  %v210_v1 = vsub.f32 %v417_v56, %v572_v0  ;;  %v211_v2 = vsub.f32 %v418_v57, %v572_v0 }
  0x1e   : > { %v256_v4 = vmax.f32 %v231_v58, 0.0  ;;  %v257_v5 = vmax.f32 %v232_v59, 0.0  ;;  %v235_v7 = vmul.f32 %v580_v6, %v208_v60  ;;  %v236_v8 = vmul.f32 %v580_v6, %v209_v61 }
  0x1f   : > { %v258_v9 = vmax.f32 %v233_v62, 0.0  ;;  %v259_v10 = vmax.f32 %v234_v63, 0.0  ;;  %v237_v11 = vmul.f32 %v580_v6, %v210_v1  ;;  %v238_v12 = vmul.f32 %v580_v6, %v211_v2 }
  0x20   : > { %v458_v14 = vpack.c.bf16 %v257_v5, %v256_v4  ;;  %v260_v15 = vmax.f32 %v235_v7, 0.0  ;;  %v261_v16 = vmax.f32 %v236_v8, 0.0  ;;  %v421_v17 = vunpack.c.l.bf16 %v502_v3 }
  0x21   : > { %v463_v19 = vpack.c.bf16 %v259_v10, %v258_v9  ;;  %v262_v20 = vmax.f32 %v237_v11, 0.0  ;;  %v263_v21 = vmax.f32 %v238_v12, 0.0  ;;  %v422_v22 = vunpack.c.h.bf16 %v502_v3 }
  0x22   : > { %509 = vst [vmem:[%s606_s21 + $0x20] sm:$0xff] %v458_v14   ;;  %v468_v24 = vpack.c.bf16 %v261_v16, %v260_v15  ;;  %v212_v25 = vsub.f32 %v421_v17, %v572_v0  ;;  %v425_v26 = vunpack.c.l.bf16 %v503_v13  ;;  %v426_v27 = vunpack.c.h.bf16 %v503_v13 }
  0x23   : > { %510 = vst [vmem:[%s606_s21 + $0x28] sm:$0xff] %v463_v19   ;;  %v473_v28 = vpack.c.bf16 %v263_v21, %v262_v20  ;;  %v213_v29 = vsub.f32 %v422_v22, %v572_v0  ;;  %v429_v30 = vunpack.c.l.bf16 %v504_v18  ;;  %v430_v31 = vunpack.c.h.bf16 %v504_v18 }
  0x24   : > { %511 = vst [vmem:[%s606_s21 + $0x30] sm:$0xff] %v468_v24   ;;  %v239_v32 = vmul.f32 %v580_v6, %v212_v25  ;;  %v214_v33 = vsub.f32 %v425_v26, %v572_v0  ;;  %v215_v34 = vsub.f32 %v426_v27, %v572_v0  ;;  %v433_v35 = vunpack.c.l.bf16 %v505_v23 }
  0x25   : > { %512 = vst [vmem:[%s606_s21 + $0x38] sm:$0xff] %v473_v28   ;;  %v240_v36 = vmul.f32 %v580_v6, %v213_v29  ;;  %v216_v37 = vsub.f32 %v429_v30, %v572_v0  ;;  %v217_v38 = vsub.f32 %v430_v31, %v572_v0  ;;  %v434_v39 = vunpack.c.h.bf16 %v505_v23 }
  0x26   : > { %v264_v41 = vmax.f32 %v239_v32, 0.0  ;;  %v241_v42 = vmul.f32 %v580_v6, %v214_v33  ;;  %v242_v43 = vmul.f32 %v580_v6, %v215_v34  ;;  %v218_v44 = vsub.f32 %v433_v35, %v572_v0 }
  0x27   : > { %v265_v45 = vmax.f32 %v240_v36, 0.0  ;;  %v243_v46 = vmul.f32 %v580_v6, %v216_v37  ;;  %v244_v47 = vmul.f32 %v580_v6, %v217_v38  ;;  %v219_v48 = vsub.f32 %v434_v39, %v572_v0 }
  0x28   : > { %v266_v49 = vmax.f32 %v241_v42, 0.0  ;;  %v267_v50 = vmax.f32 %v242_v43, 0.0  ;;  %v245_v51 = vmul.f32 %v580_v6, %v218_v44  ;;  %v193_v52 = vunpack.c.l.bf16 %v168_v40 }
  0x29   : > { %v478_v53 = vpack.c.bf16 %v265_v45, %v264_v41  ;;  %v268_v54 = vmax.f32 %v243_v46, 0.0  ;;  %v269_v55 = vmax.f32 %v244_v47, 0.0  ;;  %v246_v56 = vmul.f32 %v580_v6, %v219_v48 }
  0x2a   : > { %v483_v57 = vpack.c.bf16 %v267_v50, %v266_v49  ;;  %v270_v58 = vmax.f32 %v245_v51, 0.0  ;;  %v220_v59 = vsub.f32 %v193_v52, %v572_v0 }
  0x2b   : > { %513 = vst [vmem:[%s606_s21 + $0x40] sm:$0xff] %v478_v53   ;;  %v488_v60 = vpack.c.bf16 %v269_v55, %v268_v54  ;;  %v271_v61 = vmax.f32 %v246_v56, 0.0 }
  0x2c   : > { %514 = vst [vmem:[%s606_s21 + $0x48] sm:$0xff] %v483_v57   ;;  %v247_v62 = vmul.f32 %v580_v6, %v220_v59 }
  0x2d   : > { %515 = vst [vmem:[%s606_s21 + $0x50] sm:$0xff] %v488_v60   ;;  %v493_v63 = vpack.c.bf16 %v271_v61, %v270_v58 }
  0x2e   : > { %v272_v1 = vmax.f32 %v247_v62, 0.0 }
  0x2f   : > { %516 = vst [vmem:[%s606_s21 + $0x58] sm:$0xff] %v493_v63  }
  0x30   : > { %v297_v2 = vpack.c.bf16 %v272_v1, %v272_v1 }
  0x32   : > { %322 = vst [vmem:[%s606_s21 + $0x60] sm:$0x3] %v297_v2 }
  0x33 PF: > { %s12_s9 = sadd.s32 1, %s534_s9  }
  0x34   : > { %p9_p4 = scmp.ge.s32.totalorder %s12_s9, 4  }
  0x36   :  { %11 = sbr.rel (!%p9_p4) target bundleno = 1 (0x1), region = 58 }

// kernel: _lambda_.59
= control target key start
LH: loop header
LB: loop body
LE: loop exit
PB: predicated region body
PF: predicated region fallthrough
CT: control target
= control target key end

     0   :  { %s723_s9 = smov 0   ;;  %s805_s0 = inlined_call_operand.vmem [shape: bf16[2,196,128], index: 0, kind: input, shape index: {}]   ;;  %s806_s1 = inlined_call_operand.vmem [shape: bf16[128,128], index: 1, kind: input, shape index: {}]   ;;  %s807_s2 = inlined_call_operand.vmem [shape: bf16[2,196,128], index: 2, kind: output, shape index: {}]  }
   0x1 LB: > { %s487_s10 = sadd.s32 4294967295, %s706_s9   ;;  %p491_p0 = scmp.ge.s32.totalorder %s706_s9, 1  ;;  %s706_s9 = sphi %s723_s9, %s12_s9  }
   0x2   : > { %p112_p1 = scmp.lt.s32.totalorder %s706_s9, 3 }
   0x4   : > { %p113_p2 = pnand %p491_p0, %p112_p1 }
   0x5   : > { %p134_p3 = scmp.lt.s32.totalorder (!%p113_p2), %s487_s10, 1 }
   0x6   : > { %116 = sbr.rel (%p113_p2) target bundleno = 234 (0xea), region = 28 }
   0xb   : > { %v595_v0 = vld [vmem:[%s806_s1 + $0x38] sm:$0xff]  ;;  %v594_v1 = vld [vmem:[%s806_s1 + $0x30] sm:$0xff]  ;;  %v593_v2 = vld [vmem:[%s806_s1 + $0x28] sm:$0xff]  ;;  %s809_s10 = smov (!%p134_p3, %s487_s10), 1 }
   0xc   : > { %668 = vmatpush.bf16.msra.mxu2 %v595_v0  ;;  %669 = vmatpush.bf16.msra.mxu3 %v595_v0  ;;  %v592_v3 = vld [vmem:[%s806_s1 + $0x20] sm:$0xff]  ;;  %v591_v4 = vld [vmem:[%s806_s1 + $0x18] sm:$0xff]  ;;  %v590_v5 = vld [vmem:[%s806_s1 + $0x10] sm:$0xff]  ;;  %s691_s25 = smul.u32 100, %s809_s10 }
   0xd   : > { %309 = vmatpush.bf16.msra.mxu0 %v595_v0  ;;  %667 = vmatpush.bf16.msra.mxu1 %v595_v0  ;;  %v589_v6 = vld [vmem:[%s806_s1 + $0x8] sm:$0xff]  ;;  %v588_v7 = vld [vmem:[%s806_s1] sm:$0xff] }
   0xe   : > { %s767_s30 = scalar_lea.vmem %s805_s0, %s691_s25  ;;  %s787_s5 = scalar_lea.vmem %s807_s2, %s691_s25 }
   0xf   : > { %v582_v8 = vld [vmem:[%s767_s30 + $0x30] sm:$0xff]  ;;  %v576_v10 = vld [vmem:[%s767_s30] sm:$0xff]  ;;  %v579_v11 = vld [vmem:[%s767_s30 + $0x18] sm:$0xff] }
  0x10   : > { %671 = vmatpush.bf16.msra.mxu2 %v594_v1  ;;  %672 = vmatpush.bf16.msra.mxu3 %v594_v1  ;;  %v586_v9 = vld [vmem:[%s767_s30 + $0x50] sm:$0xff]  ;;  %v583_v12 = vld [vmem:[%s767_s30 + $0x38] sm:$0xff]  ;;  %v577_v14 = vld [vmem:[%s767_s30 + $0x8] sm:$0xff] }
  0x11   : > { %310 = vmatpush.bf16.msra.mxu0 %v594_v1  ;;  %670 = vmatpush.bf16.msra.mxu1 %v594_v1  ;;  %v587_v13 = vld [vmem:[%s767_s30 + $0x58] sm:$0xff]  ;;  %v580_v15 = vld [vmem:[%s767_s30 + $0x20] sm:$0xff]  ;;  %v578_v20 = vld [vmem:[%s767_s30 + $0x10] sm:$0xff] }
  0x12   : > { %v168_v16 = vld [vmem:[%s767_s30 + $0x60] sm:$0x3]  ;;  %v581_v21 = vld [vmem:[%s767_s30 + $0x28] sm:$0xff] }
  0x13   : > { %v234_v17 = vunpack.c.l.b16 %v168_v16  ;;  %v584_v18 = vld [vmem:[%s767_s30 + $0x40] sm:$0xff]  ;;  %v585_v22 = vld [vmem:[%s767_s30 + $0x48] sm:$0xff] }
  0x14   : > { %674 = vmatpush.bf16.msra.mxu2 %v593_v2  ;;  %675 = vmatpush.bf16.msra.mxu3 %v593_v2 }
  0x15   : > { %311 = vmatpush.bf16.msra.mxu0 %v593_v2  ;;  %673 = vmatpush.bf16.msra.mxu1 %v593_v2  ;;  %v247_v19 = vpack.c.b16 %v234_v17, %v234_v17 }
  0x18   : > { %677 = vmatpush.bf16.msra.mxu2 %v592_v3  ;;  %678 = vmatpush.bf16.msra.mxu3 %v592_v3 }
  0x19   : > { %312 = vmatpush.bf16.msra.mxu0 %v592_v3  ;;  %676 = vmatpush.bf16.msra.mxu1 %v592_v3 }
  0x1c   : > { %680 = vmatpush.bf16.msra.mxu2 %v591_v4  ;;  %681 = vmatpush.bf16.msra.mxu3 %v591_v4 }
  0x1d   : > { %313 = vmatpush.bf16.msra.mxu0 %v591_v4  ;;  %679 = vmatpush.bf16.msra.mxu1 %v591_v4 }
  0x20   : > { %683 = vmatpush.bf16.msra.mxu2 %v590_v5  ;;  %684 = vmatpush.bf16.msra.mxu3 %v590_v5 }
  0x21   : > { %314 = vmatpush.bf16.msra.mxu0 %v590_v5  ;;  %682 = vmatpush.bf16.msra.mxu1 %v590_v5 }
  0x24   : > { %686 = vmatpush.bf16.msra.mxu2 %v589_v6  ;;  %687 = vmatpush.bf16.msra.mxu3 %v589_v6 }
  0x25   : > { %315 = vmatpush.bf16.msra.mxu0 %v589_v6  ;;  %685 = vmatpush.bf16.msra.mxu1 %v589_v6 }
  0x28   : > { %689 = vmatpush.bf16.msra.mxu2 %v588_v7  ;;  %690 = vmatpush.bf16.msra.mxu3 %v588_v7 }
  0x29   : > { %316 = vmatpush.bf16.msra.mxu0 %v588_v7  ;;  %688 = vmatpush.bf16.msra.mxu1 %v588_v7 }
  0x2b   : > { %347 = vmatmul.bf16.vlgmr.msra.gmra.mxu2 %v582_v8  ;;  %367 = vmatmul.bf16.vlgmr.msra.gmra.mxu3 %v586_v9 }
  0x2c   : > { %317 = vmatmul.bf16.vlgmr.msra.gmra.mxu0 %v576_v10  ;;  %332 = vmatmul.bf16.vlgmr.msra.gmra.mxu1 %v579_v11 }
  0x3b   : > { %352 = vmatmul.bf16.gmra.mxu2 %v583_v12  ;;  %372 = vmatmul.bf16.gmra.mxu3 %v587_v13 }
  0x3c   : > { %322 = vmatmul.bf16.gmra.mxu0 %v577_v14  ;;  %337 = vmatmul.bf16.gmra.mxu1 %v580_v15 }
  0x4b   : > { %357 = vmatmul.bf16.gmra.mxu2 %v584_v18  ;;  %377 = vmatmul.bf16.gmra.mxu3 %v247_v19 }
  0x4c   : > { %327 = vmatmul.bf16.gmra.mxu0 %v578_v20  ;;  %342 = vmatmul.bf16.gmra.mxu1 %v581_v21 }
  0x5b   : > { %362 = vmatmul.bf16.gmra.mxu2 %v585_v22 }
  0xa9   : > { %v318_v23 = vpop.f32.mrf.mxu0  ;;  %v333_v24 = vpop.f32.mrf.mxu1 }
  0xae   : > { %v348_v25 = vpop.f32.mrf.mxu2  ;;  %v368_v26 = vpop.f32.mrf.mxu3 }
  0xb1   : > { %v320_v27 = vpop.f32.mrf.mxu0  ;;  %v335_v28 = vpop.f32.mrf.mxu1 }
  0xb2   : > { %v599_v29 = vpack.c.bf16 %v320_v27, %v318_v23  ;;  %v614_v30 = vpack.c.bf16 %v335_v28, %v333_v24 }
  0xb4   : > { %600 = vst [vmem:[%s787_s5] sm:$0xff] %v599_v29  }
  0xb5   : > { %658 = vst [vmem:[%s787_s5 + $0x18] sm:$0xff] %v614_v30  }
  0xb6   : > { %v350_v31 = vpop.f32.mrf.mxu2  ;;  %v370_v32 = vpop.f32.mrf.mxu3 }
  0xb7   : > { %v629_v33 = vpack.c.bf16 %v350_v31, %v348_v25  ;;  %v649_v34 = vpack.c.bf16 %v370_v32, %v368_v26 }
  0xb9   : > { %661 = vst [vmem:[%s787_s5 + $0x30] sm:$0xff] %v629_v33   ;;  %v323_v35 = vpop.f32.mrf.mxu0  ;;  %v338_v36 = vpop.f32.mrf.mxu1 }
  0xba   : > { %665 = vst [vmem:[%s787_s5 + $0x50] sm:$0xff] %v649_v34  }
  0xbe   : > { %v353_v37 = vpop.f32.mrf.mxu2  ;;  %v373_v38 = vpop.f32.mrf.mxu3 }
  0xc1   : > { %v325_v39 = vpop.f32.mrf.mxu0  ;;  %v340_v40 = vpop.f32.mrf.mxu1 }
  0xc2   : > { %v604_v41 = vpack.c.bf16 %v325_v39, %v323_v35  ;;  %v619_v42 = vpack.c.bf16 %v340_v40, %v338_v36 }
  0xc4   : > { %656 = vst [vmem:[%s787_s5 + $0x8] sm:$0xff] %v604_v41  }
  0xc5   : > { %659 = vst [vmem:[%s787_s5 + $0x20] sm:$0xff] %v619_v42  }
  0xc6   : > { %v355_v43 = vpop.f32.mrf.mxu2  ;;  %v375_v44 = vpop.f32.mrf.mxu3 }
  0xc7   : > { %v634_v45 = vpack.c.bf16 %v355_v43, %v353_v37  ;;  %v654_v46 = vpack.c.bf16 %v375_v44, %v373_v38 }
  0xc9   : > { %662 = vst [vmem:[%s787_s5 + $0x38] sm:$0xff] %v634_v45   ;;  %v328_v47 = vpop.f32.mrf.mxu0  ;;  %v343_v48 = vpop.f32.mrf.mxu1 }
  0xca   : > { %666 = vst [vmem:[%s787_s5 + $0x58] sm:$0xff] %v654_v46  }
  0xce   : > { %v358_v49 = vpop.f32.mrf.mxu2  ;;  %v378_v50 = vpop.f32.mrf.mxu3 }
  0xcf   : > { %v406_v51 = vpack.c.bf16 %v378_v50, %v378_v50 }
  0xd1   : > { %431 = vst [vmem:[%s787_s5 + $0x60] sm:$0x3] %v406_v51  ;;  %v330_v52 = vpop.f32.mrf.mxu0  ;;  %v345_v53 = vpop.f32.mrf.mxu1 }
  0xd2   : > { %v609_v54 = vpack.c.bf16 %v330_v52, %v328_v47  ;;  %v624_v55 = vpack.c.bf16 %v345_v53, %v343_v48 }
  0xd4   : > { %657 = vst [vmem:[%s787_s5 + $0x10] sm:$0xff] %v609_v54  }
  0xd5   : > { %660 = vst [vmem:[%s787_s5 + $0x28] sm:$0xff] %v624_v55  }
  0xd6   : > { %v360_v56 = vpop.f32.mrf.mxu2  ;;  %v380_v57 = vpop.f32.mrf.mxu3 }
  0xd7   : > { %v639_v58 = vpack.c.bf16 %v360_v56, %v358_v49 }
  0xd9   : > { %663 = vst [vmem:[%s787_s5 + $0x40] sm:$0xff] %v639_v58  }
  0xde   : > { %v363_v59 = vpop.f32.mrf.mxu2 }
  0xe6   : > { %v365_v60 = vpop.f32.mrf.mxu2 }
  0xe7   : > { %v644_v61 = vpack.c.bf16 %v365_v60, %v363_v59 }
  0xe9   : > { %664 = vst [vmem:[%s787_s5 + $0x48] sm:$0xff] %v644_v61  }
  0xea PF: > { %s12_s9 = sadd.s32 1, %s706_s9  }
  0xeb   : > { %p9_p4 = scmp.ge.s32.totalorder %s12_s9, 4  }
  0xed   :  { %11 = sbr.rel (!%p9_p4) target bundleno = 1 (0x1), region = 58 }

// kernel: _lambda_.49
= control target key start
LH: loop header
LB: loop body
LE: loop exit
PB: predicated region body
PF: predicated region fallthrough
CT: control target
= control target key end

     0   :  { %s2848_s9 = smov 0   ;;  %s3674_s0 = inlined_call_operand.vmem [shape: bf16[2,272,128], index: 0, kind: input, shape index: {}]   ;;  %s3675_s1 = inlined_call_operand.vmem [shape: bf16[9,128,128], index: 1, kind: input, shape index: {}]   ;;  %s3676_s2 = inlined_call_operand.vmem [shape: bf16[2,196,128], index: 2, kind: output, shape index: {}]  }
   0x1 LB: > { %s2207_s10 = sadd.s32 4294967295, %s2831_s9   ;;  %p2211_p0 = scmp.ge.s32.totalorder %s2831_s9, 1  ;;  %s2831_s9 = sphi %s2848_s9, %s12_s9  }
   0x2   : > { %p112_p1 = scmp.lt.s32.totalorder %s2831_s9, 3 }
   0x4   : > { %p113_p2 = pnand %p2211_p0, %p112_p1 }
   0x6   : > { %116 = sbr.rel (%p113_p2) target bundleno = 693 (0x2b5), region = 28 }
   0xb   : > { %v2717_v0 = vld [vmem:[%s3675_s1 + $0x78] sm:$0xff]  ;;  %p134_p3 = scmp.lt.s32.totalorder %s2207_s10, 1  ;;  %v2716_v1 = vld [vmem:[%s3675_s1 + $0x70] sm:$0xff]  ;;  %v2715_v2 = vld [vmem:[%s3675_s1 + $0x68] sm:$0xff]  ;;  %vm283_vm0 = vsmask.f32 7424 }
   0xc   : > { %462 = vmatpush.bf16.msra.mxu0 %v2717_v0  ;;  %2784 = vmatpush.bf16.msra.mxu1 %v2717_v0  ;;  %v2714_v3 = vld [vmem:[%s3675_s1 + $0x60] sm:$0xff]  ;;  %v2713_v5 = vld [vmem:[%s3675_s1 + $0x58] sm:$0xff]  ;;  %v2712_v11 = vld [vmem:[%s3675_s1 + $0x50] sm:$0xff]  ;;  %vm699_vm1 = vcmask 1046528   ;;  %vm2018_vm2 = vcmask 1042432   ;;  %vm2019_vm3 = vcmask 1046532  }
   0xd   : > { %s3744_s10 = smov (!%p134_p3, %s2207_s10), 1  ;;  %2786 = vmatpush.bf16.msra.mxu3 %v2717_v0  ;;  %2785 = vmatpush.bf16.msra.mxu2 %v2717_v0  ;;  %v2711_v20 = vld [vmem:[%s3675_s1 + $0x48] sm:$0xff]  ;;  %v2710_v31 = vld [vmem:[%s3675_s1 + $0x40] sm:$0xff]  ;;  %v2709_v38 = vld [vmem:[%s3675_s1 + $0x38] sm:$0xff]  ;;  %vm2034_vm5 = vcmask 1041408   ;;  %vm2035_vm6 = vcmask 1045508  }
   0xe   : > { %s2808_s17 = smul.u32 136, %s3744_s10  ;;  %v2733_v39 = vld [vmem:[%s3675_s1 + $0xf8] sm:$0xff]  ;;  %v2708_v46 = vld [vmem:[%s3675_s1 + $0x30] sm:$0xff]  ;;  %v2707_v54 = vld [vmem:[%s3675_s1 + $0x28] sm:$0xff]  ;;  %vm2050_vm8 = vcmask 1040384   ;;  %vm2051_vm9 = vcmask 1044484  }
   0xf   : > { %v2741_v40 = vld [vmem:[%s3675_s1 + $0x138] sm:$0xff]  ;;  %v2732_v48 = vld [vmem:[%s3675_s1 + $0xf0] sm:$0xff]  ;;  %v2731_v56 = vld [vmem:[%s3675_s1 + $0xe8] sm:$0xff]  ;;  %s2809_s6 = smul.u32 100, %s3744_s10 }
  0x10   : > { %463 = vmatpush.bf16.msra.mxu0 %v2716_v1  ;;  %2787 = vmatpush.bf16.msra.mxu1 %v2716_v1  ;;  %s2874_s22 = scalar_lea.vmem %s3674_s0, %s2808_s17  ;;  %v2725_v47 = vld [vmem:[%s3675_s1 + $0xb8] sm:$0xff]  ;;  %v2740_v49 = vld [vmem:[%s3675_s1 + $0x130] sm:$0xff]  ;;  %v2739_v57 = vld [vmem:[%s3675_s1 + $0x128] sm:$0xff] }
  0x11   : > { %2789 = vmatpush.bf16.msra.mxu3 %v2716_v1  ;;  %2788 = vmatpush.bf16.msra.mxu2 %v2716_v1  ;;  %v2877_v4 = vld [vmem:[%s2874_s22] sm:$0xff]  ;;  %v2886_v7 = vld [vmem:[%s2874_s22 + $0x50] sm:$0xff]  ;;  %v2889_v8 = vld [vmem:[%s2874_s22 + $0x8] sm:$0xff]  ;;  %s3541_s11 = scalar_lea.vmem %s3676_s2, %s2809_s6 }
  0x12   : > { %v2883_v6 = vld [vmem:[%s2874_s22 + $0x20] sm:$0xff]  ;;  %v287_v9 = vshll.u32 %v2877_v4, 16  ;;  %v2893_v10 = vld [vmem:[%s2874_s22 + $0x28] sm:$0xff]  ;;  %v2903_v14 = vld [vmem:[%s2874_s22 + $0x58] sm:$0xff]  ;;  %v364_v15 = vshll.u32 %v2886_v7, 16  ;;  %v285_v16 = vshrl.u32 %v2877_v4, 16 }
  0x13   : > { %v316_v12 = vshll.u32 %v2883_v6, 16  ;;  %v2900_v13 = vld [vmem:[%s2874_s22 + $0x40] sm:$0xff]  ;;  %v292_v18 = vshll.u32 %v2889_v8, 16  ;;  %v324_v19 = vshll.u32 %v2893_v10, 16  ;;  %v320_v22 = vshrl.u32 %v2883_v6, 16  ;;  %v2916_v23 = vld [vmem:[%s2874_s22 + $0x48] sm:$0xff]  ;;  %vm3556_vm4 = vmor %vm2018_vm2, %vm2019_vm3 }
  0x14   : > { %464 = vmatpush.bf16.msra.mxu0 %v2715_v2  ;;  %2790 = vmatpush.bf16.msra.mxu1 %v2715_v2  ;;  %v289_v17 = vrot.slane %v287_v9, 1  ;;  %v348_v24 = vshll.u32 %v2900_v13, 16  ;;  %v2919_v25 = vrot.slane %v364_v15, 1  ;;  %v368_v26 = vshrl.u32 %v2886_v7, 16  ;;  %v2970_v50 = vld [vmem:[%s2874_s22 + $0x10] sm:$0xff]  ;;  %v2979_v53 = vld [vmem:[%s2874_s22 + $0x60] sm:$0xff]  ;;  %vm3579_vm7 = vmor %vm2034_vm5, %vm2035_vm6 }
  0x15   : > { %2792 = vmatpush.bf16.msra.mxu3 %v2715_v2  ;;  %2791 = vmatpush.bf16.msra.mxu2 %v2715_v2  ;;  %v2912_v21 = vrot.slane %v316_v12, 1  ;;  %v372_v27 = vshll.u32 %v2903_v14, 16  ;;  %v2923_v29 = vrot.slane %v292_v18, 1  ;;  %v2925_v30 = vrot.slane %v324_v19, 1  ;;  %v2973_v51 = vld [vmem:[%s2874_s22 + $0x30] sm:$0xff]  ;;  %v2706_v0 = vld [vmem:[%s3675_s1 + $0x20] sm:$0xff]  ;;  %vm3598_vm10 = vmor %vm2050_vm8, %vm2051_vm9 }
  0x16   : > { %v290_v28 = vor.u32 %v289_v17, %v285_v16  ;;  %v2931_v33 = vrot.slane %v348_v24, 1  ;;  %v352_v34 = vshrl.u32 %v2900_v13, 16  ;;  %v356_v35 = vshll.u32 %v2916_v23, 16  ;;  %v2724_v55 = vld [vmem:[%s3675_s1 + $0xb0] sm:$0xff]  ;;  %v2723_v1 = vld [vmem:[%s3675_s1 + $0xa8] sm:$0xff]  ;;  %v2730_v2 = vld [vmem:[%s3675_s1 + $0xe0] sm:$0xff] }
  0x17   : > { %v322_v32 = vor.u32 %v320_v22, %v2912_v21  ;;  %v370_v36 = vor.u32 %v368_v26, %v2919_v25  ;;  %v374_v37 = vrot.slane %v372_v27, 1  ;;  %v296_v58 = vshrl.u32 %v2889_v8, 16  ;;  %v2705_v18 = vld [vmem:[%s3675_s1 + $0x18] sm:$0xff]  ;;  %v2722_v19 = vld [vmem:[%s3675_s1 + $0xa0] sm:$0xff] }
  0x18   : > { %465 = vmatpush.bf16.msra.mxu0 %v2714_v3  ;;  %2793 = vmatpush.bf16.msra.mxu1 %v2714_v3  ;;  %v295_v41 = vsel %vm283_vm0, %v290_v28, %v2923_v29  ;;  %v354_v43 = vor.u32 %v352_v34, %v2931_v33  ;;  %v358_v44 = vrot.slane %v356_v35, 1  ;;  %v300_v59 = vshll.u32 %v2970_v50, 16  ;;  %v2737_v22 = vld [vmem:[%s3675_s1 + $0x118] sm:$0xff] }
  0x19   : > { %2795 = vmatpush.bf16.msra.mxu3 %v2714_v3  ;;  %2794 = vmatpush.bf16.msra.mxu2 %v2714_v3  ;;  %v2949_v42 = vsel %vm283_vm0, %v322_v32, %v2925_v30  ;;  %v2953_v45 = vsel %vm283_vm0, %v370_v36, %v374_v37  ;;  %v328_v60 = vshrl.u32 %v2893_v10, 16  ;;  %v332_v61 = vshll.u32 %v2973_v51, 16  ;;  %v2738_v3 = vld [vmem:[%s3675_s1 + $0x120] sm:$0xff]  ;;  %v3049_v32 = vld [vmem:[%s2874_s22 + $0x18] sm:$0xff]  ;;  %v2736_v36 = vld [vmem:[%s3675_s1 + $0x110] sm:$0xff] }
  0x1a   : > { %v2976_v52 = vsel %vm283_vm0, %v354_v43, %v358_v44  ;;  %v376_v62 = vshrl.u32 %v2903_v14, 16  ;;  %v380_v63 = vshll.u32 %v2979_v53, 16  ;;  %v302_v9 = vrot.slane %v300_v59, 1  ;;  %v3052_v34 = vld [vmem:[%s2874_s22 + $0x38] sm:$0xff] }
  0x1b   : > { %3695 = vst [vmem:[#allocation2_spill] sm:$0xff] %v2976_v52  ;;  %v334_v12 = vrot.slane %v332_v61, 1  ;;  %v360_v15 = vshrl.u32 %v2916_v23, 16  ;;  %v308_v43 = vshll.u32 %v3049_v32, 16 }
  0x1c   : > { %466 = vmatpush.bf16.msra.mxu0 %v2713_v5  ;;  %2796 = vmatpush.bf16.msra.mxu1 %v2713_v5  ;;  %v378_v16 = vor.u32 %v376_v62, %v374_v37  ;;  %v382_v17 = vrot.slane %v380_v63, 1  ;;  %3696 = vst [vmem:[#allocation3_spill] sm:$0xff] %v3052_v34  ;;  %v3062_v37 = vld [vmem:[%s2874_s22 + $0x68] sm:$0xff]  ;;  %v2718_v63 = vld [vmem:[%s3675_s1 + $0x80] sm:$0xff] }
  0x1d   : > { %2798 = vmatpush.bf16.msra.mxu3 %v2713_v5  ;;  %2797 = vmatpush.bf16.msra.mxu2 %v2713_v5  ;;  %v298_v5 = vor.u32 %v296_v58, %v2923_v29  ;;  %v362_v27 = vor.u32 %v360_v15, %v358_v44  ;;  %v2721_v29 = vld [vmem:[%s3675_s1 + $0x98] sm:$0xff]  ;;  %v336_v44 = vshrl.u32 %v2973_v51, 16  ;;  %v310_v58 = vrot.slane %v308_v43, 1 }
  0x1e   : > { %v3034_v28 = vsel %vm283_vm0, %v378_v16, %v382_v17  ;;  %v2765_v16 = vld [vmem:[%s3675_s1 + $0x1f8] sm:$0xff] }
  0x1f   : > { %v3028_v24 = vsel %vm283_vm0, %v298_v5, %v302_v9  ;;  %v3056_v35 = vsel %vm283_vm0, %v362_v27, %v2919_v25  ;;  %v2727_v25 = vld [vmem:[%s3675_s1 + $0xc8] sm:$0xff]  ;;  %v338_v59 = vor.u32 %v336_v44, %v334_v12  ;;  %v700_v5 = vrot.slane %v2877_v4, 1  ;;  %v2748_v44 = vld [vmem:[%s3675_s1 + $0x170] sm:$0xff] }
  0x20   : > { %467 = vmatpush.bf16.msra.mxu0 %v2712_v11  ;;  %2799 = vmatpush.bf16.msra.mxu1 %v2712_v11  ;;  %3697 = vst [vmem:[#allocation4_spill] sm:$0xff] %v3056_v35  ;;  %v392_v27 = vshrl.u32 %v3062_v37, 16 }
  0x21   : > { %2801 = vmatpush.bf16.msra.mxu3 %v2712_v11  ;;  %2800 = vmatpush.bf16.msra.mxu2 %v2712_v11  ;;  %v330_v11 = vor.u32 %v328_v60, %v2925_v30  ;;  %v2704_v30 = vld [vmem:[%s3675_s1 + $0x10] sm:$0xff] }
  0x23   : > { %v3031_v26 = vsel %vm283_vm0, %v330_v11, %v334_v12 }
  0x24   : > { %468 = vmatpush.bf16.msra.mxu0 %v2711_v20  ;;  %2802 = vmatpush.bf16.msra.mxu1 %v2711_v20 }
  0x25   : > { %2804 = vmatpush.bf16.msra.mxu3 %v2711_v20  ;;  %2803 = vmatpush.bf16.msra.mxu2 %v2711_v20  ;;  %v2729_v20 = vld [vmem:[%s3675_s1 + $0xd8] sm:$0xff] }
  0x28   : > { %469 = vmatpush.bf16.msra.mxu0 %v2710_v31  ;;  %2805 = vmatpush.bf16.msra.mxu1 %v2710_v31 }
  0x29   : > { %2807 = vmatpush.bf16.msra.mxu3 %v2710_v31  ;;  %2806 = vmatpush.bf16.msra.mxu2 %v2710_v31  ;;  %v2728_v31 = vld [vmem:[%s3675_s1 + $0xd0] sm:$0xff] }
  0x2b   : > { %470 = vmatmul.bf16.vlgmr.msra.gmra.mxu0 %v295_v41  ;;  %490 = vmatmul.bf16.vlgmr.msra.gmra.mxu1 %v2949_v42  ;;  %v304_v41 = vshrl.u32 %v2970_v50, 16 }
  0x2c   : > { %603 = vmatpush.bf16.msrb.mxu1 %v2709_v38  ;;  %1157 = vmatpush.bf16.msrb.mxu0 %v2741_v40  ;;  %v2720_v38 = vld [vmem:[%s3675_s1 + $0x90] sm:$0xff]  ;;  %v2735_v40 = vld [vmem:[%s3675_s1 + $0x108] sm:$0xff] }
  0x2d   : > { %967 = vmatpush.bf16.msrb.mxu3 %v2733_v39  ;;  %791 = vmatpush.bf16.msrb.mxu2 %v2725_v47  ;;  %v2703_v39 = vld [vmem:[%s3675_s1 + $0x8] sm:$0xff]  ;;  %v384_v47 = vshrl.u32 %v2979_v53, 16 }
  0x2e   : > { %520 = vmatmul.bf16.vlgmr.msra.gmra.mxu3 %v2953_v45  ;;  %510 = vmatmul.bf16.vlgmr.msra.gmra.mxu2 %v2976_v52 }
  0x2f   : > { %v386_v61 = vor.u32 %v384_v47, %v382_v17  ;;  %v2749_v17 = vld [vmem:[%s3675_s1 + $0x178] sm:$0xff] }
  0x30   : > { %604 = vmatpush.bf16.msrb.mxu1 %v2708_v46  ;;  %1158 = vmatpush.bf16.msrb.mxu0 %v2740_v49  ;;  %v340_v46 = vshll.u32 %v3052_v34, 16  ;;  %v2719_v49 = vld [vmem:[%s3675_s1 + $0x88] sm:$0xff] }
  0x31   : > { %968 = vmatpush.bf16.msrb.mxu3 %v2732_v48  ;;  %792 = vmatpush.bf16.msrb.mxu2 %v2724_v55  ;;  %v388_v48 = vshll.u32 %v3062_v37, 16  ;;  %v2726_v55 = vld [vmem:[%s3675_s1 + $0xc0] sm:$0xff] }
  0x32   : > { %v342_v60 = vrot.slane %v340_v46, 1  ;;  %v705_v46 = vrot.slane %v3049_v32, 1 }
  0x33   : > { %v390_v62 = vrot.slane %v388_v48, 1  ;;  %v2772_v48 = vld [vmem:[%s3675_s1 + $0x230] sm:$0xff] }
  0x34   : > { %605 = vmatpush.bf16.msrb.mxu1 %v2707_v54  ;;  %1159 = vmatpush.bf16.msrb.mxu0 %v2739_v57  ;;  %v2702_v54 = vld [vmem:[%s3675_s1] sm:$0xff]  ;;  %v306_v57 = vor.u32 %v304_v41, %v302_v9  ;;  %v701_v9 = vrot.slane %v2889_v8, 1 }
  0x35   : > { %969 = vmatpush.bf16.msrb.mxu3 %v2731_v56  ;;  %793 = vmatpush.bf16.msrb.mxu2 %v2723_v1  ;;  %v2734_v56 = vld [vmem:[%s3675_s1 + $0x100] sm:$0xff]  ;;  %v2757_v1 = vld [vmem:[%s3675_s1 + $0x1b8] sm:$0xff]  ;;  %v3113_v11 = vsel %vm283_vm0, %v386_v61, %v390_v62 }
  0x36   : > { %v702_v15 = vsel %vm699_vm1, %v700_v5, %v701_v9  ;;  %v2762_v61 = vld [vmem:[%s3675_s1 + $0x1e0] sm:$0xff] }
  0x38   : > { %606 = vmatpush.bf16.msrb.mxu1 %v2706_v0  ;;  %1160 = vmatpush.bf16.msrb.mxu0 %v2738_v3  ;;  %v3099_v0 = vld [vmem:[%s2874_s22 + $0x70] sm:$0xff]   ;;  %v3108_v3 = vsel %vm283_vm0, %v338_v59, %v342_v60 }
  0x39   : > { %970 = vmatpush.bf16.msrb.mxu3 %v2730_v2  ;;  %794 = vmatpush.bf16.msrb.mxu2 %v2722_v19  ;;  %v3105_v2 = vsel %vm283_vm0, %v306_v57, %v310_v58  ;;  %3698 = vst [vmem:[#allocation5_spill] sm:$0xff] %v3108_v3  ;;  %v2776_v12 = vunpack.c.l.b16 %v3099_v0  ;;  %v2771_v57 = vld [vmem:[%s3675_s1 + $0x228] sm:$0xff] }
  0x3b   : > { %475 = vmatmul.bf16.gmra.mxu0 %v3028_v24  ;;  %495 = vmatmul.bf16.gmra.mxu1 %v3031_v26  ;;  %v3129_v19 = vpack.c.b16 %v2776_v12, %v2776_v12 }
  0x3c   : > { %607 = vmatpush.bf16.msrb.mxu1 %v2705_v18  ;;  %1161 = vmatpush.bf16.msrb.mxu0 %v2737_v22  ;;  %v2773_v18 = vld [vmem:[%s3675_s1 + $0x238] sm:$0xff]  ;;  %v344_v22 = vshrl.u32 %v3052_v34, 16 }
  0x3d   : > { %971 = vmatpush.bf16.msrb.mxu3 %v2729_v20  ;;  %795 = vmatpush.bf16.msrb.mxu2 %v2721_v29  ;;  %v312_v20 = vshrl.u32 %v3049_v32, 16  ;;  %v396_v29 = vshll.u32 %v3129_v19, 16 }
  0x3e   : > { %525 = vmatmul.bf16.gmra.mxu3 %v3034_v28  ;;  %515 = vmatmul.bf16.gmra.mxu2 %v3056_v35 }
  0x40   : > { %608 = vmatpush.bf16.msrb.mxu1 %v2704_v30  ;;  %1162 = vmatpush.bf16.msrb.mxu0 %v2736_v36  ;;  %v314_v30 = vor.u32 %v312_v20, %v310_v58  ;;  %v3135_v36 = vor.u32 %v392_v27, %v390_v62  ;;  %v711_v58 = vrot.slane %v2973_v51, 1  ;;  %v2746_v62 = vld [vmem:[%s3675_s1 + $0x160] sm:$0xff] }
  0x41   : > { %972 = vmatpush.bf16.msrb.mxu3 %v2728_v31  ;;  %796 = vmatpush.bf16.msrb.mxu2 %v2720_v38  ;;  %v346_v31 = vor.u32 %v344_v22, %v342_v60  ;;  %v398_v38 = vrot.slane %v396_v29, 1  ;;  %v2754_v60 = vld [vmem:[%s3675_s1 + $0x1a0] sm:$0xff]  ;;  %v715_v29 = vrot.slane %v2900_v13, 1 }
  0x43   : > { %v399_v41 = vsel %vm283_vm0, %v3135_v36, %v398_v38 }
  0x44   : > { %609 = vmatpush.bf16.msrb.mxu1 %v2703_v39  ;;  %1163 = vmatpush.bf16.msrb.mxu0 %v2735_v40  ;;  %v3139_v39 = vsel %vm283_vm0, %v314_v30, %v2912_v21  ;;  %v703_v40 = vrot.slane %v2970_v50, 1  ;;  %v2756_v21 = vld [vmem:[%s3675_s1 + $0x1b0] sm:$0xff]  ;;  %v2753_v30 = vld [vmem:[%s3675_s1 + $0x198] sm:$0xff] }
  0x45   : > { %973 = vmatpush.bf16.msrb.mxu3 %v2727_v25  ;;  %797 = vmatpush.bf16.msrb.mxu2 %v2719_v49  ;;  %v3143_v25 = vsel %vm283_vm0, %v346_v31, %v2931_v33  ;;  %v2764_v33 = vld [vmem:[%s3675_s1 + $0x1f0] sm:$0xff]  ;;  %v707_v49 = vrot.slane %v2883_v6, 1 }
  0x46   : > { %3699 = vst [vmem:[#allocation6_spill] sm:$0xff] %v3143_v25  ;;  %v3151_v43 = vsel %vm699_vm1, %v701_v9, %v703_v40  ;;  %v3168_v47 = vsel %vm699_vm1, %v703_v40, %v705_v46  ;;  %v713_v9 = vrot.slane %v3052_v34, 1  ;;  %v2761_v40 = vld [vmem:[%s3675_s1 + $0x1d8] sm:$0xff] }
  0x48   : > { %610 = vmatpush.bf16.msrb.mxu1 %v2702_v54  ;;  %1164 = vmatpush.bf16.msrb.mxu0 %v2734_v56  ;;  %v2763_v54 = vld [vmem:[%s3675_s1 + $0x1e8] sm:$0xff]  ;;  %v3231_v12 = vsel %vm699_vm1, %v711_v58, %v713_v9  ;;  %v3258_v38 = vsel %vm699_vm1, %v713_v9, %v715_v29 }
  0x49   : > { %974 = vmatpush.bf16.msrb.mxu3 %v2726_v55  ;;  %798 = vmatpush.bf16.msrb.mxu2 %v2718_v63  ;;  %v2747_v55 = vld [vmem:[%s3675_s1 + $0x168] sm:$0xff]  ;;  %v2770_v63 = vld [vmem:[%s3675_s1 + $0x220] sm:$0xff]  ;;  %3700 = vst [vmem:[#allocation7_spill] sm:$0xff] %v3231_v12 }
  0x4a   : > { %3703 = vst [vmem:[#allocation10_spill] sm:$0xff] %v3258_v38 }
  0x4b   : > { %480 = vmatmul.bf16.gmra.mxu0 %v3105_v2  ;;  %500 = vmatmul.bf16.gmra.mxu1 %v3108_v3 }
  0x4c   : > { %1335 = vmatpush.bf16.msra.mxu1 %v2749_v17  ;;  %1879 = vmatpush.bf16.msra.mxu0 %v2773_v18 }
  0x4d   : > { %1511 = vmatpush.bf16.msra.mxu2 %v2757_v1  ;;  %1701 = vmatpush.bf16.msra.mxu3 %v2765_v16 }
  0x4e   : > { %530 = vmatmul.bf16.gmra.mxu3 %v3113_v11  ;;  %799 = vmatmul.bf16.vlgmr.msrb.gmra.mxu2 %v702_v15 }
  0x50   : > { %1336 = vmatpush.bf16.msra.mxu1 %v2748_v44  ;;  %1880 = vmatpush.bf16.msra.mxu0 %v2772_v48 }
  0x51   : > { %1512 = vmatpush.bf16.msra.mxu2 %v2756_v21  ;;  %1702 = vmatpush.bf16.msra.mxu3 %v2764_v33 }
  0x54   : > { %1337 = vmatpush.bf16.msra.mxu1 %v2747_v55  ;;  %1881 = vmatpush.bf16.msra.mxu0 %v2771_v57  ;;  %v717_v55 = vrot.slane %v2916_v23, 1 }
  0x55   : > { %1703 = vmatpush.bf16.msra.mxu3 %v2763_v54 }
  0x56   : > { %v3291_v57 = vsel %vm699_vm1, %v715_v29, %v717_v55 }
  0x57   : > { %3707 = vst [vmem:[#allocation14_spill] sm:$0xff] %v3291_v57 }
  0x58   : > { %1338 = vmatpush.bf16.msra.mxu1 %v2746_v62  ;;  %1882 = vmatpush.bf16.msra.mxu0 %v2770_v63  ;;  %v2752_v62 = vld [vmem:[%s3675_s1 + $0x190] sm:$0xff] }
  0x59   : > { %1704 = vmatpush.bf16.msra.mxu3 %v2762_v61 }
  0x5b   : > { %485 = vmatmul.bf16.gmra.mxu0 %v3139_v39  ;;  %505 = vmatmul.bf16.gmra.mxu1 %v3143_v25 }
  0x5d   : > { %1705 = vmatpush.bf16.msra.mxu3 %v2761_v40  ;;  %v719_v40 = vrot.slane %v2886_v7, 1 }
  0x5e   : > { %535 = vmatmul.bf16.gmra.mxu3 %v399_v41  ;;  %804 = vmatmul.bf16.gmra.mxu2 %v3151_v43  ;;  %v2745_v41 = vld [vmem:[%s3675_s1 + $0x158] sm:$0xff] }
  0x5f   : > { %1339 = vmatpush.bf16.msra.mxu1 %v2745_v41  ;;  %v2760_v41 = vld [vmem:[%s3675_s1 + $0x1d0] sm:$0xff] }
  0x61   : > { %1706 = vmatpush.bf16.msra.mxu3 %v2760_v41  ;;  %v2768_v41 = vld [vmem:[%s3675_s1 + $0x210] sm:$0xff] }
  0x6b   : > { %611 = vmatmul.bf16.vlgmr.msrb.gmra.mxu1 %v2877_v4  ;;  %1165 = vmatmul.bf16.vlgmr.msrb.gmra.mxu0 %v3028_v24  ;;  %v3179_v4 = vsel %vm699_vm1, %v705_v46, %v707_v49  ;;  %v2755_v24 = vld [vmem:[%s3675_s1 + $0x1a8] sm:$0xff]  ;;  %v2769_v46 = vld [vmem:[%s3675_s1 + $0x218] sm:$0xff] }
  0x6c   : > { %1513 = vmatpush.bf16.msra.mxu2 %v2755_v24  ;;  %1883 = vmatpush.bf16.msra.mxu0 %v2769_v46  ;;  %v2744_v46 = vld [vmem:[%s3675_s1 + $0x150] sm:$0xff] }
  0x6d   : > { %1340 = vmatpush.bf16.msra.mxu1 %v2744_v46  ;;  %v721_v46 = vrot.slane %v2903_v14, 1 }
  0x6e   : > { %975 = vmatmul.bf16.vlgmr.msrb.gmra.mxu3 %v2889_v8  ;;  %809 = vmatmul.bf16.gmra.mxu2 %v3168_v47 }
  0x70   : > { %1514 = vmatpush.bf16.msra.mxu2 %v2754_v60  ;;  %1884 = vmatpush.bf16.msra.mxu0 %v2768_v41 }
  0x74   : > { %1515 = vmatpush.bf16.msra.mxu2 %v2753_v30 }
  0x78   : > { %1516 = vmatpush.bf16.msra.mxu2 %v2752_v62  ;;  %v3320_v62 = vsel %vm699_vm1, %v717_v55, %v719_v40 }
  0x79   : > { %3710 = vst [vmem:[#allocation17_spill] sm:$0xff] %v3320_v62 }
  0x7b   : > { %616 = vmatmul.bf16.gmra.mxu1 %v2889_v8  ;;  %1170 = vmatmul.bf16.gmra.mxu0 %v3105_v2  ;;  %v709_v8 = vrot.slane %v2893_v10, 1 }
  0x7d   : > { %v3196_v56 = vsel %vm699_vm1, %v707_v49, %v709_v8  ;;  %v3207_v59 = vsel %vm699_vm1, %v709_v8, %v711_v58 }
  0x7e   : > { %980 = vmatmul.bf16.gmra.mxu3 %v2970_v50  ;;  %814 = vmatmul.bf16.gmra.mxu2 %v3179_v4 }
  0x8b   : > { %621 = vmatmul.bf16.gmra.mxu1 %v2970_v50  ;;  %1175 = vmatmul.bf16.gmra.mxu0 %v3139_v39 }
  0x8e   : > { %985 = vmatmul.bf16.gmra.mxu3 %v3049_v32  ;;  %819 = vmatmul.bf16.gmra.mxu2 %v3196_v56 }
  0x9b   : > { %626 = vmatmul.bf16.gmra.mxu1 %v3049_v32  ;;  %1180 = vmatmul.bf16.gmra.mxu0 %v2949_v42 }
  0x9e   : > { %990 = vmatmul.bf16.gmra.mxu3 %v2883_v6  ;;  %824 = vmatmul.bf16.gmra.mxu2 %v3207_v59 }
  0xa8   : > { %v3222_v1 = vpop.f32.mrf.mxu0  ;;  %v3224_v5 = vpop.f32.mrf.mxu1 }
  0xab   : > { %631 = vmatmul.bf16.gmra.mxu1 %v2883_v6  ;;  %1185 = vmatmul.bf16.gmra.mxu0 %v3031_v26 }
  0xae   : > { %995 = vmatmul.bf16.gmra.mxu3 %v2893_v10  ;;  %829 = vmatmul.bf16.gmra.mxu2 %v3231_v12 }
  0xb0   : > { %v3236_v16 = vpop.f32.mrf.mxu0  ;;  %v3238_v17 = vpop.f32.mrf.mxu1 }
  0xb1   : > { %v3233_v15 = vpop.f32.mrf.mxu3  ;;  %v3240_v18 = vpop.f32.mrf.mxu2 }
  0xb2   : > { %3701 = vst [vmem:[#allocation8_spill] sm:$0xff] %v3233_v15 }
  0xb8   : > { %v3244_v22 = vpop.f32.mrf.mxu0  ;;  %v3246_v27 = vpop.f32.mrf.mxu1 }
  0xb9   : > { %v3242_v20 = vpop.f32.mrf.mxu3  ;;  %v3252_v31 = vpop.f32.mrf.mxu2 }
  0xba   : > { %3702 = vst [vmem:[#allocation9_spill] sm:$0xff] %v3242_v20  ;;  %v3340_v20 = vsel %vm699_vm1, %v719_v40, %v721_v46 }
  0xbb   : > { %636 = vmatmul.bf16.gmra.mxu1 %v2893_v10  ;;  %1190 = vmatmul.bf16.gmra.mxu0 %v3108_v3  ;;  %3713 = vst [vmem:[#allocation20_spill] sm:$0xff] %v3340_v20 }
  0xbe   : > { %1000 = vmatmul.bf16.gmra.mxu3 %v2973_v51  ;;  %834 = vmatmul.bf16.gmra.mxu2 %v3258_v38 }
  0xc0   : > { %v3269_v33 = vpop.f32.mrf.mxu0  ;;  %v3271_v44 = vpop.f32.mrf.mxu1 }
  0xc1   : > { %v3266_v21 = vpop.f32.mrf.mxu3  ;;  %v3276_v48 = vpop.f32.mrf.mxu2 }
  0xc2   : > { %3704 = vst [vmem:[#allocation11_spill] sm:$0xff] %v3266_v21 }
  0xc8   : > { %v3280_v24 = vpop.f32.mrf.mxu0  ;;  %v3282_v54 = vpop.f32.mrf.mxu1 }
  0xc9   : > { %v3278_v49 = vpop.f32.mrf.mxu3  ;;  %v3285_v8 = vpop.f32.mrf.mxu2 }
  0xca   : > { %3705 = vst [vmem:[#allocation12_spill] sm:$0xff] %v3278_v49 }
  0xcb   : > { %3706 = vst [vmem:[#allocation13_spill] sm:$0xff] %v3285_v8  ;;  %641 = vmatmul.bf16.gmra.mxu1 %v2973_v51  ;;  %1195 = vmatmul.bf16.gmra.mxu0 %v3143_v25 }
  0xce   : > { %1005 = vmatmul.bf16.gmra.mxu3 %v3052_v34  ;;  %839 = vmatmul.bf16.gmra.mxu2 %v3291_v57 }
  0xd0   : > { %v3296_v60 = vpop.f32.mrf.mxu0  ;;  %v3298_v61 = vpop.f32.mrf.mxu1 }
  0xd1   : > { %v3293_v58 = vpop.f32.mrf.mxu3  ;;  %v800_v63 = vpop.f32.mrf.mxu2 }
  0xd2   : > { %3708 = vst [vmem:[#allocation15_spill] sm:$0xff] %v3293_v58 }
  0xd8   : > { %v3305_v30 = vpop.f32.mrf.mxu0  ;;  %v3307_v29 = vpop.f32.mrf.mxu1 }
  0xd9   : > { %v3303_v9 = vpop.f32.mrf.mxu3  ;;  %v802_v57 = vpop.f32.mrf.mxu2 }
  0xda   : > { %3709 = vst [vmem:[#allocation16_spill] sm:$0xff] %v3303_v9 }
  0xdb   : > { %646 = vmatmul.bf16.gmra.mxu1 %v3052_v34  ;;  %1200 = vmatmul.bf16.gmra.mxu0 %v2976_v52 }
  0xde   : > { %1010 = vmatmul.bf16.gmra.mxu3 %v2900_v13  ;;  %844 = vmatmul.bf16.gmra.mxu2 %v3320_v62 }
  0xe0   : > { %v3325_v58 = vpop.f32.mrf.mxu0  ;;  %v3327_v49 = vpop.f32.mrf.mxu1 }
  0xe1   : > { %v3322_v9 = vpop.f32.mrf.mxu3  ;;  %v805_v25 = vpop.f32.mrf.mxu2 }
  0xe2   : > { %3711 = vst [vmem:[#allocation18_spill] sm:$0xff] %v3322_v9 }
  0xe8   : > { %v612_v38 = vpop.f32.mrf.mxu1  ;;  %v1166_v55 = vpop.f32.mrf.mxu0 }
  0xe9   : > { %v3332_v52 = vpop.f32.mrf.mxu3  ;;  %v613_v9 = vadd.f32 %v612_v38, %v3222_v1  ;;  %v807_v21 = vpop.f32.mrf.mxu2  ;;  %v2759_v1 = vld [vmem:[%s3675_s1 + $0x1c8] sm:$0xff] }
  0xea   : > { %3712 = vst [vmem:[#allocation19_spill] sm:$0xff] %v3332_v52  ;;  %v2743_v38 = vld [vmem:[%s3675_s1 + $0x148] sm:$0xff]  ;;  %1707 = vmatpush.bf16.msra.mxu3 %v2759_v1 }
  0xeb   : > { %651 = vmatmul.bf16.gmra.mxu1 %v2900_v13  ;;  %1205 = vmatmul.bf16.gmra.mxu0 %v3056_v35  ;;  %v870_v62 = vadd.f32 %v800_v63, %v613_v9  ;;  %v2751_v13 = vld [vmem:[%s3675_s1 + $0x188] sm:$0xff] }
  0xec   : > { %1517 = vmatpush.bf16.msra.mxu2 %v2751_v13  ;;  %1341 = vmatpush.bf16.msra.mxu1 %v2743_v38 }
  0xee   : > { %1015 = vmatmul.bf16.gmra.mxu3 %v2916_v23  ;;  %849 = vmatmul.bf16.gmra.mxu2 %v3340_v20  ;;  %v723_v20 = vrot.slane %v2979_v53, 1 }
  0xf0   : > { %v614_v3 = vpop.f32.mrf.mxu1  ;;  %v1168_v12 = vpop.f32.mrf.mxu0 }
  0xf1   : > { %v976_v41 = vpop.f32.mrf.mxu3  ;;  %v615_v15 = vadd.f32 %v614_v3, %v3236_v16  ;;  %v810_v63 = vpop.f32.mrf.mxu2 }
  0xf2   : > { %v1046_v52 = vadd.f32 %v976_v41, %v870_v62 }
  0xf3   : > { %v871_v40 = vadd.f32 %v802_v57, %v615_v15  ;;  %v3363_v15 = vsel %vm699_vm1, %v721_v46, %v723_v20  ;;  %v2767_v57 = vld [vmem:[%s3675_s1 + $0x208] sm:$0xff] }
  0xf4   : > { %v3353_v9 = vadd.f32 %v1166_v55, %v1046_v52  ;;  %3714 = vst [vmem:[#allocation21_spill] sm:$0xff] %v3363_v15  ;;  %1885 = vmatpush.bf16.msra.mxu0 %v2767_v57 }
  0xf8   : > { %v617_v62 = vpop.f32.mrf.mxu1  ;;  %v1171_v41 = vpop.f32.mrf.mxu0 }
  0xf9   : > { %v978_v3 = vpop.f32.mrf.mxu3  ;;  %v618_v35 = vadd.f32 %v617_v62, %v3244_v22  ;;  %v812_v8 = vpop.f32.mrf.mxu2 }
  0xfa   : > { %v1047_v16 = vadd.f32 %v978_v3, %v871_v40 }
  0xfb   : > { %656 = vmatmul.bf16.gmra.mxu1 %v2916_v23  ;;  %1210 = vmatmul.bf16.gmra.mxu0 %v2953_v45  ;;  %v872_v52 = vadd.f32 %v805_v25, %v618_v35 }
  0xfc   : > { %v3357_v34 = vadd.f32 %v1168_v12, %v1047_v16  ;;  %v3373_v16 = vrot.slane %v3062_v37, 1 }
  0xfe   : > { %1020 = vmatmul.bf16.gmra.mxu3 %v2886_v7  ;;  %854 = vmatmul.bf16.gmra.mxu2 %v3363_v15 }
 0x100   : > { %v619_v22 = vpop.f32.mrf.mxu1  ;;  %v1173_v13 = vpop.f32.mrf.mxu0 }
 0x101   : > { %v981_v55 = vpop.f32.mrf.mxu3  ;;  %v620_v23 = vadd.f32 %v619_v22, %v3269_v33  ;;  %v815_v1 = vpop.f32.mrf.mxu2 }
 0x102   : > { %v1048_v12 = vadd.f32 %v981_v55, %v872_v52 }
 0x103   : > { %v873_v25 = vadd.f32 %v807_v21, %v620_v23  ;;  %v3383_v21 = vsel %vm699_vm1, %v723_v20, %v3373_v16  ;;  %v2742_v20 = vld [vmem:[%s3675_s1 + $0x140] sm:$0xff] }
 0x104   : > { %v3370_v35 = vadd.f32 %v1171_v41, %v1048_v12  ;;  %v2750_v41 = vld [vmem:[%s3675_s1 + $0x180] sm:$0xff]  ;;  %1342 = vmatpush.bf16.msra.mxu1 %v2742_v20 }
 0x105   : > { %1518 = vmatpush.bf16.msra.mxu2 %v2750_v41 }
 0x108   : > { %v622_v40 = vpop.f32.mrf.mxu1  ;;  %v1176_v3 = vpop.f32.mrf.mxu0 }
 0x109   : > { %v983_v38 = vpop.f32.mrf.mxu3  ;;  %v623_v62 = vadd.f32 %v622_v40, %v3280_v24  ;;  %v817_v57 = vpop.f32.mrf.mxu2 }
 0x10a   : > { %v1049_v46 = vadd.f32 %v983_v38, %v873_v25 }
 0x10b   : > { %661 = vmatmul.bf16.gmra.mxu1 %v2886_v7  ;;  %1215 = vmatmul.bf16.gmra.mxu0 %v3034_v28  ;;  %v874_v33 = vadd.f32 %v810_v63, %v623_v62  ;;  %v2758_v63 = vld [vmem:[%s3675_s1 + $0x1c0] sm:$0xff]  ;;  %v727_v62 = vrot.slane %v3129_v19, 1 }
 0x10c   : > { %v3376_v15 = vadd.f32 %v1173_v13, %v1049_v46  ;;  %1708 = vmatpush.bf16.msra.mxu3 %v2758_v63  ;;  %v1095_v63 = vshll.u32 %v3099_v0, 16 }
 0x10d   : > { %v728_v19 = vsel %vm699_vm1, %v3373_v16, %v727_v62 }
 0x10e   : > { %1025 = vmatmul.bf16.gmra.mxu3 %v2903_v14  ;;  %859 = vmatmul.bf16.gmra.mxu2 %v3383_v21 }
 0x110   : > { %v624_v55 = vpop.f32.mrf.mxu1  ;;  %v1178_v7 = vpop.f32.mrf.mxu0 }
 0x111   : > { %v986_v24 = vpop.f32.mrf.mxu3  ;;  %v625_v12 = vadd.f32 %v624_v55, %v3296_v60  ;;  %v820_v22 = vpop.f32.mrf.mxu2  ;;  %v2766_v60 = vld [vmem:[%s3675_s1 + $0x200] sm:$0xff] }
 0x112   : > { %v1050_v52 = vadd.f32 %v986_v24, %v874_v33  ;;  %1886 = vmatpush.bf16.msra.mxu0 %v2766_v60 }
 0x113   : > { %v875_v23 = vadd.f32 %v812_v8, %v625_v12 }
 0x114   : > { %v3396_v13 = vadd.f32 %v1176_v3, %v1050_v52 }
 0x118   : > { %v627_v46 = vpop.f32.mrf.mxu1  ;;  %v1181_v40 = vpop.f32.mrf.mxu0 }
 0x119   : > { %v988_v25 = vpop.f32.mrf.mxu3  ;;  %v628_v33 = vadd.f32 %v627_v46, %v3305_v30  ;;  %v822_v41 = vpop.f32.mrf.mxu2 }
 0x11a   : > { %v1051_v38 = vadd.f32 %v988_v25, %v875_v23  ;;  %v1097_v23 = vrot.slane %v1095_v63, 1 }
 0x11b   : > { %666 = vmatmul.bf16.gmra.mxu1 %v2903_v14  ;;  %1220 = vmatmul.bf16.gmra.mxu0 %v3113_v11  ;;  %v876_v8 = vadd.f32 %v815_v1, %v628_v33  ;;  %v3415_v1 = vld [vmem:[%s2874_s22 + $0x78] sm:$0xff]  }
 0x11c   : > { %v3403_v24 = vadd.f32 %v1178_v7, %v1051_v38  ;;  %v3419_v60 = vsel %vm283_vm0, %v3135_v36, %v1097_v23  ;;  %v2780_v33 = vunpack.c.l.b16 %v3415_v1 }
 0x11e   : > { %1030 = vmatmul.bf16.gmra.mxu3 %v2979_v53  ;;  %864 = vmatmul.bf16.gmra.mxu2 %v728_v19 }
 0x120   : > { %v629_v55 = vpop.f32.mrf.mxu1  ;;  %v1183_v30 = vpop.f32.mrf.mxu0 }
 0x121   : > { %v991_v3 = vpop.f32.mrf.mxu3  ;;  %v630_v7 = vadd.f32 %v629_v55, %v3325_v58  ;;  %v825_v12 = vpop.f32.mrf.mxu2 }
 0x122   : > { %v1052_v52 = vadd.f32 %v991_v3, %v876_v8 }
 0x123   : > { %v877_v20 = vadd.f32 %v817_v57, %v630_v7 }
 0x124   : > { %v3412_v14 = vadd.f32 %v1181_v40, %v1052_v52  ;;  %v3428_v40 = vpack.c.b16 %v2780_v33, %v2780_v33 }
 0x126   : > { %3715 = vst [vmem:[#allocation22_spill] sm:$0xff] %v3428_v40 }
 0x128   : > { %v632_v46 = vpop.f32.mrf.mxu1  ;;  %v1186_v62 = vpop.f32.mrf.mxu0 }
 0x129   : > { %v993_v25 = vpop.f32.mrf.mxu3  ;;  %v633_v8 = vadd.f32 %v632_v46, %v3224_v5  ;;  %v827_v58 = vpop.f32.mrf.mxu2  ;;  %v1099_v5 = vshrl.u32 %v3099_v0, 16 }
 0x12a   : > { %v1053_v38 = vadd.f32 %v993_v25, %v877_v20 }
 0x12b   : > { %671 = vmatmul.bf16.gmra.mxu1 %v2979_v53  ;;  %1225 = vmatmul.bf16.gmra.mxu0 %v3419_v60  ;;  %v878_v57 = vadd.f32 %v820_v22, %v633_v8  ;;  %v3436_v20 = vor.u32 %v1099_v5, %v1097_v23 }
 0x12c   : > { %v3423_v19 = vadd.f32 %v1183_v30, %v1053_v38  ;;  %v1103_v30 = vshll.u32 %v3428_v40, 16 }
 0x12e   : > { %1035 = vmatmul.bf16.gmra.mxu3 %v3062_v37  ;;  %1519 = vmatmul.bf16.vlgmr.msra.gmra.mxu2 %v2970_v50  ;;  %v1105_v25 = vrot.slane %v1103_v30, 1 }
 0x130   : > { %v634_v52 = vpop.f32.mrf.mxu1  ;;  %v1188_v55 = vpop.f32.mrf.mxu0  ;;  %v1106_v8 = vsel %vm283_vm0, %v3436_v20, %v1105_v25 }
 0x131   : > { %v996_v3 = vpop.f32.mrf.mxu3  ;;  %v635_v63 = vadd.f32 %v634_v52, %v3238_v17  ;;  %v830_v53 = vpop.f32.mrf.mxu2 }
 0x132   : > { %v1054_v36 = vadd.f32 %v996_v3, %v878_v57 }
 0x133   : > { %v879_v22 = vadd.f32 %v822_v41, %v635_v63 }
 0x134   : > { %v3434_v7 = vadd.f32 %v1186_v62, %v1054_v36 }
 0x138   : > { %v637_v33 = vpop.f32.mrf.mxu1  ;;  %v1191_v50 = vpop.f32.mrf.mxu0 }
 0x139   : > { %v998_v38 = vpop.f32.mrf.mxu3  ;;  %v638_v57 = vadd.f32 %v637_v33, %v3246_v27  ;;  %v832_v3 = vpop.f32.mrf.mxu2 }
 0x13a   : > { %v1055_v46 = vadd.f32 %v998_v38, %v879_v22 }
 0x13b   : > { %676 = vmatmul.bf16.gmra.mxu1 %v3062_v37  ;;  %1230 = vmatmul.bf16.gmra.mxu0 %v1106_v8  ;;  %v880_v17 = vadd.f32 %v825_v12, %v638_v57 }
 0x13c   : > { %v3441_v40 = vadd.f32 %v1188_v55, %v1055_v46 }
 0x13e   : > { %1040 = vmatmul.bf16.gmra.mxu3 %v3099_v0  ;;  %1524 = vmatmul.bf16.gmra.mxu2 %v3049_v32 }
 0x140   : > { %v639_v62 = vpop.f32.mrf.mxu1  ;;  %v1193_v36 = vpop.f32.mrf.mxu0 }
 0x141   : > { %v1001_v41 = vpop.f32.mrf.mxu3  ;;  %v640_v52 = vadd.f32 %v639_v62, %v3271_v44  ;;  %v835_v5 = vpop.f32.mrf.mxu2 }
 0x142   : > { %v1056_v23 = vadd.f32 %v1001_v41, %v880_v17 }
 0x143   : > { %v881_v27 = vadd.f32 %v827_v58, %v640_v52 }
 0x144   : > { %v3447_v30 = vadd.f32 %v1191_v50, %v1056_v23 }
 0x148   : > { %v642_v22 = vpop.f32.mrf.mxu1  ;;  %v1196_v37 = vpop.f32.mrf.mxu0 }
 0x149   : > { %v1003_v55 = vpop.f32.mrf.mxu3  ;;  %v643_v12 = vadd.f32 %v642_v22, %v3282_v54  ;;  %v837_v25 = vpop.f32.mrf.mxu2 }
 0x14a   : > { %v1057_v63 = vadd.f32 %v1003_v55, %v881_v27 }
 0x14b   : > { %1343 = vmatmul.bf16.vlgmr.msra.gmra.mxu1 %v3151_v43  ;;  %1887 = vmatmul.bf16.vlgmr.msra.gmra.mxu0 %v3168_v47  ;;  %v882_v32 = vadd.f32 %v830_v53, %v643_v12 }
 0x14c   : > { %v3450_v0 = vadd.f32 %v1193_v36, %v1057_v63 }
 0x14e   : > { %1709 = vmatmul.bf16.vlgmr.msra.gmra.mxu3 %v3105_v2  ;;  %1529 = vmatmul.bf16.gmra.mxu2 %v2883_v6 }
 0x150   : > { %v644_v38 = vpop.f32.mrf.mxu1  ;;  %v1198_v46 = vpop.f32.mrf.mxu0 }
 0x151   : > { %v1006_v44 = vpop.f32.mrf.mxu3  ;;  %v645_v33 = vadd.f32 %v644_v38, %v3298_v61  ;;  %v840_v50 = vpop.f32.mrf.mxu2 }
 0x152   : > { %v1058_v58 = vadd.f32 %v1006_v44, %v882_v32 }
 0x153   : > { %v883_v8 = vadd.f32 %v832_v3, %v645_v33 }
 0x154   : > { %v3457_v54 = vadd.f32 %v1196_v37, %v1058_v58 }
 0x158   : > { %v647_v43 = vpop.f32.mrf.mxu1  ;;  %v1201_v41 = vpop.f32.mrf.mxu0 }
 0x159   : > { %v1008_v57 = vpop.f32.mrf.mxu3  ;;  %v648_v53 = vadd.f32 %v647_v43, %v3307_v29  ;;  %v842_v23 = vpop.f32.mrf.mxu2  ;;  %v3716_v43 = vld [vmem:[#allocation3_spill] sm:$0xff] }
 0x15a   : > { %v1059_v17 = vadd.f32 %v1008_v57, %v883_v8 }
 0x15b   : > { %1348 = vmatmul.bf16.gmra.mxu1 %v3168_v47  ;;  %1892 = vmatmul.bf16.gmra.mxu0 %v3179_v4  ;;  %v884_v6 = vadd.f32 %v835_v5, %v648_v53 }
 0x15c   : > { %v3460_v2 = vadd.f32 %v1198_v46, %v1059_v17 }
 0x15e   : > { %1714 = vmatmul.bf16.gmra.mxu3 %v3139_v39  ;;  %1534 = vmatmul.bf16.gmra.mxu2 %v2893_v10 }
 0x160   : > { %v649_v62 = vpop.f32.mrf.mxu1  ;;  %v1203_v36 = vpop.f32.mrf.mxu0 }
 0x161   : > { %v1011_v61 = vpop.f32.mrf.mxu3  ;;  %v650_v52 = vadd.f32 %v649_v62, %v3327_v49  ;;  %v845_v27 = vpop.f32.mrf.mxu2 }
 0x162   : > { %v1060_v3 = vadd.f32 %v1011_v61, %v884_v6  ;;  %v3717_v6 = vld [vmem:[#allocation13_spill] sm:$0xff] }
 0x163   : > { %v885_v55 = vadd.f32 %v837_v25, %v650_v52 }
 0x164   : > { %v3467_v29 = vadd.f32 %v1201_v41, %v1060_v3 }
 0x168   : > { %v652_v47 = vpop.f32.mrf.mxu1  ;;  %v1206_v37 = vpop.f32.mrf.mxu0 }
 0x169   : > { %v1013_v63 = vpop.f32.mrf.mxu3  ;;  %v653_v5 = vadd.f32 %v652_v47, %v3240_v18  ;;  %v847_v12 = vpop.f32.mrf.mxu2  ;;  %v3719_v47 = vld [vmem:[#allocation7_spill] sm:$0xff] }
 0x16a   : > { %v1061_v22 = vadd.f32 %v1013_v63, %v885_v55 }
 0x16b   : > { %1353 = vmatmul.bf16.gmra.mxu1 %v3179_v4  ;;  %1897 = vmatmul.bf16.gmra.mxu0 %v3196_v56  ;;  %v886_v10 = vadd.f32 %v840_v50, %v653_v5  ;;  %v3720_v5 = vld [vmem:[#allocation5_spill] sm:$0xff] }
 0x16c   : > { %v3470_v39 = vadd.f32 %v1203_v36, %v1061_v22 }
 0x16e   : > { %1719 = vmatmul.bf16.gmra.mxu3 %v2949_v42  ;;  %1539 = vmatmul.bf16.gmra.mxu2 %v2973_v51 }
 0x170   : > { %v654_v32 = vpop.f32.mrf.mxu1  ;;  %v1208_v44 = vpop.f32.mrf.mxu0 }
 0x171   : > { %v1016_v49 = vpop.f32.mrf.mxu3  ;;  %v655_v58 = vadd.f32 %v654_v32, %v3252_v31  ;;  %v850_v38 = vpop.f32.mrf.mxu2 }
 0x172   : > { %v1062_v25 = vadd.f32 %v1016_v49, %v886_v10  ;;  %v2818_v49 = vld [vmem:[%s2874_s22 + $0x40] sm:$0xff] }
 0x173   : > { %v887_v46 = vadd.f32 %v842_v23, %v655_v58 }
 0x174   : > { %v3477_v18 = vadd.f32 %v1206_v37, %v1062_v25 }
 0x178   : > { %v657_v4 = vpop.f32.mrf.mxu1  ;;  %v1211_v57 = vpop.f32.mrf.mxu0 }
 0x179   : > { %v1018_v33 = vpop.f32.mrf.mxu3  ;;  %v658_v50 = vadd.f32 %v657_v4, %v3276_v48  ;;  %v852_v17 = vpop.f32.mrf.mxu2 }
 0x17a   : > { %v1063_v8 = vadd.f32 %v1018_v33, %v887_v46 }
 0x17b   : > { %1358 = vmatmul.bf16.gmra.mxu1 %v3196_v56  ;;  %1902 = vmatmul.bf16.gmra.mxu0 %v3207_v59  ;;  %v888_v51 = vadd.f32 %v845_v27, %v658_v50  ;;  %v3718_v27 = vld [vmem:[#allocation8_spill] sm:$0xff] }
 0x17c   : > { %v3480_v42 = vadd.f32 %v1208_v44, %v1063_v8  ;;  %v3721_v44 = vld [vmem:[#allocation9_spill] sm:$0xff] }
 0x17e   : > { %1724 = vmatmul.bf16.gmra.mxu3 %v3031_v26  ;;  %1544 = vmatmul.bf16.gmra.mxu2 %v3716_v43 }
 0x180   : > { %v659_v53 = vpop.f32.mrf.mxu1  ;;  %v1213_v23 = vpop.f32.mrf.mxu0 }
 0x181   : > { %v1021_v31 = vpop.f32.mrf.mxu3  ;;  %v660_v61 = vadd.f32 %v659_v53, %v3717_v6  ;;  %v855_v48 = vpop.f32.mrf.mxu2 }
 0x182   : > { %v1064_v41 = vadd.f32 %v1021_v31, %v888_v51 }
 0x183   : > { %v889_v62 = vadd.f32 %v847_v12, %v660_v61  ;;  %v2819_v61 = vld [vmem:[%s2874_s22 + $0x48] sm:$0xff] }
 0x184   : > { %v3487_v3 = vadd.f32 %v1211_v57, %v1064_v41  ;;  %v3723_v41 = vld [vmem:[#allocation10_spill] sm:$0xff] }
 0x188   : > { %v662_v52 = vpop.f32.mrf.mxu1  ;;  %v1216_v55 = vpop.f32.mrf.mxu0 }
 0x189   : > { %v1023_v36 = vpop.f32.mrf.mxu3  ;;  %v663_v63 = vadd.f32 %v662_v52, %v3718_v27  ;;  %v857_v26 = vpop.f32.mrf.mxu2 }
 0x18a   : > { %v1065_v56 = vadd.f32 %v1023_v36, %v889_v62 }
 0x18b   : > { %1363 = vmatmul.bf16.gmra.mxu1 %v3207_v59  ;;  %1907 = vmatmul.bf16.gmra.mxu0 %v3719_v47  ;;  %v890_v37 = vadd.f32 %v850_v38, %v663_v63  ;;  %v3722_v38 = vld [vmem:[#allocation11_spill] sm:$0xff] }
 0x18c   : > { %v3490_v22 = vadd.f32 %v1213_v23, %v1065_v56  ;;  %v3724_v23 = vld [vmem:[#allocation6_spill] sm:$0xff]  ;;  %v3725_v56 = vld [vmem:[#allocation12_spill] sm:$0xff] }
 0x18e   : > { %1729 = vmatmul.bf16.gmra.mxu3 %v3720_v5  ;;  %1549 = vmatmul.bf16.gmra.mxu2 %v2818_v49 }
 0x190   : > { %v664_v25 = vpop.f32.mrf.mxu1  ;;  %v1218_v32 = vpop.f32.mrf.mxu0 }
 0x191   : > { %v1026_v10 = vpop.f32.mrf.mxu3  ;;  %v665_v58 = vadd.f32 %v664_v25, %v3721_v44  ;;  %v860_v46 = vpop.f32.mrf.mxu2 }
 0x192   : > { %v1066_v12 = vadd.f32 %v1026_v10, %v890_v37 }
 0x193   : > { %v891_v8 = vadd.f32 %v852_v17, %v665_v58  ;;  %v3728_v58 = vld [vmem:[#allocation2_spill] sm:$0xff] }
 0x194   : > { %v3497_v33 = vadd.f32 %v1216_v55, %v1066_v12 }
 0x198   : > { %v667_v57 = vpop.f32.mrf.mxu1  ;;  %v1221_v50 = vpop.f32.mrf.mxu0 }
 0x199   : > { %v1028_v4 = vpop.f32.mrf.mxu3  ;;  %v668_v51 = vadd.f32 %v667_v57, %v3722_v38  ;;  %v862_v31 = vpop.f32.mrf.mxu2 }
 0x19a   : > { %v1067_v59 = vadd.f32 %v1028_v4, %v891_v8  ;;  %v2820_v4 = vld [vmem:[%s2874_s22 + $0x50] sm:$0xff] }
 0x19b   : > { %1368 = vmatmul.bf16.gmra.mxu1 %v3719_v47  ;;  %1912 = vmatmul.bf16.gmra.mxu0 %v3723_v41  ;;  %v892_v53 = vadd.f32 %v855_v48, %v668_v51  ;;  %v3726_v48 = vld [vmem:[#allocation15_spill] sm:$0xff] }
 0x19c   : > { %v3500_v43 = vadd.f32 %v1218_v32, %v1067_v59  ;;  %v3727_v32 = vld [vmem:[#allocation14_spill] sm:$0xff] }
 0x19e   : > { %1734 = vmatmul.bf16.gmra.mxu3 %v3724_v23  ;;  %1554 = vmatmul.bf16.gmra.mxu2 %v2819_v61 }
 0x1a0   : > { %v669_v62 = vpop.f32.mrf.mxu1  ;;  %v1223_v36 = vpop.f32.mrf.mxu0 }
 0x1a1   : > { %v1031_v6 = vpop.f32.mrf.mxu3  ;;  %v670_v52 = vadd.f32 %v669_v62, %v3725_v56  ;;  %v865_v55 = vpop.f32.mrf.mxu2 }
 0x1a2   : > { %v1068_v17 = vadd.f32 %v1031_v6, %v892_v53 }
 0x1a3   : > { %v893_v63 = vadd.f32 %v857_v26, %v670_v52  ;;  %v3731_v52 = vld [vmem:[#allocation17_spill] sm:$0xff] }
 0x1a4   : > { %v3507_v27 = vadd.f32 %v1221_v50, %v1068_v17  ;;  %v3729_v50 = vld [vmem:[#allocation16_spill] sm:$0xff] }
 0x1a8   : > { %v672_v5 = vpop.f32.mrf.mxu1  ;;  %v1226_v10 = vpop.f32.mrf.mxu0 }
 0x1a9   : > { %v1033_v37 = vpop.f32.mrf.mxu3  ;;  %v673_v49 = vadd.f32 %v672_v5, %v3726_v48  ;;  %v867_v12 = vpop.f32.mrf.mxu2  ;;  %v2821_v5 = vld [vmem:[%s2874_s22 + $0x58] sm:$0xff] }
 0x1aa   : > { %v1069_v47 = vadd.f32 %v1033_v37, %v893_v63  ;;  %v3732_v37 = vld [vmem:[#allocation4_spill] sm:$0xff] }
 0x1ab   : > { %1373 = vmatmul.bf16.gmra.mxu1 %v3723_v41  ;;  %1917 = vmatmul.bf16.gmra.mxu0 %v3727_v32  ;;  %v894_v44 = vadd.f32 %v860_v46, %v673_v49  ;;  %v3730_v46 = vld [vmem:[#allocation18_spill] sm:$0xff]  ;;  %v3733_v49 = vld [vmem:[#allocation19_spill] sm:$0xff] }
 0x1ac   : > { %v3510_v25 = vadd.f32 %v1223_v36, %v1069_v47 }
 0x1ae   : > { %1739 = vmatmul.bf16.gmra.mxu3 %v3728_v58  ;;  %1559 = vmatmul.bf16.gmra.mxu2 %v2820_v4 }
 0x1b0   : > { %v674_v59 = vpop.f32.mrf.mxu1  ;;  %v1228_v57 = vpop.f32.mrf.mxu0 }
 0x1b1   : > { %v1036_v8 = vpop.f32.mrf.mxu3  ;;  %v675_v38 = vadd.f32 %v674_v59, %v3729_v50  ;;  %v1520_v51 = vpop.f32.mrf.mxu2 }
 0x1b2   : > { %v1070_v26 = vadd.f32 %v1036_v8, %v894_v44 }
 0x1b3   : > { %v895_v23 = vadd.f32 %v862_v31, %v675_v38 }
 0x1b4   : > { %v3517_v53 = vadd.f32 %v1226_v10, %v1070_v26 }
 0x1b8   : > { %v677_v61 = vpop.f32.mrf.mxu1  ;;  %v1231_v17 = vpop.f32.mrf.mxu0 }
 0x1b9   : > { %v1038_v6 = vpop.f32.mrf.mxu3  ;;  %v678_v62 = vadd.f32 %v677_v61, %v3730_v46  ;;  %v1522_v36 = vpop.f32.mrf.mxu2  ;;  %v2822_v61 = vld [vmem:[%s2874_s22 + $0x60] sm:$0xff] }
 0x1ba   : > { %v1071_v41 = vadd.f32 %v1038_v6, %v895_v23  ;;  %v3734_v23 = vld [vmem:[#allocation20_spill] sm:$0xff] }
 0x1bb   : > { %1378 = vmatmul.bf16.gmra.mxu1 %v3727_v32  ;;  %1922 = vmatmul.bf16.gmra.mxu0 %v3731_v52  ;;  %v896_v63 = vadd.f32 %v865_v55, %v678_v62 }
 0x1bc   : > { %v3520_v56 = vadd.f32 %v1228_v57, %v1071_v41 }
 0x1be   : > { %1744 = vmatmul.bf16.gmra.mxu3 %v3732_v37  ;;  %1564 = vmatmul.bf16.gmra.mxu2 %v2821_v5 }
 0x1c0   : > { %v679_v10 = vpop.f32.mrf.mxu1  ;;  %v1233_v48 = vpop.f32.mrf.mxu0 }
 0x1c1   : > { %v1041_v47 = vpop.f32.mrf.mxu3  ;;  %v680_v44 = vadd.f32 %v679_v10, %v3733_v49  ;;  %v1525_v58 = vpop.f32.mrf.mxu2 }
 0x1c2   : > { %v1072_v31 = vadd.f32 %v1041_v47, %v896_v63 }
 0x1c3   : > { %v897_v4 = vadd.f32 %v867_v12, %v680_v44 }
 0x1c4   : > { %v3527_v8 = vadd.f32 %v1231_v17, %v1072_v31 }
 0x1c8   : > { %v1344_v59 = vpop.f32.mrf.mxu1  ;;  %v1888_v55 = vpop.f32.mrf.mxu0 }
 0x1c9   : > { %v1043_v32 = vpop.f32.mrf.mxu3  ;;  %v1414_v57 = vadd.f32 %v1344_v59, %v3353_v9  ;;  %v1527_v50 = vpop.f32.mrf.mxu2 }
 0x1ca   : > { %v1073_v26 = vadd.f32 %v1043_v32, %v897_v4 }
 0x1cb   : > { %1383 = vmatmul.bf16.gmra.mxu1 %v3731_v52  ;;  %1927 = vmatmul.bf16.gmra.mxu0 %v3734_v23  ;;  %v1590_v6 = vadd.f32 %v1520_v51, %v1414_v57 }
 0x1cc   : > { %v3530_v38 = vadd.f32 %v1233_v48, %v1073_v26  ;;  %v3735_v48 = vld [vmem:[#allocation21_spill] sm:$0xff] }
 0x1ce   : > { %1749 = vmatmul.bf16.gmra.mxu3 %v2953_v45  ;;  %1569 = vmatmul.bf16.gmra.mxu2 %v2822_v61 }
 0x1d0   : > { %v1346_v17 = vpop.f32.mrf.mxu1  ;;  %v1890_v46 = vpop.f32.mrf.mxu0 }
 0x1d1   : > { %v1710_v41 = vpop.f32.mrf.mxu3  ;;  %v1415_v9 = vadd.f32 %v1346_v17, %v3357_v34  ;;  %v1530_v63 = vpop.f32.mrf.mxu2 }
 0x1d2   : > { %v1780_v12 = vadd.f32 %v1710_v41, %v1590_v6 }
 0x1d3   : > { %v1591_v51 = vadd.f32 %v1522_v36, %v1415_v9  ;;  %v2823_v36 = vld [vmem:[%s2874_s22 + $0x68] sm:$0xff] }
 0x1d4   : > { %v1958_v62 = vadd.f32 %v1888_v55, %v1780_v12 }
 0x1d6   : > { %v1986_v45 = vpack.c.bf16 %v1958_v62, %v1958_v62 }
 0x1d8   : > { %2014 = vst [vmem:[%s3541_s11] sm:$0xf] %v1986_v45  ;;  %v1349_v47 = vpop.f32.mrf.mxu1  ;;  %v1893_v5 = vpop.f32.mrf.mxu0 }
 0x1d9   : > { %v1712_v52 = vpop.f32.mrf.mxu3  ;;  %v1416_v10 = vadd.f32 %v1349_v47, %v3370_v35  ;;  %v1532_v34 = vpop.f32.mrf.mxu2 }
 0x1da   : > { %v1781_v37 = vadd.f32 %v1712_v52, %v1591_v51 }
 0x1db   : > { %1388 = vmatmul.bf16.gmra.mxu1 %v3734_v23  ;;  %1932 = vmatmul.bf16.gmra.mxu0 %v3735_v48  ;;  %v1592_v44 = vadd.f32 %v1525_v58, %v1416_v10 }
 0x1dc   : > { %v1959_v31 = vadd.f32 %v1890_v46, %v1781_v37  ;;  %v2824_v37 = vld [vmem:[%s2874_s22 + $0x70] sm:$0xff]  }
 0x1de   : > { %v1987_v49 = vpack.c.bf16 %v1959_v31, %v1959_v31  ;;  %1754 = vmatmul.bf16.gmra.mxu3 %v3034_v28  ;;  %1574 = vmatmul.bf16.gmra.mxu2 %v2823_v36 }
 0x1e0   : > { %2015 = vst [vmem:[%s3541_s11 + $0x4] sm:$0x7] %v1987_v49  ;;  %v1351_v26 = vpop.f32.mrf.mxu1  ;;  %v1895_v59 = vpop.f32.mrf.mxu0 }
 0x1e1   : > { %v1715_v4 = vpop.f32.mrf.mxu3  ;;  %v1417_v35 = vadd.f32 %v1351_v26, %v3376_v15  ;;  %v1535_v57 = vpop.f32.mrf.mxu2 }
 0x1e2   : > { %v1782_v32 = vadd.f32 %v1715_v4, %v1592_v44 }
 0x1e3   : > { %v1593_v41 = vadd.f32 %v1527_v50, %v1417_v35 }
 0x1e4   : > { %v1960_v55 = vadd.f32 %v1893_v5, %v1782_v32 }
 0x1e6   : > { %v1988_v6 = vpack.c.bf16 %v1960_v55, %v1960_v55 }
 0x1e8   : > { %v2021_v23 = vrot.slane %v1988_v6, 5  ;;  %v1354_v28 = vpop.f32.mrf.mxu1  ;;  %v1898_v17 = vpop.f32.mrf.mxu0 }
 0x1e9   : > { %v1717_v61 = vpop.f32.mrf.mxu3  ;;  %v1418_v46 = vadd.f32 %v1354_v28, %v3396_v13  ;;  %v1537_v62 = vpop.f32.mrf.mxu2 }
 0x1ea   : > { %2029 = vst [vmem:[%s3541_s11 + $0x4] sm:$0x8] %v2021_v23  ;;  %v1783_v12 = vadd.f32 %v1717_v61, %v1593_v41  ;;  %v2022_v9 = vrot.slane %v2021_v23, 4 }
 0x1eb   : > { %1393 = vmatmul.bf16.gmra.mxu1 %v3735_v48  ;;  %1937 = vmatmul.bf16.gmra.mxu0 %v3383_v21  ;;  %v1594_v51 = vadd.f32 %v1530_v63, %v1418_v46  ;;  %v3568_v63 = vrot.slane %v2824_v37, 1 }
 0x1ec   : > { %v1961_v58 = vadd.f32 %v1895_v59, %v1783_v12 }
 0x1ed   : > { %v1282_v35 = vsel %vm699_vm1, %v3373_v16, %v3568_v63 }
 0x1ee   : > { %v1989_v15 = vpack.c.bf16 %v1961_v58, %v1961_v58  ;;  %1759 = vmatmul.bf16.gmra.mxu3 %v3113_v11  ;;  %1579 = vmatmul.bf16.gmra.mxu2 %v2824_v37 }
 0x1f0   : > { %v2023_v45 = vrot.slane %v1989_v15, 5  ;;  %v1356_v31 = vpop.f32.mrf.mxu1  ;;  %v1900_v10 = vpop.f32.mrf.mxu0 }
 0x1f1   : > { %v1720_v52 = vpop.f32.mrf.mxu3  ;;  %v1419_v48 = vadd.f32 %v1356_v31, %v3403_v24  ;;  %v3566_v49 = vpop.f32.mrf.mxu2 }
 0x1f2   : > { %v2024_v13 = vsel %vm3556_vm4, %v2022_v9, %v2023_v45  ;;  %v2025_v47 = vrot.slane %v2023_v45, 4  ;;  %v1784_v5 = vadd.f32 %v1720_v52, %v1594_v51  ;;  %v1825_v51 = vrot.slane %v3415_v1, 1 }
 0x1f3   : > { %2030 = vst [vmem:[%s3541_s11 + $0x8] sm:$0xf] %v2024_v13  ;;  %v1595_v36 = vadd.f32 %v1532_v34, %v1419_v48 }
 0x1f4   : > { %2031 = vst [vmem:[%s3541_s11 + $0xc] sm:$0x3] %v2025_v47  ;;  %v1962_v11 = vadd.f32 %v1898_v17, %v1784_v5  ;;  %v176_v47 = vld [vmem:[%s2874_s22 + $0x80] sm:$0xf]  ;;  %v1826_v48 = vsel %vm699_vm1, %v3568_v63, %v1825_v51 }
 0x1f6   : > { %v1990_v44 = vpack.c.bf16 %v1962_v11, %v1962_v11 }
 0x1f8   : > { %v2037_v4 = vrot.slane %v1990_v44, 6  ;;  %v1359_v59 = vpop.f32.mrf.mxu1  ;;  %v1903_v55 = vpop.f32.mrf.mxu0 }
 0x1f9   : > { %v1722_v32 = vpop.f32.mrf.mxu3  ;;  %v1420_v24 = vadd.f32 %v1359_v59, %v3412_v14  ;;  %v3575_v23 = vpop.f32.mrf.mxu2 }
 0x1fa   : > { %2045 = vst [vmem:[%s3541_s11 + $0xc] sm:$0xc] %v2037_v4  ;;  %v1785_v26 = vadd.f32 %v1722_v32, %v1595_v36  ;;  %v2038_v16 = vrot.slane %v2037_v4, 4 }
 0x1fb   : > { %1398 = vmatmul.bf16.gmra.mxu1 %v3383_v21  ;;  %1942 = vmatmul.bf16.gmra.mxu0 %v1282_v35  ;;  %v1596_v12 = vadd.f32 %v1535_v57, %v1420_v24 }
 0x1fc   : > { %v1963_v6 = vadd.f32 %v1900_v10, %v1785_v26 }
 0x1fe   : > { %v1991_v34 = vpack.c.bf16 %v1963_v6, %v1963_v6  ;;  %1764 = vmatmul.bf16.gmra.mxu3 %v3419_v60  ;;  %1584 = vmatmul.bf16.gmra.mxu2 %v3415_v1  ;;  %v1639_v60 = vshll.u32 %v3415_v1, 16 }
 0x200   : > { %v2039_v61 = vrot.slane %v1991_v34, 6  ;;  %v1361_v58 = vpop.f32.mrf.mxu1  ;;  %v1905_v46 = vpop.f32.mrf.mxu0  ;;  %v1641_v52 = vrot.slane %v1639_v60, 1 }
 0x201   : > { %v1725_v28 = vpop.f32.mrf.mxu3  ;;  %v1421_v9 = vadd.f32 %v1361_v58, %v3423_v19  ;;  %v1545_v57 = vpop.f32.mrf.mxu2  ;;  %v1636_v19 = vunpack.c.l.b16 %v176_v47  ;;  %v3742_v58 = vld [vmem:[#allocation22_spill] sm:$0xff] }
 0x202   : > { %v2040_v14 = vsel %vm3579_vm7, %v2038_v16, %v2039_v61  ;;  %v2041_v21 = vrot.slane %v2039_v61, 4  ;;  %v1786_v17 = vadd.f32 %v1725_v28, %v1596_v12  ;;  %v1642_v44 = vsel %vm283_vm0, %v3436_v20, %v1641_v52 }
 0x203   : > { %2046 = vst [vmem:[%s3541_s11 + $0x10] sm:$0xf] %v2040_v14  ;;  %v1597_v13 = vadd.f32 %v1537_v62, %v1421_v9  ;;  %v1637_v59 = vpack.c.b16 %v1636_v19, %v1636_v19  ;;  %v1643_v61 = vshrl.u32 %v3415_v1, 16 }
 0x204   : > { %2047 = vst [vmem:[%s3541_s11 + $0x14] sm:$0x1] %v2041_v21  ;;  %v1964_v15 = vadd.f32 %v1903_v55, %v1786_v17 }
 0x205   : > { %v1647_v12 = vshll.u32 %v1637_v59, 16  ;;  %v1645_v60 = vor.u32 %v1643_v61, %v1641_v52 }
 0x206   : > { %v1992_v45 = vpack.c.bf16 %v1964_v15, %v1964_v15 }
 0x207   : > { %v1649_v15 = vrot.slane %v1647_v12, 1 }
 0x208   : > { %v2053_v37 = vrot.slane %v1992_v45, 7  ;;  %v1364_v10 = vpop.f32.mrf.mxu1  ;;  %v1908_v11 = vpop.f32.mrf.mxu0 }
 0x209   : > { %v1727_v5 = vpop.f32.mrf.mxu3  ;;  %v1422_v36 = vadd.f32 %v1364_v10, %v3434_v7  ;;  %v1547_v62 = vpop.f32.mrf.mxu2 }
 0x20a   : > { %2059 = vst [vmem:[%s3541_s11 + $0x14] sm:$0xe] %v2053_v37  ;;  %v1787_v31 = vadd.f32 %v1727_v5, %v1597_v13  ;;  %v2054_v55 = vrot.slane %v2053_v37, 4  ;;  %v1650_v5 = vsel %vm283_vm0, %v1645_v60, %v1649_v15 }
 0x20b   : > { %1403 = vmatmul.bf16.gmra.mxu1 %v1282_v35  ;;  %1947 = vmatmul.bf16.gmra.mxu0 %v1826_v48  ;;  %v1598_v20 = vadd.f32 %v3566_v49, %v1422_v36  ;;  %v1827_v49 = vrot.slane %v1637_v59, 1 }
 0x20c   : > { %v1965_v4 = vadd.f32 %v1905_v46, %v1787_v31  ;;  %v1283_v46 = vrot.slane %v3742_v58, 1 }
 0x20e   : > { %v1993_v32 = vpack.c.bf16 %v1965_v4, %v1965_v4  ;;  %1769 = vmatmul.bf16.gmra.mxu3 %v1642_v44  ;;  %v1284_v1 = vsel %vm699_vm1, %v3568_v63, %v1283_v46 }
 0x210   : > { %v2055_v6 = vrot.slane %v1993_v32, 7  ;;  %v1366_v16 = vpop.f32.mrf.mxu1  ;;  %v1910_v35 = vpop.f32.mrf.mxu0 }
 0x211   : > { %v1730_v24 = vpop.f32.mrf.mxu3  ;;  %v1423_v14 = vadd.f32 %v1366_v16, %v3441_v40  ;;  %v1550_v21 = vpop.f32.mrf.mxu2  ;;  %v1828_v40 = vsel %vm699_vm1, %v1825_v51, %v1827_v49 }
 0x212   : > { %v2056_v7 = vsel %vm3598_vm10, %v2054_v55, %v2055_v6  ;;  %v1788_v34 = vadd.f32 %v1730_v24, %v1598_v20 }
 0x213   : > { %2060 = vst [vmem:[%s3541_s11 + $0x18] sm:$0xf] %v2056_v7  ;;  %v1599_v9 = vadd.f32 %v3575_v23, %v1423_v14 }
 0x214   : > { %v1966_v28 = vadd.f32 %v1908_v11, %v1788_v34 }
 0x216   : > { %v1994_v17 = vpack.c.bf16 %v1966_v28, %v1966_v28 }
 0x218   : > { %2061 = vst [vmem:[%s3541_s11 + $0x1c] sm:$0xf] %v1994_v17  ;;  %v1369_v13 = vpop.f32.mrf.mxu1  ;;  %v1913_v47 = vpop.f32.mrf.mxu0 }
 0x219   : > { %v1732_v45 = vpop.f32.mrf.mxu3  ;;  %v1424_v10 = vadd.f32 %v1369_v13, %v3447_v30  ;;  %v1552_v52 = vpop.f32.mrf.mxu2 }
 0x21a   : > { %v1789_v37 = vadd.f32 %v1732_v45, %v1599_v9 }
 0x21b   : > { %1408 = vmatmul.bf16.gmra.mxu1 %v1284_v1  ;;  %1952 = vmatmul.bf16.gmra.mxu0 %v1828_v40  ;;  %v1600_v23 = vadd.f32 %v1545_v57, %v1424_v10 }
 0x21c   : > { %v1967_v31 = vadd.f32 %v1910_v35, %v1789_v37 }
 0x21e   : > { %v1995_v11 = vpack.c.bf16 %v1967_v31, %v1967_v31  ;;  %1774 = vmatmul.bf16.gmra.mxu3 %v1650_v5 }
 0x220   : > { %2062 = vst [vmem:[%s3541_s11 + $0x20] sm:$0x7] %v1995_v11  ;;  %v1371_v19 = vpop.f32.mrf.mxu1  ;;  %v1915_v4 = vpop.f32.mrf.mxu0 }
 0x221   : > { %v1735_v48 = vpop.f32.mrf.mxu3  ;;  %v1425_v51 = vadd.f32 %v1371_v19, %v3450_v0  ;;  %v1555_v36 = vpop.f32.mrf.mxu2 }
 0x222   : > { %v1790_v44 = vadd.f32 %v1735_v48, %v1600_v23 }
 0x223   : > { %v1601_v55 = vadd.f32 %v1547_v62, %v1425_v51 }
 0x224   : > { %v1968_v63 = vadd.f32 %v1913_v47, %v1790_v44 }
 0x226   : > { %v1996_v32 = vpack.c.bf16 %v1968_v63, %v1968_v63 }
 0x228   : > { %v2065_v59 = vrot.slane %v1996_v32, 5  ;;  %v1374_v20 = vpop.f32.mrf.mxu1  ;;  %v1918_v24 = vpop.f32.mrf.mxu0 }
 0x229   : > { %v1737_v30 = vpop.f32.mrf.mxu3  ;;  %v1426_v57 = vadd.f32 %v1374_v20, %v3457_v54  ;;  %v1557_v16 = vpop.f32.mrf.mxu2 }
 0x22a   : > { %2073 = vst [vmem:[%s3541_s11 + $0x20] sm:$0x8] %v2065_v59  ;;  %v1791_v6 = vadd.f32 %v1737_v30, %v1601_v55  ;;  %v2066_v35 = vrot.slane %v2065_v59, 4 }
 0x22b   : > { %v1602_v12 = vadd.f32 %v1550_v21, %v1426_v57 }
 0x22c   : > { %v1969_v7 = vadd.f32 %v1915_v4, %v1791_v6 }
 0x22e   : > { %v1997_v34 = vpack.c.bf16 %v1969_v7, %v1969_v7 }
 0x230   : > { %v2067_v61 = vrot.slane %v1997_v34, 5  ;;  %v1376_v17 = vpop.f32.mrf.mxu1  ;;  %v1920_v58 = vpop.f32.mrf.mxu0 }
 0x231   : > { %v1740_v0 = vpop.f32.mrf.mxu3  ;;  %v1427_v49 = vadd.f32 %v1376_v17, %v3460_v2  ;;  %v1560_v45 = vpop.f32.mrf.mxu2 }
 0x232   : > { %v2068_v62 = vsel %vm3556_vm4, %v2066_v35, %v2067_v61  ;;  %v2069_v28 = vrot.slane %v2067_v61, 4  ;;  %v1792_v14 = vadd.f32 %v1740_v0, %v1602_v12 }
 0x233   : > { %2074 = vst [vmem:[%s3541_s11 + $0x24] sm:$0xf] %v2068_v62  ;;  %v1603_v15 = vadd.f32 %v1552_v52, %v1427_v49 }
 0x234   : > { %2075 = vst [vmem:[%s3541_s11 + $0x28] sm:$0x3] %v2069_v28  ;;  %v1970_v46 = vadd.f32 %v1918_v24, %v1792_v14 }
 0x236   : > { %v1998_v54 = vpack.c.bf16 %v1970_v46, %v1970_v46 }
 0x238   : > { %v2078_v60 = vrot.slane %v1998_v54, 6  ;;  %v1379_v37 = vpop.f32.mrf.mxu1  ;;  %v1923_v13 = vpop.f32.mrf.mxu0 }
 0x239   : > { %v1742_v9 = vpop.f32.mrf.mxu3  ;;  %v1428_v1 = vadd.f32 %v1379_v37, %v3467_v29  ;;  %v1562_v19 = vpop.f32.mrf.mxu2 }
 0x23a   : > { %2086 = vst [vmem:[%s3541_s11 + $0x28] sm:$0xc] %v2078_v60  ;;  %v1793_v21 = vadd.f32 %v1742_v9, %v1603_v15  ;;  %v2079_v5 = vrot.slane %v2078_v60, 4 }
 0x23b   : > { %v1604_v10 = vadd.f32 %v1555_v36, %v1428_v1 }
 0x23c   : > { %v1971_v47 = vadd.f32 %v1920_v58, %v1793_v21 }
 0x23e   : > { %v1999_v40 = vpack.c.bf16 %v1971_v47, %v1971_v47 }
 0x240   : > { %v2080_v31 = vrot.slane %v1999_v40, 6  ;;  %v1381_v48 = vpop.f32.mrf.mxu1  ;;  %v1925_v44 = vpop.f32.mrf.mxu0 }
 0x241   : > { %v1745_v2 = vpop.f32.mrf.mxu3  ;;  %v1429_v63 = vadd.f32 %v1381_v48, %v3470_v39  ;;  %v1565_v24 = vpop.f32.mrf.mxu2 }
 0x242   : > { %v2081_v52 = vsel %vm3579_vm7, %v2079_v5, %v2080_v31  ;;  %v2082_v11 = vrot.slane %v2080_v31, 4  ;;  %v1794_v23 = vadd.f32 %v1745_v2, %v1604_v10 }
 0x243   : > { %2087 = vst [vmem:[%s3541_s11 + $0x2c] sm:$0xf] %v2081_v52  ;;  %v1605_v32 = vadd.f32 %v1557_v16, %v1429_v63 }
 0x244   : > { %2088 = vst [vmem:[%s3541_s11 + $0x30] sm:$0x1] %v2082_v11  ;;  %v1972_v4 = vadd.f32 %v1923_v13, %v1794_v23 }
 0x246   : > { %v2000_v29 = vpack.c.bf16 %v1972_v4, %v1972_v4 }
 0x248   : > { %v2091_v51 = vrot.slane %v2000_v29, 7  ;;  %v1384_v55 = vpop.f32.mrf.mxu1  ;;  %v1928_v30 = vpop.f32.mrf.mxu0 }
 0x249   : > { %v1747_v59 = vpop.f32.mrf.mxu3  ;;  %v1430_v20 = vadd.f32 %v1384_v55, %v3477_v18  ;;  %v1567_v18 = vpop.f32.mrf.mxu2 }
 0x24a   : > { %2097 = vst [vmem:[%s3541_s11 + $0x30] sm:$0xe] %v2091_v51  ;;  %v1795_v36 = vadd.f32 %v1747_v59, %v1605_v32  ;;  %v2092_v57 = vrot.slane %v2091_v51, 4 }
 0x24b   : > { %v1606_v35 = vadd.f32 %v1560_v45, %v1430_v20 }
 0x24c   : > { %v1973_v6 = vadd.f32 %v1925_v44, %v1795_v36 }
 0x24e   : > { %v2001_v7 = vpack.c.bf16 %v1973_v6, %v1973_v6 }
 0x250   : > { %v2093_v34 = vrot.slane %v2001_v7, 7  ;;  %v1386_v12 = vpop.f32.mrf.mxu1  ;;  %v1930_v0 = vpop.f32.mrf.mxu0 }
 0x251   : > { %v1750_v61 = vpop.f32.mrf.mxu3  ;;  %v1431_v28 = vadd.f32 %v1386_v12, %v3480_v42  ;;  %v1570_v37 = vpop.f32.mrf.mxu2 }
 0x252   : > { %v2094_v39 = vsel %vm3598_vm10, %v2092_v57, %v2093_v34  ;;  %v1796_v16 = vadd.f32 %v1750_v61, %v1606_v35 }
 0x253   : > { %2098 = vst [vmem:[%s3541_s11 + $0x34] sm:$0xf] %v2094_v39  ;;  %v1607_v17 = vadd.f32 %v1562_v19, %v1431_v28 }
 0x254   : > { %v1974_v62 = vadd.f32 %v1928_v30, %v1796_v16 }
 0x256   : > { %v2002_v14 = vpack.c.bf16 %v1974_v62, %v1974_v62 }
 0x258   : > { %2099 = vst [vmem:[%s3541_s11 + $0x38] sm:$0xf] %v2002_v14  ;;  %v1389_v49 = vpop.f32.mrf.mxu1  ;;  %v1933_v54 = vpop.f32.mrf.mxu0 }
 0x259   : > { %v1752_v58 = vpop.f32.mrf.mxu3  ;;  %v1432_v15 = vadd.f32 %v1389_v49, %v3487_v3  ;;  %v1572_v23 = vpop.f32.mrf.mxu2 }
 0x25a   : > { %v1797_v46 = vadd.f32 %v1752_v58, %v1607_v17 }
 0x25b   : > { %v1608_v45 = vadd.f32 %v1565_v24, %v1432_v15 }
 0x25c   : > { %v1975_v60 = vadd.f32 %v1930_v0, %v1797_v46 }
 0x25e   : > { %v2003_v9 = vpack.c.bf16 %v1975_v60, %v1975_v60 }
 0x260   : > { %2100 = vst [vmem:[%s3541_s11 + $0x3c] sm:$0x7] %v2003_v9  ;;  %v1391_v47 = vpop.f32.mrf.mxu1  ;;  %v1935_v42 = vpop.f32.mrf.mxu0 }
 0x261   : > { %v1755_v21 = vpop.f32.mrf.mxu3  ;;  %v1433_v40 = vadd.f32 %v1391_v47, %v3490_v22  ;;  %v1575_v20 = vpop.f32.mrf.mxu2 }
 0x262   : > { %v1798_v13 = vadd.f32 %v1755_v21, %v1608_v45 }
 0x263   : > { %v1609_v10 = vadd.f32 %v1567_v18, %v1433_v40 }
 0x264   : > { %v1976_v1 = vadd.f32 %v1933_v54, %v1798_v13 }
 0x266   : > { %v2004_v5 = vpack.c.bf16 %v1976_v1, %v1976_v1 }
 0x268   : > { %v2103_v31 = vrot.slane %v2004_v5, 5  ;;  %v1394_v11 = vpop.f32.mrf.mxu1  ;;  %v1938_v3 = vpop.f32.mrf.mxu0 }
 0x269   : > { %v1757_v2 = vpop.f32.mrf.mxu3  ;;  %v1434_v44 = vadd.f32 %v1394_v11, %v3497_v33  ;;  %v1577_v0 = vpop.f32.mrf.mxu2 }
 0x26a   : > { %2111 = vst [vmem:[%s3541_s11 + $0x3c] sm:$0x8] %v2103_v31  ;;  %v1799_v52 = vadd.f32 %v1757_v2, %v1609_v10  ;;  %v2104_v4 = vrot.slane %v2103_v31, 4 }
 0x26b   : > { %v1610_v29 = vadd.f32 %v1570_v37, %v1434_v44 }
 0x26c   : > { %v1977_v48 = vadd.f32 %v1935_v42, %v1799_v52 }
 0x26e   : > { %v2005_v19 = vpack.c.bf16 %v1977_v48, %v1977_v48 }
 0x270   : > { %v2105_v63 = vrot.slane %v2005_v19, 5  ;;  %v1396_v36 = vpop.f32.mrf.mxu1  ;;  %v1940_v55 = vpop.f32.mrf.mxu0 }
 0x271   : > { %v1760_v22 = vpop.f32.mrf.mxu3  ;;  %v1435_v6 = vadd.f32 %v1396_v36, %v3500_v43  ;;  %v1580_v45 = vpop.f32.mrf.mxu2 }
 0x272   : > { %v2106_v51 = vsel %vm3556_vm4, %v2104_v4, %v2105_v63  ;;  %v2107_v32 = vrot.slane %v2105_v63, 4  ;;  %v1800_v59 = vadd.f32 %v1760_v22, %v1610_v29 }
 0x273   : > { %2112 = vst [vmem:[%s3541_s11 + $0x40] sm:$0xf] %v2106_v51  ;;  %v1611_v7 = vadd.f32 %v1572_v23, %v1435_v6 }
 0x274   : > { %2113 = vst [vmem:[%s3541_s11 + $0x44] sm:$0x3] %v2107_v32  ;;  %v1978_v30 = vadd.f32 %v1938_v3, %v1800_v59 }
 0x276   : > { %v2006_v33 = vpack.c.bf16 %v1978_v30, %v1978_v30 }
 0x278   : > { %v2116_v24 = vrot.slane %v2006_v33, 6  ;;  %v1399_v35 = vpop.f32.mrf.mxu1  ;;  %v1943_v61 = vpop.f32.mrf.mxu0 }
 0x279   : > { %v1762_v57 = vpop.f32.mrf.mxu3  ;;  %v1436_v16 = vadd.f32 %v1399_v35, %v3507_v27  ;;  %v1582_v11 = vpop.f32.mrf.mxu2 }
 0x27a   : > { %2124 = vst [vmem:[%s3541_s11 + $0x44] sm:$0xc] %v2116_v24  ;;  %v1801_v34 = vadd.f32 %v1762_v57, %v1611_v7  ;;  %v2117_v62 = vrot.slane %v2116_v24, 4 }
 0x27b   : > { %v1612_v14 = vadd.f32 %v1575_v20, %v1436_v16 }
 0x27c   : > { %v1979_v39 = vadd.f32 %v1940_v55, %v1801_v34 }
 0x27e   : > { %v2007_v12 = vpack.c.bf16 %v1979_v39, %v1979_v39 }
 0x280   : > { %v2118_v28 = vrot.slane %v2007_v12, 6  ;;  %v1401_v46 = vpop.f32.mrf.mxu1  ;;  %v1945_v49 = vpop.f32.mrf.mxu0 }
 0x281   : > { %v1765_v43 = vpop.f32.mrf.mxu3  ;;  %v1437_v60 = vadd.f32 %v1401_v46, %v3510_v25  ;;  %v1585_v26 = vpop.f32.mrf.mxu2 }
 0x282   : > { %v2119_v18 = vsel %vm3579_vm7, %v2117_v62, %v2118_v28  ;;  %v2120_v17 = vrot.slane %v2118_v28, 4  ;;  %v1802_v58 = vadd.f32 %v1765_v43, %v1612_v14 }
 0x283   : > { %2125 = vst [vmem:[%s3541_s11 + $0x48] sm:$0xf] %v2119_v18  ;;  %v1613_v9 = vadd.f32 %v1577_v0, %v1437_v60 }
 0x284   : > { %2126 = vst [vmem:[%s3541_s11 + $0x4c] sm:$0x1] %v2120_v17  ;;  %v1980_v54 = vadd.f32 %v1943_v61, %v1802_v58 }
 0x286   : > { %v2008_v27 = vpack.c.bf16 %v1980_v54, %v1980_v54 }
 0x288   : > { %v2129_v15 = vrot.slane %v2008_v27, 7  ;;  %v1404_v13 = vpop.f32.mrf.mxu1  ;;  %v1948_v42 = vpop.f32.mrf.mxu0 }
 0x289   : > { %v1767_v21 = vpop.f32.mrf.mxu3  ;;  %v1438_v47 = vadd.f32 %v1404_v13, %v3517_v53  ;;  %v1587_v33 = vpop.f32.mrf.mxu2 }
 0x28a   : > { %2135 = vst [vmem:[%s3541_s11 + $0x4c] sm:$0xe] %v2129_v15  ;;  %v1803_v37 = vadd.f32 %v1767_v21, %v1613_v9  ;;  %v2130_v40 = vrot.slane %v2129_v15, 4 }
 0x28b   : > { %v1614_v31 = vadd.f32 %v1580_v45, %v1438_v47 }
 0x28c   : > { %v1981_v41 = vadd.f32 %v1945_v49, %v1803_v37 }
 0x28e   : > { %v2009_v1 = vpack.c.bf16 %v1981_v41, %v1981_v41 }
 0x290   : > { %v2131_v5 = vrot.slane %v2009_v1, 7  ;;  %v1406_v52 = vpop.f32.mrf.mxu1  ;;  %v1950_v53 = vpop.f32.mrf.mxu0 }
 0x291   : > { %v1770_v10 = vpop.f32.mrf.mxu3  ;;  %v1439_v23 = vadd.f32 %v1406_v52, %v3520_v56 }
 0x292   : > { %v2132_v25 = vsel %vm3598_vm10, %v2130_v40, %v2131_v5  ;;  %v1804_v2 = vadd.f32 %v1770_v10, %v1614_v31 }
 0x293   : > { %2136 = vst [vmem:[%s3541_s11 + $0x50] sm:$0xf] %v2132_v25  ;;  %v1615_v44 = vadd.f32 %v1582_v11, %v1439_v23 }
 0x294   : > { %v1982_v3 = vadd.f32 %v1948_v42, %v1804_v2 }
 0x296   : > { %v2010_v48 = vpack.c.bf16 %v1982_v3, %v1982_v3 }
 0x298   : > { %2137 = vst [vmem:[%s3541_s11 + $0x54] sm:$0xf] %v2010_v48  ;;  %v1409_v63 = vpop.f32.mrf.mxu1  ;;  %v1953_v59 = vpop.f32.mrf.mxu0 }
 0x299   : > { %v1772_v19 = vpop.f32.mrf.mxu3  ;;  %v1440_v22 = vadd.f32 %v1409_v63, %v3527_v8 }
 0x29a   : > { %v1805_v4 = vadd.f32 %v1772_v19, %v1615_v44 }
 0x29b   : > { %v1616_v32 = vadd.f32 %v1585_v26, %v1440_v22 }
 0x29c   : > { %v1983_v29 = vadd.f32 %v1950_v53, %v1805_v4 }
 0x29e   : > { %v2011_v51 = vpack.c.bf16 %v1983_v29, %v1983_v29 }
 0x2a0   : > { %2138 = vst [vmem:[%s3541_s11 + $0x58] sm:$0x7] %v2011_v51  ;;  %v1411_v30 = vpop.f32.mrf.mxu1  ;;  %v1955_v34 = vpop.f32.mrf.mxu0 }
 0x2a1   : > { %v1775_v36 = vpop.f32.mrf.mxu3  ;;  %v1441_v6 = vadd.f32 %v1411_v30, %v3530_v38 }
 0x2a2   : > { %v1806_v55 = vadd.f32 %v1775_v36, %v1616_v32 }
 0x2a3   : > { %v1617_v7 = vadd.f32 %v1587_v33, %v1441_v6 }
 0x2a4   : > { %v1984_v56 = vadd.f32 %v1953_v59, %v1806_v55 }
 0x2a6   : > { %v2012_v20 = vpack.c.bf16 %v1984_v56, %v1984_v56 }
 0x2a8   : > { %v2141_v24 = vrot.slane %v2012_v20, 5 }
 0x2a9   : > { %v1777_v57 = vpop.f32.mrf.mxu3 }
 0x2aa   : > { %2149 = vst [vmem:[%s3541_s11 + $0x58] sm:$0x8] %v2141_v24  ;;  %v1807_v8 = vadd.f32 %v1777_v57, %v1617_v7  ;;  %v2142_v39 = vrot.slane %v2141_v24, 4 }
 0x2ac   : > { %v1985_v35 = vadd.f32 %v1955_v34, %v1807_v8 }
 0x2ae   : > { %v2013_v61 = vpack.c.bf16 %v1985_v35, %v1985_v35 }
 0x2b0   : > { %v2143_v16 = vrot.slane %v2013_v61, 5 }
 0x2b2   : > { %v2144_v12 = vsel %vm3556_vm4, %v2142_v39, %v2143_v16  ;;  %v2145_v0 = vrot.slane %v2143_v16, 4 }
 0x2b3   : > { %2150 = vst [vmem:[%s3541_s11 + $0x5c] sm:$0xf] %v2144_v12 }
 0x2b4   : > { %2151 = vst [vmem:[%s3541_s11 + $0x60] sm:$0x3] %v2145_v0 }
 0x2b5 PF: > { %s12_s9 = sadd.s32 1, %s2831_s9  }
 0x2b6   : > { %p9_p4 = scmp.ge.s32.totalorder %s12_s9, 4  }
 0x2b8   :  { %11 = sbr.rel (!%p9_p4) target bundleno = 1 (0x1), region = 66 }

// kernel: _lambda_.61
= control target key start
LH: loop header
LB: loop body
LE: loop exit
PB: predicated region body
PF: predicated region fallthrough
CT: control target
= control target key end

     0   :  { %s526_s9 = smov 0   ;;  %s640_s0 = inlined_call_operand.vmem [shape: bf16[2,196,128], index: 0, kind: input, shape index: {}]   ;;  %s641_s1 = inlined_call_operand.vmem [shape: f32[2,128], index: 1, kind: input, shape index: {}]   ;;  %s642_s2 = inlined_call_operand.vmem [shape: bf16[2,196,128], index: 2, kind: output, shape index: {}]  }
   0x1 LB: > { %s353_s10 = sadd.s32 4294967295, %s509_s9   ;;  %p357_p0 = scmp.ge.s32.totalorder %s509_s9, 1  ;;  %s509_s9 = sphi %s526_s9, %s12_s9  }
   0x2   : > { %p112_p1 = scmp.lt.s32.totalorder %s509_s9, 3 }
   0x4   : > { %p113_p2 = pnand %p357_p0, %p112_p1 }
   0x5   : > { %p134_p3 = scmp.lt.s32.totalorder (!%p113_p2), %s353_s10, 1 }
   0x6   : > { %116 = sbr.rel (%p113_p2) target bundleno = 43 (0x2b), region = 28 }
   0xb   : > { %s644_s10 = smov (!%p134_p3, %s353_s10), 1  ;;  %v547_v0 = vld [vmem:[%s641_s1] ss:$0 sm:$0xff]  ;;  %v555_v6 = vld [vmem:[%s641_s1 + $0x1] ss:$0 sm:$0xff] }
   0xc   : > { %s492_s11 = smul.u32 100, %s644_s10 }
   0xe   : > { %s542_s14 = scalar_lea.vmem %s640_s0, %s492_s11  ;;  %s577_s21 = scalar_lea.vmem %s642_s2, %s492_s11 }
   0xf   : > { %v363_v1 = vld [vmem:[%s542_s14] sm:$0xff]   ;;  %v470_v2 = vld [vmem:[%s542_s14 + $0x8] sm:$0xff]   ;;  %v471_v3 = vld [vmem:[%s542_s14 + $0x10] sm:$0xff]  }
  0x10   : > { %v364_v4 = vunpack.c.l.bf16 %v363_v1  ;;  %v365_v5 = vunpack.c.h.bf16 %v363_v1  ;;  %v368_v7 = vunpack.c.l.bf16 %v470_v2  ;;  %v369_v8 = vunpack.c.h.bf16 %v470_v2  ;;  %v472_v9 = vld [vmem:[%s542_s14 + $0x18] sm:$0xff]   ;;  %v473_v22 = vld [vmem:[%s542_s14 + $0x20] sm:$0xff]   ;;  %v474_v27 = vld [vmem:[%s542_s14 + $0x28] sm:$0xff]  }
  0x11   : > { %v372_v10 = vunpack.c.l.bf16 %v471_v3  ;;  %v373_v11 = vunpack.c.h.bf16 %v471_v3  ;;  %v376_v12 = vunpack.c.l.bf16 %v472_v9  ;;  %v377_v13 = vunpack.c.h.bf16 %v472_v9  ;;  %v475_v32 = vld [vmem:[%s542_s14 + $0x30] sm:$0xff]   ;;  %v476_v37 = vld [vmem:[%s542_s14 + $0x38] sm:$0xff]   ;;  %v477_v50 = vld [vmem:[%s542_s14 + $0x40] sm:$0xff]  }
  0x12   : > { %v196_v14 = vsub.f32 %v364_v4, %v547_v0  ;;  %v197_v15 = vsub.f32 %v365_v5, %v547_v0  ;;  %v198_v16 = vsub.f32 %v368_v7, %v547_v0  ;;  %v199_v17 = vsub.f32 %v369_v8, %v547_v0  ;;  %v478_v59 = vld [vmem:[%s542_s14 + $0x48] sm:$0xff]   ;;  %v479_v1 = vld [vmem:[%s542_s14 + $0x50] sm:$0xff]   ;;  %v480_v7 = vld [vmem:[%s542_s14 + $0x58] sm:$0xff]  }
  0x13   : > { %v200_v18 = vsub.f32 %v372_v10, %v547_v0  ;;  %v201_v19 = vsub.f32 %v373_v11, %v547_v0  ;;  %v202_v20 = vsub.f32 %v376_v12, %v547_v0  ;;  %v203_v21 = vsub.f32 %v377_v13, %v547_v0 }
  0x14   : > { %v223_v23 = vmul.f32 %v555_v6, %v196_v14  ;;  %v224_v24 = vmul.f32 %v555_v6, %v197_v15  ;;  %v225_v25 = vmul.f32 %v555_v6, %v198_v16  ;;  %v226_v26 = vmul.f32 %v555_v6, %v199_v17  ;;  %v168_v16 = vld [vmem:[%s542_s14 + $0x60] sm:$0x3] }
  0x15   : > { %v227_v28 = vmul.f32 %v555_v6, %v200_v18  ;;  %v228_v29 = vmul.f32 %v555_v6, %v201_v19  ;;  %v229_v30 = vmul.f32 %v555_v6, %v202_v20  ;;  %v230_v31 = vmul.f32 %v555_v6, %v203_v21 }
  0x16   : > { %v413_v33 = vpack.c.bf16 %v224_v24, %v223_v23  ;;  %v418_v34 = vpack.c.bf16 %v226_v26, %v225_v25  ;;  %v380_v35 = vunpack.c.l.bf16 %v473_v22  ;;  %v381_v36 = vunpack.c.h.bf16 %v473_v22 }
  0x17   : > { %v423_v38 = vpack.c.bf16 %v228_v29, %v227_v28  ;;  %v428_v39 = vpack.c.bf16 %v230_v31, %v229_v30  ;;  %v384_v40 = vunpack.c.l.bf16 %v474_v27  ;;  %v385_v41 = vunpack.c.h.bf16 %v474_v27 }
  0x18   : > { %414 = vst [vmem:[%s577_s21] sm:$0xff] %v413_v33   ;;  %v204_v42 = vsub.f32 %v380_v35, %v547_v0  ;;  %v205_v43 = vsub.f32 %v381_v36, %v547_v0  ;;  %v388_v44 = vunpack.c.l.bf16 %v475_v32  ;;  %v389_v45 = vunpack.c.h.bf16 %v475_v32 }
  0x19   : > { %481 = vst [vmem:[%s577_s21 + $0x8] sm:$0xff] %v418_v34   ;;  %v206_v46 = vsub.f32 %v384_v40, %v547_v0  ;;  %v207_v47 = vsub.f32 %v385_v41, %v547_v0  ;;  %v392_v48 = vunpack.c.l.bf16 %v476_v37  ;;  %v393_v49 = vunpack.c.h.bf16 %v476_v37 }
  0x1a   : > { %482 = vst [vmem:[%s577_s21 + $0x10] sm:$0xff] %v423_v38   ;;  %v231_v51 = vmul.f32 %v555_v6, %v204_v42  ;;  %v232_v52 = vmul.f32 %v555_v6, %v205_v43  ;;  %v208_v53 = vsub.f32 %v388_v44, %v547_v0  ;;  %v209_v54 = vsub.f32 %v389_v45, %v547_v0 }
  0x1b   : > { %483 = vst [vmem:[%s577_s21 + $0x18] sm:$0xff] %v428_v39   ;;  %v233_v55 = vmul.f32 %v555_v6, %v206_v46  ;;  %v234_v56 = vmul.f32 %v555_v6, %v207_v47  ;;  %v210_v57 = vsub.f32 %v392_v48, %v547_v0  ;;  %v211_v58 = vsub.f32 %v393_v49, %v547_v0 }
  0x1c   : > { %v433_v60 = vpack.c.bf16 %v232_v52, %v231_v51  ;;  %v235_v61 = vmul.f32 %v555_v6, %v208_v53  ;;  %v236_v62 = vmul.f32 %v555_v6, %v209_v54  ;;  %v396_v63 = vunpack.c.l.bf16 %v477_v50 }
  0x1d   : > { %v438_v2 = vpack.c.bf16 %v234_v56, %v233_v55  ;;  %v237_v3 = vmul.f32 %v555_v6, %v210_v57  ;;  %v238_v4 = vmul.f32 %v555_v6, %v211_v58  ;;  %v397_v5 = vunpack.c.h.bf16 %v477_v50 }
  0x1e   : > { %484 = vst [vmem:[%s577_s21 + $0x20] sm:$0xff] %v433_v60   ;;  %v443_v8 = vpack.c.bf16 %v236_v62, %v235_v61  ;;  %v212_v9 = vsub.f32 %v396_v63, %v547_v0  ;;  %v400_v10 = vunpack.c.l.bf16 %v478_v59  ;;  %v401_v11 = vunpack.c.h.bf16 %v478_v59 }
  0x1f   : > { %485 = vst [vmem:[%s577_s21 + $0x28] sm:$0xff] %v438_v2   ;;  %v448_v12 = vpack.c.bf16 %v238_v4, %v237_v3  ;;  %v213_v13 = vsub.f32 %v397_v5, %v547_v0  ;;  %v404_v14 = vunpack.c.l.bf16 %v479_v1  ;;  %v405_v15 = vunpack.c.h.bf16 %v479_v1 }
  0x20   : > { %486 = vst [vmem:[%s577_s21 + $0x30] sm:$0xff] %v443_v8   ;;  %v239_v17 = vmul.f32 %v555_v6, %v212_v9  ;;  %v214_v18 = vsub.f32 %v400_v10, %v547_v0  ;;  %v215_v19 = vsub.f32 %v401_v11, %v547_v0  ;;  %v408_v20 = vunpack.c.l.bf16 %v480_v7 }
  0x21   : > { %487 = vst [vmem:[%s577_s21 + $0x38] sm:$0xff] %v448_v12   ;;  %v240_v21 = vmul.f32 %v555_v6, %v213_v13  ;;  %v216_v22 = vsub.f32 %v404_v14, %v547_v0  ;;  %v217_v23 = vsub.f32 %v405_v15, %v547_v0  ;;  %v409_v24 = vunpack.c.h.bf16 %v480_v7 }
  0x22   : > { %v241_v25 = vmul.f32 %v555_v6, %v214_v18  ;;  %v242_v26 = vmul.f32 %v555_v6, %v215_v19  ;;  %v218_v27 = vsub.f32 %v408_v20, %v547_v0  ;;  %v193_v28 = vunpack.c.l.bf16 %v168_v16 }
  0x23   : > { %v453_v29 = vpack.c.bf16 %v240_v21, %v239_v17  ;;  %v243_v30 = vmul.f32 %v555_v6, %v216_v22  ;;  %v244_v31 = vmul.f32 %v555_v6, %v217_v23  ;;  %v219_v32 = vsub.f32 %v409_v24, %v547_v0 }
  0x24   : > { %v458_v33 = vpack.c.bf16 %v242_v26, %v241_v25  ;;  %v245_v34 = vmul.f32 %v555_v6, %v218_v27  ;;  %v220_v35 = vsub.f32 %v193_v28, %v547_v0 }
  0x25   : > { %488 = vst [vmem:[%s577_s21 + $0x40] sm:$0xff] %v453_v29   ;;  %v463_v36 = vpack.c.bf16 %v244_v31, %v243_v30  ;;  %v246_v37 = vmul.f32 %v555_v6, %v219_v32 }
  0x26   : > { %489 = vst [vmem:[%s577_s21 + $0x48] sm:$0xff] %v458_v33   ;;  %v247_v38 = vmul.f32 %v555_v6, %v220_v35 }
  0x27   : > { %490 = vst [vmem:[%s577_s21 + $0x50] sm:$0xff] %v463_v36   ;;  %v468_v39 = vpack.c.bf16 %v246_v37, %v245_v34 }
  0x28   : > { %v272_v40 = vpack.c.bf16 %v247_v38, %v247_v38 }
  0x29   : > { %491 = vst [vmem:[%s577_s21 + $0x58] sm:$0xff] %v468_v39  }
  0x2a   : > { %297 = vst [vmem:[%s577_s21 + $0x60] sm:$0x3] %v272_v40 }
  0x2b PF: > { %s12_s9 = sadd.s32 1, %s509_s9  }
  0x2c   : > { %p9_p4 = scmp.ge.s32.totalorder %s12_s9, 4  }
  0x2e   :  { %11 = sbr.rel (!%p9_p4) target bundleno = 1 (0x1), region = 58 }

// kernel: _lambda_.80
= control target key start
LH: loop header
LB: loop body
LE: loop exit
PB: predicated region body
PF: predicated region fallthrough
CT: control target
= control target key end

     0   :  { %s476_s9 = smov 0   ;;  %s524_s0 = inlined_call_operand.vmem [shape: bf16[2,49,128], index: 0, kind: input, shape index: {}]   ;;  %s525_s1 = inlined_call_operand.vmem [shape: bf16[128,128], index: 1, kind: input, shape index: {}]   ;;  %s526_s2 = inlined_call_operand.vmem [shape: bf16[2,49,128], index: 2, kind: output, shape index: {}]  }
   0x1 LB: > { %s339_s10 = sadd.s32 4294967295, %s459_s9   ;;  %p343_p0 = scmp.ge.s32.totalorder %s459_s9, 1  ;;  %s459_s9 = sphi %s476_s9, %s12_s9  }
   0x2   : > { %p112_p1 = scmp.lt.s32.totalorder %s459_s9, 3 }
   0x4   : > { %p113_p2 = pnand %p343_p0, %p112_p1 }
   0x5   : > { %p134_p3 = scmp.lt.s32.totalorder (!%p113_p2), %s339_s10, 1 }
   0x6   : > { %116 = sbr.rel (%p113_p2) target bundleno = 187 (0xbb), region = 28 }
   0xb   : > { %v402_v0 = vld [vmem:[%s525_s1 + $0x38] sm:$0xff]  ;;  %v401_v1 = vld [vmem:[%s525_s1 + $0x30] sm:$0xff]  ;;  %v400_v2 = vld [vmem:[%s525_s1 + $0x28] sm:$0xff]  ;;  %s528_s10 = smov (!%p134_p3, %s339_s10), 1  ;;  %vm278_vm0 = vcmask 1040384  }
   0xc   : > { %237 = vmatpush.bf16.msra.mxu0 %v402_v0  ;;  %420 = vmatpush.bf16.msra.mxu1 %v402_v0  ;;  %v399_v3 = vld [vmem:[%s525_s1 + $0x20] sm:$0xff]  ;;  %v398_v4 = vld [vmem:[%s525_s1 + $0x18] sm:$0xff]  ;;  %s444_s21 = smul.u32 28, %s528_s10  ;;  %v397_v5 = vld [vmem:[%s525_s1 + $0x10] sm:$0xff]  ;;  %vm279_vm1 = vsmask.f32 256 }
   0xd   : > { %421 = vmatpush.bf16.msra.mxu2 %v402_v0  ;;  %422 = vmatpush.bf16.msra.mxu3 %v402_v0  ;;  %v396_v6 = vld [vmem:[%s525_s1 + $0x8] sm:$0xff]  ;;  %v395_v8 = vld [vmem:[%s525_s1] sm:$0xff]  ;;  %vm280_vm2 = vmand %vm278_vm0, %vm279_vm1 }
   0xe   : > { %s138_s26 = scalar_lea.vmem %s524_s0, %s444_s21  ;;  %s143_s5 = scalar_lea.vmem %s526_s2, %s444_s21 }
   0xf   : > { %v150_v7 = vld [vmem:[%s138_s26 + $0x18] sm:$0x1]  ;;  %v392_v10 = vld [vmem:[%s138_s26] sm:$0xff]  ;;  %v393_v11 = vld [vmem:[%s138_s26 + $0x8] sm:$0xff] }
  0x10   : > { %238 = vmatpush.bf16.msra.mxu0 %v401_v1  ;;  %423 = vmatpush.bf16.msra.mxu1 %v401_v1  ;;  %v180_v9 = vunpack.c.l.b16 %v150_v7  ;;  %v394_v12 = vld [vmem:[%s138_s26 + $0x10] sm:$0xff]  ;;  %v281_v18 = vld [vmem:[%s143_s5 + $0x18] sm:$0x1] }
  0x11   : > { %424 = vmatpush.bf16.msra.mxu2 %v401_v1  ;;  %425 = vmatpush.bf16.msra.mxu3 %v401_v1 }
  0x12   : > { %v184_v13 = vpack.c.b16 %v180_v9, %v180_v9 }
  0x14   : > { %239 = vmatpush.bf16.msra.mxu0 %v400_v2  ;;  %426 = vmatpush.bf16.msra.mxu1 %v400_v2 }
  0x15   : > { %427 = vmatpush.bf16.msra.mxu2 %v400_v2  ;;  %428 = vmatpush.bf16.msra.mxu3 %v400_v2 }
  0x18   : > { %240 = vmatpush.bf16.msra.mxu0 %v399_v3  ;;  %429 = vmatpush.bf16.msra.mxu1 %v399_v3 }
  0x19   : > { %430 = vmatpush.bf16.msra.mxu2 %v399_v3  ;;  %431 = vmatpush.bf16.msra.mxu3 %v399_v3 }
  0x1c   : > { %241 = vmatpush.bf16.msra.mxu0 %v398_v4  ;;  %432 = vmatpush.bf16.msra.mxu1 %v398_v4 }
  0x1d   : > { %433 = vmatpush.bf16.msra.mxu2 %v398_v4  ;;  %434 = vmatpush.bf16.msra.mxu3 %v398_v4 }
  0x20   : > { %242 = vmatpush.bf16.msra.mxu0 %v397_v5  ;;  %435 = vmatpush.bf16.msra.mxu1 %v397_v5 }
  0x21   : > { %436 = vmatpush.bf16.msra.mxu2 %v397_v5  ;;  %437 = vmatpush.bf16.msra.mxu3 %v397_v5 }
  0x24   : > { %243 = vmatpush.bf16.msra.mxu0 %v396_v6  ;;  %438 = vmatpush.bf16.msra.mxu1 %v396_v6 }
  0x25   : > { %439 = vmatpush.bf16.msra.mxu2 %v396_v6  ;;  %440 = vmatpush.bf16.msra.mxu3 %v396_v6 }
  0x28   : > { %244 = vmatpush.bf16.msra.mxu0 %v395_v8  ;;  %441 = vmatpush.bf16.msra.mxu1 %v395_v8 }
  0x29   : > { %442 = vmatpush.bf16.msra.mxu2 %v395_v8  ;;  %443 = vmatpush.bf16.msra.mxu3 %v395_v8 }
  0x2b   : > { %245 = vmatmul.bf16.vlgmr.msra.gmra.mxu0 %v392_v10  ;;  %250 = vmatmul.bf16.vlgmr.msra.gmra.mxu1 %v393_v11 }
  0x2c   : > { %255 = vmatmul.bf16.vlgmr.msra.gmra.mxu2 %v394_v12  ;;  %260 = vmatmul.bf16.vlgmr.msra.gmra.mxu3 %v184_v13 }
  0xa8   : > { %v246_v14 = vpop.f32.mrf.mxu0  ;;  %v251_v15 = vpop.f32.mrf.mxu1 }
  0xaf   : > { %v256_v16 = vpop.f32.mrf.mxu2  ;;  %v261_v17 = vpop.f32.mrf.mxu3 }
  0xb0   : > { %v271_v19 = vpack.c.bf16 %v261_v17, %v261_v17  ;;  %v248_v20 = vpop.f32.mrf.mxu0  ;;  %v253_v21 = vpop.f32.mrf.mxu1 }
  0xb1   : > { %v406_v22 = vpack.c.bf16 %v248_v20, %v246_v14  ;;  %v411_v23 = vpack.c.bf16 %v253_v21, %v251_v15 }
  0xb2   : > { %v282_v24 = vsel %vm280_vm2, %v271_v19, %v281_v18 }
  0xb3   : > { %283 = vst [vmem:[%s143_s5 + $0x18] sm:$0x1] %v282_v24 }
  0xb4   : > { %407 = vst [vmem:[%s143_s5] sm:$0xff] %v406_v22  }
  0xb5   : > { %418 = vst [vmem:[%s143_s5 + $0x8] sm:$0xff] %v411_v23  }
  0xb7   : > { %v258_v25 = vpop.f32.mrf.mxu2  ;;  %v263_v26 = vpop.f32.mrf.mxu3 }
  0xb8   : > { %v416_v27 = vpack.c.bf16 %v258_v25, %v256_v16 }
  0xba   : > { %419 = vst [vmem:[%s143_s5 + $0x10] sm:$0xff] %v416_v27  }
  0xbb PF: > { %s12_s9 = sadd.s32 1, %s459_s9  }
  0xbc   : > { %p9_p4 = scmp.ge.s32.totalorder %s12_s9, 4  }
  0xbe   :  { %11 = sbr.rel (!%p9_p4) target bundleno = 1 (0x1), region = 58 }

// kernel: _lambda_.63
= control target key start
LH: loop header
LB: loop body
LE: loop exit
PB: predicated region body
PF: predicated region fallthrough
CT: control target
= control target key end

     0   :  { %s750_s12 = smov 0   ;;  %s880_s0 = inlined_call_operand.vmem [shape: bf16[2,196,128], index: 0, kind: input, shape index: {}]   ;;  %s881_s1 = inlined_call_operand.vmem [shape: f32[2,128], index: 1, kind: input, shape index: {}]   ;;  %s882_s2 = inlined_call_operand.vmem [shape: bf16[2,196,128], index: 2, kind: input, shape index: {}]   ;;  %s883_s3 = inlined_call_operand.vmem [shape: bf16[2,196,128], index: 3, kind: output, shape index: {}]  }
   0x1 LB: > { %s512_s13 = sadd.s32 4294967295, %s728_s12   ;;  %p516_p0 = scmp.ge.s32.totalorder %s728_s12, 1  ;;  %s728_s12 = sphi %s750_s12, %s13_s12  }
   0x2   : > { %p147_p1 = scmp.lt.s32.totalorder %s728_s12, 3 }
   0x4   : > { %p148_p2 = pnand %p516_p0, %p147_p1 }
   0x5   : > { %p176_p3 = scmp.lt.s32.totalorder (!%p148_p2), %s512_s13, 1 }
   0x6   : > { %151 = sbr.rel (%p148_p2) target bundleno = 65 (0x41), region = 32 }
   0xb   : > { %s885_s13 = smov (!%p176_p3, %s512_s13), 1  ;;  %v775_v0 = vld [vmem:[%s881_s1] ss:$0 sm:$0xff]  ;;  %v780_v1 = vld [vmem:[%s881_s1 + $0x1] ss:$0 sm:$0xff] }
   0xc   : > { %s758_s14 = smul.u32 100, %s885_s13 }
   0xe   : > { %s764_s17 = scalar_lea.vmem %s880_s0, %s758_s14  ;;  %s770_s20 = scalar_lea.vmem %s882_s2, %s758_s14 }
   0xf   : > { %v523_v2 = vld [vmem:[%s764_s17] sm:$0xff]   ;;  %v678_v4 = vld [vmem:[%s764_s17 + $0x8] sm:$0xff]   ;;  %v679_v10 = vld [vmem:[%s764_s17 + $0x10] sm:$0xff]   ;;  %s809_s27 = scalar_lea.vmem %s883_s3, %s758_s14 }
  0x10   : > { %v571_v3 = vld [vmem:[%s770_s20] sm:$0xff]   ;;  %v524_v5 = vunpack.c.l.bf16 %v523_v2  ;;  %v525_v6 = vunpack.c.h.bf16 %v523_v2  ;;  %v689_v9 = vld [vmem:[%s770_s20 + $0x8] sm:$0xff]   ;;  %v690_v11 = vld [vmem:[%s770_s20 + $0x10] sm:$0xff]   ;;  %v528_v12 = vunpack.c.l.bf16 %v678_v4  ;;  %v529_v13 = vunpack.c.h.bf16 %v678_v4 }
  0x11   : > { %v572_v7 = vunpack.c.l.bf16 %v571_v3  ;;  %v573_v8 = vunpack.c.h.bf16 %v571_v3  ;;  %v576_v14 = vunpack.c.l.bf16 %v689_v9  ;;  %v577_v15 = vunpack.c.h.bf16 %v689_v9  ;;  %v680_v20 = vld [vmem:[%s764_s17 + $0x18] sm:$0xff]   ;;  %v681_v46 = vld [vmem:[%s764_s17 + $0x20] sm:$0xff]   ;;  %v682_v56 = vld [vmem:[%s764_s17 + $0x28] sm:$0xff]  }
  0x12   : > { %v243_v16 = vsub.f32 %v524_v5, %v775_v0  ;;  %v244_v17 = vsub.f32 %v525_v6, %v775_v0  ;;  %v532_v18 = vunpack.c.l.bf16 %v679_v10  ;;  %v533_v19 = vunpack.c.h.bf16 %v679_v10  ;;  %v691_v41 = vld [vmem:[%s770_s20 + $0x18] sm:$0xff]   ;;  %v692_v51 = vld [vmem:[%s770_s20 + $0x20] sm:$0xff]   ;;  %v693_v61 = vld [vmem:[%s770_s20 + $0x28] sm:$0xff]  }
  0x13   : > { %v245_v21 = vsub.f32 %v528_v12, %v775_v0  ;;  %v246_v22 = vsub.f32 %v529_v13, %v775_v0  ;;  %v580_v23 = vunpack.c.l.bf16 %v690_v11  ;;  %v581_v24 = vunpack.c.h.bf16 %v690_v11  ;;  %v694_v9 = vld [vmem:[%s770_s20 + $0x30] sm:$0xff]  }
  0x14   : > { %v270_v25 = vmul.f32 %v780_v1, %v243_v16  ;;  %v271_v26 = vmul.f32 %v780_v1, %v244_v17  ;;  %v247_v27 = vsub.f32 %v532_v18, %v775_v0  ;;  %v248_v28 = vsub.f32 %v533_v19, %v775_v0 }
  0x15   : > { %v272_v29 = vmul.f32 %v780_v1, %v245_v21  ;;  %v273_v30 = vmul.f32 %v780_v1, %v246_v22  ;;  %v536_v31 = vunpack.c.l.bf16 %v680_v20  ;;  %v537_v32 = vunpack.c.h.bf16 %v680_v20  ;;  %v684_v22 = vld [vmem:[%s764_s17 + $0x38] sm:$0xff]  }
  0x16   : > { %v345_v33 = vadd.f32 %v572_v7, %v270_v25  ;;  %v346_v34 = vadd.f32 %v573_v8, %v271_v26  ;;  %v274_v35 = vmul.f32 %v780_v1, %v247_v27  ;;  %v275_v36 = vmul.f32 %v780_v1, %v248_v28  ;;  %v683_v8 = vld [vmem:[%s764_s17 + $0x30] sm:$0xff]  }
  0x17   : > { %v347_v37 = vadd.f32 %v576_v14, %v272_v29  ;;  %v348_v38 = vadd.f32 %v577_v15, %v273_v30  ;;  %v249_v39 = vsub.f32 %v536_v31, %v775_v0  ;;  %v250_v40 = vsub.f32 %v537_v32, %v775_v0  ;;  %v695_v31 = vld [vmem:[%s770_s20 + $0x38] sm:$0xff]  }
  0x18   : > { %v370_v42 = vmax.f32 %v345_v33, 0.0  ;;  %v371_v43 = vmax.f32 %v346_v34, 0.0  ;;  %v349_v44 = vadd.f32 %v580_v23, %v274_v35  ;;  %v350_v45 = vadd.f32 %v581_v24, %v275_v36 }
  0x19   : > { %v372_v47 = vmax.f32 %v347_v37, 0.0  ;;  %v373_v48 = vmax.f32 %v348_v38, 0.0  ;;  %v276_v49 = vmul.f32 %v780_v1, %v249_v39  ;;  %v277_v50 = vmul.f32 %v780_v1, %v250_v40  ;;  %v685_v40 = vld [vmem:[%s764_s17 + $0x40] sm:$0xff]  }
  0x1a   : > { %v621_v52 = vpack.c.bf16 %v371_v43, %v370_v42  ;;  %v374_v53 = vmax.f32 %v349_v44, 0.0  ;;  %v375_v54 = vmax.f32 %v350_v45, 0.0  ;;  %v584_v55 = vunpack.c.l.bf16 %v691_v41 }
  0x1b   : > { %v626_v57 = vpack.c.bf16 %v373_v48, %v372_v47  ;;  %v585_v58 = vunpack.c.h.bf16 %v691_v41  ;;  %v540_v59 = vunpack.c.l.bf16 %v681_v46  ;;  %v541_v60 = vunpack.c.h.bf16 %v681_v46 }
  0x1c   : > { %622 = vst [vmem:[%s809_s27] sm:$0xff] %v621_v52   ;;  %v631_v62 = vpack.c.bf16 %v375_v54, %v374_v53  ;;  %v351_v63 = vadd.f32 %v584_v55, %v276_v49  ;;  %v588_v2 = vunpack.c.l.bf16 %v692_v51  ;;  %v589_v3 = vunpack.c.h.bf16 %v692_v51  ;;  %v696_v49 = vld [vmem:[%s770_s20 + $0x40] sm:$0xff]   ;;  %v686_v54 = vld [vmem:[%s764_s17 + $0x48] sm:$0xff]  }
  0x1d   : > { %700 = vst [vmem:[%s809_s27 + $0x8] sm:$0xff] %v626_v57   ;;  %v352_v4 = vadd.f32 %v585_v58, %v277_v50  ;;  %v251_v5 = vsub.f32 %v540_v59, %v775_v0  ;;  %v252_v6 = vsub.f32 %v541_v60, %v775_v0  ;;  %v544_v7 = vunpack.c.l.bf16 %v682_v56 }
  0x1e   : > { %701 = vst [vmem:[%s809_s27 + $0x10] sm:$0xff] %v631_v62   ;;  %v376_v10 = vmax.f32 %v351_v63, 0.0  ;;  %v545_v11 = vunpack.c.h.bf16 %v682_v56  ;;  %v592_v12 = vunpack.c.l.bf16 %v693_v61  ;;  %v593_v13 = vunpack.c.h.bf16 %v693_v61  ;;  %v697_v63 = vld [vmem:[%s770_s20 + $0x48] sm:$0xff]  }
  0x1f   : > { %v377_v14 = vmax.f32 %v352_v4, 0.0  ;;  %v278_v15 = vmul.f32 %v780_v1, %v251_v5  ;;  %v279_v16 = vmul.f32 %v780_v1, %v252_v6  ;;  %v253_v17 = vsub.f32 %v544_v7, %v775_v0  ;;  %v687_v6 = vld [vmem:[%s764_s17 + $0x50] sm:$0xff]  }
  0x20   : > { %v254_v18 = vsub.f32 %v545_v11, %v775_v0  ;;  %v548_v19 = vunpack.c.l.bf16 %v683_v8  ;;  %v549_v20 = vunpack.c.h.bf16 %v683_v8  ;;  %v596_v21 = vunpack.c.l.bf16 %v694_v9  ;;  %v698_v11 = vld [vmem:[%s770_s20 + $0x50] sm:$0xff]  }
  0x21   : > { %v636_v23 = vpack.c.bf16 %v377_v14, %v376_v10  ;;  %v353_v24 = vadd.f32 %v588_v2, %v278_v15  ;;  %v354_v25 = vadd.f32 %v589_v3, %v279_v16  ;;  %v280_v26 = vmul.f32 %v780_v1, %v253_v17 }
  0x22   : > { %v281_v27 = vmul.f32 %v780_v1, %v254_v18  ;;  %v255_v28 = vsub.f32 %v548_v19, %v775_v0  ;;  %v256_v29 = vsub.f32 %v549_v20, %v775_v0  ;;  %v597_v30 = vunpack.c.h.bf16 %v694_v9  ;;  %v688_v20 = vld [vmem:[%s764_s17 + $0x58] sm:$0xff]  }
  0x23   : > { %702 = vst [vmem:[%s809_s27 + $0x18] sm:$0xff] %v636_v23   ;;  %v378_v32 = vmax.f32 %v353_v24, 0.0  ;;  %v379_v33 = vmax.f32 %v354_v25, 0.0  ;;  %v355_v34 = vadd.f32 %v592_v12, %v280_v26  ;;  %v552_v35 = vunpack.c.l.bf16 %v684_v22 }
  0x24   : > { %v356_v36 = vadd.f32 %v593_v13, %v281_v27  ;;  %v282_v37 = vmul.f32 %v780_v1, %v255_v28  ;;  %v283_v38 = vmul.f32 %v780_v1, %v256_v29  ;;  %v553_v39 = vunpack.c.h.bf16 %v684_v22  ;;  %v699_v29 = vld [vmem:[%s770_s20 + $0x58] sm:$0xff]  }
  0x25   : > { %v641_v41 = vpack.c.bf16 %v379_v33, %v378_v32  ;;  %v380_v42 = vmax.f32 %v355_v34, 0.0  ;;  %v257_v43 = vsub.f32 %v552_v35, %v775_v0  ;;  %v600_v44 = vunpack.c.l.bf16 %v695_v31 }
  0x26   : > { %v381_v45 = vmax.f32 %v356_v36, 0.0  ;;  %v357_v46 = vadd.f32 %v596_v21, %v282_v37  ;;  %v358_v47 = vadd.f32 %v597_v30, %v283_v38  ;;  %v258_v48 = vsub.f32 %v553_v39, %v775_v0  ;;  %v215_v38 = vld [vmem:[%s764_s17 + $0x60] sm:$0x3] }
  0x27   : > { %703 = vst [vmem:[%s809_s27 + $0x20] sm:$0xff] %v641_v41   ;;  %v284_v50 = vmul.f32 %v780_v1, %v257_v43  ;;  %v601_v51 = vunpack.c.h.bf16 %v695_v31  ;;  %v556_v52 = vunpack.c.l.bf16 %v685_v40  ;;  %v557_v53 = vunpack.c.h.bf16 %v685_v40 }
  0x28   : > { %v646_v55 = vpack.c.bf16 %v381_v45, %v380_v42  ;;  %v382_v56 = vmax.f32 %v357_v46, 0.0  ;;  %v383_v57 = vmax.f32 %v358_v47, 0.0  ;;  %v285_v58 = vmul.f32 %v780_v1, %v258_v48  ;;  %v319_v47 = vld [vmem:[%s770_s20 + $0x60] sm:$0x3] }
  0x29   : > { %v359_v59 = vadd.f32 %v600_v44, %v284_v50  ;;  %v259_v60 = vsub.f32 %v556_v52, %v775_v0  ;;  %v260_v61 = vsub.f32 %v557_v53, %v775_v0  ;;  %v604_v62 = vunpack.c.l.bf16 %v696_v49 }
  0x2a   : > { %704 = vst [vmem:[%s809_s27 + $0x28] sm:$0xff] %v646_v55   ;;  %v651_v2 = vpack.c.bf16 %v383_v57, %v382_v56  ;;  %v360_v3 = vadd.f32 %v601_v51, %v285_v58  ;;  %v605_v4 = vunpack.c.h.bf16 %v696_v49  ;;  %v560_v5 = vunpack.c.l.bf16 %v686_v54 }
  0x2b   : > { %v384_v7 = vmax.f32 %v359_v59, 0.0  ;;  %v286_v8 = vmul.f32 %v780_v1, %v259_v60  ;;  %v287_v9 = vmul.f32 %v780_v1, %v260_v61  ;;  %v561_v10 = vunpack.c.h.bf16 %v686_v54 }
  0x2c   : > { %705 = vst [vmem:[%s809_s27 + $0x30] sm:$0xff] %v651_v2   ;;  %v385_v12 = vmax.f32 %v360_v3, 0.0  ;;  %v261_v13 = vsub.f32 %v560_v5, %v775_v0  ;;  %v608_v14 = vunpack.c.l.bf16 %v697_v63  ;;  %v609_v15 = vunpack.c.h.bf16 %v697_v63 }
  0x2d   : > { %v361_v16 = vadd.f32 %v604_v62, %v286_v8  ;;  %v362_v17 = vadd.f32 %v605_v4, %v287_v9  ;;  %v262_v18 = vsub.f32 %v561_v10, %v775_v0  ;;  %v564_v19 = vunpack.c.l.bf16 %v687_v6 }
  0x2e   : > { %v656_v21 = vpack.c.bf16 %v385_v12, %v384_v7  ;;  %v288_v22 = vmul.f32 %v780_v1, %v261_v13  ;;  %v565_v23 = vunpack.c.h.bf16 %v687_v6  ;;  %v612_v24 = vunpack.c.l.bf16 %v698_v11 }
  0x2f   : > { %v386_v25 = vmax.f32 %v361_v16, 0.0  ;;  %v387_v26 = vmax.f32 %v362_v17, 0.0  ;;  %v289_v27 = vmul.f32 %v780_v1, %v262_v18  ;;  %v263_v28 = vsub.f32 %v564_v19, %v775_v0 }
  0x30   : > { %706 = vst [vmem:[%s809_s27 + $0x38] sm:$0xff] %v656_v21   ;;  %v363_v30 = vadd.f32 %v608_v14, %v288_v22  ;;  %v264_v31 = vsub.f32 %v565_v23, %v775_v0  ;;  %v613_v32 = vunpack.c.h.bf16 %v698_v11  ;;  %v568_v33 = vunpack.c.l.bf16 %v688_v20 }
  0x31   : > { %v661_v34 = vpack.c.bf16 %v387_v26, %v386_v25  ;;  %v364_v35 = vadd.f32 %v609_v15, %v289_v27  ;;  %v290_v36 = vmul.f32 %v780_v1, %v263_v28  ;;  %v569_v37 = vunpack.c.h.bf16 %v688_v20 }
  0x32   : > { %v388_v39 = vmax.f32 %v363_v30, 0.0  ;;  %v291_v40 = vmul.f32 %v780_v1, %v264_v31  ;;  %v265_v41 = vsub.f32 %v568_v33, %v775_v0  ;;  %v616_v42 = vunpack.c.l.bf16 %v699_v29 }
  0x33   : > { %707 = vst [vmem:[%s809_s27 + $0x40] sm:$0xff] %v661_v34   ;;  %v389_v43 = vmax.f32 %v364_v35, 0.0  ;;  %v365_v44 = vadd.f32 %v612_v24, %v290_v36  ;;  %v266_v45 = vsub.f32 %v569_v37, %v775_v0  ;;  %v617_v46 = vunpack.c.h.bf16 %v699_v29 }
  0x34   : > { %v366_v48 = vadd.f32 %v613_v32, %v291_v40  ;;  %v292_v49 = vmul.f32 %v780_v1, %v265_v41  ;;  %v240_v50 = vunpack.c.l.bf16 %v215_v38  ;;  %v344_v57 = vunpack.c.l.bf16 %v319_v47 }
  0x35   : > { %v666_v51 = vpack.c.bf16 %v389_v43, %v388_v39  ;;  %v390_v52 = vmax.f32 %v365_v44, 0.0  ;;  %v293_v53 = vmul.f32 %v780_v1, %v266_v45 }
  0x36   : > { %v391_v54 = vmax.f32 %v366_v48, 0.0  ;;  %v367_v55 = vadd.f32 %v616_v42, %v292_v49  ;;  %v267_v56 = vsub.f32 %v240_v50, %v775_v0 }
  0x37   : > { %708 = vst [vmem:[%s809_s27 + $0x48] sm:$0xff] %v666_v51   ;;  %v368_v58 = vadd.f32 %v617_v46, %v293_v53 }
  0x38   : > { %v671_v59 = vpack.c.bf16 %v391_v54, %v390_v52  ;;  %v392_v60 = vmax.f32 %v367_v55, 0.0  ;;  %v294_v61 = vmul.f32 %v780_v1, %v267_v56 }
  0x39   : > { %v393_v62 = vmax.f32 %v368_v58, 0.0 }
  0x3a   : > { %709 = vst [vmem:[%s809_s27 + $0x50] sm:$0xff] %v671_v59   ;;  %v369_v63 = vadd.f32 %v344_v57, %v294_v61 }
  0x3b   : > { %v676_v2 = vpack.c.bf16 %v393_v62, %v392_v60 }
  0x3c   : > { %v394_v3 = vmax.f32 %v369_v63, 0.0 }
  0x3d   : > { %710 = vst [vmem:[%s809_s27 + $0x58] sm:$0xff] %v676_v2  }
  0x3e   : > { %v419_v4 = vpack.c.bf16 %v394_v3, %v394_v3 }
  0x40   : > { %444 = vst [vmem:[%s809_s27 + $0x60] sm:$0x3] %v419_v4 }
  0x41 PF: > { %s13_s12 = sadd.s32 1, %s728_s12  }
  0x42   : > { %p10_p4 = scmp.ge.s32.totalorder %s13_s12, 4  }
  0x44   :  { %12 = sbr.rel (!%p10_p4) target bundleno = 1 (0x1), region = 65 }

// kernel: _lambda_.75
= control target key start
LH: loop header
LB: loop body
LE: loop exit
PB: predicated region body
PF: predicated region fallthrough
CT: control target
= control target key end

     0   :  { %s331_s9 = smov 0   ;;  %s358_s0 = inlined_call_operand.vmem [shape: bf16[2,49,128], index: 0, kind: input, shape index: {}]   ;;  %s359_s1 = inlined_call_operand.vmem [shape: f32[2,128], index: 1, kind: input, shape index: {}]   ;;  %s360_s2 = inlined_call_operand.vmem [shape: bf16[2,49,128], index: 2, kind: output, shape index: {}]  }
   0x1 LB: > { %s257_s10 = sadd.s32 4294967295, %s314_s9   ;;  %p261_p0 = scmp.ge.s32.totalorder %s314_s9, 1  ;;  %s314_s9 = sphi %s331_s9, %s12_s9  }
   0x2   : > { %p112_p1 = scmp.lt.s32.totalorder %s314_s9, 3 }
   0x4   : > { %p113_p2 = pnand %p261_p0, %p112_p1 }
   0x5   : > { %p134_p3 = scmp.lt.s32.totalorder (!%p113_p2), %s257_s10, 1 }
   0x6   : > { %116 = sbr.rel (%p113_p2) target bundleno = 30 (0x1e), region = 28 }
   0xb   : > { %s362_s10 = smov (!%p134_p3, %s257_s10), 1  ;;  %v306_v0 = vld [vmem:[%s359_s1] ss:$0 sm:$0xff]  ;;  %v307_v6 = vld [vmem:[%s359_s1 + $0x1] ss:$0 sm:$0xff]  ;;  %vm196_vm0 = vcmask 1040384  }
   0xc   : > { %s297_s11 = smul.u32 28, %s362_s10  ;;  %vm197_vm1 = vsmask.f32 256 }
   0xd   : > { %vm198_vm2 = vmand %vm196_vm0, %vm197_vm1 }
   0xe   : > { %s138_s14 = scalar_lea.vmem %s358_s0, %s297_s11  ;;  %s143_s21 = scalar_lea.vmem %s360_s2, %s297_s11 }
   0xf   : > { %v267_v1 = vld [vmem:[%s138_s14] sm:$0xff]   ;;  %v293_v2 = vld [vmem:[%s138_s14 + $0x8] sm:$0xff]   ;;  %v294_v3 = vld [vmem:[%s138_s14 + $0x10] sm:$0xff]  }
  0x10   : > { %v268_v4 = vunpack.c.l.bf16 %v267_v1  ;;  %v269_v5 = vunpack.c.h.bf16 %v267_v1  ;;  %v272_v7 = vunpack.c.l.bf16 %v293_v2  ;;  %v273_v8 = vunpack.c.h.bf16 %v293_v2  ;;  %v150_v9 = vld [vmem:[%s138_s14 + $0x18] sm:$0x1] }
  0x11   : > { %v276_v10 = vunpack.c.l.bf16 %v294_v3  ;;  %v277_v11 = vunpack.c.h.bf16 %v294_v3  ;;  %v157_v12 = vunpack.c.l.bf16 %v150_v9  ;;  %v199_v36 = vld [vmem:[%s143_s21 + $0x18] sm:$0x1] }
  0x12   : > { %v160_v13 = vsub.f32 %v268_v4, %v306_v0  ;;  %v161_v14 = vsub.f32 %v269_v5, %v306_v0  ;;  %v162_v15 = vsub.f32 %v272_v7, %v306_v0  ;;  %v163_v16 = vsub.f32 %v273_v8, %v306_v0 }
  0x13   : > { %v164_v17 = vsub.f32 %v276_v10, %v306_v0  ;;  %v165_v18 = vsub.f32 %v277_v11, %v306_v0  ;;  %v166_v19 = vsub.f32 %v157_v12, %v306_v0 }
  0x14   : > { %v169_v20 = vmul.f32 %v307_v6, %v160_v13  ;;  %v170_v21 = vmul.f32 %v307_v6, %v161_v14  ;;  %v171_v22 = vmul.f32 %v307_v6, %v162_v15  ;;  %v172_v23 = vmul.f32 %v307_v6, %v163_v16 }
  0x15   : > { %v173_v24 = vmul.f32 %v307_v6, %v164_v17  ;;  %v174_v25 = vmul.f32 %v307_v6, %v165_v18  ;;  %v175_v26 = vmul.f32 %v307_v6, %v166_v19 }
  0x16   : > { %v176_v27 = vmax.f32 %v169_v20, 0.0  ;;  %v177_v28 = vmax.f32 %v170_v21, 0.0  ;;  %v178_v29 = vmax.f32 %v171_v22, 0.0  ;;  %v179_v30 = vmax.f32 %v172_v23, 0.0 }
  0x17   : > { %v180_v31 = vmax.f32 %v173_v24, 0.0  ;;  %v181_v32 = vmax.f32 %v174_v25, 0.0  ;;  %v182_v33 = vmax.f32 %v175_v26, 0.0 }
  0x18   : > { %v281_v34 = vpack.c.bf16 %v177_v28, %v176_v27  ;;  %v286_v35 = vpack.c.bf16 %v179_v30, %v178_v29 }
  0x19   : > { %v291_v37 = vpack.c.bf16 %v181_v32, %v180_v31  ;;  %v189_v38 = vpack.c.bf16 %v182_v33, %v182_v33 }
  0x1a   : > { %282 = vst [vmem:[%s143_s21] sm:$0xff] %v281_v34  }
  0x1b   : > { %295 = vst [vmem:[%s143_s21 + $0x8] sm:$0xff] %v286_v35   ;;  %v200_v39 = vsel %vm198_vm2, %v189_v38, %v199_v36 }
  0x1c   : > { %296 = vst [vmem:[%s143_s21 + $0x10] sm:$0xff] %v291_v37  }
  0x1d   : > { %201 = vst [vmem:[%s143_s21 + $0x18] sm:$0x1] %v200_v39 }
  0x1e PF: > { %s12_s9 = sadd.s32 1, %s314_s9  }
  0x1f   : > { %p9_p4 = scmp.ge.s32.totalorder %s12_s9, 4  }
  0x21   :  { %11 = sbr.rel (!%p9_p4) target bundleno = 1 (0x1), region = 58 }

// kernel: _lambda_.74
= control target key start
LH: loop header
LB: loop body
LE: loop exit
PB: predicated region body
PF: predicated region fallthrough
CT: control target
= control target key end

     0   :  { %s266_s6 = smov 0   ;;  %s313_s0 = inlined_call_operand.vmem [shape: bf16[2,49,128], index: 0, kind: input, shape index: {}]   ;;  %s314_s1 = inlined_call_operand.vmem [shape: f32[2,128], index: 1, kind: output, shape index: {}]  }
   0x1 LB: > { %s272_s7 = sadd.s32 4294967295, %s253_s6   ;;  %p215_p0 = scmp.ge.s32.totalorder %s253_s6, 1  ;;  %s253_s6 = sphi %s266_s6, %s11_s6  }
   0x2   : > { %p82_p1 = scmp.lt.s32.totalorder %s253_s6, 3 }
   0x4   : > { %p83_p2 = pnand %p215_p0, %p82_p1 }
   0x5   : > { %p97_p3 = scmp.lt.s32.totalorder (!%p83_p2), %s272_s7, 1  ;;  %p217_p4 = scmp.ne.s32.totalorder (!%p83_p2), %s272_s7, 0 }
   0x6   : > { %86 = sbr.rel (%p83_p2) target bundleno = 83 (0x53), region = 24 }
   0xb   : > { %s98_s8 = scalar_select %p97_p3, %s272_s7, 1 }
   0xc   : > { %105 = sbr.rel (%p217_p4) target bundleno = 19 (0x13), region = 28 }
   0xd   : > { %s235_s9 = smul.u32 28, %s98_s8 }
   0xf   : > { %s101_s12 = scalar_lea.vmem %s313_s0, %s235_s9 }
  0x11   : > { %v255_v0 = vmov 0.0  }
  0x12   : > { %106 = vst [vmem:[%s314_s1] sm:$0x3] %v255_v0 }
  0x13 PF: > { %v222_v1 = vld [vmem:[%s101_s12] sm:$0xff]   ;;  %v233_v2 = vld [vmem:[%s101_s12 + $0x8] sm:$0xff]   ;;  %v234_v3 = vld [vmem:[%s101_s12 + $0x10] sm:$0xff]   ;;  %vm127_vm0 = vcmask 1040384   ;;  %p218_p5 = scmp.ne.s32.totalorder %s272_s7, 1 }
  0x14   : > { %v223_v4 = vunpack.c.l.bf16 %v222_v1  ;;  %v224_v5 = vunpack.c.h.bf16 %v222_v1  ;;  %v227_v6 = vunpack.c.l.bf16 %v233_v2  ;;  %v228_v7 = vunpack.c.h.bf16 %v233_v2  ;;  %v113_v8 = vld [vmem:[%s101_s12 + $0x18] sm:$0x1] }
  0x15   : > { %v231_v9 = vunpack.c.l.bf16 %v234_v3  ;;  %v120_v14 = vunpack.c.l.bf16 %v113_v8  ;;  %v232_v15 = vunpack.c.h.bf16 %v234_v3 }
  0x16   : > { %v122_v10 = vadd.f32 %v224_v5, %v223_v4  ;;  %v139_v11 = vmul.f32 %v223_v4, %v223_v4  ;;  %v140_v12 = vmul.f32 %v224_v5, %v224_v5  ;;  %v141_v13 = vmul.f32 %v227_v6, %v227_v6 }
  0x17   : > { %v142_v17 = vmul.f32 %v228_v7, %v228_v7  ;;  %v143_v20 = vmul.f32 %v231_v9, %v231_v9  ;;  %v145_v22 = vmul.f32 %v120_v14, %v120_v14  ;;  %v144_v24 = vmul.f32 %v232_v15, %v232_v15 }
  0x18   : > { %v123_v16 = vadd.f32 %v227_v6, %v122_v10  ;;  %v146_v18 = vadd.f32 %v140_v12, %v139_v11  ;;  %v128_v26 = vsel %vm127_vm0, %v120_v14, 0.0 }
  0x19   : > { %v151_v29 = vsel %vm127_vm0, %v145_v22, 0.0  ;;  %v121_v42 = vld [vmem:[%s314_s1] sm:$0x1]  ;;  %v138_v45 = vld [vmem:[%s314_s1 + $0x1] sm:$0x1] }
  0x1a   : > { %v124_v19 = vadd.f32 %v228_v7, %v123_v16  ;;  %v147_v21 = vadd.f32 %v146_v18, %v141_v13 }
  0x1c   : > { %v125_v23 = vadd.f32 %v231_v9, %v124_v19  ;;  %v148_v25 = vadd.f32 %v147_v21, %v142_v17 }
  0x1e   : > { %v126_v27 = vadd.f32 %v232_v15, %v125_v23  ;;  %v149_v28 = vadd.f32 %v148_v25, %v143_v20 }
  0x20   : > { %v129_v30 = vadd.f32 %v128_v26, %v126_v27  ;;  %v150_v31 = vadd.f32 %v149_v28, %v144_v24 }
  0x22   : > { %v130_v32 = vrot.slane %v129_v30, 4  ;;  %v152_v33 = vadd.f32 %v151_v29, %v150_v31 }
  0x24   : > { %v131_v34 = vadd.f32 %v130_v32, %v129_v30  ;;  %v153_v35 = vrot.slane %v152_v33, 4 }
  0x26   : > { %v132_v36 = vrot.slane %v131_v34, 2  ;;  %v154_v37 = vadd.f32 %v153_v35, %v152_v33 }
  0x28   : > { %v133_v38 = vadd.f32 %v132_v36, %v131_v34  ;;  %v155_v39 = vrot.slane %v154_v37, 2 }
  0x2a   : > { %v134_v40 = vrot.slane %v133_v38, 1  ;;  %v156_v41 = vadd.f32 %v155_v39, %v154_v37 }
  0x2c   : > { %v135_v43 = vadd.f32 %v134_v40, %v133_v38  ;;  %v157_v44 = vrot.slane %v156_v41, 1 }
  0x2e   : > { %v136_v46 = vadd.f32 %v135_v43, %v121_v42  ;;  %v158_v47 = vadd.f32 %v157_v44, %v156_v41  ;;  %164 = sbr.rel (%p218_p5) target bundleno = 83 (0x53), region = 32 }
  0x30   : > { %137 = vst [vmem:[%s314_s1] sm:$0x1] %v136_v46  ;;  %v159_v48 = vadd.f32 %v158_v47, %v138_v45 }
  0x32   : > { %160 = vst [vmem:[%s314_s1 + $0x1] sm:$0x1] %v159_v48 }
  0x37   : > { %v165_v49 = vld [vmem:[%s314_s1] sm:$0x1] }
  0x38   : > { %v166_v51 = vmul.f32 0.010204081, %v165_v49 }
  0x39   : > { %v167_v50 = vld [vmem:[%s314_s1 + $0x1] sm:$0x1] }
  0x3a   : > { %v168_v52 = vmul.f32 0.010204081, %v167_v50  ;;  %v169_v53 = vmul.f32 %v166_v51, %v166_v51  ;;  %171 = vst [vmem:[%s314_s1] sm:$0x1] %v166_v51 }
  0x3c   : > { %v170_v54 = vsub.f32 %v168_v52, %v169_v53 }
  0x3e   : > { %v172_v55 = vadd.f32 1e-05, %v170_v54 }
  0x40   : > { %245 = vrsqrt.f32 %v172_v55  ;;  %vm179_vm1 = vweird.f32 %v172_v55 }
  0x46   : > { %v246_v56 = vpop.eup %245 }
  0x47   : > { %v174_v57 = vmul.f32 %v246_v56, %v172_v55  ;;  %vm180_vm2 = vweird.f32 %v246_v56 }
  0x48   : > { %vm181_vm3 = vmor %vm179_vm1, %vm180_vm2 }
  0x49   : > { %v175_v58 = vmul.f32 %v246_v56, %v174_v57 }
  0x4b   : > { %v176_v59 = vmul.f32 0.5, %v175_v58 }
  0x4d   : > { %v177_v60 = vsub.f32 1.5, %v176_v59 }
  0x4f   : > { %v178_v61 = vmul.f32 %v246_v56, %v177_v60 }
  0x51   : > { %v182_v62 = vsel %vm181_vm3, %v246_v56, %v178_v61 }
  0x52   : > { %183 = vst [vmem:[%s314_s1 + $0x1] sm:$0x1] %v182_v62 }
  0x53 PF: > { %s11_s6 = sadd.s32 1, %s253_s6  }
  0x54   : > { %p8_p6 = scmp.ge.s32.totalorder %s11_s6, 4  }
  0x56   :  { %10 = sbr.rel (!%p8_p6) target bundleno = 1 (0x1), region = 58 }

// kernel: _lambda_.82
= control target key start
LH: loop header
LB: loop body
LE: loop exit
PB: predicated region body
PF: predicated region fallthrough
CT: control target
= control target key end

     0   :  { %s324_s9 = smov 0   ;;  %s348_s0 = inlined_call_operand.vmem [shape: bf16[2,49,128], index: 0, kind: input, shape index: {}]   ;;  %s349_s1 = inlined_call_operand.vmem [shape: f32[2,128], index: 1, kind: input, shape index: {}]   ;;  %s350_s2 = inlined_call_operand.vmem [shape: bf16[2,49,128], index: 2, kind: output, shape index: {}]  }
   0x1 LB: > { %s250_s10 = sadd.s32 4294967295, %s307_s9   ;;  %p254_p0 = scmp.ge.s32.totalorder %s307_s9, 1  ;;  %s307_s9 = sphi %s324_s9, %s12_s9  }
   0x2   : > { %p112_p1 = scmp.lt.s32.totalorder %s307_s9, 3 }
   0x4   : > { %p113_p2 = pnand %p254_p0, %p112_p1 }
   0x5   : > { %p134_p3 = scmp.lt.s32.totalorder (!%p113_p2), %s250_s10, 1 }
   0x6   : > { %116 = sbr.rel (%p113_p2) target bundleno = 28 (0x1c), region = 28 }
   0xb   : > { %s352_s10 = smov (!%p134_p3, %s250_s10), 1  ;;  %v299_v0 = vld [vmem:[%s349_s1] ss:$0 sm:$0xff]  ;;  %v300_v6 = vld [vmem:[%s349_s1 + $0x1] ss:$0 sm:$0xff]  ;;  %vm189_vm0 = vcmask 1040384  }
   0xc   : > { %s290_s11 = smul.u32 28, %s352_s10  ;;  %vm190_vm1 = vsmask.f32 256 }
   0xd   : > { %vm191_vm2 = vmand %vm189_vm0, %vm190_vm1 }
   0xe   : > { %s138_s14 = scalar_lea.vmem %s348_s0, %s290_s11  ;;  %s143_s21 = scalar_lea.vmem %s350_s2, %s290_s11 }
   0xf   : > { %v260_v1 = vld [vmem:[%s138_s14] sm:$0xff]   ;;  %v286_v2 = vld [vmem:[%s138_s14 + $0x8] sm:$0xff]   ;;  %v287_v3 = vld [vmem:[%s138_s14 + $0x10] sm:$0xff]  }
  0x10   : > { %v261_v4 = vunpack.c.l.bf16 %v260_v1  ;;  %v262_v5 = vunpack.c.h.bf16 %v260_v1  ;;  %v265_v7 = vunpack.c.l.bf16 %v286_v2  ;;  %v266_v8 = vunpack.c.h.bf16 %v286_v2  ;;  %v150_v9 = vld [vmem:[%s138_s14 + $0x18] sm:$0x1] }
  0x11   : > { %v269_v10 = vunpack.c.l.bf16 %v287_v3  ;;  %v270_v11 = vunpack.c.h.bf16 %v287_v3  ;;  %v157_v12 = vunpack.c.l.bf16 %v150_v9  ;;  %v192_v29 = vld [vmem:[%s143_s21 + $0x18] sm:$0x1] }
  0x12   : > { %v160_v13 = vsub.f32 %v261_v4, %v299_v0  ;;  %v161_v14 = vsub.f32 %v262_v5, %v299_v0  ;;  %v162_v15 = vsub.f32 %v265_v7, %v299_v0  ;;  %v163_v16 = vsub.f32 %v266_v8, %v299_v0 }
  0x13   : > { %v164_v17 = vsub.f32 %v269_v10, %v299_v0  ;;  %v165_v18 = vsub.f32 %v270_v11, %v299_v0  ;;  %v166_v19 = vsub.f32 %v157_v12, %v299_v0 }
  0x14   : > { %v169_v20 = vmul.f32 %v300_v6, %v160_v13  ;;  %v170_v21 = vmul.f32 %v300_v6, %v161_v14  ;;  %v171_v22 = vmul.f32 %v300_v6, %v162_v15  ;;  %v172_v23 = vmul.f32 %v300_v6, %v163_v16 }
  0x15   : > { %v173_v24 = vmul.f32 %v300_v6, %v164_v17  ;;  %v174_v25 = vmul.f32 %v300_v6, %v165_v18  ;;  %v175_v26 = vmul.f32 %v300_v6, %v166_v19 }
  0x16   : > { %v274_v27 = vpack.c.bf16 %v170_v21, %v169_v20  ;;  %v279_v28 = vpack.c.bf16 %v172_v23, %v171_v22 }
  0x17   : > { %v284_v30 = vpack.c.bf16 %v174_v25, %v173_v24  ;;  %v182_v31 = vpack.c.bf16 %v175_v26, %v175_v26 }
  0x18   : > { %275 = vst [vmem:[%s143_s21] sm:$0xff] %v274_v27  }
  0x19   : > { %288 = vst [vmem:[%s143_s21 + $0x8] sm:$0xff] %v279_v28   ;;  %v193_v32 = vsel %vm191_vm2, %v182_v31, %v192_v29 }
  0x1a   : > { %289 = vst [vmem:[%s143_s21 + $0x10] sm:$0xff] %v284_v30  }
  0x1b   : > { %194 = vst [vmem:[%s143_s21 + $0x18] sm:$0x1] %v193_v32 }
  0x1c PF: > { %s12_s9 = sadd.s32 1, %s307_s9  }
  0x1d   : > { %p9_p4 = scmp.ge.s32.totalorder %s12_s9, 4  }
  0x1f   :  { %11 = sbr.rel (!%p9_p4) target bundleno = 1 (0x1), region = 58 }

// kernel: _lambda_.84
= control target key start
LH: loop header
LB: loop body
LE: loop exit
PB: predicated region body
PF: predicated region fallthrough
CT: control target
= control target key end

     0   :  { %s431_s12 = smov 0   ;;  %s462_s0 = inlined_call_operand.vmem [shape: bf16[2,49,128], index: 0, kind: input, shape index: {}]   ;;  %s463_s1 = inlined_call_operand.vmem [shape: f32[2,128], index: 1, kind: input, shape index: {}]   ;;  %s464_s2 = inlined_call_operand.vmem [shape: bf16[2,49,128], index: 2, kind: input, shape index: {}]   ;;  %s465_s3 = inlined_call_operand.vmem [shape: bf16[2,49,128], index: 3, kind: output, shape index: {}]  }
   0x1 LB: > { %s337_s13 = sadd.s32 4294967295, %s409_s12   ;;  %p341_p0 = scmp.ge.s32.totalorder %s409_s12, 1  ;;  %s409_s12 = sphi %s431_s12, %s13_s12  }
   0x2   : > { %p147_p1 = scmp.lt.s32.totalorder %s409_s12, 3 }
   0x4   : > { %p148_p2 = pnand %p341_p0, %p147_p1 }
   0x5   : > { %p176_p3 = scmp.lt.s32.totalorder (!%p148_p2), %s337_s13, 1 }
   0x6   : > { %151 = sbr.rel (%p148_p2) target bundleno = 35 (0x23), region = 32 }
   0xb   : > { %s467_s13 = smov (!%p176_p3, %s337_s13), 1  ;;  %v401_v0 = vld [vmem:[%s463_s1] ss:$0 sm:$0xff]  ;;  %v402_v1 = vld [vmem:[%s463_s1 + $0x1] ss:$0 sm:$0xff]  ;;  %vm264_vm0 = vcmask 1040384  }
   0xc   : > { %s439_s14 = smul.u32 28, %s467_s13  ;;  %vm265_vm1 = vsmask.f32 256 }
   0xd   : > { %vm266_vm2 = vmand %vm264_vm0, %vm265_vm1 }
   0xe   : > { %s180_s17 = scalar_lea.vmem %s462_s0, %s439_s14  ;;  %s185_s20 = scalar_lea.vmem %s464_s2, %s439_s14 }
   0xf   : > { %v348_v2 = vld [vmem:[%s180_s17] sm:$0xff]   ;;  %v386_v4 = vld [vmem:[%s180_s17 + $0x8] sm:$0xff]   ;;  %v387_v10 = vld [vmem:[%s180_s17 + $0x10] sm:$0xff]   ;;  %s190_s27 = scalar_lea.vmem %s465_s3, %s439_s14 }
  0x10   : > { %v360_v3 = vld [vmem:[%s185_s20] sm:$0xff]   ;;  %v349_v5 = vunpack.c.l.bf16 %v348_v2  ;;  %v350_v6 = vunpack.c.h.bf16 %v348_v2  ;;  %v388_v9 = vld [vmem:[%s185_s20 + $0x8] sm:$0xff]   ;;  %v389_v11 = vld [vmem:[%s185_s20 + $0x10] sm:$0xff]   ;;  %v353_v12 = vunpack.c.l.bf16 %v386_v4  ;;  %v354_v13 = vunpack.c.h.bf16 %v386_v4 }
  0x11   : > { %v361_v7 = vunpack.c.l.bf16 %v360_v3  ;;  %v362_v8 = vunpack.c.h.bf16 %v360_v3  ;;  %v365_v14 = vunpack.c.l.bf16 %v388_v9  ;;  %v366_v15 = vunpack.c.h.bf16 %v388_v9  ;;  %v197_v20 = vld [vmem:[%s180_s17 + $0x18] sm:$0x1] }
  0x12   : > { %v207_v16 = vsub.f32 %v349_v5, %v401_v0  ;;  %v208_v17 = vsub.f32 %v350_v6, %v401_v0  ;;  %v357_v18 = vunpack.c.l.bf16 %v387_v10  ;;  %v358_v19 = vunpack.c.h.bf16 %v387_v10  ;;  %v229_v29 = vld [vmem:[%s185_s20 + $0x18] sm:$0x1] }
  0x13   : > { %v209_v21 = vsub.f32 %v353_v12, %v401_v0  ;;  %v210_v22 = vsub.f32 %v354_v13, %v401_v0  ;;  %v369_v23 = vunpack.c.l.bf16 %v389_v11  ;;  %v370_v24 = vunpack.c.h.bf16 %v389_v11  ;;  %v267_v55 = vld [vmem:[%s190_s27 + $0x18] sm:$0x1] }
  0x14   : > { %v216_v25 = vmul.f32 %v402_v1, %v207_v16  ;;  %v217_v26 = vmul.f32 %v402_v1, %v208_v17  ;;  %v211_v27 = vsub.f32 %v357_v18, %v401_v0  ;;  %v212_v28 = vsub.f32 %v358_v19, %v401_v0 }
  0x15   : > { %v218_v30 = vmul.f32 %v402_v1, %v209_v21  ;;  %v219_v31 = vmul.f32 %v402_v1, %v210_v22  ;;  %v204_v32 = vunpack.c.l.bf16 %v197_v20  ;;  %v236_v40 = vunpack.c.l.bf16 %v229_v29 }
  0x16   : > { %v237_v33 = vadd.f32 %v361_v7, %v216_v25  ;;  %v238_v34 = vadd.f32 %v362_v8, %v217_v26  ;;  %v220_v35 = vmul.f32 %v402_v1, %v211_v27  ;;  %v221_v36 = vmul.f32 %v402_v1, %v212_v28 }
  0x17   : > { %v239_v37 = vadd.f32 %v365_v14, %v218_v30  ;;  %v240_v38 = vadd.f32 %v366_v15, %v219_v31  ;;  %v213_v39 = vsub.f32 %v204_v32, %v401_v0 }
  0x18   : > { %v244_v41 = vmax.f32 %v237_v33, 0.0  ;;  %v245_v42 = vmax.f32 %v238_v34, 0.0  ;;  %v241_v43 = vadd.f32 %v369_v23, %v220_v35  ;;  %v242_v44 = vadd.f32 %v370_v24, %v221_v36 }
  0x19   : > { %v246_v45 = vmax.f32 %v239_v37, 0.0  ;;  %v247_v46 = vmax.f32 %v240_v38, 0.0  ;;  %v222_v47 = vmul.f32 %v402_v1, %v213_v39 }
  0x1a   : > { %v374_v48 = vpack.c.bf16 %v245_v42, %v244_v41  ;;  %v248_v49 = vmax.f32 %v241_v43, 0.0  ;;  %v249_v50 = vmax.f32 %v242_v44, 0.0 }
  0x1b   : > { %v379_v51 = vpack.c.bf16 %v247_v46, %v246_v45  ;;  %v243_v52 = vadd.f32 %v236_v40, %v222_v47 }
  0x1c   : > { %375 = vst [vmem:[%s190_s27] sm:$0xff] %v374_v48   ;;  %v384_v53 = vpack.c.bf16 %v249_v50, %v248_v49 }
  0x1d   : > { %390 = vst [vmem:[%s190_s27 + $0x8] sm:$0xff] %v379_v51   ;;  %v250_v54 = vmax.f32 %v243_v52, 0.0 }
  0x1e   : > { %391 = vst [vmem:[%s190_s27 + $0x10] sm:$0xff] %v384_v53  }
  0x1f   : > { %v257_v56 = vpack.c.bf16 %v250_v54, %v250_v54 }
  0x21   : > { %v268_v57 = vsel %vm266_vm2, %v257_v56, %v267_v55 }
  0x22   : > { %269 = vst [vmem:[%s190_s27 + $0x18] sm:$0x1] %v268_v57 }
  0x23 PF: > { %s13_s12 = sadd.s32 1, %s409_s12  }
  0x24   : > { %p10_p4 = scmp.ge.s32.totalorder %s13_s12, 4  }
  0x26   :  { %12 = sbr.rel (!%p10_p4) target bundleno = 1 (0x1), region = 65 }

// kernel: _lambda_.86
= control target key start
LH: loop header
LB: loop body
LE: loop exit
PB: predicated region body
PF: predicated region fallthrough
CT: control target
= control target key end

     0   :  { %s229_s6 = smov 0   ;;  %s276_s0 = inlined_call_operand.vmem [shape: bf16[2,16,128], index: 0, kind: input, shape index: {}]   ;;  %s277_s1 = inlined_call_operand.vmem [shape: f32[2,128], index: 1, kind: output, shape index: {}]  }
   0x1 LB: > { %s235_s7 = sadd.s32 4294967295, %s216_s6   ;;  %p187_p0 = scmp.ge.s32.totalorder %s216_s6, 1  ;;  %s216_s6 = sphi %s229_s6, %s11_s6  }
   0x2   : > { %p82_p1 = scmp.lt.s32.totalorder %s216_s6, 3 }
   0x4   : > { %p83_p2 = pnand %p187_p0, %p82_p1 }
   0x5   : > { %p97_p3 = scmp.lt.s32.totalorder (!%p83_p2), %s235_s7, 1  ;;  %p190_p4 = scmp.ne.s32.totalorder (!%p83_p2), %s235_s7, 0 }
   0x6   : > { %86 = sbr.rel (%p83_p2) target bundleno = 73 (0x49), region = 24 }
   0xb   : > { %s98_s8 = scalar_select %p97_p3, %s235_s7, 1 }
   0xc   : > { %105 = sbr.rel (%p190_p4) target bundleno = 19 (0x13), region = 28 }
   0xd   : > { %s194_s9 = sshll.u32 %s98_s8, 3 }
   0xe   : > { %s101_s12 = scalar_lea.vmem %s276_s0, %s194_s9 }
  0x11   : > { %v218_v0 = vmov 0.0  }
  0x12   : > { %106 = vst [vmem:[%s277_s1] sm:$0x3] %v218_v0 }
  0x13 PF: > { %v196_v1 = vld [vmem:[%s101_s12] sm:$0xff]   ;;  %p191_p5 = scmp.ne.s32.totalorder %s235_s7, 1 }
  0x14   : > { %v197_v2 = vunpack.c.l.bf16 %v196_v1  ;;  %v198_v3 = vunpack.c.h.bf16 %v196_v1 }
  0x16   : > { %v112_v4 = vadd.f32 %v198_v3, %v197_v2  ;;  %v122_v5 = vmul.f32 %v197_v2, %v197_v2  ;;  %v123_v6 = vmul.f32 %v198_v3, %v198_v3 }
  0x18   : > { %v113_v7 = vrot.slane %v112_v4, 4  ;;  %v124_v8 = vadd.f32 %v123_v6, %v122_v5 }
  0x19   : > { %v111_v17 = vld [vmem:[%s277_s1] sm:$0x1]  ;;  %v121_v20 = vld [vmem:[%s277_s1 + $0x1] sm:$0x1] }
  0x1a   : > { %v114_v9 = vadd.f32 %v113_v7, %v112_v4  ;;  %v125_v10 = vrot.slane %v124_v8, 4 }
  0x1c   : > { %v115_v11 = vrot.slane %v114_v9, 2  ;;  %v126_v12 = vadd.f32 %v125_v10, %v124_v8 }
  0x1e   : > { %v116_v13 = vadd.f32 %v115_v11, %v114_v9  ;;  %v127_v14 = vrot.slane %v126_v12, 2 }
  0x20   : > { %v117_v15 = vrot.slane %v116_v13, 1  ;;  %v128_v16 = vadd.f32 %v127_v14, %v126_v12 }
  0x22   : > { %v118_v18 = vadd.f32 %v117_v15, %v116_v13  ;;  %v129_v19 = vrot.slane %v128_v16, 1 }
  0x24   : > { %v119_v21 = vadd.f32 %v118_v18, %v111_v17  ;;  %v130_v22 = vadd.f32 %v129_v19, %v128_v16  ;;  %136 = sbr.rel (%p191_p5) target bundleno = 73 (0x49), region = 32 }
  0x26   : > { %120 = vst [vmem:[%s277_s1] sm:$0x1] %v119_v21  ;;  %v131_v23 = vadd.f32 %v130_v22, %v121_v20 }
  0x28   : > { %132 = vst [vmem:[%s277_s1 + $0x1] sm:$0x1] %v131_v23 }
  0x2d   : > { %v137_v24 = vld [vmem:[%s277_s1] sm:$0x1] }
  0x2e   : > { %v138_v26 = vmul.f32 0.03125, %v137_v24 }
  0x2f   : > { %v139_v25 = vld [vmem:[%s277_s1 + $0x1] sm:$0x1] }
  0x30   : > { %v140_v27 = vmul.f32 0.03125, %v139_v25  ;;  %v141_v28 = vmul.f32 %v138_v26, %v138_v26  ;;  %143 = vst [vmem:[%s277_s1] sm:$0x1] %v138_v26 }
  0x32   : > { %v142_v29 = vsub.f32 %v140_v27, %v141_v28 }
  0x34   : > { %v144_v30 = vadd.f32 1e-05, %v142_v29 }
  0x36   : > { %208 = vrsqrt.f32 %v144_v30  ;;  %vm151_vm0 = vweird.f32 %v144_v30 }
  0x3c   : > { %v209_v31 = vpop.eup %208 }
  0x3d   : > { %v146_v32 = vmul.f32 %v209_v31, %v144_v30  ;;  %vm152_vm1 = vweird.f32 %v209_v31 }
  0x3e   : > { %vm153_vm2 = vmor %vm151_vm0, %vm152_vm1 }
  0x3f   : > { %v147_v33 = vmul.f32 %v209_v31, %v146_v32 }
  0x41   : > { %v148_v34 = vmul.f32 0.5, %v147_v33 }
  0x43   : > { %v149_v35 = vsub.f32 1.5, %v148_v34 }
  0x45   : > { %v150_v36 = vmul.f32 %v209_v31, %v149_v35 }
  0x47   : > { %v154_v37 = vsel %vm153_vm2, %v209_v31, %v150_v36 }
  0x48   : > { %155 = vst [vmem:[%s277_s1 + $0x1] sm:$0x1] %v154_v37 }
  0x49 PF: > { %s11_s6 = sadd.s32 1, %s216_s6  }
  0x4a   : > { %p8_p6 = scmp.ge.s32.totalorder %s11_s6, 4  }
  0x4c   :  { %10 = sbr.rel (!%p8_p6) target bundleno = 1 (0x1), region = 58 }

// kernel: _lambda_.92
= control target key start
LH: loop header
LB: loop body
LE: loop exit
PB: predicated region body
PF: predicated region fallthrough
CT: control target
= control target key end

     0   :  { %s383_s9 = smov 0   ;;  %s424_s0 = inlined_call_operand.vmem [shape: bf16[2,16,128], index: 0, kind: input, shape index: {}]   ;;  %s425_s1 = inlined_call_operand.vmem [shape: bf16[128,128], index: 1, kind: input, shape index: {}]   ;;  %s426_s2 = inlined_call_operand.vmem [shape: bf16[2,16,128], index: 2, kind: output, shape index: {}]  }
   0x1 LB: > { %s289_s10 = sadd.s32 4294967295, %s366_s9   ;;  %p293_p0 = scmp.ge.s32.totalorder %s366_s9, 1  ;;  %s366_s9 = sphi %s383_s9, %s12_s9  }
   0x2   : > { %p112_p1 = scmp.lt.s32.totalorder %s366_s9, 3 }
   0x4   : > { %p113_p2 = pnand %p293_p0, %p112_p1 }
   0x5   : > { %p134_p3 = scmp.lt.s32.totalorder (!%p113_p2), %s289_s10, 1 }
   0x6   : > { %116 = sbr.rel (%p113_p2) target bundleno = 180 (0xb4), region = 28 }
   0xb   : > { %v346_v0 = vld [vmem:[%s425_s1 + $0x38] sm:$0xff]  ;;  %v345_v1 = vld [vmem:[%s425_s1 + $0x30] sm:$0xff]  ;;  %v344_v2 = vld [vmem:[%s425_s1 + $0x28] sm:$0xff]  ;;  %s428_s10 = smov (!%p134_p3, %s289_s10), 1 }
   0xc   : > { %216 = vmatpush.bf16.msra.mxu0 %v346_v0  ;;  %v343_v3 = vld [vmem:[%s425_s1 + $0x20] sm:$0xff]  ;;  %v342_v4 = vld [vmem:[%s425_s1 + $0x18] sm:$0xff]  ;;  %v341_v5 = vld [vmem:[%s425_s1 + $0x10] sm:$0xff]  ;;  %s336_s25 = sshll.u32 %s428_s10, 3 }
   0xd   : > { %v340_v6 = vld [vmem:[%s425_s1 + $0x8] sm:$0xff]  ;;  %v339_v7 = vld [vmem:[%s425_s1] sm:$0xff]  ;;  %s138_s30 = scalar_lea.vmem %s424_s0, %s336_s25  ;;  %s143_s5 = scalar_lea.vmem %s426_s2, %s336_s25 }
   0xe   : > { %v338_v8 = vld [vmem:[%s138_s30] sm:$0xff] }
  0x10   : > { %217 = vmatpush.bf16.msra.mxu0 %v345_v1 }
  0x14   : > { %218 = vmatpush.bf16.msra.mxu0 %v344_v2 }
  0x18   : > { %219 = vmatpush.bf16.msra.mxu0 %v343_v3 }
  0x1c   : > { %220 = vmatpush.bf16.msra.mxu0 %v342_v4 }
  0x20   : > { %221 = vmatpush.bf16.msra.mxu0 %v341_v5 }
  0x24   : > { %222 = vmatpush.bf16.msra.mxu0 %v340_v6 }
  0x28   : > { %223 = vmatpush.bf16.msra.mxu0 %v339_v7 }
  0x2b   : > { %224 = vmatmul.bf16.vlgmr.msra.gmra.mxu0 %v338_v8 }
  0xa8   : > { %v225_v9 = vpop.f32.mrf.mxu0 }
  0xb0   : > { %v227_v10 = vpop.f32.mrf.mxu0 }
  0xb1   : > { %v350_v11 = vpack.c.bf16 %v227_v10, %v225_v9 }
  0xb3   : > { %351 = vst [vmem:[%s143_s5] sm:$0xff] %v350_v11  }
  0xb4 PF: > { %s12_s9 = sadd.s32 1, %s366_s9  }
  0xb5   : > { %p9_p4 = scmp.ge.s32.totalorder %s12_s9, 4  }
  0xb7   :  { %11 = sbr.rel (!%p9_p4) target bundleno = 1 (0x1), region = 58 }

// kernel: _lambda_.76
= control target key start
LH: loop header
LB: loop body
LE: loop exit
PB: predicated region body
PF: predicated region fallthrough
CT: control target
= control target key end

     0   :  { %s2021_s9 = smov 0   ;;  %s2515_s0 = inlined_call_operand.vmem [shape: bf16[2,90,128], index: 0, kind: input, shape index: {}]   ;;  %s2516_s1 = inlined_call_operand.vmem [shape: bf16[9,128,128], index: 1, kind: input, shape index: {}]   ;;  %s2517_s2 = inlined_call_operand.vmem [shape: bf16[2,49,128], index: 2, kind: output, shape index: {}]  }
   0x1 LB: > { %s1428_s10 = sadd.s32 4294967295, %s2004_s9   ;;  %p1432_p0 = scmp.ge.s32.totalorder %s2004_s9, 1  ;;  %s2004_s9 = sphi %s2021_s9, %s12_s9  }
   0x2   : > { %p112_p1 = scmp.lt.s32.totalorder %s2004_s9, 3 }
   0x4   : > { %p113_p2 = pnand %p1432_p0, %p112_p1 }
   0x5   : > { %p134_p3 = scmp.lt.s32.totalorder (!%p113_p2), %s1428_s10, 1 }
   0x6   : > { %116 = sbr.rel (%p113_p2) target bundleno = 337 (0x151), region = 28 }
   0xb   : > { %v1870_v0 = vld [vmem:[%s2516_s1 + $0x78] sm:$0xff]  ;;  %v1869_v2 = vld [vmem:[%s2516_s1 + $0x70] sm:$0xff]  ;;  %s2521_s10 = smov (!%p134_p3, %s1428_s10), 1  ;;  %v1868_v6 = vld [vmem:[%s2516_s1 + $0x68] sm:$0xff]  ;;  %vm208_vm0 = vsmask.f32 7424 }
   0xc   : > { %v1878_v1 = vld [vmem:[%s2516_s1 + $0xb8] sm:$0xff]  ;;  %1972 = vmatpush.bf16.msra.mxu1 %v1870_v0  ;;  %292 = vmatpush.bf16.msra.mxu0 %v1870_v0  ;;  %v1877_v3 = vld [vmem:[%s2516_s1 + $0xb0] sm:$0xff]  ;;  %v1876_v7 = vld [vmem:[%s2516_s1 + $0xa8] sm:$0xff]  ;;  %s1988_s27 = smul.u32 48, %s2521_s10  ;;  %vm422_vm1 = vcmask 1046528   ;;  %vm1175_vm3 = vcmask 1045504  }
   0xd   : > { %484 = vmatpush.bf16.msra.mxu2 %v1878_v1  ;;  %v1886_v4 = vld [vmem:[%s2516_s1 + $0xf8] sm:$0xff]  ;;  %v1885_v5 = vld [vmem:[%s2516_s1 + $0xf0] sm:$0xff]  ;;  %v1884_v8 = vld [vmem:[%s2516_s1 + $0xe8] sm:$0xff]  ;;  %vm797_vm2 = vsmask.f32 6400  ;;  %vm1282_vm4 = vcmask 1043456  }
   0xe   : > { %625 = vmatpush.bf16.msra.mxu3 %v1886_v4  ;;  %v1867_v9 = vld [vmem:[%s2516_s1 + $0x60] sm:$0xff]  ;;  %s2068_s8 = scalar_lea.vmem %s2515_s0, %s1988_s27  ;;  %v1866_v12 = vld [vmem:[%s2516_s1 + $0x58] sm:$0xff]  ;;  %v1865_v16 = vld [vmem:[%s2516_s1 + $0x50] sm:$0xff]  ;;  %vm1283_vm5 = vsmask.f32 3328  ;;  %vm1293_vm7 = vcmask 1043459  }
   0xf   : > { %v1875_v10 = vld [vmem:[%s2516_s1 + $0xa0] sm:$0xff]  ;;  %v2077_v13 = vld [vmem:[%s2068_s8 + $0x10] sm:$0xff]   ;;  %v1874_v14 = vld [vmem:[%s2516_s1 + $0x98] sm:$0xff]  ;;  %vm1294_vm8 = vsmask.f32 7950  ;;  %vm1302_vm10 = vcmask 1041408  }
  0x10   : > { %1973 = vmatpush.bf16.msra.mxu1 %v1869_v2  ;;  %293 = vmatpush.bf16.msra.mxu0 %v1869_v2  ;;  %v1883_v11 = vld [vmem:[%s2516_s1 + $0xe0] sm:$0xff]  ;;  %v225_v17 = vshll.u32 %v2077_v13, 16  ;;  %v1882_v18 = vld [vmem:[%s2516_s1 + $0xd8] sm:$0xff]  ;;  %v2096_v20 = vld [vmem:[%s2068_s8 + $0x8] sm:$0xff]   ;;  %v229_v25 = vshrl.u32 %v2077_v13, 16  ;;  %vm1303_vm11 = vcmask 1045508  }
  0x11   : > { %485 = vmatpush.bf16.msra.mxu2 %v1877_v3  ;;  %v2083_v15 = vld [vmem:[%s2068_s8] sm:$0xff]   ;;  %v2093_v19 = vld [vmem:[%s2068_s8 + $0x18] sm:$0xff]   ;;  %v1873_v23 = vld [vmem:[%s2516_s1 + $0x90] sm:$0xff]  ;;  %v217_v27 = vshll.u32 %v2096_v20, 16  ;;  %v424_v47 = vrot.slane %v2096_v20, 1  ;;  %v221_v1 = vshrl.u32 %v2096_v20, 16 }
  0x12   : > { %626 = vmatpush.bf16.msra.mxu3 %v1885_v5  ;;  %v212_v21 = vshll.u32 %v2083_v15, 16  ;;  %v2100_v22 = vld [vmem:[%s2068_s8 + $0x4] sm:$0xff]   ;;  %v2107_v24 = vrot.slane %v225_v17, 1  ;;  %v233_v26 = vshll.u32 %v2093_v19, 16  ;;  %v1881_v28 = vld [vmem:[%s2516_s1 + $0xd0] sm:$0xff]  ;;  %v210_v30 = vshrl.u32 %v2083_v15, 16  ;;  %vm1284_vm6 = vmand %vm1282_vm4, %vm1283_vm5 }
  0x13   : > { %v1864_v29 = vld [vmem:[%s2516_s1 + $0x48] sm:$0xff]  ;;  %v545_v33 = vshll.u32 %v2100_v22, 16  ;;  %v219_v37 = vrot.slane %v217_v27, 1  ;;  %v1863_v39 = vld [vmem:[%s2516_s1 + $0x40] sm:$0xff]  ;;  %v543_v41 = vshrl.u32 %v2100_v22, 16  ;;  %v1862_v44 = vld [vmem:[%s2516_s1 + $0x38] sm:$0xff] }
  0x14   : > { %1974 = vmatpush.bf16.msra.mxu1 %v1868_v6  ;;  %294 = vmatpush.bf16.msra.mxu0 %v1868_v6  ;;  %v214_v31 = vrot.slane %v212_v21, 1  ;;  %v2120_v32 = vld [vmem:[%s2068_s8 + $0xc] sm:$0xff]   ;;  %v231_v35 = vor.u32 %v229_v25, %v2107_v24  ;;  %v2131_v36 = vrot.slane %v233_v26, 1  ;;  %v1871_v45 = vld [vmem:[%s2516_s1 + $0x80] sm:$0xff]  ;;  %v423_v46 = vrot.slane %v2083_v15, 1  ;;  %v1894_v48 = vld [vmem:[%s2516_s1 + $0x138] sm:$0xff] }
  0x15   : > { %486 = vmatpush.bf16.msra.mxu2 %v1876_v7  ;;  %v1872_v34 = vld [vmem:[%s2516_s1 + $0x88] sm:$0xff]  ;;  %v547_v42 = vrot.slane %v545_v33, 1  ;;  %v550_v43 = vshll.u32 %v2120_v32, 16  ;;  %v1910_v49 = vld [vmem:[%s2516_s1 + $0x1b8] sm:$0xff]  ;;  %v1879_v52 = vld [vmem:[%s2516_s1 + $0xc0] sm:$0xff]  ;;  %v237_v7 = vshrl.u32 %v2093_v19, 16 }
  0x16   : > { %627 = vmatpush.bf16.msra.mxu3 %v1884_v8  ;;  %v1880_v38 = vld [vmem:[%s2516_s1 + $0xc8] sm:$0xff]  ;;  %v215_v40 = vor.u32 %v214_v31, %v210_v30  ;;  %v236_v50 = vsel %vm208_vm0, %v231_v35, %v2131_v36  ;;  %v1861_v55 = vld [vmem:[%s2516_s1 + $0x30] sm:$0xff]  ;;  %v425_v56 = vsel %vm422_vm1, %v423_v46, %v424_v47  ;;  %v1918_v57 = vld [vmem:[%s2516_s1 + $0x1f8] sm:$0xff]  ;;  %v223_v8 = vor.u32 %v221_v1, %v219_v37 }
  0x17   : > { %v548_v53 = vor.u32 %v547_v42, %v543_v41  ;;  %v552_v54 = vrot.slane %v550_v43, 1  ;;  %v1893_v58 = vld [vmem:[%s2516_s1 + $0x130] sm:$0xff]  ;;  %v1860_v61 = vld [vmem:[%s2516_s1 + $0x28] sm:$0xff]  ;;  %v1859_v3 = vld [vmem:[%s2516_s1 + $0x20] sm:$0xff]  ;;  %v1942_v35 = vunpack.c.h.b16 %v2093_v19  ;;  %vm1312_vm12 = vcmask 1042432  }
  0x18   : > { %1975 = vmatpush.bf16.msra.mxu1 %v1867_v9  ;;  %295 = vmatpush.bf16.msra.mxu0 %v1867_v9  ;;  %v220_v51 = vsel %vm208_vm0, %v215_v40, %v219_v37  ;;  %v1909_v59 = vld [vmem:[%s2516_s1 + $0x1b0] sm:$0xff]  ;;  %v1892_v63 = vld [vmem:[%s2516_s1 + $0x128] sm:$0xff]  ;;  %v1891_v5 = vld [vmem:[%s2516_s1 + $0x120] sm:$0xff]  ;;  %v554_v9 = vshrl.u32 %v2120_v32, 16  ;;  %vm1313_vm13 = vsmask.f32 2304 }
  0x19   : > { %487 = vmatpush.bf16.msra.mxu2 %v1875_v10  ;;  %v553_v60 = vsel %vm208_vm0, %v548_v53, %v552_v54  ;;  %v1917_v62 = vld [vmem:[%s2516_s1 + $0x1f0] sm:$0xff]  ;;  %v1908_v0 = vld [vmem:[%s2516_s1 + $0x1a8] sm:$0xff]  ;;  %v1907_v6 = vld [vmem:[%s2516_s1 + $0x1a0] sm:$0xff]  ;;  %v2289_v53 = vrot.slane %v2093_v19, 1 }
  0x1a   : > { %628 = vmatpush.bf16.msra.mxu3 %v1883_v11  ;;  %v2199_v2 = vld [vmem:[%s2068_s8 + $0x14] sm:$0xff]   ;;  %v1916_v4 = vld [vmem:[%s2516_s1 + $0x1e8] sm:$0xff]  ;;  %v556_v21 = vor.u32 %v554_v9, %v552_v54  ;;  %v2243_v30 = vld [vmem:[%s2068_s8 + $0x20] sm:$0xff]  }
  0x1b   : > { %v558_v10 = vshll.u32 %v2199_v2, 16  ;;  %v1858_v11 = vld [vmem:[%s2516_s1 + $0x18] sm:$0xff]  ;;  %v1915_v37 = vld [vmem:[%s2516_s1 + $0x1e0] sm:$0xff]  ;;  %v1888_v40 = vld [vmem:[%s2516_s1 + $0x108] sm:$0xff] }
  0x1c   : > { %1976 = vmatpush.bf16.msra.mxu1 %v1866_v12  ;;  %296 = vmatpush.bf16.msra.mxu0 %v1866_v12  ;;  %v426_v12 = vrot.slane %v2077_v13, 1  ;;  %v1906_v31 = vld [vmem:[%s2516_s1 + $0x198] sm:$0xff]  ;;  %v1901_v54 = vld [vmem:[%s2516_s1 + $0x170] sm:$0xff]  ;;  %vm1295_vm9 = vmand %vm1293_vm7, %vm1294_vm8  ;;  %vm1343_vm8 = vcmask 1046532  }
  0x1d   : > { %488 = vmatpush.bf16.msra.mxu2 %v1874_v14  ;;  %v1890_v14 = vld [vmem:[%s2516_s1 + $0x118] sm:$0xff]  ;;  %vm2478_vm14 = vmor %vm1302_vm10, %vm1303_vm11 }
  0x1e   : > { %629 = vmatpush.bf16.msra.mxu3 %v1882_v18  ;;  %v228_v18 = vsel %vm208_vm0, %v223_v8, %v2107_v24  ;;  %v1889_v24 = vld [vmem:[%s2516_s1 + $0x110] sm:$0xff]  ;;  %v1914_v42 = vld [vmem:[%s2516_s1 + $0x1d8] sm:$0xff]  ;;  %vm1314_vm15 = vmand %vm1312_vm12, %vm1313_vm13 }
  0x1f   : > { %v1902_v46 = vld [vmem:[%s2516_s1 + $0x178] sm:$0xff]  ;;  %vm1344_vm11 = vmor %vm1312_vm12, %vm1343_vm8 }
  0x20   : > { %1977 = vmatpush.bf16.msra.mxu1 %v1865_v16  ;;  %297 = vmatpush.bf16.msra.mxu0 %v1865_v16  ;;  %v239_v16 = vor.u32 %v237_v7, %v2131_v36  ;;  %v1945_v36 = vunpack.c.l.b16 %v2243_v30  ;;  %v1898_v8 = vld [vmem:[%s2516_s1 + $0x158] sm:$0xff] }
  0x21   : > { %489 = vmatpush.bf16.msra.mxu2 %v1873_v23  ;;  %v560_v23 = vrot.slane %v558_v10, 1 }
  0x22   : > { %630 = vmatpush.bf16.msra.mxu3 %v1881_v28  ;;  %v1857_v28 = vld [vmem:[%s2516_s1 + $0x10] sm:$0xff] }
  0x24   : > { %1978 = vmatpush.bf16.msra.mxu1 %v1864_v29  ;;  %298 = vmatpush.bf16.msra.mxu0 %v1864_v29  ;;  %v2240_v29 = vsel %vm422_vm1, %v424_v47, %v426_v12  ;;  %v1887_v47 = vld [vmem:[%s2516_s1 + $0x100] sm:$0xff] }
  0x25   : > { %490 = vmatpush.bf16.msra.mxu2 %v1872_v34  ;;  %v561_v34 = vsel %vm208_vm0, %v556_v21, %v560_v23  ;;  %v802_v21 = vrot.slane %v550_v43, 2  ;;  %v1896_v43 = vld [vmem:[%s2516_s1 + $0x148] sm:$0xff] }
  0x26   : > { %631 = vmatpush.bf16.msra.mxu3 %v1880_v38  ;;  %v1856_v38 = vld [vmem:[%s2516_s1 + $0x8] sm:$0xff] }
  0x28   : > { %1979 = vmatpush.bf16.msra.mxu1 %v1863_v39  ;;  %299 = vmatpush.bf16.msra.mxu0 %v1863_v39  ;;  %v1905_v39 = vld [vmem:[%s2516_s1 + $0x190] sm:$0xff] }
  0x29   : > { %491 = vmatpush.bf16.msra.mxu2 %v1871_v45  ;;  %v1855_v45 = vld [vmem:[%s2516_s1] sm:$0xff] }
  0x2a   : > { %632 = vmatpush.bf16.msra.mxu3 %v1879_v52 }
  0x2b   : > { %310 = vmatmul.bf16.vlgmr.msra.gmra.mxu1 %v236_v50  ;;  %300 = vmatmul.bf16.vlgmr.msra.gmra.mxu0 %v220_v51  ;;  %v683_v50 = vrot.slane %v2120_v32, 1  ;;  %v562_v51 = vshrl.u32 %v2199_v2, 16  ;;  %v1922_v32 = vld [vmem:[%s2516_s1 + $0x218] sm:$0xff] }
  0x2c   : > { %373 = vmatpush.bf16.msrb.mxu1 %v1862_v44  ;;  %743 = vmatpush.bf16.msrb.mxu0 %v1894_v48  ;;  %v2270_v44 = vpack.c.b16 %v1945_v36, %v1942_v35  ;;  %v1926_v48 = vld [vmem:[%s2516_s1 + $0x238] sm:$0xff] }
  0x2d   : > { %986 = vmatpush.bf16.msrb.mxu2 %v1910_v49  ;;  %633 = vmatmul.bf16.vlgmr.msra.gmra.mxu3 %v553_v60  ;;  %v682_v49 = vrot.slane %v2100_v22, 1  ;;  %v1900_v60 = vld [vmem:[%s2516_s1 + $0x168] sm:$0xff] }
  0x2e   : > { %492 = vmatmul.bf16.vlgmr.msra.gmra.mxu2 %v425_v56  ;;  %1121 = vmatpush.bf16.msrb.mxu3 %v1918_v57  ;;  %v566_v52 = vshll.u32 %v2270_v44, 16  ;;  %v564_v56 = vor.u32 %v562_v51, %v560_v23  ;;  %v801_v23 = vrot.slane %v554_v9, 1  ;;  %v1911_v9 = vld [vmem:[%s2516_s1 + $0x1c0] sm:$0xff]  ;;  %v687_v22 = vrot.slane %v2270_v44, 1 }
  0x30   : > { %374 = vmatpush.bf16.msrb.mxu1 %v1861_v55  ;;  %744 = vmatpush.bf16.msrb.mxu0 %v1893_v58  ;;  %v684_v55 = vsel %vm422_vm1, %v682_v49, %v683_v50  ;;  %v568_v57 = vrot.slane %v566_v52, 1  ;;  %v1925_v58 = vld [vmem:[%s2516_s1 + $0x230] sm:$0xff]  ;;  %v803_v35 = vor.u32 %v802_v21, %v801_v23  ;;  %v806_v49 = vrot.slane %v558_v10, 2 }
  0x31   : > { %987 = vmatpush.bf16.msrb.mxu2 %v1909_v59  ;;  %v2304_v59 = vsel %vm422_vm1, %v426_v12, %v2289_v53  ;;  %v1052_v10 = vshrl.u32 %v2243_v30, 16 }
  0x32   : > { %1122 = vmatpush.bf16.msrb.mxu3 %v1917_v62  ;;  %v569_v62 = vsel %vm208_vm0, %v564_v56, %v568_v57  ;;  %vm1319_vm0 = vcmask 1040384  }
  0x34   : > { %375 = vmatpush.bf16.msrb.mxu1 %v1860_v61  ;;  %745 = vmatpush.bf16.msrb.mxu0 %v1892_v63  ;;  %v1904_v61 = vld [vmem:[%s2516_s1 + $0x188] sm:$0xff] }
  0x35   : > { %988 = vmatpush.bf16.msrb.mxu2 %v1908_v0  ;;  %v1924_v63 = vld [vmem:[%s2516_s1 + $0x228] sm:$0xff]  ;;  %v1913_v0 = vld [vmem:[%s2516_s1 + $0x1d0] sm:$0xff] }
  0x36   : > { %1123 = vmatpush.bf16.msrb.mxu3 %v1916_v4  ;;  %v1912_v4 = vld [vmem:[%s2516_s1 + $0x1c8] sm:$0xff] }
  0x38   : > { %376 = vmatpush.bf16.msrb.mxu1 %v1859_v3  ;;  %746 = vmatpush.bf16.msrb.mxu0 %v1891_v5  ;;  %v1903_v3 = vld [vmem:[%s2516_s1 + $0x180] sm:$0xff] }
  0x39   : > { %989 = vmatpush.bf16.msrb.mxu2 %v1907_v6  ;;  %v1923_v5 = vld [vmem:[%s2516_s1 + $0x220] sm:$0xff]  ;;  %v421_v6 = vpack.c.b16 %v1945_v36, %v1945_v36 }
  0x3a   : > { %1124 = vmatpush.bf16.msrb.mxu3 %v1915_v37  ;;  %v1895_v36 = vld [vmem:[%s2516_s1 + $0x140] sm:$0xff] }
  0x3b   : > { %315 = vmatmul.bf16.gmra.mxu1 %v239_v16  ;;  %305 = vmatmul.bf16.gmra.mxu0 %v228_v18  ;;  %v430_v12 = vrot.slane %v421_v6, 1  ;;  %v570_v16 = vshrl.u32 %v2270_v44, 16 }
  0x3c   : > { %377 = vmatpush.bf16.msrb.mxu1 %v1858_v11  ;;  %747 = vmatpush.bf16.msrb.mxu0 %v1890_v14  ;;  %v685_v11 = vrot.slane %v2199_v2, 1  ;;  %v1897_v14 = vld [vmem:[%s2516_s1 + $0x150] sm:$0xff] }
  0x3d   : > { %990 = vmatpush.bf16.msrb.mxu2 %v1906_v31  ;;  %638 = vmatmul.bf16.gmra.mxu3 %v561_v34  ;;  %v572_v31 = vor.u32 %v570_v16, %v568_v57  ;;  %v799_v34 = vrot.slane %v545_v33, 2  ;;  %v1040_v33 = vrot.slane %v221_v1, 1  ;;  %v805_v1 = vrot.slane %v562_v51, 1 }
  0x3e   : > { %497 = vmatmul.bf16.gmra.mxu2 %v2240_v29  ;;  %1125 = vmatpush.bf16.msrb.mxu3 %v1914_v42  ;;  %v686_v18 = vsel %vm422_vm1, %v683_v50, %v685_v11  ;;  %v1043_v42 = vrot.slane %v229_v25, 1  ;;  %v1946_v25 = vunpack.c.h.b16 %v2243_v30  ;;  %v1048_v57 = vrot.slane %v233_v26, 2 }
  0x3f   : > { %v807_v50 = vor.u32 %v806_v49, %v805_v1  ;;  %v1176_v26 = vrot.slane %v2096_v20, 2 }
  0x40   : > { %378 = vmatpush.bf16.msrb.mxu1 %v1857_v28  ;;  %748 = vmatpush.bf16.msrb.mxu0 %v1889_v24  ;;  %v431_v28 = vsel %vm422_vm1, %v2289_v53, %v430_v12  ;;  %v798_v24 = vrot.slane %v543_v41, 1  ;;  %v1921_v41 = vld [vmem:[%s2516_s1 + $0x210] sm:$0xff]  ;;  %v1179_v12 = vrot.slane %v2093_v19, 2 }
  0x41   : > { %991 = vmatpush.bf16.msrb.mxu2 %v1905_v39 }
  0x42   : > { %1126 = vmatpush.bf16.msrb.mxu3 %v1913_v0  ;;  %v800_v37 = vor.u32 %v799_v34, %v798_v24  ;;  %v932_v0 = vrot.slane %v2243_v30, 1 }
  0x44   : > { %379 = vmatpush.bf16.msrb.mxu1 %v1856_v38  ;;  %749 = vmatpush.bf16.msrb.mxu0 %v1888_v40  ;;  %v1920_v38 = vld [vmem:[%s2516_s1 + $0x208] sm:$0xff]  ;;  %v804_v39 = vsel %vm797_vm2, %v800_v37, %v803_v35  ;;  %v1041_v40 = vrot.slane %v217_v27, 2  ;;  %v1919_v27 = vld [vmem:[%s2516_s1 + $0x200] sm:$0xff]  ;;  %v933_v6 = vsel %vm422_vm1, %v2289_v53, %v932_v0 }
  0x45   : > { %992 = vmatpush.bf16.msrb.mxu2 %v1904_v61  ;;  %v1177_v61 = vrot.slane %v2077_v13, 2 }
  0x46   : > { %1127 = vmatpush.bf16.msrb.mxu3 %v1912_v4 }
  0x47   : > { %v1180_v24 = vsel %vm1175_vm3, %v1177_v61, %v1179_v12 }
  0x48   : > { %380 = vmatpush.bf16.msrb.mxu1 %v1855_v45  ;;  %750 = vmatpush.bf16.msrb.mxu0 %v1887_v47  ;;  %v1044_v45 = vrot.slane %v225_v17, 2  ;;  %v1042_v47 = vor.u32 %v1041_v40, %v1040_v33 }
  0x49   : > { %993 = vmatpush.bf16.msrb.mxu2 %v1903_v3  ;;  %v154_v3 = vld [vmem:[%s2068_s8 + $0x28] sm:$0xf]  ;;  %s1989_s8 = smul.u32 28, %s2521_s10 }
  0x4a   : > { %1128 = vmatpush.bf16.msrb.mxu3 %v1911_v9 }
  0x4b   : > { %381 = vmatmul.bf16.vlgmr.msrb.gmra.mxu1 %v2083_v15  ;;  %751 = vmatmul.bf16.vlgmr.msrb.gmra.mxu0 %v684_v55  ;;  %v1899_v15 = vld [vmem:[%s2516_s1 + $0x160] sm:$0xff]  ;;  %v808_v55 = vsel %vm797_vm2, %v803_v35, %v807_v50  ;;  %s2461_s7 = scalar_lea.vmem %s2517_s2, %s1989_s8 }
  0x4c   : > { %874 = vmatpush.bf16.msra.mxu1 %v1902_v46  ;;  %1237 = vmatpush.bf16.msra.mxu0 %v1926_v48  ;;  %v688_v46 = vsel %vm422_vm1, %v685_v11, %v687_v22 }
  0x4d   : > { %643 = vmatmul.bf16.gmra.mxu3 %v569_v62  ;;  %1980 = vmatpush.bf16.msra.mxu2 %v1926_v48  ;;  %v1045_v48 = vor.u32 %v1044_v45, %v1043_v42  ;;  %v1054_v62 = vrot.slane %v1052_v10, 1 }
  0x4e   : > { %502 = vmatmul.bf16.gmra.mxu2 %v2304_v59 }
  0x4f   : > { %v1046_v17 = vsel %vm797_vm2, %v1042_v47, %v1045_v48 }
  0x50   : > { %875 = vmatpush.bf16.msra.mxu1 %v1901_v54  ;;  %1238 = vmatpush.bf16.msra.mxu0 %v1925_v58  ;;  %v681_v54 = vpack.c.b16 %v1946_v25, %v1946_v25 }
  0x51   : > { %1981 = vmatpush.bf16.msra.mxu2 %v1925_v58 }
  0x52   : > { %v689_v56 = vrot.slane %v681_v54, 1  ;;  %v817_v21 = vshll.u32 %v681_v54, 16 }
  0x54   : > { %876 = vmatpush.bf16.msra.mxu1 %v1900_v60  ;;  %1239 = vmatpush.bf16.msra.mxu0 %v1924_v63  ;;  %v690_v51 = vsel %vm422_vm1, %v687_v22, %v689_v56  ;;  %v809_v60 = vrot.slane %v570_v16, 1 }
  0x55   : > { %1982 = vmatpush.bf16.msra.mxu2 %v1924_v63 }
  0x58   : > { %877 = vmatpush.bf16.msra.mxu1 %v1899_v15  ;;  %1240 = vmatpush.bf16.msra.mxu0 %v1923_v5  ;;  %v1178_v15 = vsel %vm1175_vm3, %v1176_v26, %v1177_v61 }
  0x59   : > { %1983 = vmatpush.bf16.msra.mxu2 %v1923_v5 }
  0x5b   : > { %386 = vmatmul.bf16.gmra.mxu1 %v2096_v20  ;;  %756 = vmatmul.bf16.gmra.mxu0 %v686_v18  ;;  %v814_v18 = vshrl.u32 %v681_v54, 16 }
  0x5c   : > { %878 = vmatpush.bf16.msra.mxu1 %v1898_v8  ;;  %1241 = vmatpush.bf16.msra.mxu0 %v1922_v32  ;;  %v929_v8 = vunpack.c.l.b16 %v154_v3 }
  0x5d   : > { %648 = vmatmul.bf16.gmra.mxu3 %v572_v31  ;;  %1984 = vmatpush.bf16.msra.mxu2 %v1922_v32  ;;  %v816_v53 = vrot.slane %v814_v18, 1 }
  0x5e   : > { %507 = vmatmul.bf16.gmra.mxu2 %v431_v28  ;;  %v931_v11 = vpack.c.b16 %v929_v8, %v929_v8  ;;  %v819_v28 = vrot.slane %v817_v21, 2 }
  0x60   : > { %879 = vmatpush.bf16.msra.mxu1 %v1897_v14  ;;  %1242 = vmatpush.bf16.msra.mxu0 %v1921_v41  ;;  %v1061_v44 = vshrl.u32 %v931_v11, 16  ;;  %v934_v23 = vrot.slane %v931_v11, 1  ;;  %v1183_v34 = vrot.slane %v931_v11, 2 }
  0x61   : > { %1985 = vmatpush.bf16.msra.mxu2 %v1921_v41  ;;  %v1181_v41 = vrot.slane %v2243_v30, 2 }
  0x62   : > { %v1063_v14 = vrot.slane %v1061_v44, 1  ;;  %v935_v32 = vsel %vm422_vm1, %v932_v0, %v934_v23  ;;  %vm1320_vm1 = vcmask 1044484  }
  0x63   : > { %v1182_v37 = vsel %vm1175_vm3, %v1179_v12, %v1181_v41  ;;  %vm1321_vm4 = vmor %vm1319_vm0, %vm1320_vm1 }
  0x64   : > { %880 = vmatpush.bf16.msra.mxu1 %v1896_v43  ;;  %1243 = vmatpush.bf16.msra.mxu0 %v1920_v38  ;;  %v820_v43 = vor.u32 %v819_v28, %v816_v53 }
  0x65   : > { %1986 = vmatpush.bf16.msra.mxu2 %v1920_v38  ;;  %v1184_v38 = vsel %vm1175_vm3, %v1181_v41, %v1183_v34  ;;  %vm1329_vm3 = vsmask.f32 7946 }
  0x68   : > { %881 = vmatpush.bf16.msra.mxu1 %v1895_v36  ;;  %1244 = vmatpush.bf16.msra.mxu0 %v1919_v27 }
  0x69   : > { %1987 = vmatpush.bf16.msra.mxu2 %v1919_v27 }
  0x6b   : > { %391 = vmatmul.bf16.gmra.mxu1 %v2077_v13  ;;  %761 = vmatmul.bf16.gmra.mxu0 %v688_v46 }
  0x6d   : > { %1129 = vmatmul.bf16.vlgmr.msrb.gmra.mxu3 %v1046_v17 }
  0x6e   : > { %994 = vmatmul.bf16.vlgmr.msrb.gmra.mxu2 %v2240_v29  ;;  %v1047_v29 = vrot.slane %v237_v7, 1  ;;  %v1055_v7 = vshll.u32 %v2243_v30, 16 }
  0x70   : > { %v1049_v58 = vor.u32 %v1048_v57, %v1047_v29  ;;  %v1057_v63 = vrot.slane %v1055_v7, 2 }
  0x72   : > { %v1050_v2 = vsel %vm797_vm2, %v1045_v48, %v1049_v58  ;;  %v1058_v4 = vor.u32 %v1057_v63, %v1054_v62 }
  0x74   : > { %v1059_v13 = vsel %vm797_vm2, %v1049_v58, %v1058_v4 }
  0x7b   : > { %396 = vmatmul.bf16.gmra.mxu1 %v2093_v19  ;;  %766 = vmatmul.bf16.gmra.mxu0 %v690_v51 }
  0x7d   : > { %1134 = vmatmul.bf16.gmra.mxu3 %v1050_v2 }
  0x7e   : > { %999 = vmatmul.bf16.gmra.mxu2 %v2304_v59  ;;  %v810_v59 = vrot.slane %v566_v52, 2  ;;  %v1064_v52 = vshll.u32 %v931_v11, 16 }
  0x80   : > { %v811_v5 = vor.u32 %v810_v59, %v809_v60  ;;  %v1066_v16 = vrot.slane %v1064_v52, 2 }
  0x82   : > { %v812_v20 = vsel %vm797_vm2, %v807_v50, %v811_v5  ;;  %v1067_v31 = vor.u32 %v1066_v16, %v1063_v14  ;;  %v821_v9 = vsel %vm797_vm2, %v811_v5, %v820_v43 }
  0x84   : > { %v1068_v19 = vsel %vm797_vm2, %v1058_v4, %v1067_v31  ;;  %vm1328_vm2 = vcmask 1043458  }
  0x85   : > { %vm1330_vm5 = vmand %vm1328_vm2, %vm1329_vm3 }
  0x8b   : > { %882 = vmatmul.bf16.vlgmr.msra.gmra.mxu1 %v804_v39  ;;  %1245 = vmatmul.bf16.vlgmr.msra.gmra.mxu0 %v1178_v15 }
  0x8d   : > { %1139 = vmatmul.bf16.gmra.mxu3 %v1059_v13 }
  0x8e   : > { %1004 = vmatmul.bf16.gmra.mxu2 %v933_v6 }
  0x9b   : > { %887 = vmatmul.bf16.gmra.mxu1 %v808_v55  ;;  %1250 = vmatmul.bf16.gmra.mxu0 %v1180_v24 }
  0x9d   : > { %1144 = vmatmul.bf16.gmra.mxu3 %v1068_v19 }
  0x9e   : > { %1009 = vmatmul.bf16.gmra.mxu2 %v935_v32 }
  0xa8   : > { %v311_v35 = vpop.f32.mrf.mxu1  ;;  %v301_v36 = vpop.f32.mrf.mxu0 }
  0xab   : > { %892 = vmatmul.bf16.gmra.mxu1 %v812_v20  ;;  %1255 = vmatmul.bf16.gmra.mxu0 %v1182_v37 }
  0xae   : > { %1260 = vmatmul.bf16.vlgmr.msra.gmra.mxu2 %v1184_v38 }
  0xb0   : > { %v313_v22 = vpop.f32.mrf.mxu1  ;;  %v303_v33 = vpop.f32.mrf.mxu0 }
  0xb1   : > { %v493_v39 = vpop.f32.mrf.mxu2  ;;  %v634_v40 = vpop.f32.mrf.mxu3 }
  0xb8   : > { %v316_v45 = vpop.f32.mrf.mxu1  ;;  %v306_v46 = vpop.f32.mrf.mxu0 }
  0xb9   : > { %v495_v42 = vpop.f32.mrf.mxu2  ;;  %v636_v47 = vpop.f32.mrf.mxu3 }
  0xbb   : > { %897 = vmatmul.bf16.gmra.mxu1 %v821_v9 }
  0xc0   : > { %v318_v48 = vpop.f32.mrf.mxu1  ;;  %v308_v27 = vpop.f32.mrf.mxu0 }
  0xc1   : > { %v498_v30 = vpop.f32.mrf.mxu2  ;;  %v2427_v25 = vpop.f32.mrf.mxu3 }
  0xc8   : > { %v382_v1 = vpop.f32.mrf.mxu1  ;;  %v752_v49 = vpop.f32.mrf.mxu0 }
  0xc9   : > { %v500_v17 = vpop.f32.mrf.mxu2  ;;  %v383_v50 = vadd.f32 %v382_v1, %v301_v36  ;;  %v2429_v55 = vpop.f32.mrf.mxu3 }
  0xcb   : > { %v513_v54 = vadd.f32 %v493_v39, %v383_v50 }
  0xcd   : > { %v654_v19 = vadd.f32 %v634_v40, %v513_v54 }
  0xcf   : > { %v772_v34 = vadd.f32 %v752_v49, %v654_v19 }
  0xd0   : > { %v384_v56 = vpop.f32.mrf.mxu1  ;;  %v754_v57 = vpop.f32.mrf.mxu0 }
  0xd1   : > { %v503_v29 = vpop.f32.mrf.mxu2  ;;  %v385_v51 = vadd.f32 %v384_v56, %v303_v33  ;;  %v2431_v2 = vpop.f32.mrf.mxu3 }
  0xd3   : > { %v514_v58 = vadd.f32 %v495_v42, %v385_v51 }
  0xd8   : > { %v387_v7 = vpop.f32.mrf.mxu1  ;;  %v757_v60 = vpop.f32.mrf.mxu0 }
  0xd9   : > { %v505_v10 = vpop.f32.mrf.mxu2  ;;  %v388_v26 = vadd.f32 %v387_v7, %v306_v46  ;;  %v2433_v63 = vpop.f32.mrf.mxu3  ;;  %v1285_v46 = vld [vmem:[%s2461_s7] sm:$0xf] }
  0xdb   : > { %v515_v61 = vadd.f32 %v498_v30, %v388_v26 }
  0xdd   : > { %v656_v1 = vadd.f32 %v2427_v25, %v515_v61 }
  0xdf   : > { %v774_v56 = vadd.f32 %v757_v60, %v656_v1 }
  0xe0   : > { %v389_v0 = vpop.f32.mrf.mxu1  ;;  %v2435_v59 = vpop.f32.mrf.mxu0 }
  0xe1   : > { %v508_v62 = vpop.f32.mrf.mxu2  ;;  %v390_v3 = vadd.f32 %v389_v0, %v308_v27  ;;  %v2439_v20 = vpop.f32.mrf.mxu3 }
  0xe3   : > { %v516_v15 = vadd.f32 %v500_v17, %v390_v3 }
  0xe5   : > { %v657_v26 = vadd.f32 %v2429_v55, %v516_v15 }
  0xe8   : > { %v392_v5 = vpop.f32.mrf.mxu1  ;;  %v2437_v6 = vpop.f32.mrf.mxu0 }
  0xe9   : > { %v510_v4 = vpop.f32.mrf.mxu2  ;;  %v393_v8 = vadd.f32 %v392_v5, %v311_v35  ;;  %v2447_v16 = vpop.f32.mrf.mxu3 }
  0xeb   : > { %v2441_v13 = vadd.f32 %v503_v29, %v393_v8  ;;  %v775_v8 = vadd.f32 %v2435_v59, %v657_v26 }
  0xed   : > { %v658_v55 = vadd.f32 %v2431_v2, %v2441_v13 }
  0xf0   : > { %v394_v44 = vpop.f32.mrf.mxu1  ;;  %v2443_v52 = vpop.f32.mrf.mxu0 }
  0xf1   : > { %v995_v11 = vpop.f32.mrf.mxu2  ;;  %v395_v12 = vadd.f32 %v394_v44, %v313_v22  ;;  %v1130_v24 = vpop.f32.mrf.mxu3  ;;  %v655_v22 = vadd.f32 %v636_v47, %v514_v58 }
  0xf3   : > { %v2445_v14 = vadd.f32 %v505_v10, %v395_v12  ;;  %v773_v40 = vadd.f32 %v754_v57, %v655_v22 }
  0xf5   : > { %v659_v2 = vadd.f32 %v2433_v63, %v2445_v14 }
  0xf8   : > { %v397_v21 = vpop.f32.mrf.mxu1  ;;  %v2449_v23 = vpop.f32.mrf.mxu0 }
  0xf9   : > { %v997_v18 = vpop.f32.mrf.mxu2  ;;  %v398_v53 = vadd.f32 %v397_v21, %v316_v45  ;;  %v1132_v35 = vpop.f32.mrf.mxu3 }
  0xfb   : > { %v2451_v28 = vadd.f32 %v508_v62, %v398_v53 }
 0x100   : > { %v399_v43 = vpop.f32.mrf.mxu1  ;;  %v2453_v32 = vpop.f32.mrf.mxu0 }
 0x101   : > { %v1000_v31 = vpop.f32.mrf.mxu2  ;;  %v400_v9 = vadd.f32 %v399_v43, %v318_v48  ;;  %v1135_v47 = vpop.f32.mrf.mxu3  ;;  %v776_v43 = vadd.f32 %v2437_v6, %v658_v55 }
 0x103   : > { %v2455_v41 = vadd.f32 %v510_v4, %v400_v9 }
 0x105   : > { %v661_v26 = vadd.f32 %v2447_v16, %v2455_v41 }
 0x108   : > { %v883_v36 = vpop.f32.mrf.mxu1  ;;  %v1246_v37 = vpop.f32.mrf.mxu0 }
 0x109   : > { %v903_v38 = vadd.f32 %v883_v36, %v772_v34  ;;  %v1002_v39 = vpop.f32.mrf.mxu2  ;;  %v1137_v0 = vpop.f32.mrf.mxu3 }
 0x10b   : > { %v1015_v33 = vadd.f32 %v995_v11, %v903_v38  ;;  %v1315_v38 = vld [vmem:[%s2461_s7 + $0x8] sm:$0x7] }
 0x10d   : > { %v1150_v42 = vadd.f32 %v1130_v24, %v1015_v33 }
 0x10f   : > { %v1266_v45 = vadd.f32 %v1246_v37, %v1150_v42  ;;  %v777_v42 = vadd.f32 %v2443_v52, %v659_v2  ;;  %v660_v52 = vadd.f32 %v2439_v20, %v2451_v28  ;;  %v1338_v20 = vld [vmem:[%s2461_s7 + $0x10] sm:$0x3] }
 0x110   : > { %v885_v30 = vpop.f32.mrf.mxu1  ;;  %v1248_v48 = vpop.f32.mrf.mxu0 }
 0x111   : > { %v1274_v27 = vpack.c.bf16 %v1266_v45, %v1266_v45  ;;  %v904_v17 = vadd.f32 %v885_v30, %v773_v40  ;;  %v1005_v54 = vpop.f32.mrf.mxu2 }
 0x113   : > { %v1286_v49 = vsel %vm1284_vm6, %v1274_v27, %v1285_v46  ;;  %v1016_v50 = vadd.f32 %v997_v18, %v904_v17  ;;  %vm1336_vm6 = vsmask.f32 1280 }
 0x114   : > { %1287 = vst [vmem:[%s2461_s7] sm:$0xf] %v1286_v49  ;;  %vm1337_vm7 = vmand %vm1302_vm10, %vm1336_vm6  ;;  %vm1353_vm10 = vsmask.f32 7942 }
 0x115   : > { %v1151_v29 = vadd.f32 %v1132_v35, %v1016_v50 }
 0x117   : > { %v1267_v51 = vadd.f32 %v1248_v48, %v1151_v29 }
 0x118   : > { %v888_v57 = vpop.f32.mrf.mxu1  ;;  %v1251_v58 = vpop.f32.mrf.mxu0 }
 0x119   : > { %v1275_v10 = vpack.c.bf16 %v1267_v51, %v1267_v51  ;;  %v905_v7 = vadd.f32 %v888_v57, %v774_v56  ;;  %v1007_v5 = vpop.f32.mrf.mxu2  ;;  %v778_v56 = vadd.f32 %v2449_v23, %v660_v52  ;;  %v779_v23 = vadd.f32 %v2453_v32, %v661_v26 }
 0x11b   : > { %v1289_v25 = vrot.slane %v1275_v10, 5  ;;  %v1296_v61 = vld [vmem:[%s2461_s7] sm:$0x8]  ;;  %v1017_v62 = vadd.f32 %v1000_v31, %v905_v7  ;;  %v1140_v31 = vpop.f32.mrf.mxu3 }
 0x11d   : > { %v1290_v3 = vrot.slane %v1289_v25, 4  ;;  %v1297_v4 = vsel %vm1295_vm9, %v1289_v25, %v1296_v61  ;;  %v1152_v60 = vadd.f32 %v1135_v47, %v1017_v62  ;;  %vm1352_vm9 = vcmask 1043457  }
 0x11e   : > { %1298 = vst [vmem:[%s2461_s7] sm:$0x8] %v1297_v4  ;;  %vm1354_vm13 = vmand %vm1352_vm9, %vm1353_vm10 }
 0x11f   : > { %1299 = vst [vmem:[%s2461_s7 + $0x4] sm:$0x7] %v1290_v3  ;;  %v1268_v11 = vadd.f32 %v1251_v58, %v1152_v60 }
 0x120   : > { %v890_v44 = vpop.f32.mrf.mxu1  ;;  %v1253_v12 = vpop.f32.mrf.mxu0 }
 0x121   : > { %v1276_v18 = vpack.c.bf16 %v1268_v11, %v1268_v11  ;;  %v906_v21 = vadd.f32 %v890_v44, %v775_v8  ;;  %v1010_v59 = vpop.f32.mrf.mxu2 }
 0x123   : > { %v1305_v15 = vrot.slane %v1276_v18, 6  ;;  %v1018_v53 = vadd.f32 %v1002_v39, %v906_v21  ;;  %v1142_v45 = vpop.f32.mrf.mxu3 }
 0x125   : > { %1311 = vst [vmem:[%s2461_s7 + $0x4] sm:$0x8] %v1305_v15  ;;  %v1153_v24 = vadd.f32 %v1137_v0, %v1018_v53  ;;  %v1306_v36 = vrot.slane %v1305_v15, 4 }
 0x127   : > { %v1269_v9 = vadd.f32 %v1253_v12, %v1153_v24 }
 0x128   : > { %v893_v19 = vpop.f32.mrf.mxu1  ;;  %v1256_v6 = vpop.f32.mrf.mxu0 }
 0x129   : > { %v1277_v34 = vpack.c.bf16 %v1269_v9, %v1269_v9  ;;  %v907_v35 = vadd.f32 %v893_v19, %v776_v43  ;;  %v1012_v27 = vpop.f32.mrf.mxu2  ;;  %v1370_v43 = vld [vmem:[%s2461_s7 + $0x18] sm:$0x1] }
 0x12b   : > { %v1307_v37 = vrot.slane %v1277_v34, 6  ;;  %v1019_v39 = vadd.f32 %v1005_v54, %v907_v35  ;;  %v1322_v63 = vrot.slane %v1277_v34, 7  ;;  %v1145_v7 = vpop.f32.mrf.mxu3 }
 0x12d   : > { %v1308_v22 = vsel %vm2478_vm14, %v1306_v36, %v1307_v37  ;;  %v1154_v33 = vadd.f32 %v1140_v31, %v1019_v39  ;;  %v1323_v17 = vrot.slane %v1322_v63, 4 }
 0x12e   : > { %v1316_v40 = vsel %vm1314_vm15, %v1308_v22, %v1315_v38  ;;  %vm1368_vm15 = vsmask.f32 256 }
 0x12f   : > { %1317 = vst [vmem:[%s2461_s7 + $0x8] sm:$0x7] %v1316_v40  ;;  %v1270_v14 = vadd.f32 %v1256_v6, %v1154_v33  ;;  %vm1369_vm12 = vmand %vm1319_vm0, %vm1368_vm15 }
 0x130   : > { %v895_v46 = vpop.f32.mrf.mxu1  ;;  %v1258_v49 = vpop.f32.mrf.mxu0 }
 0x131   : > { %v1278_v30 = vpack.c.bf16 %v1270_v14, %v1270_v14  ;;  %v908_v48 = vadd.f32 %v895_v46, %v777_v42  ;;  %v1261_v62 = vpop.f32.mrf.mxu2 }
 0x133   : > { %v1324_v47 = vrot.slane %v1278_v30, 7  ;;  %1335 = vst [vmem:[%s2461_s7 + $0xc] sm:$0xc] %v1278_v30  ;;  %v1020_v1 = vadd.f32 %v1007_v5, %v908_v48  ;;  %v1147_v11 = vpop.f32.mrf.mxu3 }
 0x135   : > { %v1325_v50 = vsel %vm1321_vm4, %v1323_v17, %v1324_v47  ;;  %v1155_v54 = vadd.f32 %v1142_v45, %v1020_v1 }
 0x136   : > { %v1331_v29 = vld [vmem:[%s2461_s7 + $0x8] sm:$0xc]  ;;  %1334 = vst [vmem:[%s2461_s7 + $0xc] sm:$0x3] %v1325_v50 }
 0x137   : > { %v1332_v51 = vsel %vm1330_vm5, %v1322_v63, %v1331_v29  ;;  %v1271_v57 = vadd.f32 %v1258_v49, %v1155_v54 }
 0x138   : > { %1333 = vst [vmem:[%s2461_s7 + $0x8] sm:$0xc] %v1332_v51  ;;  %v898_v28 = vpop.f32.mrf.mxu1 }
 0x139   : > { %v1279_v58 = vpack.c.bf16 %v1271_v57, %v1271_v57  ;;  %v909_v10 = vadd.f32 %v898_v28, %v778_v56  ;;  %v1263_v55 = vpop.f32.mrf.mxu2 }
 0x13b   : > { %v1339_v25 = vsel %vm1337_vm7, %v1279_v58, %v1338_v20  ;;  %v1021_v61 = vadd.f32 %v1010_v59, %v909_v10  ;;  %v1851_v16 = vrot.slane %v1279_v58, 9 }
 0x13c   : > { %1340 = vst [vmem:[%s2461_s7 + $0x10] sm:$0x3] %v1339_v25 }
 0x13d   : > { %v1156_v0 = vadd.f32 %v1145_v7, %v1021_v61 }
 0x13f   : > { %v1272_v3 = vadd.f32 %v1261_v62, %v1156_v0 }
 0x140   : > { %v900_v4 = vpop.f32.mrf.mxu1 }
 0x141   : > { %v1280_v60 = vpack.c.bf16 %v1272_v3, %v1272_v3  ;;  %v910_v5 = vadd.f32 %v900_v4, %v779_v23 }
 0x143   : > { %v1347_v41 = vrot.slane %v1280_v60, 5  ;;  %v1022_v8 = vadd.f32 %v1012_v27, %v910_v5  ;;  %v1355_v12 = vld [vmem:[%s2461_s7 + $0x10] sm:$0xe]  ;;  %v1852_v24 = vrot.slane %v1280_v60, 10 }
 0x145   : > { %v1348_v44 = vsel %vm1344_vm11, %v1851_v16, %v1347_v41  ;;  %v1349_v32 = vrot.slane %v1347_v41, 4  ;;  %v1157_v18 = vadd.f32 %v1147_v11, %v1022_v8 }
 0x146   : > { %v1356_v21 = vsel %vm1354_vm13, %v1348_v44, %v1355_v12 }
 0x147   : > { %1357 = vst [vmem:[%s2461_s7 + $0x10] sm:$0xe] %v1356_v21  ;;  %v1273_v15 = vadd.f32 %v1263_v55, %v1157_v18 }
 0x148   : > { %1358 = vst [vmem:[%s2461_s7 + $0x14] sm:$0x1] %v1349_v32 }
 0x149   : > { %v1281_v53 = vpack.c.bf16 %v1273_v15, %v1273_v15 }
 0x14b   : > { %v1362_v31 = vrot.slane %v1281_v53, 6 }
 0x14d   : > { %v1363_v9 = vsel %vm2478_vm14, %v1852_v24, %v1362_v31  ;;  %v1364_v59 = vrot.slane %v1362_v31, 4 }
 0x14e   : > { %1367 = vst [vmem:[%s2461_s7 + $0x14] sm:$0xe] %v1363_v9 }
 0x14f   : > { %v1371_v19 = vsel %vm1369_vm12, %v1364_v59, %v1370_v43 }
 0x150   : > { %1372 = vst [vmem:[%s2461_s7 + $0x18] sm:$0x1] %v1371_v19 }
 0x151 PF: > { %s12_s9 = sadd.s32 1, %s2004_s9  }
 0x152   : > { %p9_p4 = scmp.ge.s32.totalorder %s12_s9, 4  }
 0x154   :  { %11 = sbr.rel (!%p9_p4) target bundleno = 1 (0x1), region = 66 }

// kernel: _lambda_.87
= control target key start
LH: loop header
LB: loop body
LE: loop exit
PB: predicated region body
PF: predicated region fallthrough
CT: control target
= control target key end

     0   :  { %s272_s9 = smov 0   ;;  %s289_s0 = inlined_call_operand.vmem [shape: bf16[2,16,128], index: 0, kind: input, shape index: {}]   ;;  %s290_s1 = inlined_call_operand.vmem [shape: f32[2,128], index: 1, kind: input, shape index: {}]   ;;  %s291_s2 = inlined_call_operand.vmem [shape: bf16[2,16,128], index: 2, kind: output, shape index: {}]  }
   0x1 LB: > { %s217_s10 = sadd.s32 4294967295, %s255_s9   ;;  %p221_p0 = scmp.ge.s32.totalorder %s255_s9, 1  ;;  %s255_s9 = sphi %s272_s9, %s12_s9  }
   0x2   : > { %p112_p1 = scmp.lt.s32.totalorder %s255_s9, 3 }
   0x4   : > { %p113_p2 = pnand %p221_p0, %p112_p1 }
   0x5   : > { %p134_p3 = scmp.lt.s32.totalorder (!%p113_p2), %s217_s10, 1 }
   0x6   : > { %116 = sbr.rel (%p113_p2) target bundleno = 26 (0x1a), region = 28 }
   0xb   : > { %s293_s10 = smov (!%p134_p3, %s217_s10), 1  ;;  %v247_v0 = vld [vmem:[%s290_s1] ss:$0 sm:$0xff]  ;;  %v248_v4 = vld [vmem:[%s290_s1 + $0x1] ss:$0 sm:$0xff] }
   0xc   : > { %s228_s11 = sshll.u32 %s293_s10, 3 }
   0xd   : > { %s138_s14 = scalar_lea.vmem %s289_s0, %s228_s11  ;;  %s143_s21 = scalar_lea.vmem %s291_s2, %s228_s11 }
   0xe   : > { %v231_v1 = vld [vmem:[%s138_s14] sm:$0xff]  }
   0xf   : > { %v232_v2 = vunpack.c.l.bf16 %v231_v1  ;;  %v233_v3 = vunpack.c.h.bf16 %v231_v1 }
  0x11   : > { %v150_v5 = vsub.f32 %v232_v2, %v247_v0  ;;  %v151_v6 = vsub.f32 %v233_v3, %v247_v0 }
  0x13   : > { %v154_v7 = vmul.f32 %v248_v4, %v150_v5  ;;  %v155_v8 = vmul.f32 %v248_v4, %v151_v6 }
  0x15   : > { %v156_v9 = vmax.f32 %v154_v7, 0.0  ;;  %v157_v10 = vmax.f32 %v155_v8, 0.0 }
  0x17   : > { %v237_v11 = vpack.c.bf16 %v157_v10, %v156_v9 }
  0x19   : > { %238 = vst [vmem:[%s143_s21] sm:$0xff] %v237_v11  }
  0x1a PF: > { %s12_s9 = sadd.s32 1, %s255_s9  }
  0x1b   : > { %p9_p4 = scmp.ge.s32.totalorder %s12_s9, 4  }
  0x1d   :  { %11 = sbr.rel (!%p9_p4) target bundleno = 1 (0x1), region = 58 }

// kernel: _lambda_.94
= control target key start
LH: loop header
LB: loop body
LE: loop exit
PB: predicated region body
PF: predicated region fallthrough
CT: control target
= control target key end

     0   :  { %s251_s9 = smov 0   ;;  %s282_s0 = inlined_call_operand.vmem [shape: bf16[2,16,128], index: 0, kind: input, shape index: {}]   ;;  %s283_s1 = inlined_call_operand.vmem [shape: f32[2,128], index: 1, kind: input, shape index: {}]   ;;  %s284_s2 = inlined_call_operand.vmem [shape: bf16[2,16,128], index: 2, kind: output, shape index: {}]  }
   0x1 LB: > { %s215_s10 = sadd.s32 4294967295, %s253_s9   ;;  %p219_p0 = scmp.ge.s32.totalorder %s253_s9, 1  ;;  %s253_s9 = sphi %s251_s9, %s12_s9  }
   0x2   : > { %p112_p1 = scmp.lt.s32.totalorder %s253_s9, 3 }
   0x4   : > { %p113_p2 = pnand %p219_p0, %p112_p1 }
   0x5   : > { %p134_p3 = scmp.lt.s32.totalorder (!%p113_p2), %s215_s10, 1 }
   0x6   : > { %116 = sbr.rel (%p113_p2) target bundleno = 24 (0x18), region = 28 }
   0xb   : > { %s286_s10 = smov (!%p134_p3, %s215_s10), 1  ;;  %v245_v0 = vld [vmem:[%s283_s1] ss:$0 sm:$0xff]  ;;  %v246_v4 = vld [vmem:[%s283_s1 + $0x1] ss:$0 sm:$0xff] }
   0xc   : > { %s226_s11 = sshll.u32 %s286_s10, 3 }
   0xd   : > { %s138_s14 = scalar_lea.vmem %s282_s0, %s226_s11  ;;  %s143_s21 = scalar_lea.vmem %s284_s2, %s226_s11 }
   0xe   : > { %v229_v1 = vld [vmem:[%s138_s14] sm:$0xff]  }
   0xf   : > { %v230_v2 = vunpack.c.l.bf16 %v229_v1  ;;  %v231_v3 = vunpack.c.h.bf16 %v229_v1 }
  0x11   : > { %v150_v5 = vsub.f32 %v230_v2, %v245_v0  ;;  %v151_v6 = vsub.f32 %v231_v3, %v245_v0 }
  0x13   : > { %v154_v7 = vmul.f32 %v246_v4, %v150_v5  ;;  %v155_v8 = vmul.f32 %v246_v4, %v151_v6 }
  0x15   : > { %v235_v9 = vpack.c.bf16 %v155_v8, %v154_v7 }
  0x17   : > { %236 = vst [vmem:[%s143_s21] sm:$0xff] %v235_v9  }
  0x18 PF: > { %s12_s9 = sadd.s32 1, %s253_s9  }
  0x19   : > { %p9_p4 = scmp.ge.s32.totalorder %s12_s9, 4  }
  0x1b   :  { %11 = sbr.rel (!%p9_p4) target bundleno = 1 (0x1), region = 58 }

// kernel: _lambda_.96
= control target key start
LH: loop header
LB: loop body
LE: loop exit
PB: predicated region body
PF: predicated region fallthrough
CT: control target
= control target key end

     0   :  { %s349_s12 = smov 0   ;;  %s375_s0 = inlined_call_operand.vmem [shape: bf16[2,16,128], index: 0, kind: input, shape index: {}]   ;;  %s376_s1 = inlined_call_operand.vmem [shape: f32[2,128], index: 1, kind: input, shape index: {}]   ;;  %s377_s2 = inlined_call_operand.vmem [shape: bf16[2,16,128], index: 2, kind: input, shape index: {}]   ;;  %s378_s3 = inlined_call_operand.vmem [shape: bf16[2,16,128], index: 3, kind: output, shape index: {}]  }
   0x1 LB: > { %s282_s13 = sadd.s32 4294967295, %s327_s12   ;;  %p286_p0 = scmp.ge.s32.totalorder %s327_s12, 1  ;;  %s327_s12 = sphi %s349_s12, %s13_s12  }
   0x2   : > { %p147_p1 = scmp.lt.s32.totalorder %s327_s12, 3 }
   0x4   : > { %p148_p2 = pnand %p286_p0, %p147_p1 }
   0x5   : > { %p176_p3 = scmp.lt.s32.totalorder (!%p148_p2), %s282_s13, 1 }
   0x6   : > { %151 = sbr.rel (%p148_p2) target bundleno = 28 (0x1c), region = 32 }
   0xb   : > { %s380_s13 = smov (!%p176_p3, %s282_s13), 1  ;;  %v319_v0 = vld [vmem:[%s376_s1] ss:$0 sm:$0xff]  ;;  %v320_v5 = vld [vmem:[%s376_s1 + $0x1] ss:$0 sm:$0xff] }
   0xc   : > { %s295_s14 = sshll.u32 %s380_s13, 3 }
   0xd   : > { %s180_s17 = scalar_lea.vmem %s375_s0, %s295_s14  ;;  %s185_s20 = scalar_lea.vmem %s377_s2, %s295_s14 }
   0xe   : > { %v299_v1 = vld [vmem:[%s180_s17] sm:$0xff]   ;;  %s190_s27 = scalar_lea.vmem %s378_s3, %s295_s14 }
   0xf   : > { %v303_v2 = vld [vmem:[%s185_s20] sm:$0xff]   ;;  %v300_v3 = vunpack.c.l.bf16 %v299_v1  ;;  %v301_v4 = vunpack.c.h.bf16 %v299_v1 }
  0x10   : > { %v304_v8 = vunpack.c.l.bf16 %v303_v2  ;;  %v305_v9 = vunpack.c.h.bf16 %v303_v2 }
  0x11   : > { %v197_v6 = vsub.f32 %v300_v3, %v319_v0  ;;  %v198_v7 = vsub.f32 %v301_v4, %v319_v0 }
  0x13   : > { %v201_v10 = vmul.f32 %v320_v5, %v197_v6  ;;  %v202_v11 = vmul.f32 %v320_v5, %v198_v7 }
  0x15   : > { %v207_v12 = vadd.f32 %v304_v8, %v201_v10  ;;  %v208_v13 = vadd.f32 %v305_v9, %v202_v11 }
  0x17   : > { %v209_v14 = vmax.f32 %v207_v12, 0.0  ;;  %v210_v15 = vmax.f32 %v208_v13, 0.0 }
  0x19   : > { %v309_v16 = vpack.c.bf16 %v210_v15, %v209_v14 }
  0x1b   : > { %310 = vst [vmem:[%s190_s27] sm:$0xff] %v309_v16  }
  0x1c PF: > { %s13_s12 = sadd.s32 1, %s327_s12  }
  0x1d   : > { %p10_p4 = scmp.ge.s32.totalorder %s13_s12, 4  }
  0x1f   :  { %12 = sbr.rel (!%p10_p4) target bundleno = 1 (0x1), region = 65 }

// kernel: _lambda_.97
= control target key start
LH: loop header
LB: loop body
LE: loop exit
PB: predicated region body
PF: predicated region fallthrough
CT: control target
= control target key end

     0   :  { %8 = vsyncpa [#allocation3], 0  ;;  %s616_s0 = inlined_call_operand.vmem [shape: bf16[2,16,128], index: 0, kind: input, shape index: {}]   ;;  %s617_s1 = inlined_call_operand.vmem [shape: bf16[128,128], index: 1, kind: input, shape index: {}]   ;;  %s618_s2 = inlined_call_operand.vmem [shape: f32[1,128], index: 2, kind: input, shape index: {}]   ;;  %s619_s3 = inlined_call_operand.hbm [shape: f32[2,1,128], index: 3, kind: output, shape index: {}]  }
   0x1   :  { %10 = vsyncpa [#allocation3 + $0x1], 0  ;;  %s504_s12 = smov 0   ;;  %s506_s13 = smov 0  }
   0x2   :  { %s508_s14 = smov 0   ;;  %s510_s15 = smov 0  }
   0x3 LB: > { %s525_s16 = sadd.s32 4294967295, %s482_s15   ;;  %s328_s17 = sadd.s32 4294967294, %s482_s15   ;;  %s482_s15 = sphi %s510_s15, %s625_s15   ;;  %s478_s14 = sphi %s508_s14, %s624_s14   ;;  %s474_s13 = sphi %s506_s13, %s623_s13   ;;  %s470_s12 = sphi %s504_s12, %s622_s12  }
   0x4   : > { %s529_s18 = sadd.s32 1, %s482_s15   ;;  %s91_s19 = sadd.s32 1, %s478_s14 }
   0x5   : > { %s88_s20 = ssub.s32 %s482_s15, %s529_s18  ;;  %p101_p0 = scmp.ne.s32.totalorder %s478_s14, %s474_s13 }
   0x6   : > { %p89_p1 = scmp.eq.s32.totalorder %s88_s20, 0  ;;  %p102_p2 = scmp.eq.s32.totalorder %s525_s16, 1 }
   0x7   : > { %p107_p3 = scmp.ne.s32.totalorder %s474_s13, %s470_s12  ;;  %p108_p4 = scmp.eq.s32.totalorder %s328_s17, 1 }
   0x8   : > { %s540_s21 = scalar_select %p89_p1, %s478_s14, %s91_s19  }
   0x9   : > { %p542_p5 = por %p102_p2, %p101_p0  ;;  %p546_p6 = por %p108_p4, %p107_p3 }
   0xa   : > { %p331_p7 = scmp.ge.s32.totalorder %s482_s15, 1  ;;  %p140_p8 = scmp.lt.s32.totalorder %s482_s15, 3 }
   0xc   : > { %p141_p9 = pnand %p331_p7, %p140_p8 }
   0xd   : > { %p163_p10 = scmp.lt.s32.totalorder (!%p141_p9), %s525_s16, 1  ;;  %s161_s27 = sand.u32 (!%p141_p9), 1, %s474_s13  }
   0xe   : > { %144 = sbr.rel (%p141_p9) target bundleno = 185 (0xb9), region = 32  ;;  %s269_s30 = scalar_lea.hbm (!%p141_p9), %s619_s3, %s525_s16 }
   0xf   : > { %s162_s6 = scalar_lea.vmem (!%p141_p9), [#allocation2], %s161_s27  ;;  %s273_s8 = sshll.u32 (!%p141_p9), %s269_s30, 4  ;;  %s274_s8 = int_to_ptr.hbm [resolvable:$true] %s273_s8 }
  0x10   : > { %s271_s7 = sshll.u32 (!%p141_p9), %s162_s6, 4  ;;  %s261_s9 = scalar_lea.sflag (!%p141_p9), [#allocation3], %s161_s27  ;;  %s272_s7 = int_to_ptr.vmem [resolvable:$true] %s271_s7 }
  0x11   : > { %s434_s10 = sshra.s32 (!%p141_p9), %s274_s8, 4  ;;  %s440_s19 = scalar_lea.hbm (!%p141_p9), %s619_s3, 2  ;;  %s435_s10 = int_to_ptr.hbm [resolvable:$true] %s434_s10 }
  0x12   : > { %s436_s11 = scalar_lea.hbm (!%p141_p9), %s435_s10, 1  ;;  %p441_p0 = scmp.lt.s32.totalorder (!%p141_p9), %s435_s10, %s619_s3 }
  0x13   : > { %v376_v0 = vld [vmem:[%s617_s1 + $0x38] sm:$0xff]  ;;  %v375_v1 = vld [vmem:[%s617_s1 + $0x30] sm:$0xff]  ;;  %s164_s28 = scalar_select %p163_p10, %s525_s16, 1  ;;  %v374_v2 = vld [vmem:[%s617_s1 + $0x28] sm:$0xff] }
  0x14   : > { %246 = vmatpush.bf16.msra.mxu0 %v376_v0  ;;  %v373_v7 = vld [vmem:[%s617_s1 + $0x20] sm:$0xff]  ;;  %v372_v10 = vld [vmem:[%s617_s1 + $0x18] sm:$0xff]  ;;  %v371_v13 = vld [vmem:[%s617_s1 + $0x10] sm:$0xff]  ;;  %p437_p11 = scmp.ne.s32.totalorder %s435_s10, %s436_s11  ;;  %p442_p1 = scmp.lt.s32.totalorder %s440_s19, %s436_s11 }
  0x15   : > { %s368_s29 = sshll.u32 %s164_s28, 3  ;;  %v370_v16 = vld [vmem:[%s617_s1 + $0x8] sm:$0xff]  ;;  %v369_v18 = vld [vmem:[%s617_s1] sm:$0xff] }
  0x16   : > { %s167_s5 = scalar_lea.vmem %s616_s0, %s368_s29  ;;  %v197_v20 = vld [vmem:[%s618_s2] sm:$0x1]  ;;  %p438_p12 = pnand %p437_p11, %p542_p5 }
  0x17   : > { %v378_v3 = vld [vmem:[%s167_s5] sm:$0xff]   ;;  %p443_p2 = por %p442_p1, %p441_p0 }
  0x18   : > { %247 = vmatpush.bf16.msra.mxu0 %v375_v1  ;;  %v379_v4 = vunpack.c.l.bf16 %v378_v3  ;;  %v380_v5 = vunpack.c.h.bf16 %v378_v3  ;;  %p439_p13 = pneg %p438_p12 }
  0x1a   : > { %v172_v6 = vadd.f32 %v380_v5, %v379_v4  ;;  %p444_p3 = pnand %p443_p2, %p439_p13 }
  0x1c   : > { %248 = vmatpush.bf16.msra.mxu0 %v374_v2  ;;  %v173_v8 = vrot.slane %v172_v6, 4 }
  0x1e   : > { %v174_v9 = vadd.f32 %v173_v8, %v172_v6 }
  0x20   : > { %249 = vmatpush.bf16.msra.mxu0 %v373_v7  ;;  %v175_v11 = vrot.slane %v174_v9, 2 }
  0x22   : > { %v176_v12 = vadd.f32 %v175_v11, %v174_v9 }
  0x24   : > { %250 = vmatpush.bf16.msra.mxu0 %v372_v10  ;;  %v177_v14 = vrot.slane %v176_v12, 1 }
  0x26   : > { %v178_v15 = vadd.f32 %v177_v14, %v176_v12 }
  0x28   : > { %251 = vmatpush.bf16.msra.mxu0 %v371_v13  ;;  %v179_v17 = vmul.f32 0.0625, %v178_v15 }
  0x2a   : > { %v180_v19 = vpack.c.bf16 %v179_v17, %v179_v17 }
  0x2c   : > { %252 = vmatpush.bf16.msra.mxu0 %v370_v16 }
  0x30   : > { %253 = vmatpush.bf16.msra.mxu0 %v369_v18 }
  0x33   : > { %254 = vmatmul.bf16.vlgmr.msra.gmra.mxu0 %v180_v19 }
  0xb0   : > { %v255_v21 = vpop.f32.mrf.mxu0 }
  0xb1   : > { %v256_v22 = vadd.f32 %v255_v21, %v197_v20 }
  0xb3   : > { %259 = vst [vmem:[%s162_s6] sm:$0x1] %v256_v22 }
  0xb4   : > { %447 = shalt.err (!%p444_p3)
}
  0xb5   : > { %381 = dma.vmem_to_hbm [thread:$0]  (%p542_p5), %s272_s7, 16, %s274_s8, %s261_s9  }
  0xb8   : > { %v257_v23 = vpop.f32.mrf.mxu0 }
  0xb9 PF: > { %p387_p4 = scmp.ge.s32.totalorder %s482_s15, 2  ;;  %s285_s25 = sand.u32 1, %s470_s12  }
  0xba   : > { %s286_s26 = scalar_lea.sflag [#allocation3], %s285_s25 }
  0xbb   : > { %p384_p7 = pnand %p387_p4, %p546_p6 }
  0xbd   : > { %p385_p8 = pneg %p384_p7 }
  0xbf   : > { %465 = dma.done.wait (%p385_p8), %s286_s26, 16  }
  0xc0   : > { %467 = vsyncadd (%p385_p8), %s286_s26, 4294967280  ;;  %p13_p9 = scmp.ge.s32.totalorder %s529_s18, 4   ;;  %s622_s12 = smov %s474_s13 }
  0xc1   : > { %s623_s13 = smov %s478_s14  ;;  %s624_s14 = smov %s540_s21 }
  0xc2   : > { %s625_s15 = smov %s529_s18  ;;  %15 = sbr.rel (!%p13_p9) target bundleno = 3 (0x3), region = 67 }
  0xc7   :  { %291 = vsyncpa [#allocation3], 1 }
  0xc8   :  { %293 = vsyncpa [#allocation3 + $0x1], 1 }

// kernel: _lambda_.88
= control target key start
LH: loop header
LB: loop body
LE: loop exit
PB: predicated region body
PF: predicated region fallthrough
CT: control target
= control target key end

     0   :  { %s1635_s9 = smov 0   ;;  %s1935_s0 = inlined_call_operand.vmem [shape: bf16[2,42,128], index: 0, kind: input, shape index: {}]   ;;  %s1936_s1 = inlined_call_operand.vmem [shape: bf16[9,128,128], index: 1, kind: input, shape index: {}]   ;;  %s1937_s2 = inlined_call_operand.vmem [shape: bf16[2,16,128], index: 2, kind: output, shape index: {}]  }
   0x1 LB: > { %s1085_s10 = sadd.s32 4294967295, %s1618_s9   ;;  %p1089_p0 = scmp.ge.s32.totalorder %s1618_s9, 1  ;;  %s1618_s9 = sphi %s1635_s9, %s12_s9  }
   0x2   : > { %p112_p1 = scmp.lt.s32.totalorder %s1618_s9, 3 }
   0x4   : > { %p113_p2 = pnand %p1089_p0, %p112_p1 }
   0x5   : > { %p134_p3 = scmp.lt.s32.totalorder (!%p113_p2), %s1085_s10, 1 }
   0x6   : > { %116 = sbr.rel (%p113_p2) target bundleno = 249 (0xf9), region = 28 }
   0xb   : > { %v1529_v0 = vld [vmem:[%s1936_s1 + $0x78] sm:$0xff]  ;;  %v1528_v4 = vld [vmem:[%s1936_s1 + $0x70] sm:$0xff]  ;;  %s1939_s10 = smov (!%p134_p3, %s1085_s10), 1  ;;  %v1527_v8 = vld [vmem:[%s1936_s1 + $0x68] sm:$0xff]  ;;  %vm192_vm0 = vsmask.f32 7424 }
   0xc   : > { %v1521_v1 = vld [vmem:[%s1936_s1 + $0x38] sm:$0xff]  ;;  %258 = vmatpush.bf16.msra.mxu0 %v1529_v0  ;;  %v1520_v5 = vld [vmem:[%s1936_s1 + $0x30] sm:$0xff]  ;;  %v1519_v9 = vld [vmem:[%s1936_s1 + $0x28] sm:$0xff]  ;;  %s1603_s7 = smul.u32 24, %s1939_s10  ;;  %vm362_vm1 = vcmask 1046528   ;;  %vm454_vm2 = vcmask 1044480  }
   0xd   : > { %v1537_v2 = vld [vmem:[%s1936_s1 + $0xb8] sm:$0xff]  ;;  %327 = vmatpush.bf16.msra.mxu1 %v1521_v1  ;;  %v1536_v6 = vld [vmem:[%s1936_s1 + $0xb0] sm:$0xff]  ;;  %v1535_v10 = vld [vmem:[%s1936_s1 + $0xa8] sm:$0xff]  ;;  %vm546_vm3 = vsmask.f32 4352  ;;  %vm735_vm4 = vcmask 1045504  }
   0xe   : > { %v1545_v3 = vld [vmem:[%s1936_s1 + $0xf8] sm:$0xff]  ;;  %416 = vmatpush.bf16.msra.mxu2 %v1537_v2  ;;  %v1544_v7 = vld [vmem:[%s1936_s1 + $0xf0] sm:$0xff]  ;;  %v1543_v11 = vld [vmem:[%s1936_s1 + $0xe8] sm:$0xff]  ;;  %s1697_s20 = scalar_lea.vmem %s1935_s0, %s1603_s7  ;;  %vm827_vm5 = vsmask.f32 5376  ;;  %s1513_s3 = sshll.u32 %s1939_s10, 3 }
   0xf   : > { %508 = vmatpush.bf16.msra.mxu3 %v1545_v3  ;;  %v1526_v12 = vld [vmem:[%s1936_s1 + $0x60] sm:$0xff]  ;;  %v1525_v16 = vld [vmem:[%s1936_s1 + $0x58] sm:$0xff]  ;;  %v1524_v21 = vld [vmem:[%s1936_s1 + $0x50] sm:$0xff]  ;;  %s143_s6 = scalar_lea.vmem %s1937_s2, %s1513_s3  ;;  %vm1013_vm6 = vcmask 1042432   ;;  %vm1014_vm7 = vcmask 1046532  }
  0x10   : > { %259 = vmatpush.bf16.msra.mxu0 %v1528_v4  ;;  %v1518_v13 = vld [vmem:[%s1936_s1 + $0x20] sm:$0xff]  ;;  %v1517_v17 = vld [vmem:[%s1936_s1 + $0x18] sm:$0xff]  ;;  %v1516_v22 = vld [vmem:[%s1936_s1 + $0x10] sm:$0xff] }
  0x11   : > { %328 = vmatpush.bf16.msra.mxu1 %v1520_v5  ;;  %v1534_v14 = vld [vmem:[%s1936_s1 + $0xa0] sm:$0xff]  ;;  %v1533_v18 = vld [vmem:[%s1936_s1 + $0x98] sm:$0xff]  ;;  %v1532_v24 = vld [vmem:[%s1936_s1 + $0x90] sm:$0xff] }
  0x12   : > { %417 = vmatpush.bf16.msra.mxu2 %v1536_v6  ;;  %v1542_v15 = vld [vmem:[%s1936_s1 + $0xe0] sm:$0xff]  ;;  %v1541_v19 = vld [vmem:[%s1936_s1 + $0xd8] sm:$0xff]  ;;  %v1540_v25 = vld [vmem:[%s1936_s1 + $0xd0] sm:$0xff] }
  0x13   : > { %509 = vmatpush.bf16.msra.mxu3 %v1544_v7  ;;  %v1712_v20 = vld [vmem:[%s1697_s20] sm:$0xff]   ;;  %v1728_v26 = vld [vmem:[%s1697_s20 + $0x8] sm:$0xff]   ;;  %v1553_v44 = vld [vmem:[%s1936_s1 + $0x138] sm:$0xff] }
  0x14   : > { %260 = vmatpush.bf16.msra.mxu0 %v1527_v8  ;;  %v196_v23 = vshll.u32 %v1712_v20, 16  ;;  %v1523_v27 = vld [vmem:[%s1936_s1 + $0x48] sm:$0xff]  ;;  %v194_v29 = vshrl.u32 %v1712_v20, 16  ;;  %v201_v31 = vshll.u32 %v1728_v26, 16  ;;  %v1522_v34 = vld [vmem:[%s1936_s1 + $0x40] sm:$0xff]  ;;  %v363_v40 = vrot.slane %v1712_v20, 1  ;;  %vm1015_vm8 = vmor %vm1013_vm6, %vm1014_vm7 }
  0x15   : > { %329 = vmatpush.bf16.msra.mxu1 %v1519_v9  ;;  %v1515_v28 = vld [vmem:[%s1936_s1 + $0x8] sm:$0xff]  ;;  %v1514_v35 = vld [vmem:[%s1936_s1] sm:$0xff]  ;;  %v364_v41 = vrot.slane %v1728_v26, 1  ;;  %v455_v42 = vrot.slane %v1712_v20, 3  ;;  %v456_v43 = vrot.slane %v1728_v26, 3  ;;  %v1561_v45 = vld [vmem:[%s1936_s1 + $0x178] sm:$0xff]  ;;  %v1592_v63 = vunpack.c.l.b16 %v1728_v26 }
  0x16   : > { %418 = vmatpush.bf16.msra.mxu2 %v1535_v10  ;;  %v198_v30 = vrot.slane %v196_v23, 1  ;;  %v1531_v32 = vld [vmem:[%s1936_s1 + $0x88] sm:$0xff]  ;;  %v203_v37 = vrot.slane %v201_v31, 1  ;;  %v1530_v38 = vld [vmem:[%s1936_s1 + $0x80] sm:$0xff]  ;;  %v1569_v48 = vld [vmem:[%s1936_s1 + $0x1b8] sm:$0xff]  ;;  %v205_v62 = vshrl.u32 %v1728_v26, 16  ;;  %v1589_v2 = vunpack.c.h.b16 %v1712_v20 }
  0x17   : > { %510 = vmatpush.bf16.msra.mxu3 %v1543_v11  ;;  %v1539_v33 = vld [vmem:[%s1936_s1 + $0xc8] sm:$0xff]  ;;  %v1538_v39 = vld [vmem:[%s1936_s1 + $0xc0] sm:$0xff]  ;;  %v365_v47 = vsel %vm362_vm1, %v363_v40, %v364_v41  ;;  %v457_v49 = vsel %vm454_vm2, %v455_v42, %v456_v43  ;;  %v1577_v50 = vld [vmem:[%s1936_s1 + $0x1f8] sm:$0xff]  ;;  %v1826_v3 = vunpack.c.h.b16 %v1728_v26  ;;  %v276_v8 = vpack.c.b16 %v1592_v63, %v1592_v63 }
  0x18   : > { %261 = vmatpush.bf16.msra.mxu0 %v1526_v12  ;;  %v199_v36 = vor.u32 %v198_v30, %v194_v29  ;;  %v1552_v51 = vld [vmem:[%s1936_s1 + $0x130] sm:$0xff]  ;;  %v1551_v55 = vld [vmem:[%s1936_s1 + $0x128] sm:$0xff]  ;;  %v1550_v59 = vld [vmem:[%s1936_s1 + $0x120] sm:$0xff]  ;;  %v207_v7 = vor.u32 %v205_v62, %v203_v37  ;;  %v1834_v9 = vpack.c.b16 %v1592_v63, %v1589_v2  ;;  %v551_v30 = vrot.slane %v201_v31, 4 }
  0x19   : > { %330 = vmatpush.bf16.msra.mxu1 %v1518_v13  ;;  %v1560_v52 = vld [vmem:[%s1936_s1 + $0x170] sm:$0xff]  ;;  %v1559_v56 = vld [vmem:[%s1936_s1 + $0x168] sm:$0xff]  ;;  %v1558_v60 = vld [vmem:[%s1936_s1 + $0x160] sm:$0xff] }
  0x1a   : > { %419 = vmatpush.bf16.msra.mxu2 %v1534_v14  ;;  %v204_v46 = vsel %vm192_vm0, %v199_v36, %v203_v37  ;;  %v1568_v53 = vld [vmem:[%s1936_s1 + $0x1b0] sm:$0xff]  ;;  %v1567_v57 = vld [vmem:[%s1936_s1 + $0x1a8] sm:$0xff]  ;;  %v1566_v0 = vld [vmem:[%s1936_s1 + $0x1a0] sm:$0xff]  ;;  %v736_v40 = vrot.slane %v1834_v9, 2 }
  0x1b   : > { %511 = vmatpush.bf16.msra.mxu3 %v1542_v15  ;;  %v1576_v54 = vld [vmem:[%s1936_s1 + $0x1f0] sm:$0xff]  ;;  %v1575_v58 = vld [vmem:[%s1936_s1 + $0x1e8] sm:$0xff]  ;;  %v1574_v1 = vld [vmem:[%s1936_s1 + $0x1e0] sm:$0xff] }
  0x1c   : > { %262 = vmatpush.bf16.msra.mxu0 %v1525_v16  ;;  %v148_v61 = vld [vmem:[%s1697_s20 + $0x10] sm:$0xf]  ;;  %v1549_v5 = vld [vmem:[%s1936_s1 + $0x118] sm:$0xff] }
  0x1d   : > { %331 = vmatpush.bf16.msra.mxu1 %v1517_v17  ;;  %v733_v4 = vunpack.c.l.b16 %v148_v61  ;;  %v1557_v6 = vld [vmem:[%s1936_s1 + $0x158] sm:$0xff]  ;;  %v1548_v13 = vld [vmem:[%s1936_s1 + $0x110] sm:$0xff]  ;;  %v829_v17 = vshrl.u32 %v1834_v9, 16 }
  0x1e   : > { %420 = vmatpush.bf16.msra.mxu2 %v1533_v18  ;;  %v1565_v10 = vld [vmem:[%s1936_s1 + $0x198] sm:$0xff]  ;;  %v1556_v14 = vld [vmem:[%s1936_s1 + $0x150] sm:$0xff]  ;;  %v832_v18 = vshll.u32 %v1834_v9, 16 }
  0x1f   : > { %512 = vmatpush.bf16.msra.mxu3 %v1541_v19  ;;  %v1573_v11 = vld [vmem:[%s1936_s1 + $0x1d8] sm:$0xff]  ;;  %v1843_v12 = vpack.c.b16 %v733_v4, %v1826_v3  ;;  %v1564_v15 = vld [vmem:[%s1936_s1 + $0x190] sm:$0xff] }
  0x20   : > { %263 = vmatpush.bf16.msra.mxu0 %v1524_v21  ;;  %v1572_v16 = vld [vmem:[%s1936_s1 + $0x1d0] sm:$0xff]  ;;  %v1585_v26 = vld [vmem:[%s1936_s1 + $0x238] sm:$0xff] }
  0x21   : > { %332 = vmatpush.bf16.msra.mxu1 %v1516_v22  ;;  %v837_v19 = vshrl.u32 %v1843_v12, 16  ;;  %v840_v21 = vshll.u32 %v1843_v12, 16  ;;  %v1547_v22 = vld [vmem:[%s1936_s1 + $0x108] sm:$0xff] }
  0x22   : > { %421 = vmatpush.bf16.msra.mxu2 %v1532_v24  ;;  %v1555_v24 = vld [vmem:[%s1936_s1 + $0x148] sm:$0xff] }
  0x23   : > { %513 = vmatpush.bf16.msra.mxu3 %v1540_v25  ;;  %v550_v25 = vrot.slane %v205_v62, 3  ;;  %v839_v36 = vrot.slane %v837_v19, 2 }
  0x24   : > { %264 = vmatpush.bf16.msra.mxu0 %v1523_v27  ;;  %v547_v27 = vrot.slane %v194_v29, 3  ;;  %v842_v29 = vrot.slane %v840_v21, 3 }
  0x25   : > { %333 = vmatpush.bf16.msra.mxu1 %v1515_v28  ;;  %v548_v28 = vrot.slane %v196_v23, 4  ;;  %v1554_v23 = vld [vmem:[%s1936_s1 + $0x140] sm:$0xff]  ;;  %v552_v37 = vor.u32 %v551_v30, %v550_v25 }
  0x26   : > { %422 = vmatpush.bf16.msra.mxu2 %v1531_v32  ;;  %v1563_v32 = vld [vmem:[%s1936_s1 + $0x188] sm:$0xff] }
  0x27   : > { %514 = vmatpush.bf16.msra.mxu3 %v1539_v33  ;;  %v1571_v33 = vld [vmem:[%s1936_s1 + $0x1c8] sm:$0xff]  ;;  %v549_v31 = vor.u32 %v548_v28, %v547_v27 }
  0x28   : > { %265 = vmatpush.bf16.msra.mxu0 %v1522_v34  ;;  %v831_v34 = vrot.slane %v829_v17, 2 }
  0x29   : > { %334 = vmatpush.bf16.msra.mxu1 %v1514_v35  ;;  %v834_v35 = vrot.slane %v832_v18, 3 }
  0x2a   : > { %423 = vmatpush.bf16.msra.mxu2 %v1530_v38  ;;  %v1562_v38 = vld [vmem:[%s1936_s1 + $0x180] sm:$0xff] }
  0x2b   : > { %515 = vmatpush.bf16.msra.mxu3 %v1538_v39  ;;  %266 = vmatmul.bf16.vlgmr.msra.gmra.mxu0 %v204_v46  ;;  %v1570_v39 = vld [vmem:[%s1936_s1 + $0x1c0] sm:$0xff]  ;;  %v835_v42 = vor.u32 %v834_v35, %v831_v34 }
  0x2c   : > { %604 = vmatpush.bf16.msrb.mxu0 %v1553_v44  ;;  %335 = vmatmul.bf16.vlgmr.msra.gmra.mxu1 %v1712_v20  ;;  %v1546_v20 = vld [vmem:[%s1936_s1 + $0x100] sm:$0xff]  ;;  %v553_v44 = vsel %vm546_vm3, %v549_v31, %v552_v37 }
  0x2d   : > { %694 = vmatpush.bf16.msrb.mxu1 %v1561_v45  ;;  %424 = vmatmul.bf16.vlgmr.msra.gmra.mxu2 %v365_v47  ;;  %v1584_v47 = vld [vmem:[%s1936_s1 + $0x230] sm:$0xff] }
  0x2e   : > { %516 = vmatmul.bf16.vlgmr.msra.gmra.mxu3 %v457_v49  ;;  %789 = vmatpush.bf16.msrb.mxu2 %v1569_v48  ;;  %v1583_v48 = vld [vmem:[%s1936_s1 + $0x228] sm:$0xff]  ;;  %v1582_v49 = vld [vmem:[%s1936_s1 + $0x220] sm:$0xff] }
  0x2f   : > { %895 = vmatpush.bf16.msrb.mxu3 %v1577_v50  ;;  %v1581_v50 = vld [vmem:[%s1936_s1 + $0x218] sm:$0xff] }
  0x30   : > { %605 = vmatpush.bf16.msrb.mxu0 %v1552_v51  ;;  %v643_v51 = vpack.c.b16 %v1826_v3, %v1826_v3 }
  0x31   : > { %695 = vmatpush.bf16.msrb.mxu1 %v1560_v52  ;;  %v1580_v52 = vld [vmem:[%s1936_s1 + $0x210] sm:$0xff] }
  0x32   : > { %790 = vmatpush.bf16.msrb.mxu2 %v1568_v53  ;;  %v1579_v53 = vld [vmem:[%s1936_s1 + $0x208] sm:$0xff] }
  0x33   : > { %896 = vmatpush.bf16.msrb.mxu3 %v1576_v54  ;;  %v1578_v54 = vld [vmem:[%s1936_s1 + $0x200] sm:$0xff] }
  0x34   : > { %606 = vmatpush.bf16.msrb.mxu0 %v1551_v55  ;;  %v933_v55 = vrot.slane %v1834_v9, 3 }
  0x35   : > { %696 = vmatpush.bf16.msrb.mxu1 %v1559_v56  ;;  %v934_v56 = vrot.slane %v1843_v12, 3 }
  0x36   : > { %791 = vmatpush.bf16.msrb.mxu2 %v1567_v57 }
  0x37   : > { %897 = vmatpush.bf16.msrb.mxu3 %v1575_v58  ;;  %v935_v57 = vsel %vm454_vm2, %v933_v55, %v934_v56 }
  0x38   : > { %607 = vmatpush.bf16.msrb.mxu0 %v1550_v59 }
  0x39   : > { %697 = vmatpush.bf16.msrb.mxu1 %v1558_v60 }
  0x3a   : > { %792 = vmatpush.bf16.msrb.mxu2 %v1566_v0 }
  0x3b   : > { %898 = vmatpush.bf16.msrb.mxu3 %v1574_v1  ;;  %271 = vmatmul.bf16.gmra.mxu0 %v207_v7 }
  0x3c   : > { %608 = vmatpush.bf16.msrb.mxu0 %v1549_v5  ;;  %340 = vmatmul.bf16.gmra.mxu1 %v276_v8 }
  0x3d   : > { %698 = vmatpush.bf16.msrb.mxu1 %v1557_v6  ;;  %429 = vmatmul.bf16.gmra.mxu2 %v364_v41  ;;  %v737_v41 = vrot.slane %v1843_v12, 2 }
  0x3e   : > { %521 = vmatmul.bf16.gmra.mxu3 %v456_v43  ;;  %793 = vmatpush.bf16.msrb.mxu2 %v1565_v10  ;;  %v843_v43 = vor.u32 %v842_v29, %v839_v36 }
  0x3f   : > { %899 = vmatpush.bf16.msrb.mxu3 %v1573_v11  ;;  %v738_v45 = vsel %vm735_vm4, %v736_v40, %v737_v41 }
  0x40   : > { %609 = vmatpush.bf16.msrb.mxu0 %v1548_v13  ;;  %v844_v46 = vsel %vm827_vm5, %v835_v42, %v843_v43 }
  0x41   : > { %699 = vmatpush.bf16.msrb.mxu1 %v1556_v14 }
  0x42   : > { %794 = vmatpush.bf16.msrb.mxu2 %v1564_v15 }
  0x43   : > { %900 = vmatpush.bf16.msrb.mxu3 %v1572_v16 }
  0x44   : > { %610 = vmatpush.bf16.msrb.mxu0 %v1547_v22 }
  0x45   : > { %700 = vmatpush.bf16.msrb.mxu1 %v1555_v24 }
  0x46   : > { %795 = vmatpush.bf16.msrb.mxu2 %v1563_v32 }
  0x47   : > { %901 = vmatpush.bf16.msrb.mxu3 %v1571_v33 }
  0x48   : > { %611 = vmatpush.bf16.msrb.mxu0 %v1546_v20 }
  0x49   : > { %701 = vmatpush.bf16.msrb.mxu1 %v1554_v23 }
  0x4a   : > { %796 = vmatpush.bf16.msrb.mxu2 %v1562_v38 }
  0x4b   : > { %902 = vmatpush.bf16.msrb.mxu3 %v1570_v39  ;;  %612 = vmatmul.bf16.vlgmr.msrb.gmra.mxu0 %v553_v44 }
  0x4c   : > { %986 = vmatpush.bf16.msra.mxu0 %v1585_v26  ;;  %702 = vmatmul.bf16.vlgmr.msrb.gmra.mxu1 %v1834_v9 }
  0x4d   : > { %1595 = vmatpush.bf16.msra.mxu1 %v1585_v26  ;;  %797 = vmatmul.bf16.vlgmr.msrb.gmra.mxu2 %v738_v45 }
  0x4e   : > { %903 = vmatmul.bf16.vlgmr.msrb.gmra.mxu3 %v844_v46 }
  0x50   : > { %987 = vmatpush.bf16.msra.mxu0 %v1584_v47 }
  0x51   : > { %1596 = vmatpush.bf16.msra.mxu1 %v1584_v47 }
  0x54   : > { %988 = vmatpush.bf16.msra.mxu0 %v1583_v48 }
  0x55   : > { %1597 = vmatpush.bf16.msra.mxu1 %v1583_v48 }
  0x58   : > { %989 = vmatpush.bf16.msra.mxu0 %v1582_v49 }
  0x59   : > { %1598 = vmatpush.bf16.msra.mxu1 %v1582_v49 }
  0x5b   : > { %617 = vmatmul.bf16.gmra.mxu0 %v552_v37 }
  0x5c   : > { %990 = vmatpush.bf16.msra.mxu0 %v1581_v50  ;;  %707 = vmatmul.bf16.gmra.mxu1 %v643_v51 }
  0x5d   : > { %1599 = vmatpush.bf16.msra.mxu1 %v1581_v50  ;;  %802 = vmatmul.bf16.gmra.mxu2 %v737_v41 }
  0x5e   : > { %908 = vmatmul.bf16.gmra.mxu3 %v843_v43 }
  0x60   : > { %991 = vmatpush.bf16.msra.mxu0 %v1580_v52 }
  0x61   : > { %1600 = vmatpush.bf16.msra.mxu1 %v1580_v52 }
  0x64   : > { %992 = vmatpush.bf16.msra.mxu0 %v1579_v53 }
  0x65   : > { %1601 = vmatpush.bf16.msra.mxu1 %v1579_v53 }
  0x68   : > { %993 = vmatpush.bf16.msra.mxu0 %v1578_v54 }
  0x69   : > { %1602 = vmatpush.bf16.msra.mxu1 %v1578_v54 }
  0x6b   : > { %994 = vmatmul.bf16.vlgmr.msra.gmra.mxu0 %v935_v57 }
  0x6c   : > { %999 = vmatmul.bf16.vlgmr.msra.gmra.mxu1 %v934_v56 }
  0xa8   : > { %v267_v58 = vpop.f32.mrf.mxu0 }
  0xa9   : > { %v336_v59 = vpop.f32.mrf.mxu1 }
  0xaa   : > { %v337_v16 = vadd.f32 %v336_v59, %v267_v58 }
  0xb0   : > { %v425_v60 = vpop.f32.mrf.mxu2  ;;  %v269_v62 = vpop.f32.mrf.mxu0 }
  0xb1   : > { %v517_v61 = vpop.f32.mrf.mxu3  ;;  %v338_v63 = vpop.f32.mrf.mxu1  ;;  %v434_v18 = vadd.f32 %v425_v60, %v337_v16 }
  0xb2   : > { %v339_v30 = vadd.f32 %v338_v63, %v269_v62 }
  0xb3   : > { %v526_v27 = vadd.f32 %v517_v61, %v434_v18 }
  0xb8   : > { %v427_v0 = vpop.f32.mrf.mxu2  ;;  %v272_v2 = vpop.f32.mrf.mxu0 }
  0xb9   : > { %v519_v1 = vpop.f32.mrf.mxu3  ;;  %v341_v3 = vpop.f32.mrf.mxu1  ;;  %v435_v34 = vadd.f32 %v427_v0, %v339_v30 }
  0xba   : > { %v342_v17 = vadd.f32 %v341_v3, %v272_v2 }
  0xbb   : > { %v527_v31 = vadd.f32 %v519_v1, %v435_v34 }
  0xc0   : > { %v430_v4 = vpop.f32.mrf.mxu2  ;;  %v274_v6 = vpop.f32.mrf.mxu0 }
  0xc1   : > { %v522_v5 = vpop.f32.mrf.mxu3  ;;  %v343_v7 = vpop.f32.mrf.mxu1  ;;  %v436_v19 = vadd.f32 %v430_v4, %v342_v17 }
  0xc3   : > { %v528_v28 = vadd.f32 %v522_v5, %v436_v19 }
  0xc8   : > { %v432_v8 = vpop.f32.mrf.mxu2  ;;  %v613_v10 = vpop.f32.mrf.mxu0 }
  0xc9   : > { %v524_v9 = vpop.f32.mrf.mxu3  ;;  %v703_v11 = vpop.f32.mrf.mxu1  ;;  %v622_v32 = vadd.f32 %v613_v10, %v526_v27 }
  0xcb   : > { %v712_v23 = vadd.f32 %v703_v11, %v622_v32 }
  0xd0   : > { %v798_v12 = vpop.f32.mrf.mxu2  ;;  %v615_v14 = vpop.f32.mrf.mxu0 }
  0xd1   : > { %v904_v13 = vpop.f32.mrf.mxu3  ;;  %v705_v15 = vpop.f32.mrf.mxu1  ;;  %v807_v37 = vadd.f32 %v798_v12, %v712_v23  ;;  %v623_v39 = vadd.f32 %v615_v14, %v527_v31 }
  0xd3   : > { %v913_v40 = vadd.f32 %v904_v13, %v807_v37  ;;  %v713_v46 = vadd.f32 %v705_v15, %v623_v39 }
  0xd8   : > { %v800_v21 = vpop.f32.mrf.mxu2  ;;  %v618_v24 = vpop.f32.mrf.mxu0 }
  0xd9   : > { %v906_v22 = vpop.f32.mrf.mxu3  ;;  %v708_v25 = vpop.f32.mrf.mxu1  ;;  %v624_v33 = vadd.f32 %v618_v24, %v528_v28  ;;  %v808_v49 = vadd.f32 %v800_v21, %v713_v46 }
  0xdb   : > { %v714_v26 = vadd.f32 %v708_v25, %v624_v33  ;;  %v914_v53 = vadd.f32 %v906_v22, %v808_v49 }
  0xe0   : > { %v803_v35 = vpop.f32.mrf.mxu2  ;;  %v620_v29 = vpop.f32.mrf.mxu0 }
  0xe1   : > { %v909_v36 = vpop.f32.mrf.mxu3  ;;  %v710_v20 = vpop.f32.mrf.mxu1  ;;  %v809_v38 = vadd.f32 %v803_v35, %v714_v26 }
  0xe3   : > { %v915_v41 = vadd.f32 %v909_v36, %v809_v38 }
  0xe8   : > { %v805_v42 = vpop.f32.mrf.mxu2  ;;  %v995_v44 = vpop.f32.mrf.mxu0 }
  0xe9   : > { %v911_v43 = vpop.f32.mrf.mxu3  ;;  %v1000_v45 = vpop.f32.mrf.mxu1  ;;  %v1004_v47 = vadd.f32 %v995_v44, %v913_v40 }
  0xea   : > { %v1006_v48 = vadd.f32 %v1000_v45, %v915_v41 }
  0xeb   : > { %v1007_v50 = vpack.c.bf16 %v1004_v47, %v1004_v47 }
  0xec   : > { %v1009_v51 = vpack.c.bf16 %v1006_v48, %v1006_v48 }
  0xed   : > { %1010 = vst [vmem:[%s143_s6] sm:$0x3] %v1007_v50  ;;  %v1509_v58 = vrot.slane %v1007_v50, 9 }
  0xee   : > { %v1027_v52 = vrot.slane %v1009_v51, 7 }
  0xf0   : > { %1029 = vst [vmem:[%s143_s6 + $0x4] sm:$0xc] %v1027_v52  ;;  %v997_v54 = vpop.f32.mrf.mxu0 }
  0xf1   : > { %v1002_v55 = vpop.f32.mrf.mxu1  ;;  %v1005_v56 = vadd.f32 %v997_v54, %v914_v53 }
  0xf3   : > { %v1008_v57 = vpack.c.bf16 %v1005_v56, %v1005_v56 }
  0xf5   : > { %v1018_v59 = vrot.slane %v1008_v57, 5  ;;  %v1510_v60 = vrot.slane %v1008_v57, 10 }
  0xf7   : > { %v1019_v61 = vsel %vm1015_vm8, %v1509_v58, %v1018_v59  ;;  %1025 = vst [vmem:[%s143_s6 + $0x4] sm:$0x3] %v1510_v60 }
  0xf8   : > { %1021 = vst [vmem:[%s143_s6] sm:$0xc] %v1019_v61 }
  0xf9 PF: > { %s12_s9 = sadd.s32 1, %s1618_s9  }
  0xfa   : > { %p9_p4 = scmp.ge.s32.totalorder %s12_s9, 4  }
  0xfc   :  { %11 = sbr.rel (!%p9_p4) target bundleno = 1 (0x1), region = 66 }

</bundles_post_ra>
